<compile_context>
chip_gen: v6e
topology: v6e:2x2x1
jax: 0.10.0
libtpu: 0.0.40
codegen_flags: <defaults>
</compile_context>

<pallas_src>
import jax
import jax.numpy as jnp
from jax.experimental import pallas as pl
from jax.experimental.pallas import tpu as pltpu

INP_DIM = 32 * 32 * 3   # 3072
H1 = 512
H2 = 512
OUT = 10
OUT_PAD = 128           # lane-dense padded output width


def _round_up(x, m):
    return ((x + m - 1) // m) * m


def _mlp_kernel(x_ref, w1_ref, b1_ref, w2_ref, b2_ref, w3_ref, b3_ref, o_ref):
    # x tile: (TB, 3072) in caller dtype.  Weights: bf16 (in, out).  Biases: f32 (1, out).
    x = x_ref[...].astype(jnp.bfloat16)                                  # bf16 MXU path
    h1 = jnp.dot(x, w1_ref[...], preferred_element_type=jnp.float32)     # (TB, 512) f32 acc
    h1 = jnp.maximum(h1 + b1_ref[...], 0.0)                              # f32 bias + ReLU (VPU)

    h2 = jnp.dot(h1.astype(jnp.bfloat16), w2_ref[...],
                 preferred_element_type=jnp.float32)                     # (TB, 512)
    h2 = jnp.maximum(h2 + b2_ref[...], 0.0)

    logits = jnp.dot(h2.astype(jnp.bfloat16), w3_ref[...],
                     preferred_element_type=jnp.float32)                 # (TB, 128)
    o_ref[...] = (logits + b3_ref[...]).astype(o_ref.dtype)              # lane-dense store


def _vmem_limit_bytes():
    """Per-generation VMEM budget: ~75% of physical, capped at 64 MiB."""
    try:
        cap = int(pltpu.get_tpu_info().vmem_capacity_bytes)
    except Exception:
        cap = 64 << 20   # assume the smallest (v7x per-TC) if unknown
    return min(64 << 20, (cap // 4) * 3)


def mlp_forward(x_nchw, kernel_params, *, tile_b=512, out_dtype=jnp.float32):
    """x_nchw: (B, 3, 32, 32) -> logits (B, 10).

    kernel_params: bf16 weights in (in, out) layout, f32 biases, with the last
    layer zero-padded to OUT_PAD lanes (see prepare_params).  The input dtype
    is passed through unchanged; feed bf16 if the producer can emit it."""
    w1, b1, w2, b2, w3p, b3p = kernel_params
    B = x_nchw.shape[0]
    # Flatten exactly like torch.nn.Flatten on NCHW: (B, C*H*W) in C,H,W order.
    x_flat = x_nchw.reshape(B, -1)
    assert x_flat.shape[1] == INP_DIM

    # Batch tiling (no wrapper-side padding; Pallas clips partial last blocks).
    tile_b = max(8, _round_up(tile_b, 8))
    if B > tile_b:
        tb = tile_b
    else:
        tb = B                               # single full-dim block; legal for any B
        if B >= 256:
            # >= 2 grid steps so v7x's two TensorCores both get work; keep M
            # tiles multiples of 128 for the MXU on v5e.
            tb = _round_up(pl.cdiv(B, 2), 128)
    grid = (pl.cdiv(B, tb),)

    x_spec = pl.BlockSpec((tb, INP_DIM), lambda i: (i, 0))
    out_spec = pl.BlockSpec((tb, OUT_PAD), lambda i: (i, 0))

    # Logical (unpadded) FLOPs; advisory only.
    flops = 2 * B * (INP_DIM * H1 + H1 * H2 + H2 * OUT)
    bytes_accessed = (
        x_flat.size * x_flat.dtype.itemsize               # input (dominant)
        + (w1.size + w2.size + w3p.size) * 2               # bf16 weights
        + (b1.size + b2.size + b3p.size) * 4               # f32 biases
        + B * OUT_PAD * jnp.dtype(out_dtype).itemsize      # output
    )

    def build(use_buffered):
        if use_buffered:
            # Constant block index -> the block never changes across the grid,
            # so a single buffer suffices (saves ~3.6 MiB VMEM vs double-buffer).
            resident = lambda shape: pl.BlockSpec(
                shape, lambda i: (0, 0), pipeline_mode=pl.Buffered(1))
        else:
            resident = lambda shape: pl.BlockSpec(shape, lambda i: (0, 0))
        return pl.pallas_call(
            _mlp_kernel,
            out_shape=jax.ShapeDtypeStruct((B, OUT_PAD), out_dtype),
            grid=grid,
            in_specs=[
                x_spec,
                resident((INP_DIM, H1)),
                resident((1, H1)),
                resident((H1, H2)),
                resident((1, H2)),
                resident((H2, OUT_PAD)),
                resident((1, OUT_PAD)),
            ],
            out_specs=out_spec,
            compiler_params=pltpu.CompilerParams(
                dimension_semantics=("parallel",),
                vmem_limit_bytes=_vmem_limit_bytes(),
            ),
            cost_estimate=pl.CostEstimate(
                flops=flops, transcendentals=0, bytes_accessed=bytes_accessed),
        )

    try:
        out = build(True)(x_flat, w1, b1, w2, b2, w3p, b3p)
    except Exception:
        # Fallback if this JAX version rejects Buffered(1) on resident specs.
        out = build(False)(x_flat, w1, b1, w2, b2, w3p, b3p)

    return out[:, :OUT]


def init_params(key):
    """Deterministic synthetic f32 parameters matching the torch module.

    Stored as (in, out) for x @ W; equivalent to torch's weight.T."""
    ks = jax.random.split(key, 6)
    scale = 0.02
    w1 = scale * jax.random.normal(ks[0], (INP_DIM, H1), jnp.float32)
    b1 = scale * jax.random.normal(ks[1], (1, H1), jnp.float32)
    w2 = scale * jax.random.normal(ks[2], (H1, H2), jnp.float32)
    b2 = scale * jax.random.normal(ks[3], (1, H2), jnp.float32)
    w3 = scale * jax.random.normal(ks[4], (H2, OUT), jnp.float32)
    b3 = scale * jax.random.normal(ks[5], (1, OUT), jnp.float32)
    return (w1, b1, w2, b2, w3, b3)


def prepare_params(params_f32):
    """Host-side conversion: bf16 weights, last layer zero-padded to OUT_PAD lanes."""
    w1, b1, w2, b2, w3, b3 = params_f32
    w3p = jnp.zeros((H2, OUT_PAD), jnp.float32).at[:, :OUT].set(w3)
    b3p = jnp.zeros((1, OUT_PAD), jnp.float32).at[:, :OUT].set(b3)
    return (
        w1.astype(jnp.bfloat16), b1.astype(jnp.float32),
        w2.astype(jnp.bfloat16), b2.astype(jnp.float32),
        w3p.astype(jnp.bfloat16), b3p.astype(jnp.float32),
    )


def _reference(x_nchw, params_f32):
    w1, b1, w2, b2, w3, b3 = params_f32
    x = x_nchw.reshape(x_nchw.shape[0], -1).astype(jnp.float32)
    h1 = jnp.maximum(x @ w1 + b1, 0.0)
    h2 = jnp.maximum(h1 @ w2 + b2, 0.0)
    return h2 @ w3 + b3


if __name__ == "__main__":
    key = jax.random.PRNGKey(0)
    k_x, k_p = jax.random.split(key)

    B = 8
    x = jax.random.normal(k_x, (B, 3, 32, 32), jnp.float32)  # NCHW, like torch
    params_f32 = init_params(k_p)
    kernel_params = prepare_params(params_f32)

    out = mlp_forward(x, kernel_params)
    out = jax.block_until_ready(out)

    ref = _reference(x, params_f32)
    assert out.shape == (B, OUT)
    # bf16 weights/activations with f32 accumulation vs f32 reference.
    assert jnp.allclose(out, ref, atol=2e-2, rtol=2e-2)

    print("KERNEL_OK")
</pallas_src>

<mosaic_0001>
module attributes {stable_mosaic.version = 11 : i64} {
  func.func @_mlp_kernel(%arg0: i32, %arg1: memref<8x3072xf32, #tpu.memory_space<vmem>>, %arg2: memref<3072x512xbf16, #tpu.memory_space<vmem>>, %arg3: memref<1x512xf32, #tpu.memory_space<vmem>>, %arg4: memref<512x512xbf16, #tpu.memory_space<vmem>>, %arg5: memref<1x512xf32, #tpu.memory_space<vmem>>, %arg6: memref<512x128xbf16, #tpu.memory_space<vmem>>, %arg7: memref<1x128xf32, #tpu.memory_space<vmem>>, %arg8: memref<8x128xf32, #tpu.memory_space<vmem>>) attributes {dimension_semantics = [#tpu.dimension_semantics<parallel>], iteration_bounds = array<i64: 1>, scalar_prefetch = 0 : i64, scratch_operands = 0 : i64, tpu.core_type = #tpu.core_type<tc>, window_params = [{transform_indices = @transform_0, window_bounds = array<i64: 8, 3072>}, {pipeline_mode = #tpu.pipeline_mode<synchronous>, transform_indices = @transform_1, window_bounds = array<i64: 3072, 512>}, {pipeline_mode = #tpu.pipeline_mode<synchronous>, transform_indices = @transform_2, window_bounds = array<i64: 1, 512>}, {pipeline_mode = #tpu.pipeline_mode<synchronous>, transform_indices = @transform_3, window_bounds = array<i64: 512, 512>}, {pipeline_mode = #tpu.pipeline_mode<synchronous>, transform_indices = @transform_4, window_bounds = array<i64: 1, 512>}, {pipeline_mode = #tpu.pipeline_mode<synchronous>, transform_indices = @transform_5, window_bounds = array<i64: 512, 128>}, {pipeline_mode = #tpu.pipeline_mode<synchronous>, transform_indices = @transform_6, window_bounds = array<i64: 1, 128>}, {transform_indices = @transform_7, window_bounds = array<i64: 8, 128>}]} {
    %c0 = arith.constant 0 : index
    %c0_0 = arith.constant 0 : index
    %0 = vector.load %arg1[%c0, %c0_0] : memref<8x3072xf32, #tpu.memory_space<vmem>>, vector<8x3072xf32>
    %1 = arith.truncf %0 : vector<8x3072xf32> to vector<8x3072xbf16>
    %c0_1 = arith.constant 0 : index
    %c0_2 = arith.constant 0 : index
    %2 = vector.load %arg2[%c0_1, %c0_2] : memref<3072x512xbf16, #tpu.memory_space<vmem>>, vector<3072x512xbf16>
    %cst = arith.constant dense<0.000000e+00> : vector<8x512xf32>
    %3 = tpu.matmul %1, %2, %cst {dimension_numbers = #tpu.dot_dimension_numbers<[1], [0], [0], [1], [0, 0, 1, 1], [], []>} : vector<8x3072xbf16>, vector<3072x512xbf16>, vector<8x512xf32> -> vector<8x512xf32>
    %c0_3 = arith.constant 0 : index
    %c0_4 = arith.constant 0 : index
    %4 = vector.load %arg3[%c0_3, %c0_4] : memref<1x512xf32, #tpu.memory_space<vmem>>, vector<1x512xf32>
    %5 = vector.broadcast %4 : vector<1x512xf32> to vector<8x512xf32>
    %6 = arith.addf %3, %5 : vector<8x512xf32>
    %cst_5 = arith.constant 0.000000e+00 : f32
    %7 = vector.broadcast %cst_5 : f32 to vector<8x512xf32>
    %8 = arith.maximumf %6, %7 : vector<8x512xf32>
    %9 = arith.truncf %8 : vector<8x512xf32> to vector<8x512xbf16>
    %c0_6 = arith.constant 0 : index
    %c0_7 = arith.constant 0 : index
    %10 = vector.load %arg4[%c0_6, %c0_7] : memref<512x512xbf16, #tpu.memory_space<vmem>>, vector<512x512xbf16>
    %cst_8 = arith.constant dense<0.000000e+00> : vector<8x512xf32>
    %11 = tpu.matmul %9, %10, %cst_8 {dimension_numbers = #tpu.dot_dimension_numbers<[1], [0], [0], [1], [0, 0, 1, 1], [], []>} : vector<8x512xbf16>, vector<512x512xbf16>, vector<8x512xf32> -> vector<8x512xf32>
    %c0_9 = arith.constant 0 : index
    %c0_10 = arith.constant 0 : index
    %12 = vector.load %arg5[%c0_9, %c0_10] : memref<1x512xf32, #tpu.memory_space<vmem>>, vector<1x512xf32>
    %13 = vector.broadcast %12 : vector<1x512xf32> to vector<8x512xf32>
    %14 = arith.addf %11, %13 : vector<8x512xf32>
    %cst_11 = arith.constant 0.000000e+00 : f32
    %15 = vector.broadcast %cst_11 : f32 to vector<8x512xf32>
    %16 = arith.maximumf %14, %15 : vector<8x512xf32>
    %17 = arith.truncf %16 : vector<8x512xf32> to vector<8x512xbf16>
    %c0_12 = arith.constant 0 : index
    %c0_13 = arith.constant 0 : index
    %18 = vector.load %arg6[%c0_12, %c0_13] : memref<512x128xbf16, #tpu.memory_space<vmem>>, vector<512x128xbf16>
    %cst_14 = arith.constant dense<0.000000e+00> : vector<8x128xf32>
    %19 = tpu.matmul %17, %18, %cst_14 {dimension_numbers = #tpu.dot_dimension_numbers<[1], [0], [0], [1], [0, 0, 1, 1], [], []>} : vector<8x512xbf16>, vector<512x128xbf16>, vector<8x128xf32> -> vector<8x128xf32>
    %c0_15 = arith.constant 0 : index
    %c0_16 = arith.constant 0 : index
    %20 = vector.load %arg7[%c0_15, %c0_16] : memref<1x128xf32, #tpu.memory_space<vmem>>, vector<1x128xf32>
    %21 = vector.broadcast %20 : vector<1x128xf32> to vector<8x128xf32>
    %22 = arith.addf %19, %21 : vector<8x128xf32>
    %c0_17 = arith.constant 0 : index
    %c0_18 = arith.constant 0 : index
    %23 = vector.load %arg8[%c0_17, %c0_18] : memref<8x128xf32, #tpu.memory_space<vmem>>, vector<8x128xf32>
    tpu.vector_store %arg8[%c0_17, %c0_18], %22 {strides = array<i32>} : memref<8x128xf32, #tpu.memory_space<vmem>>, vector<8x128xf32>,
    return
  }
  func.func @transform_0(%arg0: i32) -> (i32, i32) {
    %c0_i32 = arith.constant 0 : i32
    %c0_i32_0 = arith.constant 0 : i32
    return %arg0, %c0_i32 : i32, i32
  }
  func.func @transform_1(%arg0: i32) -> (i32, i32) {
    %c0_i32 = arith.constant 0 : i32
    %c0_i32_0 = arith.constant 0 : i32
    %c0_i32_1 = arith.constant 0 : i32
    return %c0_i32, %c0_i32_0 : i32, i32
  }
  func.func @transform_2(%arg0: i32) -> (i32, i32) {
    %c0_i32 = arith.constant 0 : i32
    %c0_i32_0 = arith.constant 0 : i32
    %c0_i32_1 = arith.constant 0 : i32
    return %c0_i32, %c0_i32_0 : i32, i32
  }
  func.func @transform_3(%arg0: i32) -> (i32, i32) {
    %c0_i32 = arith.constant 0 : i32
    %c0_i32_0 = arith.constant 0 : i32
    %c0_i32_1 = arith.constant 0 : i32
    return %c0_i32, %c0_i32_0 : i32, i32
  }
  func.func @transform_4(%arg0: i32) -> (i32, i32) {
    %c0_i32 = arith.constant 0 : i32
    %c0_i32_0 = arith.constant 0 : i32
    %c0_i32_1 = arith.constant 0 : i32
    return %c0_i32, %c0_i32_0 : i32, i32
  }
  func.func @transform_5(%arg0: i32) -> (i32, i32) {
    %c0_i32 = arith.constant 0 : i32
    %c0_i32_0 = arith.constant 0 : i32
    %c0_i32_1 = arith.constant 0 : i32
    return %c0_i32, %c0_i32_0 : i32, i32
  }
  func.func @transform_6(%arg0: i32) -> (i32, i32) {
    %c0_i32 = arith.constant 0 : i32
    %c0_i32_0 = arith.constant 0 : i32
    %c0_i32_1 = arith.constant 0 : i32
    return %c0_i32, %c0_i32_0 : i32, i32
  }
  func.func @transform_7(%arg0: i32) -> (i32, i32) {
    %c0_i32 = arith.constant 0 : i32
    %c0_i32_0 = arith.constant 0 : i32
    return %arg0, %c0_i32 : i32, i32
  }
}

module attributes {stable_mosaic.version = 11 : i64} {
  func.func @_mlp_kernel(%arg0: i32, %arg1: memref<8x3072xf32, #tpu.memory_space<vmem>>, %arg2: memref<3072x512xbf16, #tpu.memory_space<vmem>>, %arg3: memref<1x512xf32, #tpu.memory_space<vmem>>, %arg4: memref<512x512xbf16, #tpu.memory_space<vmem>>, %arg5: memref<1x512xf32, #tpu.memory_space<vmem>>, %arg6: memref<512x128xbf16, #tpu.memory_space<vmem>>, %arg7: memref<1x128xf32, #tpu.memory_space<vmem>>, %arg8: memref<8x128xf32, #tpu.memory_space<vmem>>) attributes {dimension_semantics = [#tpu.dimension_semantics<parallel>], iteration_bounds = array<i64: 1>, scalar_prefetch = 0 : i64, scratch_operands = 0 : i64, tpu.core_type = #tpu.core_type<tc>, window_params = [{transform_indices = @transform_0, window_bounds = array<i64: 8, 3072>}, {pipeline_mode = #tpu.pipeline_mode<synchronous>, transform_indices = @transform_1, window_bounds = array<i64: 3072, 512>}, {pipeline_mode = #tpu.pipeline_mode<synchronous>, transform_indices = @transform_2, window_bounds = array<i64: 1, 512>}, {pipeline_mode = #tpu.pipeline_mode<synchronous>, transform_indices = @transform_3, window_bounds = array<i64: 512, 512>}, {pipeline_mode = #tpu.pipeline_mode<synchronous>, transform_indices = @transform_4, window_bounds = array<i64: 1, 512>}, {pipeline_mode = #tpu.pipeline_mode<synchronous>, transform_indices = @transform_5, window_bounds = array<i64: 512, 128>}, {pipeline_mode = #tpu.pipeline_mode<synchronous>, transform_indices = @transform_6, window_bounds = array<i64: 1, 128>}, {transform_indices = @transform_7, window_bounds = array<i64: 8, 128>}]} {
    %c0 = arith.constant 0 : index
    %c0_0 = arith.constant 0 : index
    %0 = vector.load %arg1[%c0, %c0_0] : memref<8x3072xf32, #tpu.memory_space<vmem>>, vector<8x3072xf32>
    %1 = arith.truncf %0 : vector<8x3072xf32> to vector<8x3072xbf16>
    %c0_1 = arith.constant 0 : index
    %c0_2 = arith.constant 0 : index
    %2 = vector.load %arg2[%c0_1, %c0_2] : memref<3072x512xbf16, #tpu.memory_space<vmem>>, vector<3072x512xbf16>
    %cst = arith.constant dense<0.000000e+00> : vector<8x512xf32>
    %3 = tpu.matmul %1, %2, %cst {dimension_numbers = #tpu.dot_dimension_numbers<[1], [0], [0], [1], [0, 0, 1, 1], [], []>} : vector<8x3072xbf16>, vector<3072x512xbf16>, vector<8x512xf32> -> vector<8x512xf32>
    %c0_3 = arith.constant 0 : index
    %c0_4 = arith.constant 0 : index
    %4 = vector.load %arg3[%c0_3, %c0_4] : memref<1x512xf32, #tpu.memory_space<vmem>>, vector<1x512xf32>
    %5 = vector.broadcast %4 : vector<1x512xf32> to vector<8x512xf32>
    %6 = arith.addf %3, %5 : vector<8x512xf32>
    %cst_5 = arith.constant 0.000000e+00 : f32
    %7 = vector.broadcast %cst_5 : f32 to vector<8x512xf32>
    %8 = arith.maximumf %6, %7 : vector<8x512xf32>
    %9 = arith.truncf %8 : vector<8x512xf32> to vector<8x512xbf16>
    %c0_6 = arith.constant 0 : index
    %c0_7 = arith.constant 0 : index
    %10 = vector.load %arg4[%c0_6, %c0_7] : memref<512x512xbf16, #tpu.memory_space<vmem>>, vector<512x512xbf16>
    %cst_8 = arith.constant dense<0.000000e+00> : vector<8x512xf32>
    %11 = tpu.matmul %9, %10, %cst_8 {dimension_numbers = #tpu.dot_dimension_numbers<[1], [0], [0], [1], [0, 0, 1, 1], [], []>} : vector<8x512xbf16>, vector<512x512xbf16>, vector<8x512xf32> -> vector<8x512xf32>
    %c0_9 = arith.constant 0 : index
    %c0_10 = arith.constant 0 : index
    %12 = vector.load %arg5[%c0_9, %c0_10] : memref<1x512xf32, #tpu.memory_space<vmem>>, vector<1x512xf32>
    %13 = vector.broadcast %12 : vector<1x512xf32> to vector<8x512xf32>
    %14 = arith.addf %11, %13 : vector<8x512xf32>
    %cst_11 = arith.constant 0.000000e+00 : f32
    %15 = vector.broadcast %cst_11 : f32 to vector<8x512xf32>
    %16 = arith.maximumf %14, %15 : vector<8x512xf32>
    %17 = arith.truncf %16 : vector<8x512xf32> to vector<8x512xbf16>
    %c0_12 = arith.constant 0 : index
    %c0_13 = arith.constant 0 : index
    %18 = vector.load %arg6[%c0_12, %c0_13] : memref<512x128xbf16, #tpu.memory_space<vmem>>, vector<512x128xbf16>
    %cst_14 = arith.constant dense<0.000000e+00> : vector<8x128xf32>
    %19 = tpu.matmul %17, %18, %cst_14 {dimension_numbers = #tpu.dot_dimension_numbers<[1], [0], [0], [1], [0, 0, 1, 1], [], []>} : vector<8x512xbf16>, vector<512x128xbf16>, vector<8x128xf32> -> vector<8x128xf32>
    %c0_15 = arith.constant 0 : index
    %c0_16 = arith.constant 0 : index
    %20 = vector.load %arg7[%c0_15, %c0_16] : memref<1x128xf32, #tpu.memory_space<vmem>>, vector<1x128xf32>
    %21 = vector.broadcast %20 : vector<1x128xf32> to vector<8x128xf32>
    %22 = arith.addf %19, %21 : vector<8x128xf32>
    %c0_17 = arith.constant 0 : index
    %c0_18 = arith.constant 0 : index
    %23 = vector.load %arg8[%c0_17, %c0_18] : memref<8x128xf32, #tpu.memory_space<vmem>>, vector<8x128xf32>
    tpu.vector_store %arg8[%c0_17, %c0_18], %22 {strides = array<i32>} : memref<8x128xf32, #tpu.memory_space<vmem>>, vector<8x128xf32>,
    return
  }
  func.func @transform_0(%arg0: i32) -> (i32, i32) {
    %c0_i32 = arith.constant 0 : i32
    %c0_i32_0 = arith.constant 0 : i32
    return %arg0, %c0_i32 : i32, i32
  }
  func.func @transform_1(%arg0: i32) -> (i32, i32) {
    %c0_i32 = arith.constant 0 : i32
    %c0_i32_0 = arith.constant 0 : i32
    %c0_i32_1 = arith.constant 0 : i32
    return %c0_i32, %c0_i32_0 : i32, i32
  }
  func.func @transform_2(%arg0: i32) -> (i32, i32) {
    %c0_i32 = arith.constant 0 : i32
    %c0_i32_0 = arith.constant 0 : i32
    %c0_i32_1 = arith.constant 0 : i32
    return %c0_i32, %c0_i32_0 : i32, i32
  }
  func.func @transform_3(%arg0: i32) -> (i32, i32) {
    %c0_i32 = arith.constant 0 : i32
    %c0_i32_0 = arith.constant 0 : i32
    %c0_i32_1 = arith.constant 0 : i32
    return %c0_i32, %c0_i32_0 : i32, i32
  }
  func.func @transform_4(%arg0: i32) -> (i32, i32) {
    %c0_i32 = arith.constant 0 : i32
    %c0_i32_0 = arith.constant 0 : i32
    %c0_i32_1 = arith.constant 0 : i32
    return %c0_i32, %c0_i32_0 : i32, i32
  }
  func.func @transform_5(%arg0: i32) -> (i32, i32) {
    %c0_i32 = arith.constant 0 : i32
    %c0_i32_0 = arith.constant 0 : i32
    %c0_i32_1 = arith.constant 0 : i32
    return %c0_i32, %c0_i32_0 : i32, i32
  }
  func.func @transform_6(%arg0: i32) -> (i32, i32) {
    %c0_i32 = arith.constant 0 : i32
    %c0_i32_0 = arith.constant 0 : i32
    %c0_i32_1 = arith.constant 0 : i32
    return %c0_i32, %c0_i32_0 : i32, i32
  }
  func.func @transform_7(%arg0: i32) -> (i32, i32) {
    %c0_i32 = arith.constant 0 : i32
    %c0_i32_0 = arith.constant 0 : i32
    return %arg0, %c0_i32 : i32, i32
  }
}

</mosaic_0001>

<bundles_post_ra>
// kernel: tpu_custom_call.1
= control target key start
LH: loop header
LB: loop body
LE: loop exit
PB: predicated region body
PF: predicated region fallthrough
CT: control target
= control target key end

     0   :  { %12 = vsyncpa [#allocation3], 0  ;;  %s9907_s0 = inlined_call_operand.hbm [shape: f32[8,3072], index: 0, kind: input, shape index: {}]   ;;  %s9908_s1 = inlined_call_operand.hbm [shape: bf16[3072,512], index: 1, kind: input, shape index: {}]   ;;  %s9909_s2 = inlined_call_operand.hbm [shape: f32[1,512], index: 2, kind: input, shape index: {}]   ;;  %s9910_s3 = inlined_call_operand.hbm [shape: bf16[512,512], index: 3, kind: input, shape index: {}]   ;;  %s9911_s4 = inlined_call_operand.hbm [shape: f32[1,512], index: 4, kind: input, shape index: {}]   ;;  %s9912_s5 = inlined_call_operand.hbm [shape: bf16[512,128], index: 5, kind: input, shape index: {}]   ;;  %s9913_s6 = inlined_call_operand.hbm [shape: f32[1,128], index: 6, kind: input, shape index: {}]   ;;  %s9914_s7 = inlined_call_operand.hbm [shape: f32[8,128], index: 7, kind: output, shape index: {}]  }
   0x1   :  { %13 = vsyncpa [#allocation6], 0 }
   0x2   :  { %14 = vsyncpa [#allocation9], 0 }
   0x3   :  { %15 = vsyncpa [#allocation12], 0 }
   0x4   :  { %16 = vsyncpa [#allocation4], 0  ;;  %s9641_s24 = smov [#allocation5]  }
   0x5   :  { %s32_s25 = sshll.u32 %s9641_s24, 4  ;;  %s33_s25 = int_to_ptr.vmem [resolvable:$true] %s32_s25 }
   0x6   :  { %s9479_s26 = scalar_lea.vmem %s33_s25, 98304  ;;  %p9484_p1 = scmp.lt.s32.totalorder %s33_s25, %s33_s25 }
   0x7   :  { %p9480_p0 = scmp.ne.s32.totalorder %s33_s25, %s9479_s26  ;;  %p9485_p2 = scmp.lt.s32.totalorder %s9479_s26, %s9479_s26 }
   0x9   :  { %p9486_p3 = por %p9485_p2, %p9484_p1 }
   0xb   :  { %p9487_p4 = pnand %p9486_p3, %p9480_p0 }
   0xd   :  { %9490 = shalt.err (!%p9487_p4)
}
   0xe   :  { %s9642_s27 = smov 256   ;;  %s9643_s28 = smov 16  }
   0xf   :  { %38 = dma.hbm_to_vmem [thread:$0]  %s9908_s1, 98304, %s33_s25, [#allocation6], %s9642_s27, %s9642_s27, %s9643_s28  }
  0x10   :  { %s9644_s8 = smov [#allocation8]   ;;  %s9645_s10 = smov [#allocation11]  }
  0x11   :  { %s54_s9 = sshll.u32 %s9644_s8, 4  ;;  %s76_s11 = sshll.u32 %s9645_s10, 4  ;;  %s55_s9 = int_to_ptr.vmem [resolvable:$true] %s54_s9  ;;  %s77_s11 = int_to_ptr.vmem [resolvable:$true] %s76_s11 }
  0x12   :  { %s9499_s12 = scalar_lea.vmem %s55_s9, 16384  ;;  %p9504_p6 = scmp.lt.s32.totalorder %s55_s9, %s55_s9 }
  0x13   :  { %p9500_p5 = scmp.ne.s32.totalorder %s55_s9, %s9499_s12  ;;  %p9505_p7 = scmp.lt.s32.totalorder %s9499_s12, %s9499_s12 }
  0x15   :  { %p9506_p8 = por %p9505_p7, %p9504_p6 }
  0x17   :  { %p9507_p9 = pnand %p9506_p8, %p9500_p5 }
  0x19   :  { %9510 = shalt.err (!%p9507_p9)
}
  0x1a   :  { %60 = dma.hbm_to_vmem [thread:$0]  %s9910_s3, 16384, %s55_s9, [#allocation9], %s9642_s27, %s9642_s27, %s9643_s28  }
  0x1b   :  { %s9519_s15 = scalar_lea.vmem %s77_s11, 4096  ;;  %p9524_p11 = scmp.lt.s32.totalorder %s77_s11, %s77_s11 }
  0x1c   :  { %p9520_p10 = scmp.ne.s32.totalorder %s77_s11, %s9519_s15  ;;  %p9525_p12 = scmp.lt.s32.totalorder %s9519_s15, %s9519_s15 }
  0x1e   :  { %p9526_p13 = por %p9525_p12, %p9524_p11 }
  0x20   :  { %p9527_p0 = pnand %p9526_p13, %p9520_p10 }
  0x22   :  { %9530 = shalt.err (!%p9527_p0)
}
  0x23   :  { %s9646_s1 = smov 64   ;;  %s9647_s16 = smov 4  }
  0x24   :  { %82 = dma.hbm_to_vmem [thread:$0]  %s9912_s5, 4096, %s77_s11, [#allocation12], %s9646_s1, %s9646_s1, %s9647_s16  }
  0x25   :  { %s9648_s19 = smov [#allocation2]   ;;  %s9649_s21 = smov [#allocation7]  }
  0x26   :  { %s23_s20 = sshll.u32 %s9648_s19, 4  ;;  %s45_s22 = sshll.u32 %s9649_s21, 4  ;;  %s24_s20 = int_to_ptr.vmem [resolvable:$true] %s23_s20  ;;  %s46_s22 = int_to_ptr.vmem [resolvable:$true] %s45_s22 }
  0x27   :  { %s9539_s3 = scalar_lea.vmem %s24_s20, 3072  ;;  %p9544_p2 = scmp.lt.s32.totalorder %s24_s20, %s24_s20 }
  0x28   :  { %p9540_p1 = scmp.ne.s32.totalorder %s24_s20, %s9539_s3  ;;  %p9545_p3 = scmp.lt.s32.totalorder %s9539_s3, %s9539_s3 }
  0x2a   :  { %p9546_p4 = por %p9545_p3, %p9544_p2 }
  0x2c   :  { %p9547_p5 = pnand %p9546_p4, %p9540_p1 }
  0x2e   :  { %9550 = shalt.err (!%p9547_p5)
}
  0x2f   :  { %26 = dma.hbm_to_vmem [thread:$0]  %s9907_s0, 3072, %s24_s20, [#allocation3]  }
  0x30   :  { %s9559_s25 = scalar_lea.vmem %s46_s22, 64  ;;  %p9564_p7 = scmp.lt.s32.totalorder %s46_s22, %s46_s22 }
  0x31   :  { %p9560_p6 = scmp.ne.s32.totalorder %s46_s22, %s9559_s25  ;;  %p9565_p8 = scmp.lt.s32.totalorder %s9559_s25, %s9559_s25 }
  0x33   :  { %p9566_p9 = por %p9565_p8, %p9564_p7 }
  0x35   :  { %p9567_p10 = pnand %p9566_p9, %p9560_p6 }
  0x37   :  { %9570 = shalt.err (!%p9567_p10)
}
  0x38   :  { %48 = dma.hbm_to_vmem [thread:$0]  %s9909_s2, 64, %s46_s22, [#allocation6]  }
  0x39   :  { %s9650_s27 = smov [#allocation10]   ;;  %s9651_s29 = smov [#allocation13]  }
  0x3a   :  { %s67_s28 = sshll.u32 %s9650_s27, 4  ;;  %s89_s30 = sshll.u32 %s9651_s29, 4  ;;  %s68_s28 = int_to_ptr.vmem [resolvable:$true] %s67_s28  ;;  %s90_s30 = int_to_ptr.vmem [resolvable:$true] %s89_s30 }
  0x3b   :  { %s9579_s8 = scalar_lea.vmem %s68_s28, 64  ;;  %p9584_p12 = scmp.lt.s32.totalorder %s68_s28, %s68_s28 }
  0x3c   :  { %p9580_p11 = scmp.ne.s32.totalorder %s68_s28, %s9579_s8  ;;  %p9585_p13 = scmp.lt.s32.totalorder %s9579_s8, %s9579_s8 }
  0x3e   :  { %p9586_p0 = por %p9585_p13, %p9584_p12 }
  0x40   :  { %p9587_p1 = pnand %p9586_p0, %p9580_p11 }
  0x42   :  { %9590 = shalt.err (!%p9587_p1)
}
  0x43   :  { %70 = dma.hbm_to_vmem [thread:$0]  %s9911_s4, 64, %s68_s28, [#allocation9]  }
  0x44   :  { %s9599_s10 = scalar_lea.vmem %s90_s30, 16  ;;  %s9603_s2 = scalar_lea.vmem %s90_s30, 32 }
  0x45   :  { %p9600_p2 = scmp.ne.s32.totalorder %s90_s30, %s9599_s10  ;;  %p9604_p3 = scmp.lt.s32.totalorder %s90_s30, %s90_s30 }
  0x46   :  { %p9605_p4 = scmp.lt.s32.totalorder %s9603_s2, %s9599_s10 }
  0x48   :  { %p9606_p5 = por %p9605_p4, %p9604_p3 }
  0x4a   :  { %p9607_p6 = pnand %p9606_p5, %p9600_p2 }
  0x4c   :  { %9610 = shalt.err (!%p9607_p6)
}
  0x4d   :  { %92 = dma.hbm_to_vmem [thread:$0]  %s9913_s6, 16, %s90_s30, [#allocation12]  }
  0x4e   :  { %9631 = dma.done.wait [#allocation3], 3072  }
  0x4f   :  { %9632 = vsyncadd [#allocation3], 4294964224 }
  0x50   :  { %9633 = dma.done.wait [#allocation6], 98368  }
  0x51   :  { %9634 = vsyncadd [#allocation6], 4294868928 }
  0x52   :  { %9635 = dma.done.wait [#allocation9], 16448  }
  0x53   :  { %9636 = vsyncadd [#allocation9], 4294950848 }
  0x54   :  { %9637 = dma.done.wait [#allocation12], 4112  }
  0x55   :  { %9638 = vsyncadd [#allocation12], 4294963184  ;;  %v8094_v0 = vld [vmem:[#allocation5 + $0xe4] ss:$16 sps:$4 sm:$0xff]   ;;  %v8098_v2 = vld [vmem:[#allocation5 + $0xe0] ss:$16 sps:$4 sm:$0xff]  }
  0x56   :  { %v8096_v1 = vld [vmem:[#allocation5 + $0x2e4] ss:$16 sps:$4 sm:$0xff]   ;;  %4793 = vmatprep.subr.bf16.mxu0 %v8094_v0  ;;  %v8099_v3 = vld [vmem:[#allocation5 + $0x2e0] ss:$16 sps:$4 sm:$0xff]   ;;  %v116_v46 = vld [vmem:[#allocation2 + $0x8] sm:$0xff]  ;;  %s9652_s4 = smov [#allocation14]  }
  0x57   :  { %4834 = vmatprep.subr.bf16.mxu1 %v8096_v1  ;;  %v8100_v4 = vld [vmem:[#allocation5 + $0xc4] ss:$16 sps:$4 sm:$0xff]   ;;  %4794 = vmatpush1.bf16.msra.mxu0 %v8098_v2  ;;  %v8104_v6 = vld [vmem:[#allocation5 + $0xc0] ss:$16 sps:$4 sm:$0xff]   ;;  %v9714_v49 = vpack.c.bf16 %v116_v46, %v116_v46  ;;  %v118_v50 = vld [vmem:[#allocation2 + $0x18] sm:$0xff]  ;;  %s7097_s6 = sshll.u32 %s9652_s4, 4  ;;  %s7098_s6 = int_to_ptr.vmem [resolvable:$true] %s7097_s6 }
  0x58   :  { %4835 = vmatpush1.bf16.msra.mxu1 %v8099_v3  ;;  %v8102_v5 = vld [vmem:[#allocation5 + $0x2c4] ss:$16 sps:$4 sm:$0xff]   ;;  %4795 = vmatprep.subr.bf16.mxu0 %v8100_v4  ;;  %v8105_v7 = vld [vmem:[#allocation5 + $0x2c0] ss:$16 sps:$4 sm:$0xff]   ;;  %v9716_v52 = vpack.c.bf16 %v118_v50, %v118_v50  ;;  %s9611_s13 = scalar_lea.vmem %s7098_s6, 128  ;;  %p9616_p8 = scmp.lt.s32.totalorder %s7098_s6, %s7098_s6 }
  0x59   :  { %4836 = vmatprep.subr.bf16.mxu1 %v8102_v5  ;;  %v8106_v8 = vld [vmem:[#allocation5 + $0xa4] ss:$16 sps:$4 sm:$0xff]   ;;  %v8110_v10 = vld [vmem:[#allocation5 + $0xa0] ss:$16 sps:$4 sm:$0xff]   ;;  %4825 = vmatprep.mubr.bf16.mxu0 %v9714_v49  ;;  %p9612_p7 = scmp.ne.s32.totalorder %s7098_s6, %s9611_s13  ;;  %p9617_p9 = scmp.lt.s32.totalorder %s9611_s13, %s9611_s13 }
  0x5a   :  { %v8108_v9 = vld [vmem:[#allocation5 + $0x2a4] ss:$16 sps:$4 sm:$0xff]   ;;  %v8111_v11 = vld [vmem:[#allocation5 + $0x2a0] ss:$16 sps:$4 sm:$0xff]   ;;  %4866 = vmatprep.mubr.bf16.mxu1 %v9716_v52 }
  0x5b   :  { %4796 = vmatpush1.bf16.msra.mxu0 %v8104_v6  ;;  %v8112_v12 = vld [vmem:[#allocation5 + $0x84] ss:$16 sps:$4 sm:$0xff]   ;;  %v8116_v14 = vld [vmem:[#allocation5 + $0x80] ss:$16 sps:$4 sm:$0xff]   ;;  %p9618_p10 = por %p9617_p9, %p9616_p8 }
  0x5c   :  { %4837 = vmatpush1.bf16.msra.mxu1 %v8105_v7  ;;  %4797 = vmatprep.subr.bf16.mxu0 %v8106_v8  ;;  %v8114_v13 = vld [vmem:[#allocation5 + $0x284] ss:$16 sps:$4 sm:$0xff]   ;;  %v8117_v15 = vld [vmem:[#allocation5 + $0x280] ss:$16 sps:$4 sm:$0xff]  }
  0x5d   :  { %4838 = vmatprep.subr.bf16.mxu1 %v8108_v9  ;;  %v8118_v16 = vld [vmem:[#allocation5 + $0x64] ss:$16 sps:$4 sm:$0xff]   ;;  %v8122_v18 = vld [vmem:[#allocation5 + $0x60] ss:$16 sps:$4 sm:$0xff]   ;;  %p9619_p11 = pnand %p9618_p10, %p9612_p7 }
  0x5e   :  { %v8120_v17 = vld [vmem:[#allocation5 + $0x264] ss:$16 sps:$4 sm:$0xff]   ;;  %v8123_v19 = vld [vmem:[#allocation5 + $0x260] ss:$16 sps:$4 sm:$0xff]  }
  0x5f   :  { %4798 = vmatpush1.bf16.msra.mxu0 %v8110_v10  ;;  %v8124_v20 = vld [vmem:[#allocation5 + $0x44] ss:$16 sps:$4 sm:$0xff]   ;;  %v8128_v22 = vld [vmem:[#allocation5 + $0x40] ss:$16 sps:$4 sm:$0xff]  }
  0x60   :  { %4839 = vmatpush1.bf16.msra.mxu1 %v8111_v11  ;;  %4799 = vmatprep.subr.bf16.mxu0 %v8112_v12  ;;  %v8126_v21 = vld [vmem:[#allocation5 + $0x244] ss:$16 sps:$4 sm:$0xff]   ;;  %v8129_v23 = vld [vmem:[#allocation5 + $0x240] ss:$16 sps:$4 sm:$0xff]  }
  0x61   :  { %4840 = vmatprep.subr.bf16.mxu1 %v8114_v13  ;;  %v8130_v24 = vld [vmem:[#allocation5 + $0x24] ss:$16 sps:$4 sm:$0xff]   ;;  %v8134_v26 = vld [vmem:[#allocation5 + $0x20] ss:$16 sps:$4 sm:$0xff]  }
  0x62   :  { %v8132_v25 = vld [vmem:[#allocation5 + $0x224] ss:$16 sps:$4 sm:$0xff]   ;;  %v8135_v27 = vld [vmem:[#allocation5 + $0x220] ss:$16 sps:$4 sm:$0xff]  }
  0x63   :  { %4800 = vmatpush1.bf16.msra.mxu0 %v8116_v14  ;;  %v8136_v28 = vld [vmem:[#allocation5 + $0x4] ss:$16 sps:$4 sm:$0xff]   ;;  %v8140_v30 = vld [vmem:[#allocation5] ss:$16 sps:$4 sm:$0xff]  }
  0x64   :  { %4841 = vmatpush1.bf16.msra.mxu1 %v8117_v15  ;;  %4801 = vmatprep.subr.bf16.mxu0 %v8118_v16  ;;  %v8138_v29 = vld [vmem:[#allocation5 + $0x204] ss:$16 sps:$4 sm:$0xff]   ;;  %v8141_v31 = vld [vmem:[#allocation5 + $0x200] ss:$16 sps:$4 sm:$0xff]  }
  0x65   :  { %4842 = vmatprep.subr.bf16.mxu1 %v8120_v17  ;;  %v8142_v32 = vld [vmem:[#allocation5 + $0x1e4] ss:$16 sps:$4 sm:$0xff]   ;;  %v8146_v34 = vld [vmem:[#allocation5 + $0x1e0] ss:$16 sps:$4 sm:$0xff]  }
  0x66   :  { %v8144_v33 = vld [vmem:[#allocation5 + $0x3e4] ss:$16 sps:$4 sm:$0xff]   ;;  %v8147_v35 = vld [vmem:[#allocation5 + $0x3e0] ss:$16 sps:$4 sm:$0xff]  }
  0x67   :  { %4802 = vmatpush1.bf16.msra.mxu0 %v8122_v18  ;;  %v8148_v36 = vld [vmem:[#allocation5 + $0x1c4] ss:$16 sps:$4 sm:$0xff]   ;;  %v8152_v38 = vld [vmem:[#allocation5 + $0x1c0] ss:$16 sps:$4 sm:$0xff]  }
  0x68   :  { %4843 = vmatpush1.bf16.msra.mxu1 %v8123_v19  ;;  %4803 = vmatprep.subr.bf16.mxu0 %v8124_v20  ;;  %v8150_v37 = vld [vmem:[#allocation5 + $0x3c4] ss:$16 sps:$4 sm:$0xff]   ;;  %v8153_v39 = vld [vmem:[#allocation5 + $0x3c0] ss:$16 sps:$4 sm:$0xff]  }
  0x69   :  { %4844 = vmatprep.subr.bf16.mxu1 %v8126_v21  ;;  %v8154_v40 = vld [vmem:[#allocation5 + $0x1a4] ss:$16 sps:$4 sm:$0xff]   ;;  %v8158_v42 = vld [vmem:[#allocation5 + $0x1a0] ss:$16 sps:$4 sm:$0xff]  }
  0x6a   :  { %v8156_v41 = vld [vmem:[#allocation5 + $0x3a4] ss:$16 sps:$4 sm:$0xff]   ;;  %v8159_v43 = vld [vmem:[#allocation5 + $0x3a0] ss:$16 sps:$4 sm:$0xff]  }
  0x6b   :  { %4804 = vmatpush1.bf16.msra.mxu0 %v8128_v22  ;;  %v8160_v44 = vld [vmem:[#allocation5 + $0x184] ss:$16 sps:$4 sm:$0xff]   ;;  %v8164_v47 = vld [vmem:[#allocation5 + $0x180] ss:$16 sps:$4 sm:$0xff]  }
  0x6c   :  { %4845 = vmatpush1.bf16.msra.mxu1 %v8129_v23  ;;  %4805 = vmatprep.subr.bf16.mxu0 %v8130_v24  ;;  %v8162_v45 = vld [vmem:[#allocation5 + $0x384] ss:$16 sps:$4 sm:$0xff]   ;;  %v8165_v48 = vld [vmem:[#allocation5 + $0x380] ss:$16 sps:$4 sm:$0xff]  }
  0x6d   :  { %4846 = vmatprep.subr.bf16.mxu1 %v8132_v25  ;;  %v8166_v51 = vld [vmem:[#allocation5 + $0x164] ss:$16 sps:$4 sm:$0xff]   ;;  %v8170_v54 = vld [vmem:[#allocation5 + $0x160] ss:$16 sps:$4 sm:$0xff]  }
  0x6e   :  { %v8168_v53 = vld [vmem:[#allocation5 + $0x364] ss:$16 sps:$4 sm:$0xff]   ;;  %v8171_v55 = vld [vmem:[#allocation5 + $0x360] ss:$16 sps:$4 sm:$0xff]  }
  0x6f   :  { %4806 = vmatpush1.bf16.msra.mxu0 %v8134_v26  ;;  %v8172_v56 = vld [vmem:[#allocation5 + $0x144] ss:$16 sps:$4 sm:$0xff]   ;;  %v8176_v58 = vld [vmem:[#allocation5 + $0x140] ss:$16 sps:$4 sm:$0xff]  }
  0x70   :  { %4847 = vmatpush1.bf16.msra.mxu1 %v8135_v27  ;;  %4807 = vmatprep.subr.bf16.mxu0 %v8136_v28  ;;  %v8174_v57 = vld [vmem:[#allocation5 + $0x344] ss:$16 sps:$4 sm:$0xff]   ;;  %v8177_v59 = vld [vmem:[#allocation5 + $0x340] ss:$16 sps:$4 sm:$0xff]  }
  0x71   :  { %4848 = vmatprep.subr.bf16.mxu1 %v8138_v29  ;;  %v8178_v60 = vld [vmem:[#allocation5 + $0x124] ss:$16 sps:$4 sm:$0xff]   ;;  %v8182_v62 = vld [vmem:[#allocation5 + $0x120] ss:$16 sps:$4 sm:$0xff]  }
  0x72   :  { %v8180_v61 = vld [vmem:[#allocation5 + $0x324] ss:$16 sps:$4 sm:$0xff]   ;;  %v8183_v63 = vld [vmem:[#allocation5 + $0x320] ss:$16 sps:$4 sm:$0xff]  }
  0x73   :  { %4808 = vmatpush1.bf16.msra.mxu0 %v8140_v30  ;;  %v8184_v0 = vld [vmem:[#allocation5 + $0x104] ss:$16 sps:$4 sm:$0xff]   ;;  %v8188_v2 = vld [vmem:[#allocation5 + $0x100] ss:$16 sps:$4 sm:$0xff]  }
  0x74   :  { %4849 = vmatpush1.bf16.msra.mxu1 %v8141_v31  ;;  %4809 = vmatprep.subr.bf16.mxu0 %v8142_v32  ;;  %v8186_v1 = vld [vmem:[#allocation5 + $0x304] ss:$16 sps:$4 sm:$0xff]   ;;  %v8189_v3 = vld [vmem:[#allocation5 + $0x300] ss:$16 sps:$4 sm:$0xff]  }
  0x75   :  { %4850 = vmatprep.subr.bf16.mxu1 %v8144_v33  ;;  %v115_v4 = vld [vmem:[#allocation2] sm:$0xff]  ;;  %v117_v5 = vld [vmem:[#allocation2 + $0x10] sm:$0xff] }
  0x76   :  { %v8192_v6 = vld [vmem:[#allocation5 + $0x4e4] ss:$16 sps:$4 sm:$0xff]   ;;  %v9720_v8 = vpack.c.bf16 %v115_v4, %v115_v4  ;;  %v9722_v9 = vpack.c.bf16 %v117_v5, %v117_v5  ;;  %v8190_v10 = vld [vmem:[#allocation5 + $0x4e0] ss:$16 sps:$4 sm:$0xff]  }
  0x77   :  { %4810 = vmatpush2.bf16.msra.mxu0 %v8146_v34  ;;  %v8195_v7 = vld [vmem:[#allocation5 + $0x6e4] ss:$16 sps:$4 sm:$0xff]   ;;  %v8193_v11 = vld [vmem:[#allocation5 + $0x6e0] ss:$16 sps:$4 sm:$0xff]   ;;  %v120_v34 = vld [vmem:[#allocation2 + $0x28] sm:$0xff] }
  0x78   :  { %4851 = vmatpush2.bf16.msra.mxu1 %v8147_v35  ;;  %4811 = vmatprep.subr.bf16.mxu0 %v8148_v36  ;;  %v8198_v12 = vld [vmem:[#allocation5 + $0x4c4] ss:$16 sps:$4 sm:$0xff]   ;;  %v8196_v14 = vld [vmem:[#allocation5 + $0x4c0] ss:$16 sps:$4 sm:$0xff]  }
  0x79   :  { %4852 = vmatprep.subr.bf16.mxu1 %v8150_v37  ;;  %v8201_v13 = vld [vmem:[#allocation5 + $0x6c4] ss:$16 sps:$4 sm:$0xff]   ;;  %v8199_v15 = vld [vmem:[#allocation5 + $0x6c0] ss:$16 sps:$4 sm:$0xff]   ;;  %v9726_v37 = vpack.c.bf16 %v120_v34, %v120_v34 }
  0x7a   :  { %v8204_v16 = vld [vmem:[#allocation5 + $0x4a4] ss:$16 sps:$4 sm:$0xff]   ;;  %v8202_v18 = vld [vmem:[#allocation5 + $0x4a0] ss:$16 sps:$4 sm:$0xff]  }
  0x7b   :  { %4812 = vmatpush2.bf16.msra.mxu0 %v8152_v38  ;;  %v8207_v17 = vld [vmem:[#allocation5 + $0x6a4] ss:$16 sps:$4 sm:$0xff]   ;;  %v8205_v19 = vld [vmem:[#allocation5 + $0x6a0] ss:$16 sps:$4 sm:$0xff]   ;;  %v122_v38 = vld [vmem:[#allocation2 + $0x38] sm:$0xff] }
  0x7c   :  { %4853 = vmatpush2.bf16.msra.mxu1 %v8153_v39  ;;  %4813 = vmatprep.subr.bf16.mxu0 %v8154_v40  ;;  %v8210_v20 = vld [vmem:[#allocation5 + $0x484] ss:$16 sps:$4 sm:$0xff]   ;;  %v8208_v22 = vld [vmem:[#allocation5 + $0x480] ss:$16 sps:$4 sm:$0xff]   ;;  %v9728_v40 = vpack.c.bf16 %v122_v38, %v122_v38 }
  0x7d   :  { %4854 = vmatprep.subr.bf16.mxu1 %v8156_v41  ;;  %v8213_v21 = vld [vmem:[#allocation5 + $0x684] ss:$16 sps:$4 sm:$0xff]   ;;  %v8211_v23 = vld [vmem:[#allocation5 + $0x680] ss:$16 sps:$4 sm:$0xff]  }
  0x7e   :  { %v8216_v24 = vld [vmem:[#allocation5 + $0x464] ss:$16 sps:$4 sm:$0xff]   ;;  %v8214_v26 = vld [vmem:[#allocation5 + $0x460] ss:$16 sps:$4 sm:$0xff]  }
  0x7f   :  { %4814 = vmatpush2.bf16.msra.mxu0 %v8158_v42  ;;  %v8219_v25 = vld [vmem:[#allocation5 + $0x664] ss:$16 sps:$4 sm:$0xff]   ;;  %v8217_v27 = vld [vmem:[#allocation5 + $0x660] ss:$16 sps:$4 sm:$0xff]  }
  0x80   :  { %4855 = vmatpush2.bf16.msra.mxu1 %v8159_v43  ;;  %4815 = vmatprep.subr.bf16.mxu0 %v8160_v44  ;;  %v8222_v28 = vld [vmem:[#allocation5 + $0x444] ss:$16 sps:$4 sm:$0xff]   ;;  %v8220_v30 = vld [vmem:[#allocation5 + $0x440] ss:$16 sps:$4 sm:$0xff]  }
  0x81   :  { %4856 = vmatprep.subr.bf16.mxu1 %v8162_v45  ;;  %v8225_v29 = vld [vmem:[#allocation5 + $0x644] ss:$16 sps:$4 sm:$0xff]   ;;  %v8223_v31 = vld [vmem:[#allocation5 + $0x640] ss:$16 sps:$4 sm:$0xff]  }
  0x82   :  { %v8228_v32 = vld [vmem:[#allocation5 + $0x424] ss:$16 sps:$4 sm:$0xff]   ;;  %v8226_v35 = vld [vmem:[#allocation5 + $0x420] ss:$16 sps:$4 sm:$0xff]  }
  0x83   :  { %4816 = vmatpush2.bf16.msra.mxu0 %v8164_v47  ;;  %v8231_v33 = vld [vmem:[#allocation5 + $0x624] ss:$16 sps:$4 sm:$0xff]   ;;  %v8229_v36 = vld [vmem:[#allocation5 + $0x620] ss:$16 sps:$4 sm:$0xff]  }
  0x84   :  { %4857 = vmatpush2.bf16.msra.mxu1 %v8165_v48  ;;  %4817 = vmatprep.subr.bf16.mxu0 %v8166_v51  ;;  %v8234_v39 = vld [vmem:[#allocation5 + $0x404] ss:$16 sps:$4 sm:$0xff]   ;;  %v8232_v42 = vld [vmem:[#allocation5 + $0x400] ss:$16 sps:$4 sm:$0xff]  }
  0x85   :  { %4858 = vmatprep.subr.bf16.mxu1 %v8168_v53  ;;  %v8237_v41 = vld [vmem:[#allocation5 + $0x604] ss:$16 sps:$4 sm:$0xff]   ;;  %v8235_v43 = vld [vmem:[#allocation5 + $0x600] ss:$16 sps:$4 sm:$0xff]  }
  0x86   :  { %v8240_v44 = vld [vmem:[#allocation5 + $0x5e4] ss:$16 sps:$4 sm:$0xff]   ;;  %v8238_v46 = vld [vmem:[#allocation5 + $0x5e0] ss:$16 sps:$4 sm:$0xff]  }
  0x87   :  { %4818 = vmatpush2.bf16.msra.mxu0 %v8170_v54  ;;  %v8243_v45 = vld [vmem:[#allocation5 + $0x7e4] ss:$16 sps:$4 sm:$0xff]   ;;  %v8241_v47 = vld [vmem:[#allocation5 + $0x7e0] ss:$16 sps:$4 sm:$0xff]  }
  0x88   :  { %4859 = vmatpush2.bf16.msra.mxu1 %v8171_v55  ;;  %4819 = vmatprep.subr.bf16.mxu0 %v8172_v56  ;;  %v8246_v48 = vld [vmem:[#allocation5 + $0x5c4] ss:$16 sps:$4 sm:$0xff]   ;;  %v8244_v51 = vld [vmem:[#allocation5 + $0x5c0] ss:$16 sps:$4 sm:$0xff]  }
  0x89   :  { %4860 = vmatprep.subr.bf16.mxu1 %v8174_v57  ;;  %v8249_v50 = vld [vmem:[#allocation5 + $0x7c4] ss:$16 sps:$4 sm:$0xff]   ;;  %v8247_v53 = vld [vmem:[#allocation5 + $0x7c0] ss:$16 sps:$4 sm:$0xff]  }
  0x8a   :  { %v8252_v54 = vld [vmem:[#allocation5 + $0x5a4] ss:$16 sps:$4 sm:$0xff]   ;;  %v8250_v56 = vld [vmem:[#allocation5 + $0x5a0] ss:$16 sps:$4 sm:$0xff]  }
  0x8b   :  { %4820 = vmatpush2.bf16.msra.mxu0 %v8176_v58  ;;  %v8255_v55 = vld [vmem:[#allocation5 + $0x7a4] ss:$16 sps:$4 sm:$0xff]   ;;  %v8253_v57 = vld [vmem:[#allocation5 + $0x7a0] ss:$16 sps:$4 sm:$0xff]  }
  0x8c   :  { %4861 = vmatpush2.bf16.msra.mxu1 %v8177_v59  ;;  %4821 = vmatprep.subr.bf16.mxu0 %v8178_v60  ;;  %v8258_v58 = vld [vmem:[#allocation5 + $0x584] ss:$16 sps:$4 sm:$0xff]   ;;  %v8256_v60 = vld [vmem:[#allocation5 + $0x580] ss:$16 sps:$4 sm:$0xff]  }
  0x8d   :  { %4862 = vmatprep.subr.bf16.mxu1 %v8180_v61  ;;  %v8261_v59 = vld [vmem:[#allocation5 + $0x784] ss:$16 sps:$4 sm:$0xff]   ;;  %v8259_v61 = vld [vmem:[#allocation5 + $0x780] ss:$16 sps:$4 sm:$0xff]  }
  0x8e   :  { %v8268_v4 = vld [vmem:[#allocation5 + $0x540] ss:$16 sps:$4 sm:$0xff]   ;;  %v8309_v38 = vld [vmem:[#allocation5 + $0xa84] ss:$16 sps:$4 sm:$0xff]  }
  0x8f   :  { %4822 = vmatpush2.bf16.msra.mxu0 %v8182_v62  ;;  %v8264_v62 = vld [vmem:[#allocation5 + $0x564] ss:$16 sps:$4 sm:$0xff]   ;;  %v8271_v5 = vld [vmem:[#allocation5 + $0x740] ss:$16 sps:$4 sm:$0xff]  }
  0x90   :  { %4863 = vmatpush2.bf16.msra.mxu1 %v8183_v63  ;;  %4823 = vmatprep.subr.bf16.mxu0 %v8184_v0  ;;  %v8267_v63 = vld [vmem:[#allocation5 + $0x764] ss:$16 sps:$4 sm:$0xff]   ;;  %v8262_v0 = vld [vmem:[#allocation5 + $0x560] ss:$16 sps:$4 sm:$0xff]  }
  0x91   :  { %4864 = vmatprep.subr.bf16.mxu1 %v8186_v1  ;;  %v8265_v1 = vld [vmem:[#allocation5 + $0x760] ss:$16 sps:$4 sm:$0xff]  }
  0x92   :  { %v8298_v34 = vld [vmem:[#allocation5 + $0x8a0] ss:$16 sps:$4 sm:$0xff]  }
  0x93   :  { %4824 = vmatpush2.bf16.msra.mxu0 %v8188_v2  ;;  %v8270_v2 = vld [vmem:[#allocation5 + $0x544] ss:$16 sps:$4 sm:$0xff]  }
  0x94   :  { %4865 = vmatpush2.bf16.msra.mxu1 %v8189_v3  ;;  %4875 = vmatprep.subr.bf16.mxu0 %v8192_v6  ;;  %v8273_v3 = vld [vmem:[#allocation5 + $0x744] ss:$16 sps:$4 sm:$0xff]  }
  0x95   :  { %4916 = vmatprep.subr.bf16.mxu1 %v8195_v7  ;;  %v8276_v6 = vld [vmem:[#allocation5 + $0x524] ss:$16 sps:$4 sm:$0xff]  }
  0x96   :  { %4826 = vmatmul.mubr.bf16.vlgmr.msra.gmra.mxu0 %v9720_v8  ;;  %v8279_v7 = vld [vmem:[#allocation5 + $0x724] ss:$16 sps:$4 sm:$0xff]  }
  0x97   :  { %4867 = vmatmul.mubr.bf16.vlgmr.msra.gmra.mxu1 %v9722_v9  ;;  %4876 = vmatpush1.bf16.msra.mxu0 %v8190_v10  ;;  %v8274_v10 = vld [vmem:[#allocation5 + $0x520] ss:$16 sps:$4 sm:$0xff]  }
  0x98   :  { %4917 = vmatpush1.bf16.msra.mxu1 %v8193_v11  ;;  %4877 = vmatprep.subr.bf16.mxu0 %v8198_v12  ;;  %v8277_v11 = vld [vmem:[#allocation5 + $0x720] ss:$16 sps:$4 sm:$0xff]   ;;  %v8282_v12 = vld [vmem:[#allocation5 + $0x504] ss:$16 sps:$4 sm:$0xff]  }
  0x99   :  { %4918 = vmatprep.subr.bf16.mxu1 %v8201_v13  ;;  %4907 = vmatprep.mubr.bf16.mxu0 %v9726_v37  ;;  %v8285_v13 = vld [vmem:[#allocation5 + $0x704] ss:$16 sps:$4 sm:$0xff]  }
  0x9a   :  { %4948 = vmatprep.mubr.bf16.mxu1 %v9728_v40 }
  0x9b   :  { %4878 = vmatpush1.bf16.msra.mxu0 %v8196_v14  ;;  %v8280_v14 = vld [vmem:[#allocation5 + $0x500] ss:$16 sps:$4 sm:$0xff]  }
  0x9c   :  { %4919 = vmatpush1.bf16.msra.mxu1 %v8199_v15  ;;  %4879 = vmatprep.subr.bf16.mxu0 %v8204_v16  ;;  %v8283_v15 = vld [vmem:[#allocation5 + $0x700] ss:$16 sps:$4 sm:$0xff]  }
  0x9d   :  { %4920 = vmatprep.subr.bf16.mxu1 %v8207_v17  ;;  %v119_v16 = vld [vmem:[#allocation2 + $0x20] sm:$0xff]  ;;  %v121_v17 = vld [vmem:[#allocation2 + $0x30] sm:$0xff] }
  0x9f   :  { %4880 = vmatpush1.bf16.msra.mxu0 %v8202_v18  ;;  %v8288_v18 = vld [vmem:[#allocation5 + $0x8e4] ss:$16 sps:$4 sm:$0xff]  }
  0xa0   :  { %4921 = vmatpush1.bf16.msra.mxu1 %v8205_v19  ;;  %4881 = vmatprep.subr.bf16.mxu0 %v8210_v20  ;;  %v8291_v19 = vld [vmem:[#allocation5 + $0xae4] ss:$16 sps:$4 sm:$0xff]   ;;  %v9732_v20 = vpack.c.bf16 %v119_v16, %v119_v16  ;;  %v8358_v16 = vld [vmem:[#allocation5 + $0x960] ss:$16 sps:$4 sm:$0xff]  }
  0xa1   :  { %4922 = vmatprep.subr.bf16.mxu1 %v8213_v21  ;;  %v9734_v21 = vpack.c.bf16 %v121_v17, %v121_v17  ;;  %v8361_v17 = vld [vmem:[#allocation5 + $0xb60] ss:$16 sps:$4 sm:$0xff]  }
  0xa3   :  { %4882 = vmatpush1.bf16.msra.mxu0 %v8208_v22  ;;  %v8286_v22 = vld [vmem:[#allocation5 + $0x8e0] ss:$16 sps:$4 sm:$0xff]  }
  0xa4   :  { %4923 = vmatpush1.bf16.msra.mxu1 %v8211_v23  ;;  %4883 = vmatprep.subr.bf16.mxu0 %v8216_v24  ;;  %v8289_v23 = vld [vmem:[#allocation5 + $0xae0] ss:$16 sps:$4 sm:$0xff]   ;;  %v8294_v24 = vld [vmem:[#allocation5 + $0x8c4] ss:$16 sps:$4 sm:$0xff]  }
  0xa5   :  { %4924 = vmatprep.subr.bf16.mxu1 %v8219_v25  ;;  %v8297_v25 = vld [vmem:[#allocation5 + $0xac4] ss:$16 sps:$4 sm:$0xff]  }
  0xa7   :  { %4884 = vmatpush1.bf16.msra.mxu0 %v8214_v26  ;;  %v124_v26 = vld [vmem:[#allocation2 + $0x48] sm:$0xff] }
  0xa8   :  { %4925 = vmatpush1.bf16.msra.mxu1 %v8217_v27  ;;  %4885 = vmatprep.subr.bf16.mxu0 %v8222_v28  ;;  %v8292_v27 = vld [vmem:[#allocation5 + $0x8c0] ss:$16 sps:$4 sm:$0xff]  }
  0xa9   :  { %4926 = vmatprep.subr.bf16.mxu1 %v8225_v29  ;;  %v8295_v28 = vld [vmem:[#allocation5 + $0xac0] ss:$16 sps:$4 sm:$0xff]   ;;  %v9738_v29 = vpack.c.bf16 %v124_v26, %v124_v26 }
  0xaa   :  { %v8370_v26 = vld [vmem:[#allocation5 + $0x920] ss:$16 sps:$4 sm:$0xff]  }
  0xab   :  { %4886 = vmatpush1.bf16.msra.mxu0 %v8220_v30  ;;  %v126_v30 = vld [vmem:[#allocation2 + $0x58] sm:$0xff] }
  0xac   :  { %4927 = vmatpush1.bf16.msra.mxu1 %v8223_v31  ;;  %4887 = vmatprep.subr.bf16.mxu0 %v8228_v32  ;;  %v8300_v31 = vld [vmem:[#allocation5 + $0x8a4] ss:$16 sps:$4 sm:$0xff]   ;;  %v9740_v32 = vpack.c.bf16 %v126_v30, %v126_v30 }
  0xad   :  { %4928 = vmatprep.subr.bf16.mxu1 %v8231_v33  ;;  %v8303_v33 = vld [vmem:[#allocation5 + $0xaa4] ss:$16 sps:$4 sm:$0xff]  }
  0xae   :  { %v8381_v30 = vld [vmem:[#allocation5 + $0xb04] ss:$16 sps:$4 sm:$0xff]  }
  0xaf   :  { %4888 = vmatpush1.bf16.msra.mxu0 %v8226_v35  ;;  %v8301_v35 = vld [vmem:[#allocation5 + $0xaa0] ss:$16 sps:$4 sm:$0xff]  }
  0xb0   :  { %4929 = vmatpush1.bf16.msra.mxu1 %v8229_v36  ;;  %4889 = vmatprep.subr.bf16.mxu0 %v8234_v39  ;;  %v8306_v36 = vld [vmem:[#allocation5 + $0x884] ss:$16 sps:$4 sm:$0xff]   ;;  %v8304_v39 = vld [vmem:[#allocation5 + $0x880] ss:$16 sps:$4 sm:$0xff]  }
  0xb1   :  { %4930 = vmatprep.subr.bf16.mxu1 %v8237_v41  ;;  %v8307_v41 = vld [vmem:[#allocation5 + $0xa80] ss:$16 sps:$4 sm:$0xff]  }
  0xb3   :  { %4890 = vmatpush1.bf16.msra.mxu0 %v8232_v42  ;;  %v8312_v42 = vld [vmem:[#allocation5 + $0x864] ss:$16 sps:$4 sm:$0xff]  }
  0xb4   :  { %4931 = vmatpush1.bf16.msra.mxu1 %v8235_v43  ;;  %4891 = vmatprep.subr.bf16.mxu0 %v8240_v44  ;;  %v8315_v43 = vld [vmem:[#allocation5 + $0xa64] ss:$16 sps:$4 sm:$0xff]   ;;  %v8310_v44 = vld [vmem:[#allocation5 + $0x860] ss:$16 sps:$4 sm:$0xff]  }
  0xb5   :  { %4932 = vmatprep.subr.bf16.mxu1 %v8243_v45  ;;  %v8313_v45 = vld [vmem:[#allocation5 + $0xa60] ss:$16 sps:$4 sm:$0xff]  }
  0xb7   :  { %4892 = vmatpush2.bf16.msra.mxu0 %v8238_v46  ;;  %v8318_v46 = vld [vmem:[#allocation5 + $0x844] ss:$16 sps:$4 sm:$0xff]  }
  0xb8   :  { %4933 = vmatpush2.bf16.msra.mxu1 %v8241_v47  ;;  %4893 = vmatprep.subr.bf16.mxu0 %v8246_v48  ;;  %v8321_v47 = vld [vmem:[#allocation5 + $0xa44] ss:$16 sps:$4 sm:$0xff]   ;;  %v8316_v48 = vld [vmem:[#allocation5 + $0x840] ss:$16 sps:$4 sm:$0xff]  }
  0xb9   :  { %4934 = vmatprep.subr.bf16.mxu1 %v8249_v50  ;;  %v8319_v50 = vld [vmem:[#allocation5 + $0xa40] ss:$16 sps:$4 sm:$0xff]  }
  0xbb   :  { %4894 = vmatpush2.bf16.msra.mxu0 %v8244_v51  ;;  %v8324_v51 = vld [vmem:[#allocation5 + $0x824] ss:$16 sps:$4 sm:$0xff]  }
  0xbc   :  { %4935 = vmatpush2.bf16.msra.mxu1 %v8247_v53  ;;  %4895 = vmatprep.subr.bf16.mxu0 %v8252_v54  ;;  %v8327_v53 = vld [vmem:[#allocation5 + $0xa24] ss:$16 sps:$4 sm:$0xff]   ;;  %v8322_v54 = vld [vmem:[#allocation5 + $0x820] ss:$16 sps:$4 sm:$0xff]  }
  0xbd   :  { %4936 = vmatprep.subr.bf16.mxu1 %v8255_v55  ;;  %v8325_v55 = vld [vmem:[#allocation5 + $0xa20] ss:$16 sps:$4 sm:$0xff]  }
  0xbf   :  { %4896 = vmatpush2.bf16.msra.mxu0 %v8250_v56  ;;  %v8330_v56 = vld [vmem:[#allocation5 + $0x804] ss:$16 sps:$4 sm:$0xff]  }
  0xc0   :  { %4937 = vmatpush2.bf16.msra.mxu1 %v8253_v57  ;;  %4897 = vmatprep.subr.bf16.mxu0 %v8258_v58  ;;  %v8333_v57 = vld [vmem:[#allocation5 + $0xa04] ss:$16 sps:$4 sm:$0xff]   ;;  %v8328_v58 = vld [vmem:[#allocation5 + $0x800] ss:$16 sps:$4 sm:$0xff]  }
  0xc1   :  { %4938 = vmatprep.subr.bf16.mxu1 %v8261_v59  ;;  %v8331_v59 = vld [vmem:[#allocation5 + $0xa00] ss:$16 sps:$4 sm:$0xff]  }
  0xc3   :  { %4898 = vmatpush2.bf16.msra.mxu0 %v8256_v60  ;;  %v8336_v60 = vld [vmem:[#allocation5 + $0x9e4] ss:$16 sps:$4 sm:$0xff]  }
  0xc4   :  { %4939 = vmatpush2.bf16.msra.mxu1 %v8259_v61  ;;  %4899 = vmatprep.subr.bf16.mxu0 %v8264_v62  ;;  %v8339_v61 = vld [vmem:[#allocation5 + $0xbe4] ss:$16 sps:$4 sm:$0xff]   ;;  %v8334_v62 = vld [vmem:[#allocation5 + $0x9e0] ss:$16 sps:$4 sm:$0xff]  }
  0xc5   :  { %4940 = vmatprep.subr.bf16.mxu1 %v8267_v63  ;;  %v8337_v63 = vld [vmem:[#allocation5 + $0xbe0] ss:$16 sps:$4 sm:$0xff]  }
  0xc7   :  { %4900 = vmatpush2.bf16.msra.mxu0 %v8262_v0  ;;  %v8342_v0 = vld [vmem:[#allocation5 + $0x9c4] ss:$16 sps:$4 sm:$0xff]  }
  0xc8   :  { %4941 = vmatpush2.bf16.msra.mxu1 %v8265_v1  ;;  %4901 = vmatprep.subr.bf16.mxu0 %v8270_v2  ;;  %v8345_v1 = vld [vmem:[#allocation5 + $0xbc4] ss:$16 sps:$4 sm:$0xff]   ;;  %v8340_v2 = vld [vmem:[#allocation5 + $0x9c0] ss:$16 sps:$4 sm:$0xff]  }
  0xc9   :  { %4942 = vmatprep.subr.bf16.mxu1 %v8273_v3  ;;  %v8343_v3 = vld [vmem:[#allocation5 + $0xbc0] ss:$16 sps:$4 sm:$0xff]  }
  0xcb   :  { %4902 = vmatpush2.bf16.msra.mxu0 %v8268_v4  ;;  %v8348_v4 = vld [vmem:[#allocation5 + $0x9a4] ss:$16 sps:$4 sm:$0xff]  }
  0xcc   :  { %4943 = vmatpush2.bf16.msra.mxu1 %v8271_v5  ;;  %4903 = vmatprep.subr.bf16.mxu0 %v8276_v6  ;;  %v8351_v5 = vld [vmem:[#allocation5 + $0xba4] ss:$16 sps:$4 sm:$0xff]   ;;  %v8346_v6 = vld [vmem:[#allocation5 + $0x9a0] ss:$16 sps:$4 sm:$0xff]  }
  0xcd   :  { %4944 = vmatprep.subr.bf16.mxu1 %v8279_v7  ;;  %v8349_v7 = vld [vmem:[#allocation5 + $0xba0] ss:$16 sps:$4 sm:$0xff]  }
  0xcf   :  { %4904 = vmatpush2.bf16.msra.mxu0 %v8274_v10  ;;  %v8354_v10 = vld [vmem:[#allocation5 + $0x984] ss:$16 sps:$4 sm:$0xff]  }
  0xd0   :  { %4945 = vmatpush2.bf16.msra.mxu1 %v8277_v11  ;;  %4905 = vmatprep.subr.bf16.mxu0 %v8282_v12  ;;  %v8357_v11 = vld [vmem:[#allocation5 + $0xb84] ss:$16 sps:$4 sm:$0xff]   ;;  %v8352_v12 = vld [vmem:[#allocation5 + $0x980] ss:$16 sps:$4 sm:$0xff]  }
  0xd1   :  { %4946 = vmatprep.subr.bf16.mxu1 %v8285_v13  ;;  %v8355_v13 = vld [vmem:[#allocation5 + $0xb80] ss:$16 sps:$4 sm:$0xff]  }
  0xd3   :  { %4906 = vmatpush2.bf16.msra.mxu0 %v8280_v14  ;;  %v8360_v14 = vld [vmem:[#allocation5 + $0x964] ss:$16 sps:$4 sm:$0xff]  }
  0xd4   :  { %4947 = vmatpush2.bf16.msra.mxu1 %v8283_v15  ;;  %4957 = vmatprep.subr.bf16.mxu0 %v8288_v18  ;;  %v8363_v15 = vld [vmem:[#allocation5 + $0xb64] ss:$16 sps:$4 sm:$0xff]  }
  0xd5   :  { %4998 = vmatprep.subr.bf16.mxu1 %v8291_v19  ;;  %v8366_v18 = vld [vmem:[#allocation5 + $0x944] ss:$16 sps:$4 sm:$0xff]  }
  0xd6   :  { %4908 = vmatmul.mubr.bf16.vlgmr.msra.gmra.mxu0 %v9732_v20  ;;  %v8369_v19 = vld [vmem:[#allocation5 + $0xb44] ss:$16 sps:$4 sm:$0xff]  }
  0xd7   :  { %4949 = vmatmul.mubr.bf16.vlgmr.msra.gmra.mxu1 %v9734_v21  ;;  %4958 = vmatpush1.bf16.msra.mxu0 %v8286_v22  ;;  %v8364_v22 = vld [vmem:[#allocation5 + $0x940] ss:$16 sps:$4 sm:$0xff]  }
  0xd8   :  { %4999 = vmatpush1.bf16.msra.mxu1 %v8289_v23  ;;  %4959 = vmatprep.subr.bf16.mxu0 %v8294_v24  ;;  %v8367_v23 = vld [vmem:[#allocation5 + $0xb40] ss:$16 sps:$4 sm:$0xff]   ;;  %v8372_v24 = vld [vmem:[#allocation5 + $0x924] ss:$16 sps:$4 sm:$0xff]  }
  0xd9   :  { %5000 = vmatprep.subr.bf16.mxu1 %v8297_v25  ;;  %4989 = vmatprep.mubr.bf16.mxu0 %v9738_v29  ;;  %v8375_v25 = vld [vmem:[#allocation5 + $0xb24] ss:$16 sps:$4 sm:$0xff]  }
  0xda   :  { %5030 = vmatprep.mubr.bf16.mxu1 %v9740_v32 }
  0xdb   :  { %4960 = vmatpush1.bf16.msra.mxu0 %v8292_v27  ;;  %v8373_v27 = vld [vmem:[#allocation5 + $0xb20] ss:$16 sps:$4 sm:$0xff]  }
  0xdc   :  { %5001 = vmatpush1.bf16.msra.mxu1 %v8295_v28  ;;  %4961 = vmatprep.subr.bf16.mxu0 %v8300_v31  ;;  %v8378_v28 = vld [vmem:[#allocation5 + $0x904] ss:$16 sps:$4 sm:$0xff]   ;;  %v8376_v31 = vld [vmem:[#allocation5 + $0x900] ss:$16 sps:$4 sm:$0xff]  }
  0xdd   :  { %5002 = vmatprep.subr.bf16.mxu1 %v8303_v33  ;;  %v8379_v33 = vld [vmem:[#allocation5 + $0xb00] ss:$16 sps:$4 sm:$0xff]  }
  0xdf   :  { %4962 = vmatpush1.bf16.msra.mxu0 %v8298_v34  ;;  %v123_v34 = vld [vmem:[#allocation2 + $0x40] sm:$0xff] }
  0xe0   :  { %5003 = vmatpush1.bf16.msra.mxu1 %v8301_v35  ;;  %4963 = vmatprep.subr.bf16.mxu0 %v8306_v36  ;;  %v125_v35 = vld [vmem:[#allocation2 + $0x50] sm:$0xff] }
  0xe1   :  { %5004 = vmatprep.subr.bf16.mxu1 %v8309_v38  ;;  %v8384_v36 = vld [vmem:[#allocation5 + $0xce4] ss:$16 sps:$4 sm:$0xff]  }
  0xe2   :  { %v8387_v38 = vld [vmem:[#allocation5 + $0xee4] ss:$16 sps:$4 sm:$0xff]  }
  0xe3   :  { %4964 = vmatpush1.bf16.msra.mxu0 %v8304_v39  ;;  %v8382_v39 = vld [vmem:[#allocation5 + $0xce0] ss:$16 sps:$4 sm:$0xff]  }
  0xe4   :  { %5005 = vmatpush1.bf16.msra.mxu1 %v8307_v41  ;;  %4965 = vmatprep.subr.bf16.mxu0 %v8312_v42  ;;  %v128_v41 = vld [vmem:[#allocation2 + $0x68] sm:$0xff]  ;;  %v9744_v42 = vpack.c.bf16 %v123_v34, %v123_v34  ;;  %v8448_v34 = vld [vmem:[#allocation5 + $0xd80] ss:$16 sps:$4 sm:$0xff]  }
  0xe5   :  { %5006 = vmatprep.subr.bf16.mxu1 %v8315_v43  ;;  %v9746_v43 = vpack.c.bf16 %v125_v35, %v125_v35  ;;  %v8451_v35 = vld [vmem:[#allocation5 + $0xf80] ss:$16 sps:$4 sm:$0xff]  }
  0xe7   :  { %4966 = vmatpush1.bf16.msra.mxu0 %v8310_v44  ;;  %v130_v44 = vld [vmem:[#allocation2 + $0x78] sm:$0xff] }
  0xe8   :  { %5007 = vmatpush1.bf16.msra.mxu1 %v8313_v45  ;;  %4967 = vmatprep.subr.bf16.mxu0 %v8318_v46  ;;  %v8385_v45 = vld [vmem:[#allocation5 + $0xee0] ss:$16 sps:$4 sm:$0xff]   ;;  %v8390_v46 = vld [vmem:[#allocation5 + $0xcc4] ss:$16 sps:$4 sm:$0xff]  }
  0xe9   :  { %5008 = vmatprep.subr.bf16.mxu1 %v8321_v47  ;;  %v8393_v47 = vld [vmem:[#allocation5 + $0xec4] ss:$16 sps:$4 sm:$0xff]  }
  0xeb   :  { %4968 = vmatpush1.bf16.msra.mxu0 %v8316_v48  ;;  %v9748_v48 = vpack.c.bf16 %v128_v41, %v128_v41  ;;  %v8457_v41 = vld [vmem:[#allocation5 + $0xf60] ss:$16 sps:$4 sm:$0xff]  }
  0xec   :  { %5009 = vmatpush1.bf16.msra.mxu1 %v8319_v50  ;;  %4969 = vmatprep.subr.bf16.mxu0 %v8324_v51  ;;  %v9750_v50 = vpack.c.bf16 %v130_v44, %v130_v44  ;;  %v8388_v51 = vld [vmem:[#allocation5 + $0xcc0] ss:$16 sps:$4 sm:$0xff]   ;;  %v8462_v44 = vld [vmem:[#allocation5 + $0xd44] ss:$16 sps:$4 sm:$0xff]  }
  0xed   :  { %5010 = vmatprep.subr.bf16.mxu1 %v8327_v53  ;;  %v8391_v53 = vld [vmem:[#allocation5 + $0xec0] ss:$16 sps:$4 sm:$0xff]  }
  0xef   :  { %4970 = vmatpush1.bf16.msra.mxu0 %v8322_v54  ;;  %v8396_v54 = vld [vmem:[#allocation5 + $0xca4] ss:$16 sps:$4 sm:$0xff]  }
  0xf0   :  { %5011 = vmatpush1.bf16.msra.mxu1 %v8325_v55  ;;  %4971 = vmatprep.subr.bf16.mxu0 %v8330_v56  ;;  %v8399_v55 = vld [vmem:[#allocation5 + $0xea4] ss:$16 sps:$4 sm:$0xff]   ;;  %v8394_v56 = vld [vmem:[#allocation5 + $0xca0] ss:$16 sps:$4 sm:$0xff]  }
  0xf1   :  { %5012 = vmatprep.subr.bf16.mxu1 %v8333_v57  ;;  %v8397_v57 = vld [vmem:[#allocation5 + $0xea0] ss:$16 sps:$4 sm:$0xff]  }
  0xf3   :  { %4972 = vmatpush1.bf16.msra.mxu0 %v8328_v58  ;;  %v8402_v58 = vld [vmem:[#allocation5 + $0xc84] ss:$16 sps:$4 sm:$0xff]  }
  0xf4   :  { %5013 = vmatpush1.bf16.msra.mxu1 %v8331_v59  ;;  %4973 = vmatprep.subr.bf16.mxu0 %v8336_v60  ;;  %v8405_v59 = vld [vmem:[#allocation5 + $0xe84] ss:$16 sps:$4 sm:$0xff]   ;;  %v8400_v60 = vld [vmem:[#allocation5 + $0xc80] ss:$16 sps:$4 sm:$0xff]  }
  0xf5   :  { %5014 = vmatprep.subr.bf16.mxu1 %v8339_v61  ;;  %v8403_v61 = vld [vmem:[#allocation5 + $0xe80] ss:$16 sps:$4 sm:$0xff]  }
  0xf7   :  { %4974 = vmatpush2.bf16.msra.mxu0 %v8334_v62  ;;  %v8408_v62 = vld [vmem:[#allocation5 + $0xc64] ss:$16 sps:$4 sm:$0xff]  }
  0xf8   :  { %5015 = vmatpush2.bf16.msra.mxu1 %v8337_v63  ;;  %4975 = vmatprep.subr.bf16.mxu0 %v8342_v0  ;;  %v8411_v63 = vld [vmem:[#allocation5 + $0xe64] ss:$16 sps:$4 sm:$0xff]   ;;  %v8406_v0 = vld [vmem:[#allocation5 + $0xc60] ss:$16 sps:$4 sm:$0xff]  }
  0xf9   :  { %5016 = vmatprep.subr.bf16.mxu1 %v8345_v1  ;;  %v8409_v1 = vld [vmem:[#allocation5 + $0xe60] ss:$16 sps:$4 sm:$0xff]  }
  0xfb   :  { %4976 = vmatpush2.bf16.msra.mxu0 %v8340_v2  ;;  %v8414_v2 = vld [vmem:[#allocation5 + $0xc44] ss:$16 sps:$4 sm:$0xff]  }
  0xfc   :  { %5017 = vmatpush2.bf16.msra.mxu1 %v8343_v3  ;;  %4977 = vmatprep.subr.bf16.mxu0 %v8348_v4  ;;  %v8417_v3 = vld [vmem:[#allocation5 + $0xe44] ss:$16 sps:$4 sm:$0xff]   ;;  %v8412_v4 = vld [vmem:[#allocation5 + $0xc40] ss:$16 sps:$4 sm:$0xff]  }
  0xfd   :  { %5018 = vmatprep.subr.bf16.mxu1 %v8351_v5  ;;  %v8415_v5 = vld [vmem:[#allocation5 + $0xe40] ss:$16 sps:$4 sm:$0xff]  }
  0xff   :  { %4978 = vmatpush2.bf16.msra.mxu0 %v8346_v6  ;;  %v8420_v6 = vld [vmem:[#allocation5 + $0xc24] ss:$16 sps:$4 sm:$0xff]  }
 0x100   :  { %5019 = vmatpush2.bf16.msra.mxu1 %v8349_v7  ;;  %4979 = vmatprep.subr.bf16.mxu0 %v8354_v10  ;;  %v8423_v7 = vld [vmem:[#allocation5 + $0xe24] ss:$16 sps:$4 sm:$0xff]   ;;  %v8418_v10 = vld [vmem:[#allocation5 + $0xc20] ss:$16 sps:$4 sm:$0xff]  }
 0x101   :  { %5020 = vmatprep.subr.bf16.mxu1 %v8357_v11  ;;  %v8421_v11 = vld [vmem:[#allocation5 + $0xe20] ss:$16 sps:$4 sm:$0xff]  }
 0x103   :  { %4980 = vmatpush2.bf16.msra.mxu0 %v8352_v12  ;;  %v8426_v12 = vld [vmem:[#allocation5 + $0xc04] ss:$16 sps:$4 sm:$0xff]  }
 0x104   :  { %5021 = vmatpush2.bf16.msra.mxu1 %v8355_v13  ;;  %4981 = vmatprep.subr.bf16.mxu0 %v8360_v14  ;;  %v8429_v13 = vld [vmem:[#allocation5 + $0xe04] ss:$16 sps:$4 sm:$0xff]   ;;  %v8424_v14 = vld [vmem:[#allocation5 + $0xc00] ss:$16 sps:$4 sm:$0xff]  }
 0x105   :  { %5022 = vmatprep.subr.bf16.mxu1 %v8363_v15  ;;  %v8427_v15 = vld [vmem:[#allocation5 + $0xe00] ss:$16 sps:$4 sm:$0xff]  }
 0x107   :  { %4982 = vmatpush2.bf16.msra.mxu0 %v8358_v16  ;;  %v8432_v16 = vld [vmem:[#allocation5 + $0xde4] ss:$16 sps:$4 sm:$0xff]  }
 0x108   :  { %5023 = vmatpush2.bf16.msra.mxu1 %v8361_v17  ;;  %4983 = vmatprep.subr.bf16.mxu0 %v8366_v18  ;;  %v8435_v17 = vld [vmem:[#allocation5 + $0xfe4] ss:$16 sps:$4 sm:$0xff]   ;;  %v8430_v18 = vld [vmem:[#allocation5 + $0xde0] ss:$16 sps:$4 sm:$0xff]  }
 0x109   :  { %5024 = vmatprep.subr.bf16.mxu1 %v8369_v19  ;;  %v8433_v19 = vld [vmem:[#allocation5 + $0xfe0] ss:$16 sps:$4 sm:$0xff]  }
 0x10b   :  { %4984 = vmatpush2.bf16.msra.mxu0 %v8364_v22  ;;  %v8438_v22 = vld [vmem:[#allocation5 + $0xdc4] ss:$16 sps:$4 sm:$0xff]  }
 0x10c   :  { %5025 = vmatpush2.bf16.msra.mxu1 %v8367_v23  ;;  %4985 = vmatprep.subr.bf16.mxu0 %v8372_v24  ;;  %v8441_v23 = vld [vmem:[#allocation5 + $0xfc4] ss:$16 sps:$4 sm:$0xff]   ;;  %v8436_v24 = vld [vmem:[#allocation5 + $0xdc0] ss:$16 sps:$4 sm:$0xff]  }
 0x10d   :  { %5026 = vmatprep.subr.bf16.mxu1 %v8375_v25  ;;  %v8439_v25 = vld [vmem:[#allocation5 + $0xfc0] ss:$16 sps:$4 sm:$0xff]  }
 0x10f   :  { %4986 = vmatpush2.bf16.msra.mxu0 %v8370_v26  ;;  %v8444_v26 = vld [vmem:[#allocation5 + $0xda4] ss:$16 sps:$4 sm:$0xff]  }
 0x110   :  { %5027 = vmatpush2.bf16.msra.mxu1 %v8373_v27  ;;  %4987 = vmatprep.subr.bf16.mxu0 %v8378_v28  ;;  %v8447_v27 = vld [vmem:[#allocation5 + $0xfa4] ss:$16 sps:$4 sm:$0xff]   ;;  %v8442_v28 = vld [vmem:[#allocation5 + $0xda0] ss:$16 sps:$4 sm:$0xff]  }
 0x111   :  { %5028 = vmatprep.subr.bf16.mxu1 %v8381_v30  ;;  %v8445_v30 = vld [vmem:[#allocation5 + $0xfa0] ss:$16 sps:$4 sm:$0xff]  }
 0x113   :  { %4988 = vmatpush2.bf16.msra.mxu0 %v8376_v31  ;;  %v8450_v31 = vld [vmem:[#allocation5 + $0xd84] ss:$16 sps:$4 sm:$0xff]  }
 0x114   :  { %5029 = vmatpush2.bf16.msra.mxu1 %v8379_v33  ;;  %5039 = vmatprep.subr.bf16.mxu0 %v8384_v36  ;;  %v8453_v33 = vld [vmem:[#allocation5 + $0xf84] ss:$16 sps:$4 sm:$0xff]  }
 0x115   :  { %5080 = vmatprep.subr.bf16.mxu1 %v8387_v38  ;;  %v8456_v36 = vld [vmem:[#allocation5 + $0xd64] ss:$16 sps:$4 sm:$0xff]  }
 0x116   :  { %4990 = vmatmul.mubr.bf16.vlgmr.msra.gmra.mxu0 %v9744_v42  ;;  %v8459_v38 = vld [vmem:[#allocation5 + $0xf64] ss:$16 sps:$4 sm:$0xff]  }
 0x117   :  { %5031 = vmatmul.mubr.bf16.vlgmr.msra.gmra.mxu1 %v9746_v43  ;;  %5040 = vmatpush1.bf16.msra.mxu0 %v8382_v39  ;;  %v8454_v39 = vld [vmem:[#allocation5 + $0xd60] ss:$16 sps:$4 sm:$0xff]  }
 0x118   :  { %5081 = vmatpush1.bf16.msra.mxu1 %v8385_v45  ;;  %5041 = vmatprep.subr.bf16.mxu0 %v8390_v46  ;;  %v8465_v45 = vld [vmem:[#allocation5 + $0xf44] ss:$16 sps:$4 sm:$0xff]   ;;  %v8460_v46 = vld [vmem:[#allocation5 + $0xd40] ss:$16 sps:$4 sm:$0xff]  }
 0x119   :  { %5082 = vmatprep.subr.bf16.mxu1 %v8393_v47  ;;  %5071 = vmatprep.mubr.bf16.mxu0 %v9748_v48  ;;  %v8463_v47 = vld [vmem:[#allocation5 + $0xf40] ss:$16 sps:$4 sm:$0xff]  }
 0x11a   :  { %5112 = vmatprep.mubr.bf16.mxu1 %v9750_v50 }
 0x11b   :  { %5042 = vmatpush1.bf16.msra.mxu0 %v8388_v51  ;;  %v933_v51 = vlaneseq }
 0x11c   :  { %5083 = vmatpush1.bf16.msra.mxu1 %v8391_v53  ;;  %5043 = vmatprep.subr.bf16.mxu0 %v8396_v54  ;;  %v8468_v53 = vld [vmem:[#allocation5 + $0xd24] ss:$16 sps:$4 sm:$0xff]  }
 0x11d   :  { %5084 = vmatprep.subr.bf16.mxu1 %v8399_v55  ;;  %v8471_v54 = vld [vmem:[#allocation5 + $0xf24] ss:$16 sps:$4 sm:$0xff]   ;;  %v8466_v55 = vld [vmem:[#allocation5 + $0xd20] ss:$16 sps:$4 sm:$0xff]  }
 0x11f   :  { %5044 = vmatpush1.bf16.msra.mxu0 %v8394_v56  ;;  %v8469_v56 = vld [vmem:[#allocation5 + $0xf20] ss:$16 sps:$4 sm:$0xff]  }
 0x120   :  { %5085 = vmatpush1.bf16.msra.mxu1 %v8397_v57  ;;  %5045 = vmatprep.subr.bf16.mxu0 %v8402_v58  ;;  %v9756_v57 = vshrl.u32 %v933_v51, 7  ;;  %v8474_v58 = vld [vmem:[#allocation5 + $0xd04] ss:$16 sps:$4 sm:$0xff]   ;;  %v8499_v51 = vld [vmem:[#allocation5 + $0x1280] ss:$16 sps:$4 sm:$0xff]  }
 0x121   :  { %5086 = vmatprep.subr.bf16.mxu1 %v8405_v59  ;;  %v8477_v59 = vld [vmem:[#allocation5 + $0xf04] ss:$16 sps:$4 sm:$0xff]  }
 0x123   :  { %5046 = vmatpush1.bf16.msra.mxu0 %v8400_v60  ;;  %v8472_v60 = vld [vmem:[#allocation5 + $0xd00] ss:$16 sps:$4 sm:$0xff]  }
 0x124   :  { %5087 = vmatpush1.bf16.msra.mxu1 %v8403_v61  ;;  %5047 = vmatprep.subr.bf16.mxu0 %v8408_v62  ;;  %v8475_v61 = vld [vmem:[#allocation5 + $0xf00] ss:$16 sps:$4 sm:$0xff]  }
 0x125   :  { %5088 = vmatprep.subr.bf16.mxu1 %v8411_v63  ;;  %v931_v62 = vld [vmem:[#allocation7] sm:$0xf] }
 0x126   :  { %v127_v63 = vld [vmem:[#allocation2 + $0x60] sm:$0xff] }
 0x127   :  { %5048 = vmatpush1.bf16.msra.mxu0 %v8406_v0  ;;  %v935_v0 = vsub.s32 0, %v9756_v57 }
 0x128   :  { %5089 = vmatpush1.bf16.msra.mxu1 %v8409_v1  ;;  %5049 = vmatprep.subr.bf16.mxu0 %v8414_v2  ;;  %v129_v1 = vld [vmem:[#allocation2 + $0x70] sm:$0xff] }
 0x129   :  { %5090 = vmatprep.subr.bf16.mxu1 %v8417_v3  ;;  %v8480_v2 = vld [vmem:[#allocation5 + $0x10e4] ss:$16 sps:$4 sm:$0xff]  }
 0x12a   :  { %v8483_v3 = vld [vmem:[#allocation5 + $0x12e4] ss:$16 sps:$4 sm:$0xff]  }
 0x12b   :  { %5050 = vmatpush1.bf16.msra.mxu0 %v8412_v4  ;;  %v8478_v4 = vld [vmem:[#allocation5 + $0x10e0] ss:$16 sps:$4 sm:$0xff]  }
 0x12c   :  { %5091 = vmatpush1.bf16.msra.mxu1 %v8415_v5  ;;  %5051 = vmatprep.subr.bf16.mxu0 %v8420_v6  ;;  %v939_v5 = vsub.s32 1, %v9756_v57  ;;  %v132_v6 = vld [vmem:[#allocation2 + $0x88] sm:$0xff] }
 0x12d   :  { %5092 = vmatprep.subr.bf16.mxu1 %v8423_v7  ;;  %v9760_v7 = vpack.c.bf16 %v127_v63, %v127_v63  ;;  %v8519_v63 = vld [vmem:[#allocation5 + $0x1224] ss:$16 sps:$4 sm:$0xff]  }
 0x12f   :  { %5052 = vmatpush1.bf16.msra.mxu0 %v8418_v10  ;;  %v9762_v10 = vpack.c.bf16 %v129_v1, %v129_v1  ;;  %v8514_v1 = vld [vmem:[#allocation5 + $0x1020] ss:$16 sps:$4 sm:$0xff]  }
 0x130   :  { %5093 = vmatpush1.bf16.msra.mxu1 %v8421_v11  ;;  %5053 = vmatprep.subr.bf16.mxu0 %v8426_v12  ;;  %v134_v11 = vld [vmem:[#allocation2 + $0x98] sm:$0xff]  ;;  %v936_v12 = vrot.slane %v931_v62, %v935_v0 }
 0x131   :  { %5094 = vmatprep.subr.bf16.mxu1 %v8429_v13  ;;  %v8481_v13 = vld [vmem:[#allocation5 + $0x12e0] ss:$16 sps:$4 sm:$0xff]  }
 0x133   :  { %5054 = vmatpush1.bf16.msra.mxu0 %v8424_v14  ;;  %v8486_v14 = vld [vmem:[#allocation5 + $0x10c4] ss:$16 sps:$4 sm:$0xff]  }
 0x134   :  { %5095 = vmatpush1.bf16.msra.mxu1 %v8427_v15  ;;  %5055 = vmatprep.subr.bf16.mxu0 %v8432_v16  ;;  %v8489_v15 = vld [vmem:[#allocation5 + $0x12c4] ss:$16 sps:$4 sm:$0xff]   ;;  %v940_v16 = vrot.slane %v931_v62, %v939_v5 }
 0x135   :  { %5096 = vmatprep.subr.bf16.mxu1 %v8435_v17  ;;  %v9768_v17 = vpack.c.bf16 %v132_v6, %v132_v6  ;;  %v8516_v62 = vld [vmem:[#allocation5 + $0x1024] ss:$16 sps:$4 sm:$0xff]   ;;  %v8520_v6 = vld [vmem:[#allocation5 + $0x1000] ss:$16 sps:$4 sm:$0xff]  }
 0x137   :  { %5056 = vmatpush2.bf16.msra.mxu0 %v8430_v18  ;;  %v9770_v18 = vpack.c.bf16 %v134_v11, %v134_v11  ;;  %v8523_v11 = vld [vmem:[#allocation5 + $0x1200] ss:$16 sps:$4 sm:$0xff]  }
 0x138   :  { %5097 = vmatpush2.bf16.msra.mxu1 %v8433_v19  ;;  %5057 = vmatprep.subr.bf16.mxu0 %v8438_v22 }
 0x139   :  { %5098 = vmatprep.subr.bf16.mxu1 %v8441_v23  ;;  %v8484_v23 = vld [vmem:[#allocation5 + $0x10c0] ss:$16 sps:$4 sm:$0xff]  }
 0x13b   :  { %5058 = vmatpush2.bf16.msra.mxu0 %v8436_v24 }
 0x13c   :  { %5099 = vmatpush2.bf16.msra.mxu1 %v8439_v25  ;;  %5059 = vmatprep.subr.bf16.mxu0 %v8444_v26  ;;  %v8487_v25 = vld [vmem:[#allocation5 + $0x12c0] ss:$16 sps:$4 sm:$0xff]  }
 0x13d   :  { %5100 = vmatprep.subr.bf16.mxu1 %v8447_v27 }
 0x13f   :  { %5060 = vmatpush2.bf16.msra.mxu0 %v8442_v28  ;;  %v8492_v28 = vld [vmem:[#allocation5 + $0x10a4] ss:$16 sps:$4 sm:$0xff]  }
 0x140   :  { %5101 = vmatpush2.bf16.msra.mxu1 %v8445_v30  ;;  %5061 = vmatprep.subr.bf16.mxu0 %v8450_v31  ;;  %v8495_v30 = vld [vmem:[#allocation5 + $0x12a4] ss:$16 sps:$4 sm:$0xff]  }
 0x141   :  { %5102 = vmatprep.subr.bf16.mxu1 %v8453_v33 }
 0x143   :  { %5062 = vmatpush2.bf16.msra.mxu0 %v8448_v34 }
 0x144   :  { %5103 = vmatpush2.bf16.msra.mxu1 %v8451_v35  ;;  %5063 = vmatprep.subr.bf16.mxu0 %v8456_v36  ;;  %v8490_v36 = vld [vmem:[#allocation5 + $0x10a0] ss:$16 sps:$4 sm:$0xff]  }
 0x145   :  { %5104 = vmatprep.subr.bf16.mxu1 %v8459_v38 }
 0x147   :  { %5064 = vmatpush2.bf16.msra.mxu0 %v8454_v39  ;;  %v8493_v39 = vld [vmem:[#allocation5 + $0x12a0] ss:$16 sps:$4 sm:$0xff]  }
 0x148   :  { %5105 = vmatpush2.bf16.msra.mxu1 %v8457_v41  ;;  %5065 = vmatprep.subr.bf16.mxu0 %v8462_v44 }
 0x149   :  { %5106 = vmatprep.subr.bf16.mxu1 %v8465_v45  ;;  %v8498_v45 = vld [vmem:[#allocation5 + $0x1084] ss:$16 sps:$4 sm:$0xff]  }
 0x14b   :  { %5066 = vmatpush2.bf16.msra.mxu0 %v8460_v46  ;;  %v8501_v46 = vld [vmem:[#allocation5 + $0x1284] ss:$16 sps:$4 sm:$0xff]  }
 0x14c   :  { %5107 = vmatpush2.bf16.msra.mxu1 %v8463_v47  ;;  %5067 = vmatprep.subr.bf16.mxu0 %v8468_v53  ;;  %v8496_v47 = vld [vmem:[#allocation5 + $0x1080] ss:$16 sps:$4 sm:$0xff]   ;;  %v8504_v53 = vld [vmem:[#allocation5 + $0x1064] ss:$16 sps:$4 sm:$0xff]  }
 0x14d   :  { %5108 = vmatprep.subr.bf16.mxu1 %v8471_v54  ;;  %v8507_v54 = vld [vmem:[#allocation5 + $0x1264] ss:$16 sps:$4 sm:$0xff]  }
 0x14f   :  { %5068 = vmatpush2.bf16.msra.mxu0 %v8466_v55  ;;  %v8502_v55 = vld [vmem:[#allocation5 + $0x1060] ss:$16 sps:$4 sm:$0xff]  }
 0x150   :  { %5109 = vmatpush2.bf16.msra.mxu1 %v8469_v56  ;;  %5069 = vmatprep.subr.bf16.mxu0 %v8474_v58  ;;  %v8505_v56 = vld [vmem:[#allocation5 + $0x1260] ss:$16 sps:$4 sm:$0xff]   ;;  %v8510_v58 = vld [vmem:[#allocation5 + $0x1044] ss:$16 sps:$4 sm:$0xff]  }
 0x151   :  { %5110 = vmatprep.subr.bf16.mxu1 %v8477_v59  ;;  %v8513_v59 = vld [vmem:[#allocation5 + $0x1244] ss:$16 sps:$4 sm:$0xff]  }
 0x153   :  { %5070 = vmatpush2.bf16.msra.mxu0 %v8472_v60  ;;  %v8508_v60 = vld [vmem:[#allocation5 + $0x1040] ss:$16 sps:$4 sm:$0xff]  }
 0x154   :  { %5111 = vmatpush2.bf16.msra.mxu1 %v8475_v61  ;;  %5121 = vmatprep.subr.bf16.mxu0 %v8480_v2  ;;  %v8511_v61 = vld [vmem:[#allocation5 + $0x1240] ss:$16 sps:$4 sm:$0xff]  }
 0x155   :  { %5162 = vmatprep.subr.bf16.mxu1 %v8483_v3  ;;  %v8517_v2 = vld [vmem:[#allocation5 + $0x1220] ss:$16 sps:$4 sm:$0xff]   ;;  %v8522_v3 = vld [vmem:[#allocation5 + $0x1004] ss:$16 sps:$4 sm:$0xff]  }
 0x156   :  { %v4827_v19 = vpop.f32.mrf.mxu0  ;;  %5072 = vmatmul.mubr.bf16.vlgmr.msra.gmra.mxu0 %v9760_v7 }
 0x157   :  { %v4868_v22 = vpop.f32.mrf.mxu1  ;;  %5113 = vmatmul.mubr.bf16.vlgmr.msra.gmra.mxu1 %v9762_v10  ;;  %v4828_v24 = vadd.f32 %v4827_v19, %v936_v12  ;;  %5122 = vmatpush1.bf16.msra.mxu0 %v8478_v4  ;;  %v8525_v4 = vld [vmem:[#allocation5 + $0x1204] ss:$16 sps:$4 sm:$0xff]  }
 0x158   :  { %5163 = vmatpush1.bf16.msra.mxu1 %v8481_v13  ;;  %v4829_v26 = vpop.f32.mrf.mxu0  ;;  %5123 = vmatprep.subr.bf16.mxu0 %v8486_v14  ;;  %v8528_v12 = vld [vmem:[#allocation5 + $0x11e4] ss:$16 sps:$4 sm:$0xff]   ;;  %v8526_v14 = vld [vmem:[#allocation5 + $0x11e0] ss:$16 sps:$4 sm:$0xff]  }
 0x159   :  { %v4870_v27 = vpop.f32.mrf.mxu1  ;;  %5164 = vmatprep.subr.bf16.mxu1 %v8489_v15  ;;  %v9774_v31 = vadd.f32 %v4868_v22, %v4828_v24  ;;  %v4830_v33 = vadd.f32 %v4829_v26, %v940_v16  ;;  %5153 = vmatprep.mubr.bf16.mxu0 %v9768_v17  ;;  %v8531_v13 = vld [vmem:[#allocation5 + $0x13e4] ss:$16 sps:$4 sm:$0xff]   ;;  %v8529_v15 = vld [vmem:[#allocation5 + $0x13e0] ss:$16 sps:$4 sm:$0xff]  }
 0x15a   :  { %5194 = vmatprep.mubr.bf16.mxu1 %v9770_v18  ;;  %v4831_v34 = vpop.f32.mrf.mxu0  ;;  %v8534_v16 = vld [vmem:[#allocation5 + $0x11c4] ss:$16 sps:$4 sm:$0xff]   ;;  %v8532_v22 = vld [vmem:[#allocation5 + $0x11c0] ss:$16 sps:$4 sm:$0xff]  }
 0x15b   :  { %v4872_v35 = vpop.f32.mrf.mxu1  ;;  %v9778_v38 = vadd.f32 %v4870_v27, %v4830_v33  ;;  %5124 = vmatpush1.bf16.msra.mxu0 %v8484_v23  ;;  %v8537_v19 = vld [vmem:[#allocation5 + $0x13c4] ss:$16 sps:$4 sm:$0xff]   ;;  %v8535_v23 = vld [vmem:[#allocation5 + $0x13c0] ss:$16 sps:$4 sm:$0xff]  }
 0x15c   :  { %5165 = vmatpush1.bf16.msra.mxu1 %v8487_v25  ;;  %v4832_v41 = vpop.f32.mrf.mxu0  ;;  %5125 = vmatprep.subr.bf16.mxu0 %v8492_v28  ;;  %v8540_v24 = vld [vmem:[#allocation5 + $0x11a4] ss:$16 sps:$4 sm:$0xff]   ;;  %v8538_v26 = vld [vmem:[#allocation5 + $0x11a0] ss:$16 sps:$4 sm:$0xff]  }
 0x15d   :  { %v4873_v44 = vpop.f32.mrf.mxu1  ;;  %5166 = vmatprep.subr.bf16.mxu1 %v8495_v30  ;;  %v8543_v25 = vld [vmem:[#allocation5 + $0x13a4] ss:$16 sps:$4 sm:$0xff]   ;;  %v8541_v27 = vld [vmem:[#allocation5 + $0x13a0] ss:$16 sps:$4 sm:$0xff]  }
 0x15e   :  { %v8546_v28 = vld [vmem:[#allocation5 + $0x1184] ss:$16 sps:$4 sm:$0xff]   ;;  %v8544_v33 = vld [vmem:[#allocation5 + $0x1180] ss:$16 sps:$4 sm:$0xff]  }
 0x15f   :  { %5126 = vmatpush1.bf16.msra.mxu0 %v8490_v36  ;;  %v8549_v30 = vld [vmem:[#allocation5 + $0x1384] ss:$16 sps:$4 sm:$0xff]   ;;  %v8547_v34 = vld [vmem:[#allocation5 + $0x1380] ss:$16 sps:$4 sm:$0xff]  }
 0x160   :  { %5167 = vmatpush1.bf16.msra.mxu1 %v8493_v39  ;;  %5127 = vmatprep.subr.bf16.mxu0 %v8498_v45  ;;  %v8552_v35 = vld [vmem:[#allocation5 + $0x1164] ss:$16 sps:$4 sm:$0xff]   ;;  %v8550_v39 = vld [vmem:[#allocation5 + $0x1160] ss:$16 sps:$4 sm:$0xff]  }
 0x161   :  { %5168 = vmatprep.subr.bf16.mxu1 %v8501_v46  ;;  %v8555_v36 = vld [vmem:[#allocation5 + $0x1364] ss:$16 sps:$4 sm:$0xff]   ;;  %v8553_v41 = vld [vmem:[#allocation5 + $0x1360] ss:$16 sps:$4 sm:$0xff]  }
 0x162   :  { %v8558_v44 = vld [vmem:[#allocation5 + $0x1144] ss:$16 sps:$4 sm:$0xff]   ;;  %v8556_v46 = vld [vmem:[#allocation5 + $0x1140] ss:$16 sps:$4 sm:$0xff]  }
 0x163   :  { %5128 = vmatpush1.bf16.msra.mxu0 %v8496_v47  ;;  %v8561_v45 = vld [vmem:[#allocation5 + $0x1344] ss:$16 sps:$4 sm:$0xff]   ;;  %v8559_v47 = vld [vmem:[#allocation5 + $0x1340] ss:$16 sps:$4 sm:$0xff]  }
 0x164   :  { %5169 = vmatpush1.bf16.msra.mxu1 %v8499_v51  ;;  %5129 = vmatprep.subr.bf16.mxu0 %v8504_v53  ;;  %v8564_v51 = vld [vmem:[#allocation5 + $0x1124] ss:$16 sps:$4 sm:$0xff]  }
 0x165   :  { %5170 = vmatprep.subr.bf16.mxu1 %v8507_v54  ;;  %v8567_v53 = vld [vmem:[#allocation5 + $0x1324] ss:$16 sps:$4 sm:$0xff]   ;;  %v8562_v54 = vld [vmem:[#allocation5 + $0x1120] ss:$16 sps:$4 sm:$0xff]  }
 0x167   :  { %5130 = vmatpush1.bf16.msra.mxu0 %v8502_v55  ;;  %v8565_v55 = vld [vmem:[#allocation5 + $0x1320] ss:$16 sps:$4 sm:$0xff]  }
 0x168   :  { %5171 = vmatpush1.bf16.msra.mxu1 %v8505_v56  ;;  %5131 = vmatprep.subr.bf16.mxu0 %v8510_v58  ;;  %v8570_v56 = vld [vmem:[#allocation5 + $0x1104] ss:$16 sps:$4 sm:$0xff]  }
 0x169   :  { %5172 = vmatprep.subr.bf16.mxu1 %v8513_v59  ;;  %v8573_v58 = vld [vmem:[#allocation5 + $0x1304] ss:$16 sps:$4 sm:$0xff]   ;;  %v8568_v59 = vld [vmem:[#allocation5 + $0x1100] ss:$16 sps:$4 sm:$0xff]  }
 0x16b   :  { %5132 = vmatpush1.bf16.msra.mxu0 %v8508_v60  ;;  %v8571_v60 = vld [vmem:[#allocation5 + $0x1300] ss:$16 sps:$4 sm:$0xff]  }
 0x16c   :  { %5173 = vmatpush1.bf16.msra.mxu1 %v8511_v61  ;;  %5133 = vmatprep.subr.bf16.mxu0 %v8516_v62  ;;  %v131_v61 = vld [vmem:[#allocation2 + $0x80] sm:$0xff]  ;;  %v133_v62 = vld [vmem:[#allocation2 + $0x90] sm:$0xff] }
 0x16d   :  { %5174 = vmatprep.subr.bf16.mxu1 %v8519_v63  ;;  %v8576_v63 = vld [vmem:[#allocation5 + $0x14e4] ss:$16 sps:$4 sm:$0xff]  }
 0x16f   :  { %5134 = vmatpush1.bf16.msra.mxu0 %v8514_v1  ;;  %v8579_v1 = vld [vmem:[#allocation5 + $0x16e4] ss:$16 sps:$4 sm:$0xff]  }
 0x170   :  { %5175 = vmatpush1.bf16.msra.mxu1 %v8517_v2  ;;  %5135 = vmatprep.subr.bf16.mxu0 %v8522_v3  ;;  %v136_v2 = vld [vmem:[#allocation2 + $0xa8] sm:$0xff]  ;;  %v138_v3 = vld [vmem:[#allocation2 + $0xb8] sm:$0xff] }
 0x171   :  { %5176 = vmatprep.subr.bf16.mxu1 %v8525_v4  ;;  %v8574_v4 = vld [vmem:[#allocation5 + $0x14e0] ss:$16 sps:$4 sm:$0xff]  }
 0x173   :  { %5136 = vmatpush1.bf16.msra.mxu0 %v8520_v6  ;;  %v8577_v6 = vld [vmem:[#allocation5 + $0x16e0] ss:$16 sps:$4 sm:$0xff]  }
 0x174   :  { %5177 = vmatpush1.bf16.msra.mxu1 %v8523_v11  ;;  %5137 = vmatprep.subr.bf16.mxu0 %v8528_v12  ;;  %v9780_v11 = vpack.c.bf16 %v131_v61, %v131_v61  ;;  %v9782_v12 = vpack.c.bf16 %v133_v62, %v133_v62  ;;  %v8607_v61 = vld [vmem:[#allocation5 + $0x1640] ss:$16 sps:$4 sm:$0xff]   ;;  %v8612_v62 = vld [vmem:[#allocation5 + $0x1424] ss:$16 sps:$4 sm:$0xff]  }
 0x175   :  { %5178 = vmatprep.subr.bf16.mxu1 %v8531_v13  ;;  %v8582_v13 = vld [vmem:[#allocation5 + $0x14c4] ss:$16 sps:$4 sm:$0xff]  }
 0x177   :  { %5138 = vmatpush2.bf16.msra.mxu0 %v8526_v14  ;;  %v8585_v14 = vld [vmem:[#allocation5 + $0x16c4] ss:$16 sps:$4 sm:$0xff]  }
 0x178   :  { %5179 = vmatpush2.bf16.msra.mxu1 %v8529_v15  ;;  %5139 = vmatprep.subr.bf16.mxu0 %v8534_v16  ;;  %v8580_v15 = vld [vmem:[#allocation5 + $0x14c0] ss:$16 sps:$4 sm:$0xff]  }
 0x179   :  { %5180 = vmatprep.subr.bf16.mxu1 %v8537_v19  ;;  %v8583_v16 = vld [vmem:[#allocation5 + $0x16c0] ss:$16 sps:$4 sm:$0xff]   ;;  %v9784_v19 = vpack.c.bf16 %v136_v2, %v136_v2 }
 0x17a   :  { %v8613_v2 = vld [vmem:[#allocation5 + $0x1620] ss:$16 sps:$4 sm:$0xff]  }
 0x17b   :  { %5140 = vmatpush2.bf16.msra.mxu0 %v8532_v22  ;;  %v9786_v22 = vpack.c.bf16 %v138_v3, %v138_v3  ;;  %v8618_v3 = vld [vmem:[#allocation5 + $0x1404] ss:$16 sps:$4 sm:$0xff]  }
 0x17c   :  { %5181 = vmatpush2.bf16.msra.mxu1 %v8535_v23  ;;  %5141 = vmatprep.subr.bf16.mxu0 %v8540_v24 }
 0x17d   :  { %5182 = vmatprep.subr.bf16.mxu1 %v8543_v25 }
 0x17f   :  { %5142 = vmatpush2.bf16.msra.mxu0 %v8538_v26 }
 0x180   :  { %5183 = vmatpush2.bf16.msra.mxu1 %v8541_v27  ;;  %5143 = vmatprep.subr.bf16.mxu0 %v8546_v28  ;;  %v8588_v28 = vld [vmem:[#allocation5 + $0x14a4] ss:$16 sps:$4 sm:$0xff]  }
 0x181   :  { %5184 = vmatprep.subr.bf16.mxu1 %v8549_v30  ;;  %v8591_v30 = vld [vmem:[#allocation5 + $0x16a4] ss:$16 sps:$4 sm:$0xff]  }
 0x183   :  { %5144 = vmatpush2.bf16.msra.mxu0 %v8544_v33 }
 0x184   :  { %5185 = vmatpush2.bf16.msra.mxu1 %v8547_v34  ;;  %5145 = vmatprep.subr.bf16.mxu0 %v8552_v35  ;;  %v8586_v35 = vld [vmem:[#allocation5 + $0x14a0] ss:$16 sps:$4 sm:$0xff]  }
 0x185   :  { %5186 = vmatprep.subr.bf16.mxu1 %v8555_v36  ;;  %v8589_v36 = vld [vmem:[#allocation5 + $0x16a0] ss:$16 sps:$4 sm:$0xff]  }
 0x187   :  { %5146 = vmatpush2.bf16.msra.mxu0 %v8550_v39 }
 0x188   :  { %5187 = vmatpush2.bf16.msra.mxu1 %v8553_v41  ;;  %5147 = vmatprep.subr.bf16.mxu0 %v8558_v44 }
 0x189   :  { %5188 = vmatprep.subr.bf16.mxu1 %v8561_v45 }
 0x18b   :  { %5148 = vmatpush2.bf16.msra.mxu0 %v8556_v46  ;;  %v8594_v46 = vld [vmem:[#allocation5 + $0x1484] ss:$16 sps:$4 sm:$0xff]  }
 0x18c   :  { %5189 = vmatpush2.bf16.msra.mxu1 %v8559_v47  ;;  %5149 = vmatprep.subr.bf16.mxu0 %v8564_v51  ;;  %v8597_v47 = vld [vmem:[#allocation5 + $0x1684] ss:$16 sps:$4 sm:$0xff]   ;;  %v8595_v51 = vld [vmem:[#allocation5 + $0x1680] ss:$16 sps:$4 sm:$0xff]  }
 0x18d   :  { %5190 = vmatprep.subr.bf16.mxu1 %v8567_v53  ;;  %v8600_v53 = vld [vmem:[#allocation5 + $0x1464] ss:$16 sps:$4 sm:$0xff]  }
 0x18f   :  { %5150 = vmatpush2.bf16.msra.mxu0 %v8562_v54  ;;  %v8603_v54 = vld [vmem:[#allocation5 + $0x1664] ss:$16 sps:$4 sm:$0xff]  }
 0x190   :  { %5191 = vmatpush2.bf16.msra.mxu1 %v8565_v55  ;;  %5151 = vmatprep.subr.bf16.mxu0 %v8570_v56  ;;  %v8598_v55 = vld [vmem:[#allocation5 + $0x1460] ss:$16 sps:$4 sm:$0xff]  }
 0x191   :  { %5192 = vmatprep.subr.bf16.mxu1 %v8573_v58  ;;  %v8601_v56 = vld [vmem:[#allocation5 + $0x1660] ss:$16 sps:$4 sm:$0xff]   ;;  %v8606_v58 = vld [vmem:[#allocation5 + $0x1444] ss:$16 sps:$4 sm:$0xff]  }
 0x193   :  { %5152 = vmatpush2.bf16.msra.mxu0 %v8568_v59  ;;  %v8609_v59 = vld [vmem:[#allocation5 + $0x1644] ss:$16 sps:$4 sm:$0xff]  }
 0x194   :  { %5193 = vmatpush2.bf16.msra.mxu1 %v8571_v60  ;;  %5203 = vmatprep.subr.bf16.mxu0 %v8576_v63  ;;  %v8604_v60 = vld [vmem:[#allocation5 + $0x1440] ss:$16 sps:$4 sm:$0xff]   ;;  %v8615_v63 = vld [vmem:[#allocation5 + $0x1624] ss:$16 sps:$4 sm:$0xff]  }
 0x195   :  { %5244 = vmatprep.subr.bf16.mxu1 %v8579_v1  ;;  %v8610_v1 = vld [vmem:[#allocation5 + $0x1420] ss:$16 sps:$4 sm:$0xff]  }
 0x196   :  { %v4909_v23 = vpop.f32.mrf.mxu0  ;;  %5154 = vmatmul.mubr.bf16.vlgmr.msra.gmra.mxu0 %v9780_v11 }
 0x197   :  { %v4950_v24 = vpop.f32.mrf.mxu1  ;;  %5195 = vmatmul.mubr.bf16.vlgmr.msra.gmra.mxu1 %v9782_v12  ;;  %v4910_v25 = vadd.f32 %v4909_v23, %v9774_v31  ;;  %5204 = vmatpush1.bf16.msra.mxu0 %v8574_v4  ;;  %v8621_v4 = vld [vmem:[#allocation5 + $0x1604] ss:$16 sps:$4 sm:$0xff]   ;;  %v8625_v23 = vld [vmem:[#allocation5 + $0x17e0] ss:$16 sps:$4 sm:$0xff]  }
 0x198   :  { %5245 = vmatpush1.bf16.msra.mxu1 %v8577_v6  ;;  %v4911_v26 = vpop.f32.mrf.mxu0  ;;  %5205 = vmatprep.subr.bf16.mxu0 %v8582_v13  ;;  %v8616_v6 = vld [vmem:[#allocation5 + $0x1400] ss:$16 sps:$4 sm:$0xff]  }
 0x199   :  { %v4952_v27 = vpop.f32.mrf.mxu1  ;;  %5246 = vmatprep.subr.bf16.mxu1 %v8585_v14  ;;  %v9791_v33 = vadd.f32 %v4950_v24, %v4910_v25  ;;  %v4912_v34 = vadd.f32 %v4911_v26, %v9778_v38  ;;  %5235 = vmatprep.mubr.bf16.mxu0 %v9784_v19  ;;  %v8592_v38 = vld [vmem:[#allocation5 + $0x1480] ss:$16 sps:$4 sm:$0xff]   ;;  %v8624_v14 = vld [vmem:[#allocation5 + $0x15e4] ss:$16 sps:$4 sm:$0xff]  }
 0x19a   :  { %5276 = vmatprep.mubr.bf16.mxu1 %v9786_v22  ;;  %v4913_v39 = vpop.f32.mrf.mxu0  ;;  %v8619_v13 = vld [vmem:[#allocation5 + $0x1600] ss:$16 sps:$4 sm:$0xff]   ;;  %v8630_v24 = vld [vmem:[#allocation5 + $0x15c4] ss:$16 sps:$4 sm:$0xff]  }
 0x19b   :  { %v4954_v31 = vpop.f32.mrf.mxu1  ;;  %v9796_v41 = vadd.f32 %v4952_v27, %v4912_v34  ;;  %5206 = vmatpush1.bf16.msra.mxu0 %v8580_v15  ;;  %v8627_v15 = vld [vmem:[#allocation5 + $0x17e4] ss:$16 sps:$4 sm:$0xff]   ;;  %v8628_v26 = vld [vmem:[#allocation5 + $0x15c0] ss:$16 sps:$4 sm:$0xff]  }
 0x19c   :  { %5247 = vmatpush1.bf16.msra.mxu1 %v8583_v16  ;;  %v4914_v44 = vpop.f32.mrf.mxu0  ;;  %5207 = vmatprep.subr.bf16.mxu0 %v8588_v28  ;;  %v8622_v16 = vld [vmem:[#allocation5 + $0x15e0] ss:$16 sps:$4 sm:$0xff]   ;;  %v8633_v25 = vld [vmem:[#allocation5 + $0x17c4] ss:$16 sps:$4 sm:$0xff]  }
 0x19d   :  { %v4955_v45 = vpop.f32.mrf.mxu1  ;;  %5248 = vmatprep.subr.bf16.mxu1 %v8591_v30  ;;  %v8631_v27 = vld [vmem:[#allocation5 + $0x17c0] ss:$16 sps:$4 sm:$0xff]   ;;  %v8636_v28 = vld [vmem:[#allocation5 + $0x15a4] ss:$16 sps:$4 sm:$0xff]  }
 0x19e   :  { %v8639_v30 = vld [vmem:[#allocation5 + $0x17a4] ss:$16 sps:$4 sm:$0xff]   ;;  %v8634_v34 = vld [vmem:[#allocation5 + $0x15a0] ss:$16 sps:$4 sm:$0xff]  }
 0x19f   :  { %5208 = vmatpush1.bf16.msra.mxu0 %v8586_v35  ;;  %v8637_v35 = vld [vmem:[#allocation5 + $0x17a0] ss:$16 sps:$4 sm:$0xff]   ;;  %v8645_v39 = vld [vmem:[#allocation5 + $0x1784] ss:$16 sps:$4 sm:$0xff]  }
 0x1a0   :  { %5249 = vmatpush1.bf16.msra.mxu1 %v8589_v36  ;;  %5209 = vmatprep.subr.bf16.mxu0 %v8594_v46  ;;  %v8642_v36 = vld [vmem:[#allocation5 + $0x1584] ss:$16 sps:$4 sm:$0xff]   ;;  %v8640_v31 = vld [vmem:[#allocation5 + $0x1580] ss:$16 sps:$4 sm:$0xff]  }
 0x1a1   :  { %5250 = vmatprep.subr.bf16.mxu1 %v8597_v47  ;;  %v8643_v44 = vld [vmem:[#allocation5 + $0x1780] ss:$16 sps:$4 sm:$0xff]   ;;  %v8648_v45 = vld [vmem:[#allocation5 + $0x1564] ss:$16 sps:$4 sm:$0xff]  }
 0x1a2   :  { %v8651_v46 = vld [vmem:[#allocation5 + $0x1764] ss:$16 sps:$4 sm:$0xff]   ;;  %v8646_v47 = vld [vmem:[#allocation5 + $0x1560] ss:$16 sps:$4 sm:$0xff]  }
 0x1a3   :  { %5210 = vmatpush1.bf16.msra.mxu0 %v8592_v38  ;;  %v8649_v38 = vld [vmem:[#allocation5 + $0x1760] ss:$16 sps:$4 sm:$0xff]  }
 0x1a4   :  { %5251 = vmatpush1.bf16.msra.mxu1 %v8595_v51  ;;  %5211 = vmatprep.subr.bf16.mxu0 %v8600_v53  ;;  %v8654_v51 = vld [vmem:[#allocation5 + $0x1544] ss:$16 sps:$4 sm:$0xff]  }
 0x1a5   :  { %5252 = vmatprep.subr.bf16.mxu1 %v8603_v54  ;;  %v8657_v53 = vld [vmem:[#allocation5 + $0x1744] ss:$16 sps:$4 sm:$0xff]   ;;  %v8652_v54 = vld [vmem:[#allocation5 + $0x1540] ss:$16 sps:$4 sm:$0xff]  }
 0x1a7   :  { %5212 = vmatpush1.bf16.msra.mxu0 %v8598_v55  ;;  %v8655_v55 = vld [vmem:[#allocation5 + $0x1740] ss:$16 sps:$4 sm:$0xff]  }
 0x1a8   :  { %5253 = vmatpush1.bf16.msra.mxu1 %v8601_v56  ;;  %5213 = vmatprep.subr.bf16.mxu0 %v8606_v58  ;;  %v8660_v56 = vld [vmem:[#allocation5 + $0x1524] ss:$16 sps:$4 sm:$0xff]  }
 0x1a9   :  { %5254 = vmatprep.subr.bf16.mxu1 %v8609_v59  ;;  %v8663_v58 = vld [vmem:[#allocation5 + $0x1724] ss:$16 sps:$4 sm:$0xff]   ;;  %v8658_v59 = vld [vmem:[#allocation5 + $0x1520] ss:$16 sps:$4 sm:$0xff]  }
 0x1ab   :  { %5214 = vmatpush1.bf16.msra.mxu0 %v8604_v60  ;;  %v8661_v60 = vld [vmem:[#allocation5 + $0x1720] ss:$16 sps:$4 sm:$0xff]  }
 0x1ac   :  { %5255 = vmatpush1.bf16.msra.mxu1 %v8607_v61  ;;  %5215 = vmatprep.subr.bf16.mxu0 %v8612_v62  ;;  %v8666_v61 = vld [vmem:[#allocation5 + $0x1504] ss:$16 sps:$4 sm:$0xff]  }
 0x1ad   :  { %5256 = vmatprep.subr.bf16.mxu1 %v8615_v63  ;;  %v8669_v62 = vld [vmem:[#allocation5 + $0x1704] ss:$16 sps:$4 sm:$0xff]   ;;  %v8664_v63 = vld [vmem:[#allocation5 + $0x1500] ss:$16 sps:$4 sm:$0xff]  }
 0x1af   :  { %5216 = vmatpush1.bf16.msra.mxu0 %v8610_v1  ;;  %v8667_v1 = vld [vmem:[#allocation5 + $0x1700] ss:$16 sps:$4 sm:$0xff]  }
 0x1b0   :  { %5257 = vmatpush1.bf16.msra.mxu1 %v8613_v2  ;;  %5217 = vmatprep.subr.bf16.mxu0 %v8618_v3  ;;  %v135_v2 = vld [vmem:[#allocation2 + $0xa0] sm:$0xff]  ;;  %v137_v3 = vld [vmem:[#allocation2 + $0xb0] sm:$0xff] }
 0x1b1   :  { %5258 = vmatprep.subr.bf16.mxu1 %v8621_v4  ;;  %v8672_v4 = vld [vmem:[#allocation5 + $0xec] ss:$16 sps:$4 sm:$0xff]  }
 0x1b3   :  { %5218 = vmatpush1.bf16.msra.mxu0 %v8616_v6  ;;  %v8675_v6 = vld [vmem:[#allocation5 + $0x2ec] ss:$16 sps:$4 sm:$0xff]  }
 0x1b4   :  { %5259 = vmatpush1.bf16.msra.mxu1 %v8619_v13  ;;  %5219 = vmatprep.subr.bf16.mxu0 %v8624_v14  ;;  %v8670_v13 = vld [vmem:[#allocation5 + $0xe8] ss:$16 sps:$4 sm:$0xff]  }
 0x1b5   :  { %5260 = vmatprep.subr.bf16.mxu1 %v8627_v15  ;;  %v8673_v14 = vld [vmem:[#allocation5 + $0x2e8] ss:$16 sps:$4 sm:$0xff]   ;;  %v9798_v15 = vpack.c.bf16 %v135_v2, %v135_v2  ;;  %v8711_v2 = vld [vmem:[#allocation5 + $0x22c] ss:$16 sps:$4 sm:$0xff]  }
 0x1b7   :  { %5220 = vmatpush2.bf16.msra.mxu0 %v8622_v16  ;;  %v9800_v16 = vpack.c.bf16 %v137_v3, %v137_v3  ;;  %v8706_v3 = vld [vmem:[#allocation5 + $0x28] ss:$16 sps:$4 sm:$0xff]  }
 0x1b8   :  { %5261 = vmatpush2.bf16.msra.mxu1 %v8625_v23  ;;  %5221 = vmatprep.subr.bf16.mxu0 %v8630_v24  ;;  %v8678_v23 = vld [vmem:[#allocation5 + $0xcc] ss:$16 sps:$4 sm:$0xff]  }
 0x1b9   :  { %5262 = vmatprep.subr.bf16.mxu1 %v8633_v25  ;;  %v8681_v24 = vld [vmem:[#allocation5 + $0x2cc] ss:$16 sps:$4 sm:$0xff]   ;;  %v8676_v25 = vld [vmem:[#allocation5 + $0xc8] ss:$16 sps:$4 sm:$0xff]  }
 0x1bb   :  { %5222 = vmatpush2.bf16.msra.mxu0 %v8628_v26  ;;  %v8679_v26 = vld [vmem:[#allocation5 + $0x2c8] ss:$16 sps:$4 sm:$0xff]  }
 0x1bc   :  { %5263 = vmatpush2.bf16.msra.mxu1 %v8631_v27  ;;  %5223 = vmatprep.subr.bf16.mxu0 %v8636_v28 }
 0x1bd   :  { %5264 = vmatprep.subr.bf16.mxu1 %v8639_v30 }
 0x1bf   :  { %5224 = vmatpush2.bf16.msra.mxu0 %v8634_v34 }
 0x1c0   :  { %5265 = vmatpush2.bf16.msra.mxu1 %v8637_v35  ;;  %5225 = vmatprep.subr.bf16.mxu0 %v8642_v36  ;;  %v8684_v36 = vld [vmem:[#allocation5 + $0xac] ss:$16 sps:$4 sm:$0xff]  }
 0x1c1   :  { %5266 = vmatprep.subr.bf16.mxu1 %v8645_v39  ;;  %v8687_v39 = vld [vmem:[#allocation5 + $0x2ac] ss:$16 sps:$4 sm:$0xff]  }
 0x1c3   :  { %5226 = vmatpush2.bf16.msra.mxu0 %v8640_v31 }
 0x1c4   :  { %5267 = vmatpush2.bf16.msra.mxu1 %v8643_v44  ;;  %5227 = vmatprep.subr.bf16.mxu0 %v8648_v45  ;;  %v8682_v45 = vld [vmem:[#allocation5 + $0xa8] ss:$16 sps:$4 sm:$0xff]  }
 0x1c5   :  { %5268 = vmatprep.subr.bf16.mxu1 %v8651_v46  ;;  %v8685_v46 = vld [vmem:[#allocation5 + $0x2a8] ss:$16 sps:$4 sm:$0xff]  }
 0x1c7   :  { %5228 = vmatpush2.bf16.msra.mxu0 %v8646_v47 }
 0x1c8   :  { %5269 = vmatpush2.bf16.msra.mxu1 %v8649_v38  ;;  %5229 = vmatprep.subr.bf16.mxu0 %v8654_v51 }
 0x1c9   :  { %5270 = vmatprep.subr.bf16.mxu1 %v8657_v53 }
 0x1cb   :  { %5230 = vmatpush2.bf16.msra.mxu0 %v8652_v54  ;;  %v8690_v54 = vld [vmem:[#allocation5 + $0x8c] ss:$16 sps:$4 sm:$0xff]  }
 0x1cc   :  { %5271 = vmatpush2.bf16.msra.mxu1 %v8655_v55  ;;  %5231 = vmatprep.subr.bf16.mxu0 %v8660_v56  ;;  %v8693_v55 = vld [vmem:[#allocation5 + $0x28c] ss:$16 sps:$4 sm:$0xff]   ;;  %v8691_v56 = vld [vmem:[#allocation5 + $0x288] ss:$16 sps:$4 sm:$0xff]  }
 0x1cd   :  { %5272 = vmatprep.subr.bf16.mxu1 %v8663_v58  ;;  %v8694_v58 = vld [vmem:[#allocation5 + $0x68] ss:$16 sps:$4 sm:$0xff]  }
 0x1cf   :  { %5232 = vmatpush2.bf16.msra.mxu0 %v8658_v59  ;;  %v8697_v59 = vld [vmem:[#allocation5 + $0x268] ss:$16 sps:$4 sm:$0xff]  }
 0x1d0   :  { %5273 = vmatpush2.bf16.msra.mxu1 %v8661_v60  ;;  %5233 = vmatprep.subr.bf16.mxu0 %v8666_v61  ;;  %v8702_v60 = vld [vmem:[#allocation5 + $0x4c] ss:$16 sps:$4 sm:$0xff]  }
 0x1d1   :  { %5274 = vmatprep.subr.bf16.mxu1 %v8669_v62  ;;  %v8705_v61 = vld [vmem:[#allocation5 + $0x24c] ss:$16 sps:$4 sm:$0xff]   ;;  %v8700_v62 = vld [vmem:[#allocation5 + $0x48] ss:$16 sps:$4 sm:$0xff]  }
 0x1d3   :  { %5234 = vmatpush2.bf16.msra.mxu0 %v8664_v63  ;;  %v8703_v63 = vld [vmem:[#allocation5 + $0x248] ss:$16 sps:$4 sm:$0xff]  }
 0x1d4   :  { %5275 = vmatpush2.bf16.msra.mxu1 %v8667_v1  ;;  %5285 = vmatprep.subr.bf16.mxu0 %v8672_v4  ;;  %v8708_v1 = vld [vmem:[#allocation5 + $0x2c] ss:$16 sps:$4 sm:$0xff]   ;;  %v8709_v4 = vld [vmem:[#allocation5 + $0x228] ss:$16 sps:$4 sm:$0xff]  }
 0x1d5   :  { %5326 = vmatprep.subr.bf16.mxu1 %v8675_v6  ;;  %v8714_v6 = vld [vmem:[#allocation5 + $0xc] ss:$16 sps:$4 sm:$0xff]  }
 0x1d6   :  { %v4991_v27 = vpop.f32.mrf.mxu0  ;;  %5236 = vmatmul.mubr.bf16.vlgmr.msra.gmra.mxu0 %v9798_v15 }
 0x1d7   :  { %v5032_v28 = vpop.f32.mrf.mxu1  ;;  %5277 = vmatmul.mubr.bf16.vlgmr.msra.gmra.mxu1 %v9800_v16  ;;  %v4992_v30 = vadd.f32 %v4991_v27, %v9791_v33  ;;  %5286 = vmatpush1.bf16.msra.mxu0 %v8670_v13  ;;  %v8717_v13 = vld [vmem:[#allocation5 + $0x20c] ss:$16 sps:$4 sm:$0xff]   ;;  %v8721_v27 = vld [vmem:[#allocation5 + $0x3e8] ss:$16 sps:$4 sm:$0xff]  }
 0x1d8   :  { %5327 = vmatpush1.bf16.msra.mxu1 %v8673_v14  ;;  %v4993_v34 = vpop.f32.mrf.mxu0  ;;  %5287 = vmatprep.subr.bf16.mxu0 %v8678_v23  ;;  %v8712_v14 = vld [vmem:[#allocation5 + $0x8] ss:$16 sps:$4 sm:$0xff]  }
 0x1d9   :  { %v5034_v35 = vpop.f32.mrf.mxu1  ;;  %5328 = vmatprep.subr.bf16.mxu1 %v8681_v24  ;;  %v9805_v31 = vadd.f32 %v5032_v28, %v4992_v30  ;;  %v4994_v44 = vadd.f32 %v4993_v34, %v9796_v41  ;;  %5317 = vmatprep.mubr.bf16.mxu0 %v9714_v49  ;;  %v8688_v41 = vld [vmem:[#allocation5 + $0x88] ss:$16 sps:$4 sm:$0xff]   ;;  %v8696_v49 = vld [vmem:[#allocation5 + $0x6c] ss:$16 sps:$4 sm:$0xff]  }
 0x1da   :  { %5358 = vmatprep.mubr.bf16.mxu1 %v9716_v52  ;;  %v4995_v47 = vpop.f32.mrf.mxu0  ;;  %v8699_v52 = vld [vmem:[#allocation5 + $0x26c] ss:$16 sps:$4 sm:$0xff]   ;;  %v8715_v23 = vld [vmem:[#allocation5 + $0x208] ss:$16 sps:$4 sm:$0xff]  }
 0x1db   :  { %v5036_v33 = vpop.f32.mrf.mxu1  ;;  %v9810_v38 = vadd.f32 %v5034_v35, %v4994_v44  ;;  %5288 = vmatpush1.bf16.msra.mxu0 %v8676_v25  ;;  %v8720_v24 = vld [vmem:[#allocation5 + $0x1ec] ss:$16 sps:$4 sm:$0xff]   ;;  %v8724_v34 = vld [vmem:[#allocation5 + $0x1c8] ss:$16 sps:$4 sm:$0xff]  }
 0x1dc   :  { %5329 = vmatpush1.bf16.msra.mxu1 %v8679_v26  ;;  %v4996_v51 = vpop.f32.mrf.mxu0  ;;  %5289 = vmatprep.subr.bf16.mxu0 %v8684_v36  ;;  %v8723_v25 = vld [vmem:[#allocation5 + $0x3ec] ss:$16 sps:$4 sm:$0xff]   ;;  %v8718_v26 = vld [vmem:[#allocation5 + $0x1e8] ss:$16 sps:$4 sm:$0xff]  }
 0x1dd   :  { %v5037_v53 = vpop.f32.mrf.mxu1  ;;  %5330 = vmatprep.subr.bf16.mxu1 %v8687_v39  ;;  %v8726_v28 = vld [vmem:[#allocation5 + $0x1cc] ss:$16 sps:$4 sm:$0xff]   ;;  %v8727_v35 = vld [vmem:[#allocation5 + $0x3c8] ss:$16 sps:$4 sm:$0xff]  }
 0x1de   :  { %v8729_v30 = vld [vmem:[#allocation5 + $0x3cc] ss:$16 sps:$4 sm:$0xff]   ;;  %v8730_v44 = vld [vmem:[#allocation5 + $0x1a8] ss:$16 sps:$4 sm:$0xff]  }
 0x1df   :  { %5290 = vmatpush1.bf16.msra.mxu0 %v8682_v45  ;;  %v8732_v36 = vld [vmem:[#allocation5 + $0x1ac] ss:$16 sps:$4 sm:$0xff]   ;;  %v8733_v45 = vld [vmem:[#allocation5 + $0x3a8] ss:$16 sps:$4 sm:$0xff]  }
 0x1e0   :  { %5331 = vmatpush1.bf16.msra.mxu1 %v8685_v46  ;;  %5291 = vmatprep.subr.bf16.mxu0 %v8690_v54  ;;  %v8735_v39 = vld [vmem:[#allocation5 + $0x3ac] ss:$16 sps:$4 sm:$0xff]   ;;  %v8736_v33 = vld [vmem:[#allocation5 + $0x188] ss:$16 sps:$4 sm:$0xff]  }
 0x1e1   :  { %5332 = vmatprep.subr.bf16.mxu1 %v8693_v55  ;;  %v8738_v46 = vld [vmem:[#allocation5 + $0x18c] ss:$16 sps:$4 sm:$0xff]   ;;  %v8739_v51 = vld [vmem:[#allocation5 + $0x388] ss:$16 sps:$4 sm:$0xff]  }
 0x1e2   :  { %v8741_v47 = vld [vmem:[#allocation5 + $0x38c] ss:$16 sps:$4 sm:$0xff]   ;;  %v8742_v55 = vld [vmem:[#allocation5 + $0x168] ss:$16 sps:$4 sm:$0xff]  }
 0x1e3   :  { %5292 = vmatpush1.bf16.msra.mxu0 %v8688_v41  ;;  %v8744_v53 = vld [vmem:[#allocation5 + $0x16c] ss:$16 sps:$4 sm:$0xff]   ;;  %v8745_v41 = vld [vmem:[#allocation5 + $0x368] ss:$16 sps:$4 sm:$0xff]  }
 0x1e4   :  { %5333 = vmatpush1.bf16.msra.mxu1 %v8691_v56  ;;  %5293 = vmatprep.subr.bf16.mxu0 %v8696_v49  ;;  %v8747_v54 = vld [vmem:[#allocation5 + $0x36c] ss:$16 sps:$4 sm:$0xff]  }
 0x1e5   :  { %5334 = vmatprep.subr.bf16.mxu1 %v8699_v52  ;;  %v8750_v56 = vld [vmem:[#allocation5 + $0x14c] ss:$16 sps:$4 sm:$0xff]   ;;  %v8748_v52 = vld [vmem:[#allocation5 + $0x148] ss:$16 sps:$4 sm:$0xff]  }
 0x1e6   :  { %v8753_v49 = vld [vmem:[#allocation5 + $0x34c] ss:$16 sps:$4 sm:$0xff]  }
 0x1e7   :  { %5294 = vmatpush1.bf16.msra.mxu0 %v8694_v58  ;;  %v8751_v58 = vld [vmem:[#allocation5 + $0x348] ss:$16 sps:$4 sm:$0xff]  }
 0x1e8   :  { %5335 = vmatpush1.bf16.msra.mxu1 %v8697_v59  ;;  %5295 = vmatprep.subr.bf16.mxu0 %v8702_v60  ;;  %v8756_v59 = vld [vmem:[#allocation5 + $0x12c] ss:$16 sps:$4 sm:$0xff]  }
 0x1e9   :  { %5336 = vmatprep.subr.bf16.mxu1 %v8705_v61  ;;  %v8759_v60 = vld [vmem:[#allocation5 + $0x32c] ss:$16 sps:$4 sm:$0xff]   ;;  %v8754_v61 = vld [vmem:[#allocation5 + $0x128] ss:$16 sps:$4 sm:$0xff]  }
 0x1eb   :  { %5296 = vmatpush1.bf16.msra.mxu0 %v8700_v62  ;;  %v8757_v62 = vld [vmem:[#allocation5 + $0x328] ss:$16 sps:$4 sm:$0xff]  }
 0x1ec   :  { %5337 = vmatpush1.bf16.msra.mxu1 %v8703_v63  ;;  %5297 = vmatprep.subr.bf16.mxu0 %v8708_v1  ;;  %v8762_v63 = vld [vmem:[#allocation5 + $0x10c] ss:$16 sps:$4 sm:$0xff]  }
 0x1ed   :  { %5338 = vmatprep.subr.bf16.mxu1 %v8711_v2  ;;  %v8765_v1 = vld [vmem:[#allocation5 + $0x30c] ss:$16 sps:$4 sm:$0xff]   ;;  %v8760_v2 = vld [vmem:[#allocation5 + $0x108] ss:$16 sps:$4 sm:$0xff]  }
 0x1ef   :  { %5298 = vmatpush1.bf16.msra.mxu0 %v8706_v3  ;;  %v8763_v3 = vld [vmem:[#allocation5 + $0x308] ss:$16 sps:$4 sm:$0xff]  }
 0x1f0   :  { %5339 = vmatpush1.bf16.msra.mxu1 %v8709_v4  ;;  %5299 = vmatprep.subr.bf16.mxu0 %v8714_v6  ;;  %v8768_v4 = vld [vmem:[#allocation5 + $0x4ec] ss:$16 sps:$4 sm:$0xff]  }
 0x1f1   :  { %5340 = vmatprep.subr.bf16.mxu1 %v8717_v13  ;;  %v8771_v6 = vld [vmem:[#allocation5 + $0x6ec] ss:$16 sps:$4 sm:$0xff]   ;;  %v8766_v13 = vld [vmem:[#allocation5 + $0x4e8] ss:$16 sps:$4 sm:$0xff]  }
 0x1f3   :  { %5300 = vmatpush1.bf16.msra.mxu0 %v8712_v14  ;;  %v8769_v14 = vld [vmem:[#allocation5 + $0x6e8] ss:$16 sps:$4 sm:$0xff]  }
 0x1f4   :  { %5341 = vmatpush1.bf16.msra.mxu1 %v8715_v23  ;;  %5301 = vmatprep.subr.bf16.mxu0 %v8720_v24  ;;  %v8774_v23 = vld [vmem:[#allocation5 + $0x4cc] ss:$16 sps:$4 sm:$0xff]  }
 0x1f5   :  { %5342 = vmatprep.subr.bf16.mxu1 %v8723_v25  ;;  %v8777_v24 = vld [vmem:[#allocation5 + $0x6cc] ss:$16 sps:$4 sm:$0xff]   ;;  %v8772_v25 = vld [vmem:[#allocation5 + $0x4c8] ss:$16 sps:$4 sm:$0xff]  }
 0x1f7   :  { %5302 = vmatpush2.bf16.msra.mxu0 %v8718_v26  ;;  %v8775_v26 = vld [vmem:[#allocation5 + $0x6c8] ss:$16 sps:$4 sm:$0xff]  }
 0x1f8   :  { %5343 = vmatpush2.bf16.msra.mxu1 %v8721_v27  ;;  %5303 = vmatprep.subr.bf16.mxu0 %v8726_v28 }
 0x1f9   :  { %5344 = vmatprep.subr.bf16.mxu1 %v8729_v30 }
 0x1fb   :  { %5304 = vmatpush2.bf16.msra.mxu0 %v8724_v34 }
 0x1fc   :  { %5345 = vmatpush2.bf16.msra.mxu1 %v8727_v35  ;;  %5305 = vmatprep.subr.bf16.mxu0 %v8732_v36  ;;  %v8780_v36 = vld [vmem:[#allocation5 + $0x4ac] ss:$16 sps:$4 sm:$0xff]  }
 0x1fd   :  { %5346 = vmatprep.subr.bf16.mxu1 %v8735_v39  ;;  %v8783_v39 = vld [vmem:[#allocation5 + $0x6ac] ss:$16 sps:$4 sm:$0xff]  }
 0x1ff   :  { %5306 = vmatpush2.bf16.msra.mxu0 %v8730_v44 }
 0x200   :  { %5347 = vmatpush2.bf16.msra.mxu1 %v8733_v45  ;;  %5307 = vmatprep.subr.bf16.mxu0 %v8738_v46  ;;  %v8778_v46 = vld [vmem:[#allocation5 + $0x4a8] ss:$16 sps:$4 sm:$0xff]  }
 0x201   :  { %5348 = vmatprep.subr.bf16.mxu1 %v8741_v47  ;;  %v8781_v47 = vld [vmem:[#allocation5 + $0x6a8] ss:$16 sps:$4 sm:$0xff]  }
 0x203   :  { %5308 = vmatpush2.bf16.msra.mxu0 %v8736_v33 }
 0x204   :  { %5349 = vmatpush2.bf16.msra.mxu1 %v8739_v51  ;;  %5309 = vmatprep.subr.bf16.mxu0 %v8744_v53  ;;  %v8786_v53 = vld [vmem:[#allocation5 + $0x48c] ss:$16 sps:$4 sm:$0xff]  }
 0x205   :  { %5350 = vmatprep.subr.bf16.mxu1 %v8747_v54  ;;  %v8789_v54 = vld [vmem:[#allocation5 + $0x68c] ss:$16 sps:$4 sm:$0xff]  }
 0x207   :  { %5310 = vmatpush2.bf16.msra.mxu0 %v8742_v55  ;;  %v8787_v55 = vld [vmem:[#allocation5 + $0x688] ss:$16 sps:$4 sm:$0xff]  }
 0x208   :  { %5351 = vmatpush2.bf16.msra.mxu1 %v8745_v41  ;;  %5311 = vmatprep.subr.bf16.mxu0 %v8750_v56  ;;  %v8790_v41 = vld [vmem:[#allocation5 + $0x468] ss:$16 sps:$4 sm:$0xff]  }
 0x209   :  { %5352 = vmatprep.subr.bf16.mxu1 %v8753_v49  ;;  %v8793_v56 = vld [vmem:[#allocation5 + $0x668] ss:$16 sps:$4 sm:$0xff]   ;;  %v8798_v49 = vld [vmem:[#allocation5 + $0x44c] ss:$16 sps:$4 sm:$0xff]  }
 0x20b   :  { %5312 = vmatpush2.bf16.msra.mxu0 %v8748_v52  ;;  %v8801_v52 = vld [vmem:[#allocation5 + $0x64c] ss:$16 sps:$4 sm:$0xff]  }
 0x20c   :  { %5353 = vmatpush2.bf16.msra.mxu1 %v8751_v58  ;;  %5313 = vmatprep.subr.bf16.mxu0 %v8756_v59  ;;  %v8796_v58 = vld [vmem:[#allocation5 + $0x448] ss:$16 sps:$4 sm:$0xff]  }
 0x20d   :  { %5354 = vmatprep.subr.bf16.mxu1 %v8759_v60  ;;  %v8799_v59 = vld [vmem:[#allocation5 + $0x648] ss:$16 sps:$4 sm:$0xff]   ;;  %v8804_v60 = vld [vmem:[#allocation5 + $0x42c] ss:$16 sps:$4 sm:$0xff]  }
 0x20f   :  { %5314 = vmatpush2.bf16.msra.mxu0 %v8754_v61  ;;  %v8807_v61 = vld [vmem:[#allocation5 + $0x62c] ss:$16 sps:$4 sm:$0xff]  }
 0x210   :  { %5355 = vmatpush2.bf16.msra.mxu1 %v8757_v62  ;;  %5315 = vmatprep.subr.bf16.mxu0 %v8762_v63  ;;  %v8802_v62 = vld [vmem:[#allocation5 + $0x428] ss:$16 sps:$4 sm:$0xff]  }
 0x211   :  { %5356 = vmatprep.subr.bf16.mxu1 %v8765_v1  ;;  %v8805_v63 = vld [vmem:[#allocation5 + $0x628] ss:$16 sps:$4 sm:$0xff]   ;;  %v8810_v1 = vld [vmem:[#allocation5 + $0x40c] ss:$16 sps:$4 sm:$0xff]  }
 0x213   :  { %5316 = vmatpush2.bf16.msra.mxu0 %v8760_v2  ;;  %v8813_v2 = vld [vmem:[#allocation5 + $0x60c] ss:$16 sps:$4 sm:$0xff]  }
 0x214   :  { %5357 = vmatpush2.bf16.msra.mxu1 %v8763_v3  ;;  %5367 = vmatprep.subr.bf16.mxu0 %v8768_v4  ;;  %v8808_v3 = vld [vmem:[#allocation5 + $0x408] ss:$16 sps:$4 sm:$0xff]  }
 0x215   :  { %5408 = vmatprep.subr.bf16.mxu1 %v8771_v6  ;;  %v8811_v4 = vld [vmem:[#allocation5 + $0x608] ss:$16 sps:$4 sm:$0xff]   ;;  %v8816_v6 = vld [vmem:[#allocation5 + $0x5ec] ss:$16 sps:$4 sm:$0xff]  }
 0x216   :  { %v5073_v27 = vpop.f32.mrf.mxu0  ;;  %5318 = vmatmul.mubr.bf16.vlgmr.msra.gmra.mxu0 %v9720_v8 }
 0x217   :  { %v5114_v28 = vpop.f32.mrf.mxu1  ;;  %5359 = vmatmul.mubr.bf16.vlgmr.msra.gmra.mxu1 %v9722_v9  ;;  %v5074_v30 = vadd.f32 %v5073_v27, %v9805_v31  ;;  %5368 = vmatpush1.bf16.msra.mxu0 %v8766_v13  ;;  %v8819_v13 = vld [vmem:[#allocation5 + $0x7ec] ss:$16 sps:$4 sm:$0xff]   ;;  %v8823_v27 = vld [vmem:[#allocation5 + $0x7c8] ss:$16 sps:$4 sm:$0xff]  }
 0x218   :  { %5409 = vmatpush1.bf16.msra.mxu1 %v8769_v14  ;;  %v5075_v34 = vpop.f32.mrf.mxu0  ;;  %5369 = vmatprep.subr.bf16.mxu0 %v8774_v23  ;;  %v8814_v14 = vld [vmem:[#allocation5 + $0x5e8] ss:$16 sps:$4 sm:$0xff]  }
 0x219   :  { %v5116_v35 = vpop.f32.mrf.mxu1  ;;  %5410 = vmatprep.subr.bf16.mxu1 %v8777_v24  ;;  %v9815_v44 = vadd.f32 %v5114_v28, %v5074_v30  ;;  %v5076_v45 = vadd.f32 %v5075_v34, %v9810_v38  ;;  %5399 = vmatprep.mubr.bf16.mxu0 %v9726_v37  ;;  %v8784_v38 = vld [vmem:[#allocation5 + $0x488] ss:$16 sps:$4 sm:$0xff]   ;;  %v8792_v37 = vld [vmem:[#allocation5 + $0x46c] ss:$16 sps:$4 sm:$0xff]  }
 0x21a   :  { %5440 = vmatprep.mubr.bf16.mxu1 %v9728_v40  ;;  %v5077_v8 = vpop.f32.mrf.mxu0  ;;  %v8795_v40 = vld [vmem:[#allocation5 + $0x66c] ss:$16 sps:$4 sm:$0xff]   ;;  %v8817_v23 = vld [vmem:[#allocation5 + $0x7e8] ss:$16 sps:$4 sm:$0xff]  }
 0x21b   :  { %v5118_v9 = vpop.f32.mrf.mxu1  ;;  %v9820_v31 = vadd.f32 %v5116_v35, %v5076_v45  ;;  %5370 = vmatpush1.bf16.msra.mxu0 %v8772_v25  ;;  %v8822_v24 = vld [vmem:[#allocation5 + $0x5cc] ss:$16 sps:$4 sm:$0xff]   ;;  %v8826_v34 = vld [vmem:[#allocation5 + $0x5a8] ss:$16 sps:$4 sm:$0xff]  }
 0x21c   :  { %5411 = vmatpush1.bf16.msra.mxu1 %v8775_v26  ;;  %v5078_v33 = vpop.f32.mrf.mxu0  ;;  %5371 = vmatprep.subr.bf16.mxu0 %v8780_v36  ;;  %v8825_v25 = vld [vmem:[#allocation5 + $0x7cc] ss:$16 sps:$4 sm:$0xff]   ;;  %v8820_v26 = vld [vmem:[#allocation5 + $0x5c8] ss:$16 sps:$4 sm:$0xff]  }
 0x21d   :  { %v5119_v51 = vpop.f32.mrf.mxu1  ;;  %5412 = vmatprep.subr.bf16.mxu1 %v8783_v39  ;;  %v8828_v28 = vld [vmem:[#allocation5 + $0x5ac] ss:$16 sps:$4 sm:$0xff]   ;;  %v8829_v35 = vld [vmem:[#allocation5 + $0x7a8] ss:$16 sps:$4 sm:$0xff]  }
 0x21e   :  { %v8831_v30 = vld [vmem:[#allocation5 + $0x7ac] ss:$16 sps:$4 sm:$0xff]   ;;  %v8832_v45 = vld [vmem:[#allocation5 + $0x588] ss:$16 sps:$4 sm:$0xff]  }
 0x21f   :  { %5372 = vmatpush1.bf16.msra.mxu0 %v8778_v46  ;;  %v8834_v36 = vld [vmem:[#allocation5 + $0x58c] ss:$16 sps:$4 sm:$0xff]   ;;  %v8835_v46 = vld [vmem:[#allocation5 + $0x788] ss:$16 sps:$4 sm:$0xff]  }
 0x220   :  { %5413 = vmatpush1.bf16.msra.mxu1 %v8781_v47  ;;  %5373 = vmatprep.subr.bf16.mxu0 %v8786_v53  ;;  %v8837_v39 = vld [vmem:[#allocation5 + $0x78c] ss:$16 sps:$4 sm:$0xff]   ;;  %v8838_v9 = vld [vmem:[#allocation5 + $0x568] ss:$16 sps:$4 sm:$0xff]  }
 0x221   :  { %5414 = vmatprep.subr.bf16.mxu1 %v8789_v54  ;;  %v8840_v47 = vld [vmem:[#allocation5 + $0x56c] ss:$16 sps:$4 sm:$0xff]   ;;  %v8841_v33 = vld [vmem:[#allocation5 + $0x768] ss:$16 sps:$4 sm:$0xff]  }
 0x222   :  { %v8843_v8 = vld [vmem:[#allocation5 + $0x76c] ss:$16 sps:$4 sm:$0xff]   ;;  %v8844_v54 = vld [vmem:[#allocation5 + $0x548] ss:$16 sps:$4 sm:$0xff]  }
 0x223   :  { %5374 = vmatpush1.bf16.msra.mxu0 %v8784_v38  ;;  %v8846_v51 = vld [vmem:[#allocation5 + $0x54c] ss:$16 sps:$4 sm:$0xff]   ;;  %v8847_v38 = vld [vmem:[#allocation5 + $0x748] ss:$16 sps:$4 sm:$0xff]  }
 0x224   :  { %5415 = vmatpush1.bf16.msra.mxu1 %v8787_v55  ;;  %5375 = vmatprep.subr.bf16.mxu0 %v8792_v37  ;;  %v8849_v53 = vld [vmem:[#allocation5 + $0x74c] ss:$16 sps:$4 sm:$0xff]  }
 0x225   :  { %5416 = vmatprep.subr.bf16.mxu1 %v8795_v40  ;;  %v8852_v55 = vld [vmem:[#allocation5 + $0x52c] ss:$16 sps:$4 sm:$0xff]   ;;  %v8850_v40 = vld [vmem:[#allocation5 + $0x528] ss:$16 sps:$4 sm:$0xff]  }
 0x226   :  { %v8855_v37 = vld [vmem:[#allocation5 + $0x72c] ss:$16 sps:$4 sm:$0xff]  }
 0x227   :  { %5376 = vmatpush1.bf16.msra.mxu0 %v8790_v41  ;;  %v8853_v41 = vld [vmem:[#allocation5 + $0x728] ss:$16 sps:$4 sm:$0xff]  }
 0x228   :  { %5417 = vmatpush1.bf16.msra.mxu1 %v8793_v56  ;;  %5377 = vmatprep.subr.bf16.mxu0 %v8798_v49  ;;  %v8858_v56 = vld [vmem:[#allocation5 + $0x50c] ss:$16 sps:$4 sm:$0xff]  }
 0x229   :  { %5418 = vmatprep.subr.bf16.mxu1 %v8801_v52  ;;  %v8861_v49 = vld [vmem:[#allocation5 + $0x70c] ss:$16 sps:$4 sm:$0xff]   ;;  %v8856_v52 = vld [vmem:[#allocation5 + $0x508] ss:$16 sps:$4 sm:$0xff]  }
 0x22b   :  { %5378 = vmatpush1.bf16.msra.mxu0 %v8796_v58  ;;  %v8859_v58 = vld [vmem:[#allocation5 + $0x708] ss:$16 sps:$4 sm:$0xff]  }
 0x22c   :  { %5419 = vmatpush1.bf16.msra.mxu1 %v8799_v59  ;;  %5379 = vmatprep.subr.bf16.mxu0 %v8804_v60  ;;  %v8864_v59 = vld [vmem:[#allocation5 + $0x8ec] ss:$16 sps:$4 sm:$0xff]  }
 0x22d   :  { %5420 = vmatprep.subr.bf16.mxu1 %v8807_v61  ;;  %v8867_v60 = vld [vmem:[#allocation5 + $0xaec] ss:$16 sps:$4 sm:$0xff]   ;;  %v8862_v61 = vld [vmem:[#allocation5 + $0x8e8] ss:$16 sps:$4 sm:$0xff]  }
 0x22f   :  { %5380 = vmatpush1.bf16.msra.mxu0 %v8802_v62  ;;  %v8865_v62 = vld [vmem:[#allocation5 + $0xae8] ss:$16 sps:$4 sm:$0xff]  }
 0x230   :  { %5421 = vmatpush1.bf16.msra.mxu1 %v8805_v63  ;;  %5381 = vmatprep.subr.bf16.mxu0 %v8810_v1  ;;  %v8870_v63 = vld [vmem:[#allocation5 + $0x8cc] ss:$16 sps:$4 sm:$0xff]  }
 0x231   :  { %5422 = vmatprep.subr.bf16.mxu1 %v8813_v2  ;;  %v8873_v1 = vld [vmem:[#allocation5 + $0xacc] ss:$16 sps:$4 sm:$0xff]   ;;  %v8868_v2 = vld [vmem:[#allocation5 + $0x8c8] ss:$16 sps:$4 sm:$0xff]  }
 0x233   :  { %5382 = vmatpush1.bf16.msra.mxu0 %v8808_v3  ;;  %v8871_v3 = vld [vmem:[#allocation5 + $0xac8] ss:$16 sps:$4 sm:$0xff]  }
 0x234   :  { %5423 = vmatpush1.bf16.msra.mxu1 %v8811_v4  ;;  %5383 = vmatprep.subr.bf16.mxu0 %v8816_v6 }
 0x235   :  { %5424 = vmatprep.subr.bf16.mxu1 %v8819_v13 }
 0x237   :  { %5384 = vmatpush2.bf16.msra.mxu0 %v8814_v14 }
 0x238   :  { %5425 = vmatpush2.bf16.msra.mxu1 %v8817_v23  ;;  %5385 = vmatprep.subr.bf16.mxu0 %v8822_v24  ;;  %v8876_v24 = vld [vmem:[#allocation5 + $0x8ac] ss:$16 sps:$4 sm:$0xff]  }
 0x239   :  { %5426 = vmatprep.subr.bf16.mxu1 %v8825_v25  ;;  %v8879_v25 = vld [vmem:[#allocation5 + $0xaac] ss:$16 sps:$4 sm:$0xff]  }
 0x23b   :  { %5386 = vmatpush2.bf16.msra.mxu0 %v8820_v26 }
 0x23c   :  { %5427 = vmatpush2.bf16.msra.mxu1 %v8823_v27  ;;  %5387 = vmatprep.subr.bf16.mxu0 %v8828_v28  ;;  %v8874_v28 = vld [vmem:[#allocation5 + $0x8a8] ss:$16 sps:$4 sm:$0xff]  }
 0x23d   :  { %5428 = vmatprep.subr.bf16.mxu1 %v8831_v30  ;;  %v8877_v30 = vld [vmem:[#allocation5 + $0xaa8] ss:$16 sps:$4 sm:$0xff]  }
 0x23f   :  { %5388 = vmatpush2.bf16.msra.mxu0 %v8826_v34 }
 0x240   :  { %5429 = vmatpush2.bf16.msra.mxu1 %v8829_v35  ;;  %5389 = vmatprep.subr.bf16.mxu0 %v8834_v36  ;;  %v8882_v36 = vld [vmem:[#allocation5 + $0x88c] ss:$16 sps:$4 sm:$0xff]  }
 0x241   :  { %5430 = vmatprep.subr.bf16.mxu1 %v8837_v39  ;;  %v8885_v39 = vld [vmem:[#allocation5 + $0xa8c] ss:$16 sps:$4 sm:$0xff]  }
 0x243   :  { %5390 = vmatpush2.bf16.msra.mxu0 %v8832_v45  ;;  %v8883_v45 = vld [vmem:[#allocation5 + $0xa88] ss:$16 sps:$4 sm:$0xff]  }
 0x244   :  { %5431 = vmatpush2.bf16.msra.mxu1 %v8835_v46  ;;  %5391 = vmatprep.subr.bf16.mxu0 %v8840_v47  ;;  %v8886_v46 = vld [vmem:[#allocation5 + $0x868] ss:$16 sps:$4 sm:$0xff]  }
 0x245   :  { %5432 = vmatprep.subr.bf16.mxu1 %v8843_v8  ;;  %v8889_v47 = vld [vmem:[#allocation5 + $0xa68] ss:$16 sps:$4 sm:$0xff]   ;;  %v8894_v8 = vld [vmem:[#allocation5 + $0x84c] ss:$16 sps:$4 sm:$0xff]  }
 0x247   :  { %5392 = vmatpush2.bf16.msra.mxu0 %v8838_v9  ;;  %v8897_v9 = vld [vmem:[#allocation5 + $0xa4c] ss:$16 sps:$4 sm:$0xff]  }
 0x248   :  { %5433 = vmatpush2.bf16.msra.mxu1 %v8841_v33  ;;  %5393 = vmatprep.subr.bf16.mxu0 %v8846_v51  ;;  %v8892_v33 = vld [vmem:[#allocation5 + $0x848] ss:$16 sps:$4 sm:$0xff]  }
 0x249   :  { %5434 = vmatprep.subr.bf16.mxu1 %v8849_v53  ;;  %v8895_v51 = vld [vmem:[#allocation5 + $0xa48] ss:$16 sps:$4 sm:$0xff]   ;;  %v8900_v53 = vld [vmem:[#allocation5 + $0x82c] ss:$16 sps:$4 sm:$0xff]  }
 0x24b   :  { %5394 = vmatpush2.bf16.msra.mxu0 %v8844_v54  ;;  %v8903_v54 = vld [vmem:[#allocation5 + $0xa2c] ss:$16 sps:$4 sm:$0xff]  }
 0x24c   :  { %5435 = vmatpush2.bf16.msra.mxu1 %v8847_v38  ;;  %5395 = vmatprep.subr.bf16.mxu0 %v8852_v55  ;;  %v8898_v38 = vld [vmem:[#allocation5 + $0x828] ss:$16 sps:$4 sm:$0xff]  }
 0x24d   :  { %5436 = vmatprep.subr.bf16.mxu1 %v8855_v37  ;;  %v8901_v55 = vld [vmem:[#allocation5 + $0xa28] ss:$16 sps:$4 sm:$0xff]   ;;  %v8906_v37 = vld [vmem:[#allocation5 + $0x80c] ss:$16 sps:$4 sm:$0xff]  }
 0x24f   :  { %5396 = vmatpush2.bf16.msra.mxu0 %v8850_v40  ;;  %v8909_v40 = vld [vmem:[#allocation5 + $0xa0c] ss:$16 sps:$4 sm:$0xff]  }
 0x250   :  { %5437 = vmatpush2.bf16.msra.mxu1 %v8853_v41  ;;  %5397 = vmatprep.subr.bf16.mxu0 %v8858_v56  ;;  %v8904_v41 = vld [vmem:[#allocation5 + $0x808] ss:$16 sps:$4 sm:$0xff]  }
 0x251   :  { %5438 = vmatprep.subr.bf16.mxu1 %v8861_v49  ;;  %v8907_v56 = vld [vmem:[#allocation5 + $0xa08] ss:$16 sps:$4 sm:$0xff]   ;;  %v8912_v49 = vld [vmem:[#allocation5 + $0x9ec] ss:$16 sps:$4 sm:$0xff]  }
 0x253   :  { %5398 = vmatpush2.bf16.msra.mxu0 %v8856_v52  ;;  %v8915_v52 = vld [vmem:[#allocation5 + $0xbec] ss:$16 sps:$4 sm:$0xff]  }
 0x254   :  { %5439 = vmatpush2.bf16.msra.mxu1 %v8859_v58  ;;  %5449 = vmatprep.subr.bf16.mxu0 %v8864_v59  ;;  %v8910_v58 = vld [vmem:[#allocation5 + $0x9e8] ss:$16 sps:$4 sm:$0xff]  }
 0x255   :  { %5490 = vmatprep.subr.bf16.mxu1 %v8867_v60  ;;  %v8913_v59 = vld [vmem:[#allocation5 + $0xbe8] ss:$16 sps:$4 sm:$0xff]   ;;  %v8918_v60 = vld [vmem:[#allocation5 + $0x9cc] ss:$16 sps:$4 sm:$0xff]  }
 0x256   :  { %v5155_v4 = vpop.f32.mrf.mxu0  ;;  %5400 = vmatmul.mubr.bf16.vlgmr.msra.gmra.mxu0 %v9732_v20 }
 0x257   :  { %v5196_v6 = vpop.f32.mrf.mxu1  ;;  %5441 = vmatmul.mubr.bf16.vlgmr.msra.gmra.mxu1 %v9734_v21  ;;  %v5156_v13 = vadd.f32 %v5155_v4, %v9815_v44  ;;  %5450 = vmatpush1.bf16.msra.mxu0 %v8862_v61  ;;  %v8921_v61 = vld [vmem:[#allocation5 + $0xbcc] ss:$16 sps:$4 sm:$0xff]   ;;  %v8925_v4 = vld [vmem:[#allocation5 + $0xba8] ss:$16 sps:$4 sm:$0xff]  }
 0x258   :  { %5491 = vmatpush1.bf16.msra.mxu1 %v8865_v62  ;;  %v5157_v14 = vpop.f32.mrf.mxu0  ;;  %5451 = vmatprep.subr.bf16.mxu0 %v8870_v63  ;;  %v8916_v62 = vld [vmem:[#allocation5 + $0x9c8] ss:$16 sps:$4 sm:$0xff]  }
 0x259   :  { %v5198_v23 = vpop.f32.mrf.mxu1  ;;  %5492 = vmatprep.subr.bf16.mxu1 %v8873_v1  ;;  %v9825_v26 = vadd.f32 %v5196_v6, %v5156_v13  ;;  %v5158_v27 = vadd.f32 %v5157_v14, %v9820_v31  ;;  %5481 = vmatprep.mubr.bf16.mxu0 %v9738_v29  ;;  %v8880_v31 = vld [vmem:[#allocation5 + $0x888] ss:$16 sps:$4 sm:$0xff]   ;;  %v8888_v29 = vld [vmem:[#allocation5 + $0x86c] ss:$16 sps:$4 sm:$0xff]  }
 0x25a   :  { %5522 = vmatprep.mubr.bf16.mxu1 %v9740_v32  ;;  %v5159_v20 = vpop.f32.mrf.mxu0  ;;  %v8891_v32 = vld [vmem:[#allocation5 + $0xa6c] ss:$16 sps:$4 sm:$0xff]   ;;  %v8919_v63 = vld [vmem:[#allocation5 + $0xbc8] ss:$16 sps:$4 sm:$0xff]  }
 0x25b   :  { %v5200_v21 = vpop.f32.mrf.mxu1  ;;  %v9830_v44 = vadd.f32 %v5198_v23, %v5158_v27  ;;  %5452 = vmatpush1.bf16.msra.mxu0 %v8868_v2  ;;  %v8924_v1 = vld [vmem:[#allocation5 + $0x9ac] ss:$16 sps:$4 sm:$0xff]   ;;  %v8928_v14 = vld [vmem:[#allocation5 + $0x988] ss:$16 sps:$4 sm:$0xff]  }
 0x25c   :  { %5493 = vmatpush1.bf16.msra.mxu1 %v8871_v3  ;;  %v5160_v34 = vpop.f32.mrf.mxu0  ;;  %5453 = vmatprep.subr.bf16.mxu0 %v8876_v24  ;;  %v8927_v2 = vld [vmem:[#allocation5 + $0xbac] ss:$16 sps:$4 sm:$0xff]   ;;  %v8922_v3 = vld [vmem:[#allocation5 + $0x9a8] ss:$16 sps:$4 sm:$0xff]  }
 0x25d   :  { %v5201_v35 = vpop.f32.mrf.mxu1  ;;  %5494 = vmatprep.subr.bf16.mxu1 %v8879_v25  ;;  %v8930_v6 = vld [vmem:[#allocation5 + $0x98c] ss:$16 sps:$4 sm:$0xff]   ;;  %v8931_v23 = vld [vmem:[#allocation5 + $0xb88] ss:$16 sps:$4 sm:$0xff]  }
 0x25e   :  { %v8933_v13 = vld [vmem:[#allocation5 + $0xb8c] ss:$16 sps:$4 sm:$0xff]   ;;  %v8934_v27 = vld [vmem:[#allocation5 + $0x968] ss:$16 sps:$4 sm:$0xff]  }
 0x25f   :  { %5454 = vmatpush1.bf16.msra.mxu0 %v8874_v28  ;;  %v8936_v24 = vld [vmem:[#allocation5 + $0x96c] ss:$16 sps:$4 sm:$0xff]   ;;  %v8937_v28 = vld [vmem:[#allocation5 + $0xb68] ss:$16 sps:$4 sm:$0xff]  }
 0x260   :  { %5495 = vmatpush1.bf16.msra.mxu1 %v8877_v30  ;;  %5455 = vmatprep.subr.bf16.mxu0 %v8882_v36  ;;  %v8939_v25 = vld [vmem:[#allocation5 + $0xb6c] ss:$16 sps:$4 sm:$0xff]   ;;  %v8940_v21 = vld [vmem:[#allocation5 + $0x948] ss:$16 sps:$4 sm:$0xff]  }
 0x261   :  { %5496 = vmatprep.subr.bf16.mxu1 %v8885_v39  ;;  %v8942_v30 = vld [vmem:[#allocation5 + $0x94c] ss:$16 sps:$4 sm:$0xff]   ;;  %v8943_v34 = vld [vmem:[#allocation5 + $0xb48] ss:$16 sps:$4 sm:$0xff]  }
 0x262   :  { %v8945_v20 = vld [vmem:[#allocation5 + $0xb4c] ss:$16 sps:$4 sm:$0xff]   ;;  %v8946_v39 = vld [vmem:[#allocation5 + $0x928] ss:$16 sps:$4 sm:$0xff]  }
 0x263   :  { %5456 = vmatpush1.bf16.msra.mxu0 %v8880_v31  ;;  %v8948_v35 = vld [vmem:[#allocation5 + $0x92c] ss:$16 sps:$4 sm:$0xff]   ;;  %v8949_v31 = vld [vmem:[#allocation5 + $0xb28] ss:$16 sps:$4 sm:$0xff]  }
 0x264   :  { %5497 = vmatpush1.bf16.msra.mxu1 %v8883_v45  ;;  %5457 = vmatprep.subr.bf16.mxu0 %v8888_v29  ;;  %v8951_v36 = vld [vmem:[#allocation5 + $0xb2c] ss:$16 sps:$4 sm:$0xff]  }
 0x265   :  { %5498 = vmatprep.subr.bf16.mxu1 %v8891_v32  ;;  %v8954_v45 = vld [vmem:[#allocation5 + $0x90c] ss:$16 sps:$4 sm:$0xff]   ;;  %v8952_v32 = vld [vmem:[#allocation5 + $0x908] ss:$16 sps:$4 sm:$0xff]  }
 0x266   :  { %v8957_v29 = vld [vmem:[#allocation5 + $0xb0c] ss:$16 sps:$4 sm:$0xff]  }
 0x267   :  { %5458 = vmatpush1.bf16.msra.mxu0 %v8886_v46  ;;  %v8955_v46 = vld [vmem:[#allocation5 + $0xb08] ss:$16 sps:$4 sm:$0xff]  }
 0x268   :  { %5499 = vmatpush1.bf16.msra.mxu1 %v8889_v47  ;;  %5459 = vmatprep.subr.bf16.mxu0 %v8894_v8  ;;  %v8960_v47 = vld [vmem:[#allocation5 + $0xcec] ss:$16 sps:$4 sm:$0xff]  }
 0x269   :  { %5500 = vmatprep.subr.bf16.mxu1 %v8897_v9  ;;  %v8963_v8 = vld [vmem:[#allocation5 + $0xeec] ss:$16 sps:$4 sm:$0xff]   ;;  %v8958_v9 = vld [vmem:[#allocation5 + $0xce8] ss:$16 sps:$4 sm:$0xff]  }
 0x26b   :  { %5460 = vmatpush1.bf16.msra.mxu0 %v8892_v33  ;;  %v8961_v33 = vld [vmem:[#allocation5 + $0xee8] ss:$16 sps:$4 sm:$0xff]  }
 0x26c   :  { %5501 = vmatpush1.bf16.msra.mxu1 %v8895_v51  ;;  %5461 = vmatprep.subr.bf16.mxu0 %v8900_v53  ;;  %v8966_v51 = vld [vmem:[#allocation5 + $0xccc] ss:$16 sps:$4 sm:$0xff]  }
 0x26d   :  { %5502 = vmatprep.subr.bf16.mxu1 %v8903_v54  ;;  %v8969_v53 = vld [vmem:[#allocation5 + $0xecc] ss:$16 sps:$4 sm:$0xff]  }
 0x26f   :  { %5462 = vmatpush1.bf16.msra.mxu0 %v8898_v38 }
 0x270   :  { %5503 = vmatpush1.bf16.msra.mxu1 %v8901_v55  ;;  %5463 = vmatprep.subr.bf16.mxu0 %v8906_v37  ;;  %v8964_v37 = vld [vmem:[#allocation5 + $0xcc8] ss:$16 sps:$4 sm:$0xff]  }
 0x271   :  { %5504 = vmatprep.subr.bf16.mxu1 %v8909_v40  ;;  %v8967_v40 = vld [vmem:[#allocation5 + $0xec8] ss:$16 sps:$4 sm:$0xff]  }
 0x273   :  { %5464 = vmatpush1.bf16.msra.mxu0 %v8904_v41 }
 0x274   :  { %5505 = vmatpush1.bf16.msra.mxu1 %v8907_v56  ;;  %5465 = vmatprep.subr.bf16.mxu0 %v8912_v49  ;;  %v8972_v49 = vld [vmem:[#allocation5 + $0xcac] ss:$16 sps:$4 sm:$0xff]  }
 0x275   :  { %5506 = vmatprep.subr.bf16.mxu1 %v8915_v52  ;;  %v8975_v52 = vld [vmem:[#allocation5 + $0xeac] ss:$16 sps:$4 sm:$0xff]  }
 0x277   :  { %5466 = vmatpush2.bf16.msra.mxu0 %v8910_v58 }
 0x278   :  { %5507 = vmatpush2.bf16.msra.mxu1 %v8913_v59  ;;  %5467 = vmatprep.subr.bf16.mxu0 %v8918_v60  ;;  %v8970_v60 = vld [vmem:[#allocation5 + $0xca8] ss:$16 sps:$4 sm:$0xff]  }
 0x279   :  { %5508 = vmatprep.subr.bf16.mxu1 %v8921_v61  ;;  %v8973_v61 = vld [vmem:[#allocation5 + $0xea8] ss:$16 sps:$4 sm:$0xff]  }
 0x27b   :  { %5468 = vmatpush2.bf16.msra.mxu0 %v8916_v62 }
 0x27c   :  { %5509 = vmatpush2.bf16.msra.mxu1 %v8919_v63  ;;  %5469 = vmatprep.subr.bf16.mxu0 %v8924_v1  ;;  %v8978_v1 = vld [vmem:[#allocation5 + $0xc8c] ss:$16 sps:$4 sm:$0xff]  }
 0x27d   :  { %5510 = vmatprep.subr.bf16.mxu1 %v8927_v2  ;;  %v8981_v2 = vld [vmem:[#allocation5 + $0xe8c] ss:$16 sps:$4 sm:$0xff]  }
 0x27f   :  { %5470 = vmatpush2.bf16.msra.mxu0 %v8922_v3  ;;  %v8987_v3 = vld [vmem:[#allocation5 + $0xe6c] ss:$16 sps:$4 sm:$0xff]  }
 0x280   :  { %5511 = vmatpush2.bf16.msra.mxu1 %v8925_v4  ;;  %5471 = vmatprep.subr.bf16.mxu0 %v8930_v6  ;;  %v8982_v4 = vld [vmem:[#allocation5 + $0xc68] ss:$16 sps:$4 sm:$0xff]  }
 0x281   :  { %5512 = vmatprep.subr.bf16.mxu1 %v8933_v13  ;;  %v8985_v6 = vld [vmem:[#allocation5 + $0xe68] ss:$16 sps:$4 sm:$0xff]   ;;  %v8990_v13 = vld [vmem:[#allocation5 + $0xc4c] ss:$16 sps:$4 sm:$0xff]  }
 0x283   :  { %5472 = vmatpush2.bf16.msra.mxu0 %v8928_v14  ;;  %v8993_v14 = vld [vmem:[#allocation5 + $0xe4c] ss:$16 sps:$4 sm:$0xff]  }
 0x284   :  { %5513 = vmatpush2.bf16.msra.mxu1 %v8931_v23  ;;  %5473 = vmatprep.subr.bf16.mxu0 %v8936_v24  ;;  %v8988_v23 = vld [vmem:[#allocation5 + $0xc48] ss:$16 sps:$4 sm:$0xff]  }
 0x285   :  { %5514 = vmatprep.subr.bf16.mxu1 %v8939_v25  ;;  %v8991_v24 = vld [vmem:[#allocation5 + $0xe48] ss:$16 sps:$4 sm:$0xff]   ;;  %v8996_v25 = vld [vmem:[#allocation5 + $0xc2c] ss:$16 sps:$4 sm:$0xff]  }
 0x287   :  { %5474 = vmatpush2.bf16.msra.mxu0 %v8934_v27  ;;  %v8999_v27 = vld [vmem:[#allocation5 + $0xe2c] ss:$16 sps:$4 sm:$0xff]  }
 0x288   :  { %5515 = vmatpush2.bf16.msra.mxu1 %v8937_v28  ;;  %5475 = vmatprep.subr.bf16.mxu0 %v8942_v30  ;;  %v8994_v28 = vld [vmem:[#allocation5 + $0xc28] ss:$16 sps:$4 sm:$0xff]  }
 0x289   :  { %5516 = vmatprep.subr.bf16.mxu1 %v8945_v20  ;;  %v8997_v30 = vld [vmem:[#allocation5 + $0xe28] ss:$16 sps:$4 sm:$0xff]   ;;  %v9002_v20 = vld [vmem:[#allocation5 + $0xc0c] ss:$16 sps:$4 sm:$0xff]  }
 0x28b   :  { %5476 = vmatpush2.bf16.msra.mxu0 %v8940_v21  ;;  %v9005_v21 = vld [vmem:[#allocation5 + $0xe0c] ss:$16 sps:$4 sm:$0xff]  }
 0x28c   :  { %5517 = vmatpush2.bf16.msra.mxu1 %v8943_v34  ;;  %5477 = vmatprep.subr.bf16.mxu0 %v8948_v35  ;;  %v9000_v34 = vld [vmem:[#allocation5 + $0xc08] ss:$16 sps:$4 sm:$0xff]  }
 0x28d   :  { %5518 = vmatprep.subr.bf16.mxu1 %v8951_v36  ;;  %v9003_v35 = vld [vmem:[#allocation5 + $0xe08] ss:$16 sps:$4 sm:$0xff]   ;;  %v9008_v36 = vld [vmem:[#allocation5 + $0xdec] ss:$16 sps:$4 sm:$0xff]  }
 0x28f   :  { %5478 = vmatpush2.bf16.msra.mxu0 %v8946_v39  ;;  %v9011_v39 = vld [vmem:[#allocation5 + $0xfec] ss:$16 sps:$4 sm:$0xff]  }
 0x290   :  { %5519 = vmatpush2.bf16.msra.mxu1 %v8949_v31  ;;  %5479 = vmatprep.subr.bf16.mxu0 %v8954_v45  ;;  %v9006_v31 = vld [vmem:[#allocation5 + $0xde8] ss:$16 sps:$4 sm:$0xff]  }
 0x291   :  { %5520 = vmatprep.subr.bf16.mxu1 %v8957_v29  ;;  %v9009_v45 = vld [vmem:[#allocation5 + $0xfe8] ss:$16 sps:$4 sm:$0xff]   ;;  %v9014_v29 = vld [vmem:[#allocation5 + $0xdcc] ss:$16 sps:$4 sm:$0xff]  }
 0x293   :  { %5480 = vmatpush2.bf16.msra.mxu0 %v8952_v32  ;;  %v9017_v32 = vld [vmem:[#allocation5 + $0xfcc] ss:$16 sps:$4 sm:$0xff]  }
 0x294   :  { %5521 = vmatpush2.bf16.msra.mxu1 %v8955_v46  ;;  %5531 = vmatprep.subr.bf16.mxu0 %v8960_v47  ;;  %v9012_v46 = vld [vmem:[#allocation5 + $0xdc8] ss:$16 sps:$4 sm:$0xff]  }
 0x295   :  { %5572 = vmatprep.subr.bf16.mxu1 %v8963_v8  ;;  %v9015_v47 = vld [vmem:[#allocation5 + $0xfc8] ss:$16 sps:$4 sm:$0xff]   ;;  %v9020_v8 = vld [vmem:[#allocation5 + $0xdac] ss:$16 sps:$4 sm:$0xff]  }
 0x296   :  { %v5237_v54 = vpop.f32.mrf.mxu0  ;;  %5482 = vmatmul.mubr.bf16.vlgmr.msra.gmra.mxu0 %v9744_v42 }
 0x297   :  { %v5278_v38 = vpop.f32.mrf.mxu1  ;;  %5523 = vmatmul.mubr.bf16.vlgmr.msra.gmra.mxu1 %v9746_v43  ;;  %v5238_v55 = vadd.f32 %v5237_v54, %v9825_v26  ;;  %5532 = vmatpush1.bf16.msra.mxu0 %v8958_v9  ;;  %v9023_v9 = vld [vmem:[#allocation5 + $0xfac] ss:$16 sps:$4 sm:$0xff]  }
 0x298   :  { %5573 = vmatpush1.bf16.msra.mxu1 %v8961_v33  ;;  %v5239_v41 = vpop.f32.mrf.mxu0  ;;  %5533 = vmatprep.subr.bf16.mxu0 %v8966_v51  ;;  %v9018_v33 = vld [vmem:[#allocation5 + $0xda8] ss:$16 sps:$4 sm:$0xff]   ;;  %v9029_v54 = vld [vmem:[#allocation5 + $0xf8c] ss:$16 sps:$4 sm:$0xff]  }
 0x299   :  { %v5280_v56 = vpop.f32.mrf.mxu1  ;;  %5574 = vmatprep.subr.bf16.mxu1 %v8969_v53  ;;  %v9835_v58 = vadd.f32 %v5278_v38, %v5238_v55  ;;  %v5240_v59 = vadd.f32 %v5239_v41, %v9830_v44  ;;  %5563 = vmatprep.mubr.bf16.mxu0 %v9748_v48  ;;  %v8976_v44 = vld [vmem:[#allocation5 + $0xc88] ss:$16 sps:$4 sm:$0xff]   ;;  %v9026_v53 = vld [vmem:[#allocation5 + $0xd8c] ss:$16 sps:$4 sm:$0xff]  }
 0x29a   :  { %5604 = vmatprep.mubr.bf16.mxu1 %v9750_v50  ;;  %v5241_v42 = vpop.f32.mrf.mxu0  ;;  %v8979_v48 = vld [vmem:[#allocation5 + $0xe88] ss:$16 sps:$4 sm:$0xff]   ;;  %v8984_v50 = vld [vmem:[#allocation5 + $0xc6c] ss:$16 sps:$4 sm:$0xff]  }
 0x29b   :  { %v5282_v43 = vpop.f32.mrf.mxu1  ;;  %v9840_v26 = vadd.f32 %v5280_v56, %v5240_v59  ;;  %5534 = vmatpush1.bf16.msra.mxu0 %v8964_v37  ;;  %v9021_v51 = vld [vmem:[#allocation5 + $0xfa8] ss:$16 sps:$4 sm:$0xff]   ;;  %v9032_v37 = vld [vmem:[#allocation5 + $0xd6c] ss:$16 sps:$4 sm:$0xff]  }
 0x29c   :  { %5575 = vmatpush1.bf16.msra.mxu1 %v8967_v40  ;;  %v5242_v62 = vpop.f32.mrf.mxu0  ;;  %5535 = vmatprep.subr.bf16.mxu0 %v8972_v49  ;;  %v9024_v38 = vld [vmem:[#allocation5 + $0xd88] ss:$16 sps:$4 sm:$0xff]   ;;  %v9035_v40 = vld [vmem:[#allocation5 + $0xf6c] ss:$16 sps:$4 sm:$0xff]  }
 0x29d   :  { %v5283_v63 = vpop.f32.mrf.mxu1  ;;  %5576 = vmatprep.subr.bf16.mxu1 %v8975_v52  ;;  %v9027_v55 = vld [vmem:[#allocation5 + $0xf88] ss:$16 sps:$4 sm:$0xff]   ;;  %v9038_v49 = vld [vmem:[#allocation5 + $0xd4c] ss:$16 sps:$4 sm:$0xff]  }
 0x29e   :  { %v9030_v41 = vld [vmem:[#allocation5 + $0xd68] ss:$16 sps:$4 sm:$0xff]   ;;  %v9041_v52 = vld [vmem:[#allocation5 + $0xf4c] ss:$16 sps:$4 sm:$0xff]  }
 0x29f   :  { %5536 = vmatpush1.bf16.msra.mxu0 %v8970_v60  ;;  %v9033_v56 = vld [vmem:[#allocation5 + $0xf68] ss:$16 sps:$4 sm:$0xff]   ;;  %v9044_v43 = vld [vmem:[#allocation5 + $0xd2c] ss:$16 sps:$4 sm:$0xff]  }
 0x2a0   :  { %5577 = vmatpush1.bf16.msra.mxu1 %v8973_v61  ;;  %5537 = vmatprep.subr.bf16.mxu0 %v8978_v1  ;;  %v9036_v59 = vld [vmem:[#allocation5 + $0xd48] ss:$16 sps:$4 sm:$0xff]   ;;  %v9047_v60 = vld [vmem:[#allocation5 + $0xf2c] ss:$16 sps:$4 sm:$0xff]  }
 0x2a1   :  { %5578 = vmatprep.subr.bf16.mxu1 %v8981_v2  ;;  %v9039_v42 = vld [vmem:[#allocation5 + $0xf48] ss:$16 sps:$4 sm:$0xff]   ;;  %v9050_v63 = vld [vmem:[#allocation5 + $0xd0c] ss:$16 sps:$4 sm:$0xff]  }
 0x2a2   :  { %v9042_v61 = vld [vmem:[#allocation5 + $0xd28] ss:$16 sps:$4 sm:$0xff]   ;;  %v9053_v1 = vld [vmem:[#allocation5 + $0xf0c] ss:$16 sps:$4 sm:$0xff]  }
 0x2a3   :  { %5538 = vmatpush1.bf16.msra.mxu0 %v8976_v44  ;;  %v9045_v62 = vld [vmem:[#allocation5 + $0xf28] ss:$16 sps:$4 sm:$0xff]  }
 0x2a4   :  { %5579 = vmatpush1.bf16.msra.mxu1 %v8979_v48  ;;  %5539 = vmatprep.subr.bf16.mxu0 %v8984_v50  ;;  %v9048_v2 = vld [vmem:[#allocation5 + $0xd08] ss:$16 sps:$4 sm:$0xff]   ;;  %v943_v48 = vsub.s32 2, %v9756_v57  ;;  %v9056_v50 = vld [vmem:[#allocation5 + $0x10ec] ss:$16 sps:$4 sm:$0xff]  }
 0x2a5   :  { %5580 = vmatprep.subr.bf16.mxu1 %v8987_v3  ;;  %v9051_v44 = vld [vmem:[#allocation5 + $0xf08] ss:$16 sps:$4 sm:$0xff]   ;;  %v9059_v3 = vld [vmem:[#allocation5 + $0x12ec] ss:$16 sps:$4 sm:$0xff]  }
 0x2a7   :  { %5540 = vmatpush1.bf16.msra.mxu0 %v8982_v4  ;;  %v947_v4 = vsub.s32 3, %v9756_v57 }
 0x2a8   :  { %5581 = vmatpush1.bf16.msra.mxu1 %v8985_v6  ;;  %5541 = vmatprep.subr.bf16.mxu0 %v8990_v13  ;;  %v9470_v6 = vld [vmem:[#allocation7] sm:$0xf] }
 0x2a9   :  { %5582 = vmatprep.subr.bf16.mxu1 %v8993_v14  ;;  %v944_v13 = vrot.slane %v9470_v6, %v943_v48  ;;  %v9054_v14 = vld [vmem:[#allocation5 + $0x10e8] ss:$16 sps:$4 sm:$0xff]  }
 0x2ab   :  { %5542 = vmatpush1.bf16.msra.mxu0 %v8988_v23  ;;  %v9057_v23 = vld [vmem:[#allocation5 + $0x12e8] ss:$16 sps:$4 sm:$0xff]  }
 0x2ac   :  { %5583 = vmatpush1.bf16.msra.mxu1 %v8991_v24  ;;  %5543 = vmatprep.subr.bf16.mxu0 %v8996_v25  ;;  %v9062_v24 = vld [vmem:[#allocation5 + $0x10cc] ss:$16 sps:$4 sm:$0xff]  }
 0x2ad   :  { %5584 = vmatprep.subr.bf16.mxu1 %v8999_v27  ;;  %v9065_v25 = vld [vmem:[#allocation5 + $0x12cc] ss:$16 sps:$4 sm:$0xff]   ;;  %v948_v27 = vrot.slane %v9470_v6, %v947_v4  ;;  %v9108_v6 = vld [vmem:[#allocation5 + $0x11c8] ss:$16 sps:$4 sm:$0xff]  }
 0x2af   :  { %5544 = vmatpush1.bf16.msra.mxu0 %v8994_v28 }
 0x2b0   :  { %5585 = vmatpush1.bf16.msra.mxu1 %v8997_v30  ;;  %5545 = vmatprep.subr.bf16.mxu0 %v9002_v20 }
 0x2b1   :  { %5586 = vmatprep.subr.bf16.mxu1 %v9005_v21  ;;  %v9060_v21 = vld [vmem:[#allocation5 + $0x10c8] ss:$16 sps:$4 sm:$0xff]  }
 0x2b3   :  { %5546 = vmatpush1.bf16.msra.mxu0 %v9000_v34  ;;  %v9063_v34 = vld [vmem:[#allocation5 + $0x12c8] ss:$16 sps:$4 sm:$0xff]  }
 0x2b4   :  { %5587 = vmatpush1.bf16.msra.mxu1 %v9003_v35  ;;  %5547 = vmatprep.subr.bf16.mxu0 %v9008_v36 }
 0x2b5   :  { %5588 = vmatprep.subr.bf16.mxu1 %v9011_v39  ;;  %v9068_v39 = vld [vmem:[#allocation5 + $0x10ac] ss:$16 sps:$4 sm:$0xff]  }
 0x2b7   :  { %5548 = vmatpush2.bf16.msra.mxu0 %v9006_v31  ;;  %v9071_v31 = vld [vmem:[#allocation5 + $0x12ac] ss:$16 sps:$4 sm:$0xff]  }
 0x2b8   :  { %5589 = vmatpush2.bf16.msra.mxu1 %v9009_v45  ;;  %5549 = vmatprep.subr.bf16.mxu0 %v9014_v29 }
 0x2b9   :  { %5590 = vmatprep.subr.bf16.mxu1 %v9017_v32 }
 0x2bb   :  { %5550 = vmatpush2.bf16.msra.mxu0 %v9012_v46  ;;  %v9066_v46 = vld [vmem:[#allocation5 + $0x10a8] ss:$16 sps:$4 sm:$0xff]  }
 0x2bc   :  { %5591 = vmatpush2.bf16.msra.mxu1 %v9015_v47  ;;  %5551 = vmatprep.subr.bf16.mxu0 %v9020_v8  ;;  %v9069_v47 = vld [vmem:[#allocation5 + $0x12a8] ss:$16 sps:$4 sm:$0xff]  }
 0x2bd   :  { %5592 = vmatprep.subr.bf16.mxu1 %v9023_v9 }
 0x2bf   :  { %5552 = vmatpush2.bf16.msra.mxu0 %v9018_v33  ;;  %v9074_v33 = vld [vmem:[#allocation5 + $0x108c] ss:$16 sps:$4 sm:$0xff]  }
 0x2c0   :  { %5593 = vmatpush2.bf16.msra.mxu1 %v9021_v51  ;;  %5553 = vmatprep.subr.bf16.mxu0 %v9026_v53  ;;  %v9077_v51 = vld [vmem:[#allocation5 + $0x128c] ss:$16 sps:$4 sm:$0xff]   ;;  %v9072_v53 = vld [vmem:[#allocation5 + $0x1088] ss:$16 sps:$4 sm:$0xff]  }
 0x2c1   :  { %5594 = vmatprep.subr.bf16.mxu1 %v9029_v54  ;;  %v9083_v54 = vld [vmem:[#allocation5 + $0x126c] ss:$16 sps:$4 sm:$0xff]  }
 0x2c3   :  { %5554 = vmatpush2.bf16.msra.mxu0 %v9024_v38  ;;  %v9078_v38 = vld [vmem:[#allocation5 + $0x1068] ss:$16 sps:$4 sm:$0xff]  }
 0x2c4   :  { %5595 = vmatpush2.bf16.msra.mxu1 %v9027_v55  ;;  %5555 = vmatprep.subr.bf16.mxu0 %v9032_v37  ;;  %v9081_v55 = vld [vmem:[#allocation5 + $0x1268] ss:$16 sps:$4 sm:$0xff]   ;;  %v9086_v37 = vld [vmem:[#allocation5 + $0x104c] ss:$16 sps:$4 sm:$0xff]  }
 0x2c5   :  { %5596 = vmatprep.subr.bf16.mxu1 %v9035_v40  ;;  %v9089_v40 = vld [vmem:[#allocation5 + $0x124c] ss:$16 sps:$4 sm:$0xff]  }
 0x2c7   :  { %5556 = vmatpush2.bf16.msra.mxu0 %v9030_v41  ;;  %v9084_v41 = vld [vmem:[#allocation5 + $0x1048] ss:$16 sps:$4 sm:$0xff]  }
 0x2c8   :  { %5597 = vmatpush2.bf16.msra.mxu1 %v9033_v56  ;;  %5557 = vmatprep.subr.bf16.mxu0 %v9038_v49  ;;  %v9087_v56 = vld [vmem:[#allocation5 + $0x1248] ss:$16 sps:$4 sm:$0xff]   ;;  %v9092_v49 = vld [vmem:[#allocation5 + $0x102c] ss:$16 sps:$4 sm:$0xff]  }
 0x2c9   :  { %5598 = vmatprep.subr.bf16.mxu1 %v9041_v52  ;;  %v9095_v52 = vld [vmem:[#allocation5 + $0x122c] ss:$16 sps:$4 sm:$0xff]  }
 0x2cb   :  { %5558 = vmatpush2.bf16.msra.mxu0 %v9036_v59  ;;  %v9090_v59 = vld [vmem:[#allocation5 + $0x1028] ss:$16 sps:$4 sm:$0xff]  }
 0x2cc   :  { %5599 = vmatpush2.bf16.msra.mxu1 %v9039_v42  ;;  %5559 = vmatprep.subr.bf16.mxu0 %v9044_v43  ;;  %v9093_v42 = vld [vmem:[#allocation5 + $0x1228] ss:$16 sps:$4 sm:$0xff]   ;;  %v9098_v43 = vld [vmem:[#allocation5 + $0x100c] ss:$16 sps:$4 sm:$0xff]  }
 0x2cd   :  { %5600 = vmatprep.subr.bf16.mxu1 %v9047_v60  ;;  %v9101_v60 = vld [vmem:[#allocation5 + $0x120c] ss:$16 sps:$4 sm:$0xff]  }
 0x2cf   :  { %5560 = vmatpush2.bf16.msra.mxu0 %v9042_v61  ;;  %v9096_v61 = vld [vmem:[#allocation5 + $0x1008] ss:$16 sps:$4 sm:$0xff]  }
 0x2d0   :  { %5601 = vmatpush2.bf16.msra.mxu1 %v9045_v62  ;;  %5561 = vmatprep.subr.bf16.mxu0 %v9050_v63  ;;  %v9099_v62 = vld [vmem:[#allocation5 + $0x1208] ss:$16 sps:$4 sm:$0xff]   ;;  %v9104_v63 = vld [vmem:[#allocation5 + $0x11ec] ss:$16 sps:$4 sm:$0xff]  }
 0x2d1   :  { %5602 = vmatprep.subr.bf16.mxu1 %v9053_v1  ;;  %v9107_v1 = vld [vmem:[#allocation5 + $0x13ec] ss:$16 sps:$4 sm:$0xff]  }
 0x2d3   :  { %5562 = vmatpush2.bf16.msra.mxu0 %v9048_v2  ;;  %v9102_v2 = vld [vmem:[#allocation5 + $0x11e8] ss:$16 sps:$4 sm:$0xff]  }
 0x2d4   :  { %5603 = vmatpush2.bf16.msra.mxu1 %v9051_v44  ;;  %5613 = vmatprep.subr.bf16.mxu0 %v9056_v50  ;;  %v9105_v44 = vld [vmem:[#allocation5 + $0x13e8] ss:$16 sps:$4 sm:$0xff]   ;;  %v9110_v50 = vld [vmem:[#allocation5 + $0x11cc] ss:$16 sps:$4 sm:$0xff]  }
 0x2d5   :  { %5654 = vmatprep.subr.bf16.mxu1 %v9059_v3  ;;  %v9113_v3 = vld [vmem:[#allocation5 + $0x13cc] ss:$16 sps:$4 sm:$0xff]  }
 0x2d6   :  { %v5319_v28 = vpop.f32.mrf.mxu0  ;;  %5564 = vmatmul.mubr.bf16.vlgmr.msra.gmra.mxu0 %v9760_v7 }
 0x2d7   :  { %v5360_v30 = vpop.f32.mrf.mxu1  ;;  %5605 = vmatmul.mubr.bf16.vlgmr.msra.gmra.mxu1 %v9762_v10  ;;  %v5320_v20 = vadd.f32 %v5319_v28, %v944_v13  ;;  %5614 = vmatpush1.bf16.msra.mxu0 %v9054_v14  ;;  %v9111_v13 = vld [vmem:[#allocation5 + $0x13c8] ss:$16 sps:$4 sm:$0xff]   ;;  %v9116_v14 = vld [vmem:[#allocation5 + $0x11ac] ss:$16 sps:$4 sm:$0xff]  }
 0x2d8   :  { %5655 = vmatpush1.bf16.msra.mxu1 %v9057_v23  ;;  %v5321_v35 = vpop.f32.mrf.mxu0  ;;  %5615 = vmatprep.subr.bf16.mxu0 %v9062_v24  ;;  %v9119_v23 = vld [vmem:[#allocation5 + $0x13ac] ss:$16 sps:$4 sm:$0xff]   ;;  %v9114_v24 = vld [vmem:[#allocation5 + $0x11a8] ss:$16 sps:$4 sm:$0xff]  }
 0x2d9   :  { %v5362_v36 = vpop.f32.mrf.mxu1  ;;  %5656 = vmatprep.subr.bf16.mxu1 %v9065_v25  ;;  %v9850_v45 = vadd.f32 %v5360_v30, %v5320_v20  ;;  %v5322_v29 = vadd.f32 %v5321_v35, %v948_v27  ;;  %5645 = vmatprep.mubr.bf16.mxu0 %v9768_v17  ;;  %v9075_v17 = vld [vmem:[#allocation5 + $0x1288] ss:$16 sps:$4 sm:$0xff]   ;;  %v9122_v27 = vld [vmem:[#allocation5 + $0x118c] ss:$16 sps:$4 sm:$0xff]  }
 0x2da   :  { %5686 = vmatprep.mubr.bf16.mxu1 %v9770_v18  ;;  %v5323_v7 = vpop.f32.mrf.mxu0  ;;  %v9080_v18 = vld [vmem:[#allocation5 + $0x106c] ss:$16 sps:$4 sm:$0xff]   ;;  %v9117_v25 = vld [vmem:[#allocation5 + $0x13a8] ss:$16 sps:$4 sm:$0xff]  }
 0x2db   :  { %v5364_v10 = vpop.f32.mrf.mxu1  ;;  %v9854_v32 = vadd.f32 %v5362_v36, %v5322_v29  ;;  %5616 = vmatpush1.bf16.msra.mxu0 %v9060_v21  ;;  %v9125_v28 = vld [vmem:[#allocation5 + $0x138c] ss:$16 sps:$4 sm:$0xff]   ;;  %v9120_v30 = vld [vmem:[#allocation5 + $0x1188] ss:$16 sps:$4 sm:$0xff]  }
 0x2dc   :  { %5657 = vmatpush1.bf16.msra.mxu1 %v9063_v34  ;;  %v5324_v8 = vpop.f32.mrf.mxu0  ;;  %5617 = vmatprep.subr.bf16.mxu0 %v9068_v39  ;;  %v9123_v20 = vld [vmem:[#allocation5 + $0x1388] ss:$16 sps:$4 sm:$0xff]   ;;  %v9128_v21 = vld [vmem:[#allocation5 + $0x116c] ss:$16 sps:$4 sm:$0xff]  }
 0x2dd   :  { %v5365_v9 = vpop.f32.mrf.mxu1  ;;  %5658 = vmatprep.subr.bf16.mxu1 %v9071_v31  ;;  %v9131_v34 = vld [vmem:[#allocation5 + $0x136c] ss:$16 sps:$4 sm:$0xff]   ;;  %v9126_v35 = vld [vmem:[#allocation5 + $0x1168] ss:$16 sps:$4 sm:$0xff]  }
 0x2de   :  { %v9129_v36 = vld [vmem:[#allocation5 + $0x1368] ss:$16 sps:$4 sm:$0xff]   ;;  %v9134_v39 = vld [vmem:[#allocation5 + $0x114c] ss:$16 sps:$4 sm:$0xff]  }
 0x2df   :  { %5618 = vmatpush1.bf16.msra.mxu0 %v9066_v46  ;;  %v9137_v31 = vld [vmem:[#allocation5 + $0x134c] ss:$16 sps:$4 sm:$0xff]   ;;  %v9132_v29 = vld [vmem:[#allocation5 + $0x1148] ss:$16 sps:$4 sm:$0xff]  }
 0x2e0   :  { %5659 = vmatpush1.bf16.msra.mxu1 %v9069_v47  ;;  %5619 = vmatprep.subr.bf16.mxu0 %v9074_v33  ;;  %v9135_v7 = vld [vmem:[#allocation5 + $0x1348] ss:$16 sps:$4 sm:$0xff]   ;;  %v9140_v10 = vld [vmem:[#allocation5 + $0x112c] ss:$16 sps:$4 sm:$0xff]  }
 0x2e1   :  { %5660 = vmatprep.subr.bf16.mxu1 %v9077_v51  ;;  %v9143_v46 = vld [vmem:[#allocation5 + $0x132c] ss:$16 sps:$4 sm:$0xff]   ;;  %v9138_v47 = vld [vmem:[#allocation5 + $0x1128] ss:$16 sps:$4 sm:$0xff]  }
 0x2e2   :  { %v9141_v8 = vld [vmem:[#allocation5 + $0x1328] ss:$16 sps:$4 sm:$0xff]   ;;  %v9146_v9 = vld [vmem:[#allocation5 + $0x110c] ss:$16 sps:$4 sm:$0xff]  }
 0x2e3   :  { %5620 = vmatpush1.bf16.msra.mxu0 %v9072_v53  ;;  %v9149_v33 = vld [vmem:[#allocation5 + $0x130c] ss:$16 sps:$4 sm:$0xff]   ;;  %v9144_v51 = vld [vmem:[#allocation5 + $0x1108] ss:$16 sps:$4 sm:$0xff]  }
 0x2e4   :  { %5661 = vmatpush1.bf16.msra.mxu1 %v9075_v17  ;;  %5621 = vmatprep.subr.bf16.mxu0 %v9080_v18  ;;  %v9147_v53 = vld [vmem:[#allocation5 + $0x1308] ss:$16 sps:$4 sm:$0xff]   ;;  %v9152_v17 = vld [vmem:[#allocation5 + $0x14ec] ss:$16 sps:$4 sm:$0xff]  }
 0x2e5   :  { %5662 = vmatprep.subr.bf16.mxu1 %v9083_v54  ;;  %v9155_v18 = vld [vmem:[#allocation5 + $0x16ec] ss:$16 sps:$4 sm:$0xff]   ;;  %v9150_v54 = vld [vmem:[#allocation5 + $0x14e8] ss:$16 sps:$4 sm:$0xff]  }
 0x2e7   :  { %5622 = vmatpush1.bf16.msra.mxu0 %v9078_v38  ;;  %v9153_v38 = vld [vmem:[#allocation5 + $0x16e8] ss:$16 sps:$4 sm:$0xff]  }
 0x2e8   :  { %5663 = vmatpush1.bf16.msra.mxu1 %v9081_v55  ;;  %5623 = vmatprep.subr.bf16.mxu0 %v9086_v37  ;;  %v9158_v55 = vld [vmem:[#allocation5 + $0x14cc] ss:$16 sps:$4 sm:$0xff]  }
 0x2e9   :  { %5664 = vmatprep.subr.bf16.mxu1 %v9089_v40  ;;  %v9161_v37 = vld [vmem:[#allocation5 + $0x16cc] ss:$16 sps:$4 sm:$0xff]  }
 0x2eb   :  { %5624 = vmatpush1.bf16.msra.mxu0 %v9084_v41 }
 0x2ec   :  { %5665 = vmatpush1.bf16.msra.mxu1 %v9087_v56  ;;  %5625 = vmatprep.subr.bf16.mxu0 %v9092_v49  ;;  %v9156_v49 = vld [vmem:[#allocation5 + $0x14c8] ss:$16 sps:$4 sm:$0xff]  }
 0x2ed   :  { %5666 = vmatprep.subr.bf16.mxu1 %v9095_v52  ;;  %v9159_v52 = vld [vmem:[#allocation5 + $0x16c8] ss:$16 sps:$4 sm:$0xff]  }
 0x2ef   :  { %5626 = vmatpush1.bf16.msra.mxu0 %v9090_v59 }
 0x2f0   :  { %5667 = vmatpush1.bf16.msra.mxu1 %v9093_v42  ;;  %5627 = vmatprep.subr.bf16.mxu0 %v9098_v43  ;;  %v9164_v43 = vld [vmem:[#allocation5 + $0x14ac] ss:$16 sps:$4 sm:$0xff]  }
 0x2f1   :  { %5668 = vmatprep.subr.bf16.mxu1 %v9101_v60  ;;  %v9167_v60 = vld [vmem:[#allocation5 + $0x16ac] ss:$16 sps:$4 sm:$0xff]  }
 0x2f3   :  { %5628 = vmatpush1.bf16.msra.mxu0 %v9096_v61 }
 0x2f4   :  { %5669 = vmatpush1.bf16.msra.mxu1 %v9099_v62  ;;  %5629 = vmatprep.subr.bf16.mxu0 %v9104_v63  ;;  %v9162_v63 = vld [vmem:[#allocation5 + $0x14a8] ss:$16 sps:$4 sm:$0xff]  }
 0x2f5   :  { %5670 = vmatprep.subr.bf16.mxu1 %v9107_v1  ;;  %v9165_v1 = vld [vmem:[#allocation5 + $0x16a8] ss:$16 sps:$4 sm:$0xff]  }
 0x2f7   :  { %5630 = vmatpush2.bf16.msra.mxu0 %v9102_v2 }
 0x2f8   :  { %5671 = vmatpush2.bf16.msra.mxu1 %v9105_v44  ;;  %5631 = vmatprep.subr.bf16.mxu0 %v9110_v50  ;;  %v9170_v50 = vld [vmem:[#allocation5 + $0x148c] ss:$16 sps:$4 sm:$0xff]  }
 0x2f9   :  { %5672 = vmatprep.subr.bf16.mxu1 %v9113_v3  ;;  %v9173_v3 = vld [vmem:[#allocation5 + $0x168c] ss:$16 sps:$4 sm:$0xff]  }
 0x2fb   :  { %5632 = vmatpush2.bf16.msra.mxu0 %v9108_v6  ;;  %v9179_v6 = vld [vmem:[#allocation5 + $0x166c] ss:$16 sps:$4 sm:$0xff]  }
 0x2fc   :  { %5673 = vmatpush2.bf16.msra.mxu1 %v9111_v13  ;;  %5633 = vmatprep.subr.bf16.mxu0 %v9116_v14  ;;  %v9174_v13 = vld [vmem:[#allocation5 + $0x1468] ss:$16 sps:$4 sm:$0xff]  }
 0x2fd   :  { %5674 = vmatprep.subr.bf16.mxu1 %v9119_v23  ;;  %v9177_v14 = vld [vmem:[#allocation5 + $0x1668] ss:$16 sps:$4 sm:$0xff]   ;;  %v9182_v23 = vld [vmem:[#allocation5 + $0x144c] ss:$16 sps:$4 sm:$0xff]  }
 0x2ff   :  { %5634 = vmatpush2.bf16.msra.mxu0 %v9114_v24  ;;  %v9185_v24 = vld [vmem:[#allocation5 + $0x164c] ss:$16 sps:$4 sm:$0xff]  }
 0x300   :  { %5675 = vmatpush2.bf16.msra.mxu1 %v9117_v25  ;;  %5635 = vmatprep.subr.bf16.mxu0 %v9122_v27  ;;  %v9180_v25 = vld [vmem:[#allocation5 + $0x1448] ss:$16 sps:$4 sm:$0xff]  }
 0x301   :  { %5676 = vmatprep.subr.bf16.mxu1 %v9125_v28  ;;  %v9183_v27 = vld [vmem:[#allocation5 + $0x1648] ss:$16 sps:$4 sm:$0xff]   ;;  %v9188_v28 = vld [vmem:[#allocation5 + $0x142c] ss:$16 sps:$4 sm:$0xff]  }
 0x303   :  { %5636 = vmatpush2.bf16.msra.mxu0 %v9120_v30  ;;  %v9191_v30 = vld [vmem:[#allocation5 + $0x162c] ss:$16 sps:$4 sm:$0xff]  }
 0x304   :  { %5677 = vmatpush2.bf16.msra.mxu1 %v9123_v20  ;;  %5637 = vmatprep.subr.bf16.mxu0 %v9128_v21  ;;  %v9186_v20 = vld [vmem:[#allocation5 + $0x1428] ss:$16 sps:$4 sm:$0xff]  }
 0x305   :  { %5678 = vmatprep.subr.bf16.mxu1 %v9131_v34  ;;  %v9189_v21 = vld [vmem:[#allocation5 + $0x1628] ss:$16 sps:$4 sm:$0xff]   ;;  %v9194_v34 = vld [vmem:[#allocation5 + $0x140c] ss:$16 sps:$4 sm:$0xff]  }
 0x307   :  { %5638 = vmatpush2.bf16.msra.mxu0 %v9126_v35  ;;  %v9197_v35 = vld [vmem:[#allocation5 + $0x160c] ss:$16 sps:$4 sm:$0xff]  }
 0x308   :  { %5679 = vmatpush2.bf16.msra.mxu1 %v9129_v36  ;;  %5639 = vmatprep.subr.bf16.mxu0 %v9134_v39  ;;  %v9192_v36 = vld [vmem:[#allocation5 + $0x1408] ss:$16 sps:$4 sm:$0xff]  }
 0x309   :  { %5680 = vmatprep.subr.bf16.mxu1 %v9137_v31  ;;  %v9195_v39 = vld [vmem:[#allocation5 + $0x1608] ss:$16 sps:$4 sm:$0xff]   ;;  %v9200_v31 = vld [vmem:[#allocation5 + $0x15ec] ss:$16 sps:$4 sm:$0xff]  }
 0x30b   :  { %5640 = vmatpush2.bf16.msra.mxu0 %v9132_v29  ;;  %v9203_v29 = vld [vmem:[#allocation5 + $0x17ec] ss:$16 sps:$4 sm:$0xff]  }
 0x30c   :  { %5681 = vmatpush2.bf16.msra.mxu1 %v9135_v7  ;;  %5641 = vmatprep.subr.bf16.mxu0 %v9140_v10  ;;  %v9198_v7 = vld [vmem:[#allocation5 + $0x15e8] ss:$16 sps:$4 sm:$0xff]  }
 0x30d   :  { %5682 = vmatprep.subr.bf16.mxu1 %v9143_v46  ;;  %v9201_v10 = vld [vmem:[#allocation5 + $0x17e8] ss:$16 sps:$4 sm:$0xff]   ;;  %v9206_v46 = vld [vmem:[#allocation5 + $0x15cc] ss:$16 sps:$4 sm:$0xff]  }
 0x30f   :  { %5642 = vmatpush2.bf16.msra.mxu0 %v9138_v47  ;;  %v9209_v47 = vld [vmem:[#allocation5 + $0x17cc] ss:$16 sps:$4 sm:$0xff]  }
 0x310   :  { %5683 = vmatpush2.bf16.msra.mxu1 %v9141_v8  ;;  %5643 = vmatprep.subr.bf16.mxu0 %v9146_v9  ;;  %v9204_v8 = vld [vmem:[#allocation5 + $0x15c8] ss:$16 sps:$4 sm:$0xff]  }
 0x311   :  { %5684 = vmatprep.subr.bf16.mxu1 %v9149_v33  ;;  %v9207_v9 = vld [vmem:[#allocation5 + $0x17c8] ss:$16 sps:$4 sm:$0xff]   ;;  %v9212_v33 = vld [vmem:[#allocation5 + $0x15ac] ss:$16 sps:$4 sm:$0xff]  }
 0x313   :  { %5644 = vmatpush2.bf16.msra.mxu0 %v9144_v51  ;;  %v9215_v51 = vld [vmem:[#allocation5 + $0x17ac] ss:$16 sps:$4 sm:$0xff]  }
 0x314   :  { %5685 = vmatpush2.bf16.msra.mxu1 %v9147_v53  ;;  %5695 = vmatprep.subr.bf16.mxu0 %v9152_v17  ;;  %v9210_v53 = vld [vmem:[#allocation5 + $0x15a8] ss:$16 sps:$4 sm:$0xff]  }
 0x315   :  { %5736 = vmatprep.subr.bf16.mxu1 %v9155_v18  ;;  %v9213_v17 = vld [vmem:[#allocation5 + $0x17a8] ss:$16 sps:$4 sm:$0xff]   ;;  %v9218_v18 = vld [vmem:[#allocation5 + $0x158c] ss:$16 sps:$4 sm:$0xff]  }
 0x316   :  { %v5401_v40 = vpop.f32.mrf.mxu0  ;;  %5646 = vmatmul.mubr.bf16.vlgmr.msra.gmra.mxu0 %v9780_v11 }
 0x317   :  { %v5442_v41 = vpop.f32.mrf.mxu1  ;;  %5687 = vmatmul.mubr.bf16.vlgmr.msra.gmra.mxu1 %v9782_v12  ;;  %v5402_v56 = vadd.f32 %v5401_v40, %v9850_v45  ;;  %5696 = vmatpush1.bf16.msra.mxu0 %v9150_v54  ;;  %v9221_v54 = vld [vmem:[#allocation5 + $0x178c] ss:$16 sps:$4 sm:$0xff]  }
 0x318   :  { %5737 = vmatpush1.bf16.msra.mxu1 %v9153_v38  ;;  %v5403_v59 = vpop.f32.mrf.mxu0  ;;  %5697 = vmatprep.subr.bf16.mxu0 %v9158_v55  ;;  %v9216_v38 = vld [vmem:[#allocation5 + $0x1588] ss:$16 sps:$4 sm:$0xff]   ;;  %v9227_v40 = vld [vmem:[#allocation5 + $0x176c] ss:$16 sps:$4 sm:$0xff]  }
 0x319   :  { %v5444_v42 = vpop.f32.mrf.mxu1  ;;  %5738 = vmatprep.subr.bf16.mxu1 %v9161_v37  ;;  %v9859_v61 = vadd.f32 %v5442_v41, %v5402_v56  ;;  %v5404_v62 = vadd.f32 %v5403_v59, %v9854_v32  ;;  %5727 = vmatprep.mubr.bf16.mxu0 %v9784_v19  ;;  %v9168_v32 = vld [vmem:[#allocation5 + $0x1488] ss:$16 sps:$4 sm:$0xff]   ;;  %v9224_v37 = vld [vmem:[#allocation5 + $0x156c] ss:$16 sps:$4 sm:$0xff]  }
 0x31a   :  { %5768 = vmatprep.mubr.bf16.mxu1 %v9786_v22  ;;  %v5405_v11 = vpop.f32.mrf.mxu0  ;;  %v9171_v19 = vld [vmem:[#allocation5 + $0x1688] ss:$16 sps:$4 sm:$0xff]   ;;  %v9176_v22 = vld [vmem:[#allocation5 + $0x146c] ss:$16 sps:$4 sm:$0xff]  }
 0x31b   :  { %v5446_v12 = vpop.f32.mrf.mxu1  ;;  %v9864_v45 = vadd.f32 %v5444_v42, %v5404_v62  ;;  %5698 = vmatpush1.bf16.msra.mxu0 %v9156_v49  ;;  %v9219_v55 = vld [vmem:[#allocation5 + $0x1788] ss:$16 sps:$4 sm:$0xff]   ;;  %v9230_v49 = vld [vmem:[#allocation5 + $0x154c] ss:$16 sps:$4 sm:$0xff]  }
 0x31c   :  { %5739 = vmatpush1.bf16.msra.mxu1 %v9159_v52  ;;  %v5406_v2 = vpop.f32.mrf.mxu0  ;;  %5699 = vmatprep.subr.bf16.mxu0 %v9164_v43  ;;  %v9222_v41 = vld [vmem:[#allocation5 + $0x1568] ss:$16 sps:$4 sm:$0xff]   ;;  %v9233_v52 = vld [vmem:[#allocation5 + $0x174c] ss:$16 sps:$4 sm:$0xff]  }
 0x31d   :  { %v5447_v44 = vpop.f32.mrf.mxu1  ;;  %5740 = vmatprep.subr.bf16.mxu1 %v9167_v60  ;;  %v9225_v56 = vld [vmem:[#allocation5 + $0x1768] ss:$16 sps:$4 sm:$0xff]   ;;  %v9236_v43 = vld [vmem:[#allocation5 + $0x152c] ss:$16 sps:$4 sm:$0xff]  }
 0x31e   :  { %v9228_v59 = vld [vmem:[#allocation5 + $0x1548] ss:$16 sps:$4 sm:$0xff]   ;;  %v9239_v60 = vld [vmem:[#allocation5 + $0x172c] ss:$16 sps:$4 sm:$0xff]  }
 0x31f   :  { %5700 = vmatpush1.bf16.msra.mxu0 %v9162_v63  ;;  %v9231_v42 = vld [vmem:[#allocation5 + $0x1748] ss:$16 sps:$4 sm:$0xff]   ;;  %v9242_v12 = vld [vmem:[#allocation5 + $0x150c] ss:$16 sps:$4 sm:$0xff]  }
 0x320   :  { %5741 = vmatpush1.bf16.msra.mxu1 %v9165_v1  ;;  %5701 = vmatprep.subr.bf16.mxu0 %v9170_v50  ;;  %v9234_v62 = vld [vmem:[#allocation5 + $0x1528] ss:$16 sps:$4 sm:$0xff]   ;;  %v9245_v63 = vld [vmem:[#allocation5 + $0x170c] ss:$16 sps:$4 sm:$0xff]   ;;  %v5778_v50 = vmax.f32 %v9840_v26, 0.0 }
 0x321   :  { %5742 = vmatprep.subr.bf16.mxu1 %v9173_v3  ;;  %v9237_v11 = vld [vmem:[#allocation5 + $0x1728] ss:$16 sps:$4 sm:$0xff]   ;;  %v9246_v3 = vld [vmem:[#allocation8 + $0xe0] ss:$16 sps:$4 sm:$0xff]  }
 0x322   :  { %v9240_v1 = vld [vmem:[#allocation5 + $0x1508] ss:$16 sps:$4 sm:$0xff]  }
 0x323   :  { %5702 = vmatpush1.bf16.msra.mxu0 %v9168_v32  ;;  %v9243_v2 = vld [vmem:[#allocation5 + $0x1708] ss:$16 sps:$4 sm:$0xff]  }
 0x324   :  { %5743 = vmatpush1.bf16.msra.mxu1 %v9171_v19  ;;  %5703 = vmatprep.subr.bf16.mxu0 %v9176_v22  ;;  %v9248_v44 = vld [vmem:[#allocation8 + $0xe4] ss:$16 sps:$4 sm:$0xff]   ;;  %v9867_v19 = vpack.c.bf16 %v5778_v50, %v5778_v50 }
 0x325   :  { %5744 = vmatprep.subr.bf16.mxu1 %v9179_v6  ;;  %v9251_v32 = vld [vmem:[#allocation8 + $0xc4] ss:$16 sps:$4 sm:$0xff]  }
 0x326   :  { %v9374_v50 = vld [vmem:[#allocation8 + $0x3a4] ss:$16 sps:$4 sm:$0xff]  }
 0x327   :  { %5704 = vmatpush1.bf16.msra.mxu0 %v9174_v13 }
 0x328   :  { %5745 = vmatpush1.bf16.msra.mxu1 %v9177_v14  ;;  %5705 = vmatprep.subr.bf16.mxu0 %v9182_v23  ;;  %v9249_v14 = vld [vmem:[#allocation8 + $0xc0] ss:$16 sps:$4 sm:$0xff]  }
 0x329   :  { %5746 = vmatprep.subr.bf16.mxu1 %v9185_v24  ;;  %v9254_v24 = vld [vmem:[#allocation8 + $0xa4] ss:$16 sps:$4 sm:$0xff]  }
 0x32b   :  { %5706 = vmatpush1.bf16.msra.mxu0 %v9180_v25 }
 0x32c   :  { %5747 = vmatpush1.bf16.msra.mxu1 %v9183_v27  ;;  %5707 = vmatprep.subr.bf16.mxu0 %v9188_v28 }
 0x32d   :  { %5748 = vmatprep.subr.bf16.mxu1 %v9191_v30 }
 0x32f   :  { %5708 = vmatpush1.bf16.msra.mxu0 %v9186_v20 }
 0x330   :  { %5749 = vmatpush1.bf16.msra.mxu1 %v9189_v21  ;;  %5709 = vmatprep.subr.bf16.mxu0 %v9194_v34  ;;  %v9257_v21 = vld [vmem:[#allocation8 + $0x84] ss:$16 sps:$4 sm:$0xff]   ;;  %v9342_v34 = vld [vmem:[#allocation8 + $0x2e0] ss:$16 sps:$4 sm:$0xff]  }
 0x331   :  { %5750 = vmatprep.subr.bf16.mxu1 %v9197_v35  ;;  %v9344_v35 = vld [vmem:[#allocation8 + $0x2e4] ss:$16 sps:$4 sm:$0xff]  }
 0x333   :  { %5710 = vmatpush1.bf16.msra.mxu0 %v9192_v36  ;;  %v9347_v36 = vld [vmem:[#allocation8 + $0x2c4] ss:$16 sps:$4 sm:$0xff]  }
 0x334   :  { %5751 = vmatpush1.bf16.msra.mxu1 %v9195_v39  ;;  %5711 = vmatprep.subr.bf16.mxu0 %v9200_v31  ;;  %v9255_v39 = vld [vmem:[#allocation8 + $0x80] ss:$16 sps:$4 sm:$0xff]  }
 0x335   :  { %5752 = vmatprep.subr.bf16.mxu1 %v9203_v29  ;;  %v9345_v31 = vld [vmem:[#allocation8 + $0x2c0] ss:$16 sps:$4 sm:$0xff]   ;;  %v9350_v29 = vld [vmem:[#allocation8 + $0x2a4] ss:$16 sps:$4 sm:$0xff]  }
 0x337   :  { %5712 = vmatpush2.bf16.msra.mxu0 %v9198_v7  ;;  %v9258_v7 = vld [vmem:[#allocation8 + $0x60] ss:$16 sps:$4 sm:$0xff]  }
 0x338   :  { %5753 = vmatpush2.bf16.msra.mxu1 %v9201_v10  ;;  %5713 = vmatprep.subr.bf16.mxu0 %v9206_v46  ;;  %v9348_v10 = vld [vmem:[#allocation8 + $0x2a0] ss:$16 sps:$4 sm:$0xff]   ;;  %v9263_v46 = vld [vmem:[#allocation8 + $0x44] ss:$16 sps:$4 sm:$0xff]  }
 0x339   :  { %5754 = vmatprep.subr.bf16.mxu1 %v9209_v47  ;;  %v9353_v47 = vld [vmem:[#allocation8 + $0x284] ss:$16 sps:$4 sm:$0xff]  }
 0x33b   :  { %5714 = vmatpush2.bf16.msra.mxu0 %v9204_v8  ;;  %v9261_v8 = vld [vmem:[#allocation8 + $0x40] ss:$16 sps:$4 sm:$0xff]  }
 0x33c   :  { %5755 = vmatpush2.bf16.msra.mxu1 %v9207_v9  ;;  %5715 = vmatprep.subr.bf16.mxu0 %v9212_v33  ;;  %v9351_v9 = vld [vmem:[#allocation8 + $0x280] ss:$16 sps:$4 sm:$0xff]   ;;  %v9266_v33 = vld [vmem:[#allocation8 + $0x24] ss:$16 sps:$4 sm:$0xff]  }
 0x33d   :  { %5756 = vmatprep.subr.bf16.mxu1 %v9215_v51  ;;  %v9356_v51 = vld [vmem:[#allocation8 + $0x264] ss:$16 sps:$4 sm:$0xff]  }
 0x33f   :  { %5716 = vmatpush2.bf16.msra.mxu0 %v9210_v53  ;;  %v9264_v53 = vld [vmem:[#allocation8 + $0x20] ss:$16 sps:$4 sm:$0xff]  }
 0x340   :  { %5757 = vmatpush2.bf16.msra.mxu1 %v9213_v17  ;;  %5717 = vmatprep.subr.bf16.mxu0 %v9218_v18  ;;  %v9354_v17 = vld [vmem:[#allocation8 + $0x260] ss:$16 sps:$4 sm:$0xff]   ;;  %v9269_v18 = vld [vmem:[#allocation8 + $0x4] ss:$16 sps:$4 sm:$0xff]  }
 0x341   :  { %5758 = vmatprep.subr.bf16.mxu1 %v9221_v54  ;;  %v9359_v54 = vld [vmem:[#allocation8 + $0x244] ss:$16 sps:$4 sm:$0xff]  }
 0x343   :  { %5718 = vmatpush2.bf16.msra.mxu0 %v9216_v38  ;;  %v9267_v38 = vld [vmem:[#allocation8] ss:$16 sps:$4 sm:$0xff]  }
 0x344   :  { %5759 = vmatpush2.bf16.msra.mxu1 %v9219_v55  ;;  %5719 = vmatprep.subr.bf16.mxu0 %v9224_v37  ;;  %v9357_v55 = vld [vmem:[#allocation8 + $0x240] ss:$16 sps:$4 sm:$0xff]   ;;  %v9272_v37 = vld [vmem:[#allocation8 + $0x1e4] ss:$16 sps:$4 sm:$0xff]  }
 0x345   :  { %5760 = vmatprep.subr.bf16.mxu1 %v9227_v40  ;;  %v9362_v40 = vld [vmem:[#allocation8 + $0x224] ss:$16 sps:$4 sm:$0xff]  }
 0x347   :  { %5720 = vmatpush2.bf16.msra.mxu0 %v9222_v41  ;;  %v9270_v41 = vld [vmem:[#allocation8 + $0x1e0] ss:$16 sps:$4 sm:$0xff]  }
 0x348   :  { %5761 = vmatpush2.bf16.msra.mxu1 %v9225_v56  ;;  %5721 = vmatprep.subr.bf16.mxu0 %v9230_v49  ;;  %v9360_v56 = vld [vmem:[#allocation8 + $0x220] ss:$16 sps:$4 sm:$0xff]   ;;  %v9275_v49 = vld [vmem:[#allocation8 + $0x1c4] ss:$16 sps:$4 sm:$0xff]  }
 0x349   :  { %5762 = vmatprep.subr.bf16.mxu1 %v9233_v52  ;;  %v9365_v52 = vld [vmem:[#allocation8 + $0x204] ss:$16 sps:$4 sm:$0xff]  }
 0x34b   :  { %5722 = vmatpush2.bf16.msra.mxu0 %v9228_v59  ;;  %v9273_v59 = vld [vmem:[#allocation8 + $0x1c0] ss:$16 sps:$4 sm:$0xff]  }
 0x34c   :  { %5763 = vmatpush2.bf16.msra.mxu1 %v9231_v42  ;;  %5723 = vmatprep.subr.bf16.mxu0 %v9236_v43  ;;  %v9363_v42 = vld [vmem:[#allocation8 + $0x200] ss:$16 sps:$4 sm:$0xff]   ;;  %v9278_v43 = vld [vmem:[#allocation8 + $0x1a4] ss:$16 sps:$4 sm:$0xff]  }
 0x34d   :  { %5764 = vmatprep.subr.bf16.mxu1 %v9239_v60  ;;  %v9368_v60 = vld [vmem:[#allocation8 + $0x3e4] ss:$16 sps:$4 sm:$0xff]  }
 0x34f   :  { %5724 = vmatpush2.bf16.msra.mxu0 %v9234_v62  ;;  %v9276_v62 = vld [vmem:[#allocation8 + $0x1a0] ss:$16 sps:$4 sm:$0xff]  }
 0x350   :  { %5765 = vmatpush2.bf16.msra.mxu1 %v9237_v11  ;;  %5725 = vmatprep.subr.bf16.mxu0 %v9242_v12  ;;  %v9366_v11 = vld [vmem:[#allocation8 + $0x3e0] ss:$16 sps:$4 sm:$0xff]   ;;  %v9281_v12 = vld [vmem:[#allocation8 + $0x184] ss:$16 sps:$4 sm:$0xff]  }
 0x351   :  { %5766 = vmatprep.subr.bf16.mxu1 %v9245_v63  ;;  %v9371_v63 = vld [vmem:[#allocation8 + $0x3c4] ss:$16 sps:$4 sm:$0xff]  }
 0x353   :  { %5726 = vmatpush2.bf16.msra.mxu0 %v9240_v1  ;;  %v9279_v1 = vld [vmem:[#allocation8 + $0x180] ss:$16 sps:$4 sm:$0xff]  }
 0x354   :  { %5767 = vmatpush2.bf16.msra.mxu1 %v9243_v2  ;;  %6575 = vmatprep.subr.bf16.mxu0 %v9248_v44  ;;  %v9369_v2 = vld [vmem:[#allocation8 + $0x3c0] ss:$16 sps:$4 sm:$0xff]   ;;  %v9284_v44 = vld [vmem:[#allocation8 + $0x164] ss:$16 sps:$4 sm:$0xff]  }
 0x355   :  { %6616 = vmatprep.subr.bf16.mxu1 %v9344_v35 }
 0x356   :  { %v5483_v22 = vpop.f32.mrf.mxu0  ;;  %5728 = vmatmul.mubr.bf16.vlgmr.msra.gmra.mxu0 %v9798_v15  ;;  %v9252_v15 = vld [vmem:[#allocation8 + $0xa0] ss:$16 sps:$4 sm:$0xff]  }
 0x357   :  { %v5524_v6 = vpop.f32.mrf.mxu1  ;;  %5769 = vmatmul.mubr.bf16.vlgmr.msra.gmra.mxu1 %v9800_v16  ;;  %v5484_v13 = vadd.f32 %v5483_v22, %v9859_v61  ;;  %6576 = vmatpush1.bf16.msra.mxu0 %v9246_v3  ;;  %v9282_v3 = vld [vmem:[#allocation8 + $0x160] ss:$16 sps:$4 sm:$0xff]   ;;  %v9287_v22 = vld [vmem:[#allocation8 + $0x144] ss:$16 sps:$4 sm:$0xff]  }
 0x358   :  { %6607 = vmatprep.mubr.bf16.mxu0 %v9867_v19  ;;  %v5485_v26 = vpop.f32.mrf.mxu0  ;;  %6577 = vmatprep.subr.bf16.mxu0 %v9251_v32  ;;  %v9372_v32 = vld [vmem:[#allocation8 + $0x3a0] ss:$16 sps:$4 sm:$0xff]  }
 0x359   :  { %v5526_v23 = vpop.f32.mrf.mxu1  ;;  %v9873_v25 = vadd.f32 %v5524_v6, %v5484_v13  ;;  %v5486_v27 = vadd.f32 %v5485_v26, %v9864_v45  ;;  %6617 = vmatpush1.bf16.msra.mxu1 %v9342_v34  ;;  %v9260_v45 = vld [vmem:[#allocation8 + $0x64] ss:$16 sps:$4 sm:$0xff]   ;;  %v9285_v13 = vld [vmem:[#allocation8 + $0x140] ss:$16 sps:$4 sm:$0xff]   ;;  %v9294_v34 = vld [vmem:[#allocation8 + $0xe8] ss:$16 sps:$4 sm:$0xff]  }
 0x35a   :  { %v5487_v28 = vpop.f32.mrf.mxu0  ;;  %6618 = vmatprep.subr.bf16.mxu1 %v9347_v36  ;;  %v9377_v6 = vld [vmem:[#allocation8 + $0x384] ss:$16 sps:$4 sm:$0xff]   ;;  %v9299_v36 = vld [vmem:[#allocation8 + $0xcc] ss:$16 sps:$4 sm:$0xff]  }
 0x35b   :  { %v5528_v30 = vpop.f32.mrf.mxu1  ;;  %v9876_v20 = vadd.f32 %v5526_v23, %v5486_v27  ;;  %6578 = vmatpush1.bf16.msra.mxu0 %v9249_v14  ;;  %v9375_v14 = vld [vmem:[#allocation8 + $0x380] ss:$16 sps:$4 sm:$0xff]   ;;  %v9290_v26 = vld [vmem:[#allocation8 + $0x124] ss:$16 sps:$4 sm:$0xff]  }
 0x35c   :  { %v5488_v16 = vpop.f32.mrf.mxu0  ;;  %6579 = vmatprep.subr.bf16.mxu0 %v9254_v24  ;;  %v9380_v23 = vld [vmem:[#allocation8 + $0x364] ss:$16 sps:$4 sm:$0xff]   ;;  %v9288_v24 = vld [vmem:[#allocation8 + $0x120] ss:$16 sps:$4 sm:$0xff]  }
 0x35d   :  { %v5529_v61 = vpop.f32.mrf.mxu1  ;;  %6619 = vmatpush1.bf16.msra.mxu1 %v9345_v31  ;;  %v9378_v27 = vld [vmem:[#allocation8 + $0x360] ss:$16 sps:$4 sm:$0xff]   ;;  %v9293_v28 = vld [vmem:[#allocation8 + $0x104] ss:$16 sps:$4 sm:$0xff]  }
 0x35e   :  { %6620 = vmatprep.subr.bf16.mxu1 %v9350_v29  ;;  %v9383_v30 = vld [vmem:[#allocation8 + $0x344] ss:$16 sps:$4 sm:$0xff]   ;;  %v9381_v16 = vld [vmem:[#allocation8 + $0x340] ss:$16 sps:$4 sm:$0xff]   ;;  %v5777_v61 = vmax.f32 %v9835_v58, 0.0 }
 0x35f   :  { %6580 = vmatpush1.bf16.msra.mxu0 %v9252_v15  ;;  %v9291_v15 = vld [vmem:[#allocation8 + $0x100] ss:$16 sps:$4 sm:$0xff]   ;;  %v9297_v58 = vld [vmem:[#allocation8 + $0xc8] ss:$16 sps:$4 sm:$0xff]   ;;  %v9386_v29 = vld [vmem:[#allocation8 + $0x324] ss:$16 sps:$4 sm:$0xff]  }
 0x360   :  { %6581 = vmatprep.subr.bf16.mxu0 %v9257_v21  ;;  %v9296_v21 = vld [vmem:[#allocation8 + $0xec] ss:$16 sps:$4 sm:$0xff]   ;;  %v9879_v35 = vpack.c.bf16 %v5777_v61, %v5777_v61 }
 0x361   :  { %6621 = vmatpush1.bf16.msra.mxu1 %v9348_v10 }
 0x362   :  { %6622 = vmatprep.subr.bf16.mxu1 %v9353_v47  ;;  %v9384_v47 = vld [vmem:[#allocation8 + $0x320] ss:$16 sps:$4 sm:$0xff]  }
 0x363   :  { %6582 = vmatpush1.bf16.msra.mxu0 %v9255_v39 }
 0x364   :  { %6583 = vmatprep.subr.bf16.mxu0 %v9260_v45 }
 0x365   :  { %6623 = vmatpush1.bf16.msra.mxu1 %v9351_v9 }
 0x366   :  { %6624 = vmatprep.subr.bf16.mxu1 %v9356_v51 }
 0x367   :  { %6584 = vmatpush1.bf16.msra.mxu0 %v9258_v7 }
 0x368   :  { %6585 = vmatprep.subr.bf16.mxu0 %v9263_v46  ;;  %v9302_v46 = vld [vmem:[#allocation8 + $0xac] ss:$16 sps:$4 sm:$0xff]  }
 0x369   :  { %6625 = vmatpush1.bf16.msra.mxu1 %v9354_v17 }
 0x36a   :  { %6626 = vmatprep.subr.bf16.mxu1 %v9359_v54  ;;  %v9305_v54 = vld [vmem:[#allocation8 + $0x8c] ss:$16 sps:$4 sm:$0xff]  }
 0x36b   :  { %6586 = vmatpush1.bf16.msra.mxu0 %v9261_v8 }
 0x36c   :  { %6587 = vmatprep.subr.bf16.mxu0 %v9266_v33 }
 0x36d   :  { %6627 = vmatpush1.bf16.msra.mxu1 %v9357_v55  ;;  %v9303_v55 = vld [vmem:[#allocation8 + $0x88] ss:$16 sps:$4 sm:$0xff]  }
 0x36e   :  { %6628 = vmatprep.subr.bf16.mxu1 %v9362_v40  ;;  %v9306_v40 = vld [vmem:[#allocation8 + $0x68] ss:$16 sps:$4 sm:$0xff]  }
 0x36f   :  { %6588 = vmatpush1.bf16.msra.mxu0 %v9264_v53 }
 0x370   :  { %6589 = vmatprep.subr.bf16.mxu0 %v9269_v18 }
 0x371   :  { %6629 = vmatpush1.bf16.msra.mxu1 %v9360_v56  ;;  %v9309_v56 = vld [vmem:[#allocation8 + $0x48] ss:$16 sps:$4 sm:$0xff]  }
 0x372   :  { %6630 = vmatprep.subr.bf16.mxu1 %v9365_v52  ;;  %v9312_v52 = vld [vmem:[#allocation8 + $0x28] ss:$16 sps:$4 sm:$0xff]  }
 0x373   :  { %6590 = vmatpush1.bf16.msra.mxu0 %v9267_v38  ;;  %v9387_v38 = vld [vmem:[#allocation8 + $0x300] ss:$16 sps:$4 sm:$0xff]  }
 0x374   :  { %6591 = vmatprep.subr.bf16.mxu0 %v9272_v37  ;;  %v9392_v37 = vld [vmem:[#allocation8 + $0x2ec] ss:$16 sps:$4 sm:$0xff]  }
 0x375   :  { %6631 = vmatpush1.bf16.msra.mxu1 %v9363_v42  ;;  %v9315_v42 = vld [vmem:[#allocation8 + $0x8] ss:$16 sps:$4 sm:$0xff]  }
 0x376   :  { %6632 = vmatprep.subr.bf16.mxu1 %v9368_v60  ;;  %v9318_v60 = vld [vmem:[#allocation8 + $0x1e8] ss:$16 sps:$4 sm:$0xff]  }
 0x377   :  { %6592 = vmatpush2.bf16.msra.mxu0 %v9270_v41  ;;  %v9311_v41 = vld [vmem:[#allocation8 + $0x4c] ss:$16 sps:$4 sm:$0xff]  }
 0x378   :  { %6593 = vmatprep.subr.bf16.mxu0 %v9275_v49  ;;  %v9314_v49 = vld [vmem:[#allocation8 + $0x2c] ss:$16 sps:$4 sm:$0xff]  }
 0x379   :  { %6633 = vmatpush2.bf16.msra.mxu1 %v9366_v11  ;;  %v9321_v11 = vld [vmem:[#allocation8 + $0x1c8] ss:$16 sps:$4 sm:$0xff]  }
 0x37a   :  { %6634 = vmatprep.subr.bf16.mxu1 %v9371_v63  ;;  %v9324_v63 = vld [vmem:[#allocation8 + $0x1a8] ss:$16 sps:$4 sm:$0xff]  }
 0x37b   :  { %6594 = vmatpush2.bf16.msra.mxu0 %v9273_v59  ;;  %v9317_v59 = vld [vmem:[#allocation8 + $0xc] ss:$16 sps:$4 sm:$0xff]  }
 0x37c   :  { %6595 = vmatprep.subr.bf16.mxu0 %v9278_v43  ;;  %v9320_v43 = vld [vmem:[#allocation8 + $0x1ec] ss:$16 sps:$4 sm:$0xff]  }
 0x37d   :  { %6635 = vmatpush2.bf16.msra.mxu1 %v9369_v2  ;;  %v9327_v2 = vld [vmem:[#allocation8 + $0x188] ss:$16 sps:$4 sm:$0xff]  }
 0x37e   :  { %6636 = vmatprep.subr.bf16.mxu1 %v9374_v50  ;;  %v9330_v50 = vld [vmem:[#allocation8 + $0x168] ss:$16 sps:$4 sm:$0xff]  }
 0x37f   :  { %6596 = vmatpush2.bf16.msra.mxu0 %v9276_v62  ;;  %v9323_v62 = vld [vmem:[#allocation8 + $0x1cc] ss:$16 sps:$4 sm:$0xff]  }
 0x380   :  { %6597 = vmatprep.subr.bf16.mxu0 %v9281_v12  ;;  %v9326_v12 = vld [vmem:[#allocation8 + $0x1ac] ss:$16 sps:$4 sm:$0xff]  }
 0x381   :  { %6637 = vmatpush2.bf16.msra.mxu1 %v9372_v32  ;;  %v9333_v32 = vld [vmem:[#allocation8 + $0x148] ss:$16 sps:$4 sm:$0xff]  }
 0x382   :  { %6638 = vmatprep.subr.bf16.mxu1 %v9377_v6  ;;  %v9336_v6 = vld [vmem:[#allocation8 + $0x128] ss:$16 sps:$4 sm:$0xff]  }
 0x383   :  { %6598 = vmatpush2.bf16.msra.mxu0 %v9279_v1  ;;  %v9329_v1 = vld [vmem:[#allocation8 + $0x18c] ss:$16 sps:$4 sm:$0xff]  }
 0x384   :  { %6599 = vmatprep.subr.bf16.mxu0 %v9284_v44  ;;  %v9332_v44 = vld [vmem:[#allocation8 + $0x16c] ss:$16 sps:$4 sm:$0xff]  }
 0x385   :  { %6639 = vmatpush2.bf16.msra.mxu1 %v9375_v14  ;;  %v9339_v14 = vld [vmem:[#allocation8 + $0x108] ss:$16 sps:$4 sm:$0xff]  }
 0x386   :  { %6640 = vmatprep.subr.bf16.mxu1 %v9380_v23 }
 0x387   :  { %6600 = vmatpush2.bf16.msra.mxu0 %v9282_v3  ;;  %v9335_v3 = vld [vmem:[#allocation8 + $0x14c] ss:$16 sps:$4 sm:$0xff]  }
 0x388   :  { %6601 = vmatprep.subr.bf16.mxu0 %v9287_v22  ;;  %v9338_v22 = vld [vmem:[#allocation8 + $0x12c] ss:$16 sps:$4 sm:$0xff]  }
 0x389   :  { %6641 = vmatpush2.bf16.msra.mxu1 %v9378_v27 }
 0x38a   :  { %6642 = vmatprep.subr.bf16.mxu1 %v9383_v30 }
 0x38b   :  { %6602 = vmatpush2.bf16.msra.mxu0 %v9285_v13  ;;  %v9341_v13 = vld [vmem:[#allocation8 + $0x10c] ss:$16 sps:$4 sm:$0xff]  }
 0x38c   :  { %6603 = vmatprep.subr.bf16.mxu0 %v9290_v26 }
 0x38d   :  { %6643 = vmatpush2.bf16.msra.mxu1 %v9381_v16 }
 0x38e   :  { %6644 = vmatprep.subr.bf16.mxu1 %v9386_v29 }
 0x38f   :  { %6604 = vmatpush2.bf16.msra.mxu0 %v9288_v24 }
 0x390   :  { %6605 = vmatprep.subr.bf16.mxu0 %v9293_v28 }
 0x391   :  { %6645 = vmatpush2.bf16.msra.mxu1 %v9384_v47 }
 0x393   :  { %6606 = vmatpush2.bf16.msra.mxu0 %v9291_v15 }
 0x394   :  { %6657 = vmatprep.subr.bf16.mxu0 %v9296_v21 }
 0x396   :  { %v5565_v39 = vpop.f32.mrf.mxu0  ;;  %6608 = vmatmul.mubr.bf16.vlgmr.msra.gmra.mxu0 %v9879_v35 }
 0x397   :  { %v5606_v31 = vpop.f32.mrf.mxu1  ;;  %v5566_v45 = vadd.f32 %v5565_v39, %v9873_v25  ;;  %6658 = vmatpush1.bf16.msra.mxu0 %v9294_v34  ;;  %6689 = vmatprep.mubr.bf16.mxu0 %v9867_v19  ;;  %v9300_v25 = vld [vmem:[#allocation8 + $0xa8] ss:$16 sps:$4 sm:$0xff]   ;;  %v9389_v19 = vld [vmem:[#allocation8 + $0x304] ss:$16 sps:$4 sm:$0xff]  }
 0x398   :  { %v5567_v7 = vpop.f32.mrf.mxu0  ;;  %6659 = vmatprep.subr.bf16.mxu0 %v9299_v36  ;;  %6646 = vmatprep.subr.bf16.mxu1 %v9389_v19  ;;  %v9440_v19 = vld [vmem:[#allocation11 + $0x70] sm:$0xff]  }
 0x399   :  { %v5608_v10 = vpop.f32.mrf.mxu1  ;;  %v9884_v8 = vadd.f32 %v5606_v31, %v5566_v45  ;;  %v5568_v9 = vadd.f32 %v5567_v7, %v9876_v20  ;;  %6647 = vmatpush2.bf16.msra.mxu1 %v9387_v38  ;;  %v9308_v20 = vld [vmem:[#allocation8 + $0x6c] ss:$16 sps:$4 sm:$0xff]  }
 0x39a   :  { %v5569_v33 = vpop.f32.mrf.mxu0  ;;  %6698 = vmatprep.subr.bf16.mxu1 %v9392_v37  ;;  %v9395_v38 = vld [vmem:[#allocation8 + $0x2cc] ss:$16 sps:$4 sm:$0xff]  }
 0x39b   :  { %v5610_v51 = vpop.f32.mrf.mxu1  ;;  %v9887_v53 = vadd.f32 %v5608_v10, %v5568_v9  ;;  %6660 = vmatpush1.bf16.msra.mxu0 %v9297_v58  ;;  %v9442_v37 = vld [vmem:[#allocation11 + $0x68] sm:$0xff]  }
 0x39c   :  { %v5570_v17 = vpop.f32.mrf.mxu0  ;;  %6661 = vmatprep.subr.bf16.mxu0 %v9302_v46  ;;  %v9438_v51 = vld [vmem:[#allocation11 + $0x78] sm:$0xff]  }
 0x39d   :  { %v5611_v18 = vpop.f32.mrf.mxu1 }
 0x39e   :  { %v9390_v18 = vld [vmem:[#allocation8 + $0x2e8] ss:$16 sps:$4 sm:$0xff]  }
 0x39f   :  { %6662 = vmatpush1.bf16.msra.mxu0 %v9300_v25  ;;  %v9439_v25 = vld [vmem:[#allocation11 + $0x38] sm:$0xff]  }
 0x3a0   :  { %6663 = vmatprep.subr.bf16.mxu0 %v9305_v54 }
 0x3a3   :  { %6664 = vmatpush1.bf16.msra.mxu0 %v9303_v55  ;;  %v9441_v55 = vld [vmem:[#allocation11 + $0x30] sm:$0xff]  }
 0x3a4   :  { %6665 = vmatprep.subr.bf16.mxu0 %v9308_v20  ;;  %v9393_v20 = vld [vmem:[#allocation8 + $0x2c8] ss:$16 sps:$4 sm:$0xff]  }
 0x3a7   :  { %6666 = vmatpush1.bf16.msra.mxu0 %v9306_v40  ;;  %v9398_v40 = vld [vmem:[#allocation8 + $0x2ac] ss:$16 sps:$4 sm:$0xff]  }
 0x3a8   :  { %6667 = vmatprep.subr.bf16.mxu0 %v9311_v41  ;;  %v9443_v41 = vld [vmem:[#allocation11 + $0x28] sm:$0xff]  }
 0x3ab   :  { %6668 = vmatpush1.bf16.msra.mxu0 %v9309_v56  ;;  %v9444_v56 = vld [vmem:[#allocation11 + $0x60] sm:$0xff]  }
 0x3ac   :  { %6669 = vmatprep.subr.bf16.mxu0 %v9314_v49  ;;  %v9396_v49 = vld [vmem:[#allocation8 + $0x2a8] ss:$16 sps:$4 sm:$0xff]  }
 0x3af   :  { %6670 = vmatpush1.bf16.msra.mxu0 %v9312_v52  ;;  %v9401_v52 = vld [vmem:[#allocation8 + $0x28c] ss:$16 sps:$4 sm:$0xff]  }
 0x3b0   :  { %6671 = vmatprep.subr.bf16.mxu0 %v9317_v59  ;;  %v9445_v59 = vld [vmem:[#allocation11 + $0x20] sm:$0xff]  }
 0x3b3   :  { %6672 = vmatpush1.bf16.msra.mxu0 %v9315_v42  ;;  %v9446_v42 = vld [vmem:[#allocation11 + $0x58] sm:$0xff]  }
 0x3b4   :  { %6673 = vmatprep.subr.bf16.mxu0 %v9320_v43  ;;  %v9399_v43 = vld [vmem:[#allocation8 + $0x288] ss:$16 sps:$4 sm:$0xff]  }
 0x3b7   :  { %6674 = vmatpush2.bf16.msra.mxu0 %v9318_v60  ;;  %v9404_v60 = vld [vmem:[#allocation8 + $0x26c] ss:$16 sps:$4 sm:$0xff]  }
 0x3b8   :  { %6675 = vmatprep.subr.bf16.mxu0 %v9323_v62  ;;  %v9447_v62 = vld [vmem:[#allocation11 + $0x18] sm:$0xff]  }
 0x3bb   :  { %6676 = vmatpush2.bf16.msra.mxu0 %v9321_v11  ;;  %v9448_v11 = vld [vmem:[#allocation11 + $0x50] sm:$0xff]  }
 0x3bc   :  { %6677 = vmatprep.subr.bf16.mxu0 %v9326_v12  ;;  %v9402_v12 = vld [vmem:[#allocation8 + $0x268] ss:$16 sps:$4 sm:$0xff]  }
 0x3bf   :  { %6678 = vmatpush2.bf16.msra.mxu0 %v9324_v63  ;;  %v9407_v63 = vld [vmem:[#allocation8 + $0x24c] ss:$16 sps:$4 sm:$0xff]  }
 0x3c0   :  { %6679 = vmatprep.subr.bf16.mxu0 %v9329_v1  ;;  %v9449_v1 = vld [vmem:[#allocation11 + $0x10] sm:$0xff]  }
 0x3c3   :  { %6680 = vmatpush2.bf16.msra.mxu0 %v9327_v2  ;;  %v9405_v2 = vld [vmem:[#allocation8 + $0x248] ss:$16 sps:$4 sm:$0xff]  }
 0x3c4   :  { %6681 = vmatprep.subr.bf16.mxu0 %v9332_v44  ;;  %v9410_v44 = vld [vmem:[#allocation8 + $0x22c] ss:$16 sps:$4 sm:$0xff]  }
 0x3c7   :  { %6682 = vmatpush2.bf16.msra.mxu0 %v9330_v50  ;;  %v9408_v50 = vld [vmem:[#allocation8 + $0x228] ss:$16 sps:$4 sm:$0xff]  }
 0x3c8   :  { %6683 = vmatprep.subr.bf16.mxu0 %v9335_v3  ;;  %v9413_v3 = vld [vmem:[#allocation8 + $0x20c] ss:$16 sps:$4 sm:$0xff]  }
 0x3cb   :  { %6684 = vmatpush2.bf16.msra.mxu0 %v9333_v32  ;;  %v9411_v32 = vld [vmem:[#allocation8 + $0x208] ss:$16 sps:$4 sm:$0xff]  }
 0x3cc   :  { %6685 = vmatprep.subr.bf16.mxu0 %v9338_v22  ;;  %v9416_v22 = vld [vmem:[#allocation8 + $0x3ec] ss:$16 sps:$4 sm:$0xff]  }
 0x3cf   :  { %6686 = vmatpush2.bf16.msra.mxu0 %v9336_v6  ;;  %v9414_v6 = vld [vmem:[#allocation8 + $0x3e8] ss:$16 sps:$4 sm:$0xff]  }
 0x3d0   :  { %6687 = vmatprep.subr.bf16.mxu0 %v9341_v13  ;;  %v9419_v13 = vld [vmem:[#allocation8 + $0x3cc] ss:$16 sps:$4 sm:$0xff]  }
 0x3d3   :  { %6688 = vmatpush2.bf16.msra.mxu0 %v9339_v14  ;;  %v9417_v14 = vld [vmem:[#allocation8 + $0x3c8] ss:$16 sps:$4 sm:$0xff]  }
 0x3d4   :  { %8038 = vmatprep.subr.bf16.mxu0 %v9438_v51  ;;  %v9459_v51 = vld [vmem:[#allocation11 + $0xa8] sm:$0xff]  }
 0x3d6   :  { %v5647_v26 = vpop.f32.mrf.mxu0  ;;  %6690 = vmatmul.mubr.bf16.vlgmr.msra.gmra.mxu0 %v9879_v35 }
 0x3d7   :  { %v5688_v23 = vpop.f32.mrf.mxu1  ;;  %v5648_v24 = vadd.f32 %v5647_v26, %v9884_v8  ;;  %8039 = vmatpush3.bf16.msra.mxu0 %v9439_v25  ;;  %v9422_v26 = vld [vmem:[#allocation8 + $0x3ac] ss:$16 sps:$4 sm:$0xff]   ;;  %v9460_v25 = vld [vmem:[#allocation11 + $0xe0] sm:$0xff]  }
 0x3d8   :  { %v5649_v27 = vpop.f32.mrf.mxu0  ;;  %8040 = vmatprep.subr.bf16.mxu0 %v9440_v19  ;;  %v9461_v19 = vld [vmem:[#allocation11 + $0xa0] sm:$0xff]  }
 0x3d9   :  { %v5690_v28 = vpop.f32.mrf.mxu1  ;;  %v5689_v30 = vadd.f32 %v5688_v23, %v5648_v24  ;;  %v5650_v34 = vadd.f32 %v5649_v27, %v9887_v53  ;;  %v9420_v23 = vld [vmem:[#allocation8 + $0x3a8] ss:$16 sps:$4 sm:$0xff]   ;;  %v9425_v24 = vld [vmem:[#allocation8 + $0x38c] ss:$16 sps:$4 sm:$0xff]  }
 0x3da   :  { %v5651_v15 = vpop.f32.mrf.mxu0  ;;  %v9423_v27 = vld [vmem:[#allocation8 + $0x388] ss:$16 sps:$4 sm:$0xff]  }
 0x3db   :  { %v5692_v16 = vpop.f32.mrf.mxu1  ;;  %v5691_v31 = vadd.f32 %v5690_v28, %v5650_v34  ;;  %8041 = vmatpush3.bf16.msra.mxu0 %v9441_v55  ;;  %v9428_v28 = vld [vmem:[#allocation8 + $0x36c] ss:$16 sps:$4 sm:$0xff]   ;;  %v9432_v34 = vld [vmem:[#allocation8 + $0x328] ss:$16 sps:$4 sm:$0xff]  }
 0x3dc   :  { %v5652_v61 = vpop.f32.mrf.mxu0  ;;  %8042 = vmatprep.subr.bf16.mxu0 %v9442_v37  ;;  %v9431_v15 = vld [vmem:[#allocation8 + $0x34c] ss:$16 sps:$4 sm:$0xff]   ;;  %v9429_v16 = vld [vmem:[#allocation8 + $0x348] ss:$16 sps:$4 sm:$0xff]  }
 0x3dd   :  { %v5693_v21 = vpop.f32.mrf.mxu1  ;;  %v9434_v61 = vld [vmem:[#allocation8 + $0x32c] ss:$16 sps:$4 sm:$0xff]  }
 0x3df   :  { %8043 = vmatpush3.bf16.msra.mxu0 %v9443_v41  ;;  %v9467_v41 = vld [vmem:[#allocation11 + $0x88] sm:$0xff]  }
 0x3e0   :  { %8044 = vmatprep.subr.bf16.mxu0 %v9444_v56  ;;  %v9468_v56 = vld [vmem:[#allocation11 + $0xc0] sm:$0xff]  }
 0x3e3   :  { %8045 = vmatpush3.bf16.msra.mxu0 %v9445_v59 }
 0x3e4   :  { %8046 = vmatprep.subr.bf16.mxu0 %v9446_v42 }
 0x3e7   :  { %8047 = vmatpush3.bf16.msra.mxu0 %v9447_v62 }
 0x3e8   :  { %8048 = vmatprep.subr.bf16.mxu0 %v9448_v11 }
 0x3eb   :  { %8049 = vmatpush3.bf16.msra.mxu0 %v9449_v1 }
 0x416   :  { %v5729_v36 = vpop.f32.mrf.mxu0 }
 0x417   :  { %v5770_v39 = vpop.f32.mrf.mxu1  ;;  %v5730_v45 = vadd.f32 %v5729_v36, %v5689_v30  ;;  %v9426_v30 = vld [vmem:[#allocation8 + $0x368] ss:$16 sps:$4 sm:$0xff]  }
 0x418   :  { %v5731_v58 = vpop.f32.mrf.mxu0 }
 0x419   :  { %v5772_v29 = vpop.f32.mrf.mxu1  ;;  %v5771_v7 = vadd.f32 %v5770_v39, %v5730_v45  ;;  %v5732_v10 = vadd.f32 %v5731_v58, %v5691_v31  ;;  %v9437_v39 = vld [vmem:[#allocation8 + $0x30c] ss:$16 sps:$4 sm:$0xff]   ;;  %v9435_v45 = vld [vmem:[#allocation8 + $0x308] ss:$16 sps:$4 sm:$0xff]  }
 0x41a   :  { %v5733_v35 = vpop.f32.mrf.mxu0 }
 0x41b   :  { %v5774_v46 = vpop.f32.mrf.mxu1  ;;  %v5773_v47 = vadd.f32 %v5772_v29, %v5732_v10  ;;  %v5779_v8 = vmax.f32 %v5771_v7, 0.0  ;;  %v9450_v29 = vld [vmem:[#allocation11 + $0x48] sm:$0xff]   ;;  %v9452_v10 = vld [vmem:[#allocation11 + $0x40] sm:$0xff]  }
 0x41c   :  { %v5734_v9 = vpop.f32.mrf.mxu0  ;;  %v9451_v7 = vld [vmem:[#allocation11 + $0x8] sm:$0xff]   ;;  %8050 = vmatprep.subr.bf16.mxu0 %v9450_v29  ;;  %v9453_v35 = vld [vmem:[#allocation11] sm:$0xff]   ;;  %v9454_v46 = vld [vmem:[#allocation11 + $0xf8] sm:$0xff]  }
 0x41d   :  { %v5775_v33 = vpop.f32.mrf.mxu1  ;;  %v5780_v17 = vmax.f32 %v5773_v47, 0.0  ;;  %v9892_v54 = vpack.c.bf16 %v5779_v8, %v5779_v8  ;;  %8051 = vmatpush3.bf16.msra.mxu0 %v9451_v7  ;;  %v9455_v47 = vld [vmem:[#allocation11 + $0xb8] sm:$0xff]   ;;  %v9456_v8 = vld [vmem:[#allocation11 + $0xf0] sm:$0xff]  }
 0x41e   :  { %8052 = vmatprep.subr.bf16.mxu0 %v9452_v10  ;;  %v9457_v9 = vld [vmem:[#allocation11 + $0xb0] sm:$0xff]   ;;  %v9458_v33 = vld [vmem:[#allocation11 + $0xe8] sm:$0xff]  }
 0x41f   :  { %v5784_v53 = vpack.c.bf16 %v5780_v17, %v5780_v17  ;;  %v9462_v17 = vld [vmem:[#allocation11 + $0xd8] sm:$0xff]  }
 0x421   :  { %6648 = vmatprep.mubr.bf16.mxu1 %v5784_v53  ;;  %8053 = vmatpush3.bf16.msra.mxu0 %v9453_v35 }
 0x422   :  { %6649 = vmatmul.mubr.bf16.vlgmr.msra.gmra.mxu1 %v9892_v54 }
 0x423   :  { %6699 = vmatpush1.bf16.msra.mxu1 %v9390_v18  ;;  %6730 = vmatprep.mubr.bf16.mxu1 %v5784_v53  ;;  %v9463_v53 = vld [vmem:[#allocation11 + $0x98] sm:$0xff]   ;;  %v9464_v18 = vld [vmem:[#allocation11 + $0xd0] sm:$0xff]  }
 0x424   :  { %6700 = vmatprep.subr.bf16.mxu1 %v9395_v38 }
 0x427   :  { %6701 = vmatpush1.bf16.msra.mxu1 %v9393_v20 }
 0x428   :  { %6702 = vmatprep.subr.bf16.mxu1 %v9398_v40  ;;  %v9466_v40 = vld [vmem:[#allocation11 + $0xc8] sm:$0xff]  }
 0x42b   :  { %6703 = vmatpush1.bf16.msra.mxu1 %v9396_v49  ;;  %v9469_v49 = vld [vmem:[#allocation11 + $0x80] sm:$0xff]  }
 0x42c   :  { %6704 = vmatprep.subr.bf16.mxu1 %v9401_v52  ;;  %v5913_v52 = vld [vmem:[#allocation10] sm:$0xf] }
 0x42d   :  { %v5918_v59 = vrot.slane %v5913_v52, %v935_v0  ;;  %v5922_v42 = vrot.slane %v5913_v52, %v939_v5  ;;  %v5926_v0 = vrot.slane %v5913_v52, %v943_v48  ;;  %v5930_v5 = vrot.slane %v5913_v52, %v947_v4  ;;  %v8005_v4 = vld [vmem:[#allocation13] ss:$0 sm:$0xff] }
 0x42f   :  { %6705 = vmatpush1.bf16.msra.mxu1 %v9399_v43 }
 0x430   :  { %6706 = vmatprep.subr.bf16.mxu1 %v9404_v60 }
 0x433   :  { %6707 = vmatpush1.bf16.msra.mxu1 %v9402_v12 }
 0x434   :  { %6708 = vmatprep.subr.bf16.mxu1 %v9407_v63 }
 0x437   :  { %6709 = vmatpush1.bf16.msra.mxu1 %v9405_v2 }
 0x438   :  { %6710 = vmatprep.subr.bf16.mxu1 %v9410_v44 }
 0x43b   :  { %6711 = vmatpush1.bf16.msra.mxu1 %v9408_v50 }
 0x43c   :  { %6712 = vmatprep.subr.bf16.mxu1 %v9413_v3 }
 0x43f   :  { %6713 = vmatpush1.bf16.msra.mxu1 %v9411_v32 }
 0x440   :  { %6714 = vmatprep.subr.bf16.mxu1 %v9416_v22 }
 0x443   :  { %6715 = vmatpush2.bf16.msra.mxu1 %v9414_v6 }
 0x444   :  { %6716 = vmatprep.subr.bf16.mxu1 %v9419_v13 }
 0x447   :  { %6717 = vmatpush2.bf16.msra.mxu1 %v9417_v14 }
 0x448   :  { %6718 = vmatprep.subr.bf16.mxu1 %v9422_v26 }
 0x44b   :  { %6719 = vmatpush2.bf16.msra.mxu1 %v9420_v23 }
 0x44c   :  { %6720 = vmatprep.subr.bf16.mxu1 %v9425_v24 }
 0x44f   :  { %6721 = vmatpush2.bf16.msra.mxu1 %v9423_v27 }
 0x450   :  { %6722 = vmatprep.subr.bf16.mxu1 %v9428_v28 }
 0x453   :  { %6723 = vmatpush2.bf16.msra.mxu1 %v9426_v30 }
 0x454   :  { %6724 = vmatprep.subr.bf16.mxu1 %v9431_v15 }
 0x456   :  { %v6609_v21 = vpop.f32.mrf.mxu0 }
 0x457   :  { %6725 = vmatpush2.bf16.msra.mxu1 %v9429_v16  ;;  %v6610_v43 = vadd.f32 %v6609_v21, %v5918_v59 }
 0x458   :  { %v6611_v36 = vpop.f32.mrf.mxu0  ;;  %6726 = vmatprep.subr.bf16.mxu1 %v9434_v61 }
 0x459   :  { %v6612_v62 = vadd.f32 %v6611_v36, %v5922_v42 }
 0x45a   :  { %v6613_v31 = vpop.f32.mrf.mxu0 }
 0x45b   :  { %6727 = vmatpush2.bf16.msra.mxu1 %v9432_v34 }
 0x45c   :  { %v6614_v58 = vpop.f32.mrf.mxu0  ;;  %6728 = vmatprep.subr.bf16.mxu1 %v9437_v39 }
 0x45f   :  { %6729 = vmatpush2.bf16.msra.mxu1 %v9435_v45 }
 0x460   :  { %8060 = vmatprep.subr.bf16.mxu1 %v9454_v46 }
 0x462   :  { %6731 = vmatmul.mubr.bf16.vlgmr.msra.gmra.mxu1 %v9892_v54  ;;  %v9465_v54 = vld [vmem:[#allocation11 + $0x90] sm:$0xff]  }
 0x463   :  { %8061 = vmatpush3.bf16.msra.mxu1 %v9455_v47 }
 0x464   :  { %8062 = vmatprep.subr.bf16.mxu1 %v9456_v8 }
 0x467   :  { %8063 = vmatpush3.bf16.msra.mxu1 %v9457_v9 }
 0x468   :  { %8064 = vmatprep.subr.bf16.mxu1 %v9458_v33 }
 0x46b   :  { %8065 = vmatpush3.bf16.msra.mxu1 %v9459_v51 }
 0x46c   :  { %8066 = vmatprep.subr.bf16.mxu1 %v9460_v25 }
 0x46f   :  { %8067 = vmatpush3.bf16.msra.mxu1 %v9461_v19 }
 0x470   :  { %8068 = vmatprep.subr.bf16.mxu1 %v9462_v17 }
 0x473   :  { %8069 = vmatpush3.bf16.msra.mxu1 %v9463_v53 }
 0x474   :  { %8070 = vmatprep.subr.bf16.mxu1 %v9464_v18 }
 0x477   :  { %8071 = vmatpush3.bf16.msra.mxu1 %v9465_v54 }
 0x478   :  { %8072 = vmatprep.subr.bf16.mxu1 %v9466_v40 }
 0x47b   :  { %8073 = vmatpush3.bf16.msra.mxu1 %v9467_v41 }
 0x47c   :  { %8074 = vmatprep.subr.bf16.mxu1 %v9468_v56 }
 0x47f   :  { %8075 = vmatpush3.bf16.msra.mxu1 %v9469_v49 }
 0x496   :  { %v6691_v38 = vpop.f32.mrf.mxu0 }
 0x497   :  { %v6692_v22 = vadd.f32 %v6691_v38, %v5926_v0 }
 0x498   :  { %v6693_v55 = vpop.f32.mrf.mxu0 }
 0x499   :  { %v6694_v13 = vadd.f32 %v6693_v55, %v5930_v5 }
 0x49a   :  { %v6695_v37 = vpop.f32.mrf.mxu0 }
 0x49c   :  { %v6696_v20 = vpop.f32.mrf.mxu0 }
 0x4e2   :  { %v6650_v60 = vpop.f32.mrf.mxu1 }
 0x4e3   :  { %v6651_v11 = vadd.f32 %v6650_v60, %v6610_v43 }
 0x4e4   :  { %v6652_v12 = vpop.f32.mrf.mxu1 }
 0x4e5   :  { %v6653_v63 = vadd.f32 %v6652_v12, %v6612_v62  ;;  %v6739_v1 = vmax.f32 %v6651_v11, 0.0 }
 0x4e6   :  { %v6654_v2 = vpop.f32.mrf.mxu1 }
 0x4e7   :  { %v6740_v44 = vmax.f32 %v6653_v63, 0.0  ;;  %v6743_v32 = vpack.c.bf16 %v6739_v1, %v6739_v1 }
 0x4e8   :  { %v6655_v50 = vpop.f32.mrf.mxu1 }
 0x4e9   :  { %v6744_v3 = vpack.c.bf16 %v6740_v44, %v6740_v44 }
 0x4eb   :  { %7042 = vmatprep.mubr.bf16.mxu0 %v6744_v3 }
 0x4ec   :  { %7043 = vmatmul.mubr.bf16.vlgmr.msra.gmra.mxu0 %v6743_v32 }
 0x522   :  { %v6732_v6 = vpop.f32.mrf.mxu1 }
 0x523   :  { %v6733_v14 = vadd.f32 %v6732_v6, %v6692_v22 }
 0x524   :  { %v6734_v26 = vpop.f32.mrf.mxu1 }
 0x525   :  { %v6735_v23 = vadd.f32 %v6734_v26, %v6694_v13  ;;  %v6741_v24 = vmax.f32 %v6733_v14, 0.0 }
 0x526   :  { %v6736_v27 = vpop.f32.mrf.mxu1 }
 0x527   :  { %v6742_v28 = vmax.f32 %v6735_v23, 0.0  ;;  %v6745_v16 = vpack.c.bf16 %v6741_v24, %v6741_v24 }
 0x528   :  { %v6737_v30 = vpop.f32.mrf.mxu1 }
 0x529   :  { %v6746_v15 = vpack.c.bf16 %v6742_v28, %v6742_v28 }
 0x52b   :  { %7082 = vmatprep.mubr.bf16.mxu1 %v6746_v15 }
 0x52c   :  { %7083 = vmatmul.mubr.bf16.vlgmr.msra.gmra.mxu1 %v6745_v16 }
 0x5ac   :  { %v8054_v61 = vpop.f32.mrf.mxu0 }
 0x5ae   :  { %v8055_v21 = vpop.f32.mrf.mxu0 }
 0x5af   :  { %v8056_v57 = vadd.f32 %v8055_v21, %v8054_v61 }
 0x5b0   :  { %v8057_v48 = vpop.f32.mrf.mxu0 }
 0x5b1   :  { %v7045_v31 = vadd.f32 %v8056_v57, %v8005_v4 }
 0x5b2   :  { %v8058_v34 = vpop.f32.mrf.mxu0 }
 0x5ec   :  { %v8076_v36 = vpop.f32.mrf.mxu1 }
 0x5ee   :  { %v8077_v39 = vpop.f32.mrf.mxu1 }
 0x5ef   :  { %v8078_v45 = vadd.f32 %v8077_v39, %v8076_v36 }
 0x5f0   :  { %v8079_v58 = vpop.f32.mrf.mxu1 }
 0x5f1   :  { %v7085_v29 = vadd.f32 %v8078_v45, %v7045_v31 }
 0x5f2   :  { %v8080_v7 = vpop.f32.mrf.mxu1 }
 0x5f3   :  { %7090 = vst [vmem:[#allocation14] sm:$0xff] %v7085_v29 }
 0x5f4   :  { %9622 = shalt.err (!%p9619_p11)
}
 0x5f5   :  { %7100 = dma.vmem_to_hbm [thread:$0]  %s7098_s6, 128, %s9914_s7, [#allocation4]  }
 0x5f6   :  { %9639 = dma.done.wait [#allocation4], 128  }
 0x5f7   :  { %9640 = vsyncadd [#allocation4], 4294967168 }
 0x5f8   :  { %7104 = vsyncpa [#allocation3], 1 }
 0x5f9   :  { %7105 = vsyncpa [#allocation6], 1 }
 0x5fa   :  { %7106 = vsyncpa [#allocation9], 1 }
 0x5fb   :  { %7107 = vsyncpa [#allocation12], 1 }
 0x5fc   :  { %7108 = vsyncpa [#allocation4], 1 }

// kernel: tpu_custom_call.1
= control target key start
LH: loop header
LB: loop body
LE: loop exit
PB: predicated region body
PF: predicated region fallthrough
CT: control target
= control target key end

     0   :  { %12 = vsyncpa [#allocation3], 0  ;;  %s9907_s0 = inlined_call_operand.hbm [shape: f32[8,3072], index: 0, kind: input, shape index: {}]   ;;  %s9908_s1 = inlined_call_operand.hbm [shape: bf16[3072,512], index: 1, kind: input, shape index: {}]   ;;  %s9909_s2 = inlined_call_operand.hbm [shape: f32[1,512], index: 2, kind: input, shape index: {}]   ;;  %s9910_s3 = inlined_call_operand.hbm [shape: bf16[512,512], index: 3, kind: input, shape index: {}]   ;;  %s9911_s4 = inlined_call_operand.hbm [shape: f32[1,512], index: 4, kind: input, shape index: {}]   ;;  %s9912_s5 = inlined_call_operand.hbm [shape: bf16[512,128], index: 5, kind: input, shape index: {}]   ;;  %s9913_s6 = inlined_call_operand.hbm [shape: f32[1,128], index: 6, kind: input, shape index: {}]   ;;  %s9914_s7 = inlined_call_operand.hbm [shape: f32[8,128], index: 7, kind: output, shape index: {}]  }
   0x1   :  { %13 = vsyncpa [#allocation6], 0 }
   0x2   :  { %14 = vsyncpa [#allocation9], 0 }
   0x3   :  { %15 = vsyncpa [#allocation12], 0 }
   0x4   :  { %16 = vsyncpa [#allocation4], 0  ;;  %s9641_s24 = smov [#allocation5]  }
   0x5   :  { %s32_s25 = sshll.u32 %s9641_s24, 4  ;;  %s33_s25 = int_to_ptr.vmem [resolvable:$true] %s32_s25 }
   0x6   :  { %s9479_s26 = scalar_lea.vmem %s33_s25, 98304  ;;  %p9484_p1 = scmp.lt.s32.totalorder %s33_s25, %s33_s25 }
   0x7   :  { %p9480_p0 = scmp.ne.s32.totalorder %s33_s25, %s9479_s26  ;;  %p9485_p2 = scmp.lt.s32.totalorder %s9479_s26, %s9479_s26 }
   0x9   :  { %p9486_p3 = por %p9485_p2, %p9484_p1 }
   0xb   :  { %p9487_p4 = pnand %p9486_p3, %p9480_p0 }
   0xd   :  { %9490 = shalt.err (!%p9487_p4)
}
   0xe   :  { %s9642_s27 = smov 256   ;;  %s9643_s28 = smov 16  }
   0xf   :  { %38 = dma.hbm_to_vmem [thread:$0]  %s9908_s1, 98304, %s33_s25, [#allocation6], %s9642_s27, %s9642_s27, %s9643_s28  }
  0x10   :  { %s9644_s8 = smov [#allocation8]   ;;  %s9645_s10 = smov [#allocation11]  }
  0x11   :  { %s54_s9 = sshll.u32 %s9644_s8, 4  ;;  %s76_s11 = sshll.u32 %s9645_s10, 4  ;;  %s55_s9 = int_to_ptr.vmem [resolvable:$true] %s54_s9  ;;  %s77_s11 = int_to_ptr.vmem [resolvable:$true] %s76_s11 }
  0x12   :  { %s9499_s12 = scalar_lea.vmem %s55_s9, 16384  ;;  %p9504_p6 = scmp.lt.s32.totalorder %s55_s9, %s55_s9 }
  0x13   :  { %p9500_p5 = scmp.ne.s32.totalorder %s55_s9, %s9499_s12  ;;  %p9505_p7 = scmp.lt.s32.totalorder %s9499_s12, %s9499_s12 }
  0x15   :  { %p9506_p8 = por %p9505_p7, %p9504_p6 }
  0x17   :  { %p9507_p9 = pnand %p9506_p8, %p9500_p5 }
  0x19   :  { %9510 = shalt.err (!%p9507_p9)
}
  0x1a   :  { %60 = dma.hbm_to_vmem [thread:$0]  %s9910_s3, 16384, %s55_s9, [#allocation9], %s9642_s27, %s9642_s27, %s9643_s28  }
  0x1b   :  { %s9519_s15 = scalar_lea.vmem %s77_s11, 4096  ;;  %p9524_p11 = scmp.lt.s32.totalorder %s77_s11, %s77_s11 }
  0x1c   :  { %p9520_p10 = scmp.ne.s32.totalorder %s77_s11, %s9519_s15  ;;  %p9525_p12 = scmp.lt.s32.totalorder %s9519_s15, %s9519_s15 }
  0x1e   :  { %p9526_p13 = por %p9525_p12, %p9524_p11 }
  0x20   :  { %p9527_p0 = pnand %p9526_p13, %p9520_p10 }
  0x22   :  { %9530 = shalt.err (!%p9527_p0)
}
  0x23   :  { %s9646_s1 = smov 64   ;;  %s9647_s16 = smov 4  }
  0x24   :  { %82 = dma.hbm_to_vmem [thread:$0]  %s9912_s5, 4096, %s77_s11, [#allocation12], %s9646_s1, %s9646_s1, %s9647_s16  }
  0x25   :  { %s9648_s19 = smov [#allocation2]   ;;  %s9649_s21 = smov [#allocation7]  }
  0x26   :  { %s23_s20 = sshll.u32 %s9648_s19, 4  ;;  %s45_s22 = sshll.u32 %s9649_s21, 4  ;;  %s24_s20 = int_to_ptr.vmem [resolvable:$true] %s23_s20  ;;  %s46_s22 = int_to_ptr.vmem [resolvable:$true] %s45_s22 }
  0x27   :  { %s9539_s3 = scalar_lea.vmem %s24_s20, 3072  ;;  %p9544_p2 = scmp.lt.s32.totalorder %s24_s20, %s24_s20 }
  0x28   :  { %p9540_p1 = scmp.ne.s32.totalorder %s24_s20, %s9539_s3  ;;  %p9545_p3 = scmp.lt.s32.totalorder %s9539_s3, %s9539_s3 }
  0x2a   :  { %p9546_p4 = por %p9545_p3, %p9544_p2 }
  0x2c   :  { %p9547_p5 = pnand %p9546_p4, %p9540_p1 }
  0x2e   :  { %9550 = shalt.err (!%p9547_p5)
}
  0x2f   :  { %26 = dma.hbm_to_vmem [thread:$0]  %s9907_s0, 3072, %s24_s20, [#allocation3]  }
  0x30   :  { %s9559_s25 = scalar_lea.vmem %s46_s22, 64  ;;  %p9564_p7 = scmp.lt.s32.totalorder %s46_s22, %s46_s22 }
  0x31   :  { %p9560_p6 = scmp.ne.s32.totalorder %s46_s22, %s9559_s25  ;;  %p9565_p8 = scmp.lt.s32.totalorder %s9559_s25, %s9559_s25 }
  0x33   :  { %p9566_p9 = por %p9565_p8, %p9564_p7 }
  0x35   :  { %p9567_p10 = pnand %p9566_p9, %p9560_p6 }
  0x37   :  { %9570 = shalt.err (!%p9567_p10)
}
  0x38   :  { %48 = dma.hbm_to_vmem [thread:$0]  %s9909_s2, 64, %s46_s22, [#allocation6]  }
  0x39   :  { %s9650_s27 = smov [#allocation10]   ;;  %s9651_s29 = smov [#allocation13]  }
  0x3a   :  { %s67_s28 = sshll.u32 %s9650_s27, 4  ;;  %s89_s30 = sshll.u32 %s9651_s29, 4  ;;  %s68_s28 = int_to_ptr.vmem [resolvable:$true] %s67_s28  ;;  %s90_s30 = int_to_ptr.vmem [resolvable:$true] %s89_s30 }
  0x3b   :  { %s9579_s8 = scalar_lea.vmem %s68_s28, 64  ;;  %p9584_p12 = scmp.lt.s32.totalorder %s68_s28, %s68_s28 }
  0x3c   :  { %p9580_p11 = scmp.ne.s32.totalorder %s68_s28, %s9579_s8  ;;  %p9585_p13 = scmp.lt.s32.totalorder %s9579_s8, %s9579_s8 }
  0x3e   :  { %p9586_p0 = por %p9585_p13, %p9584_p12 }
  0x40   :  { %p9587_p1 = pnand %p9586_p0, %p9580_p11 }
  0x42   :  { %9590 = shalt.err (!%p9587_p1)
}
  0x43   :  { %70 = dma.hbm_to_vmem [thread:$0]  %s9911_s4, 64, %s68_s28, [#allocation9]  }
  0x44   :  { %s9599_s10 = scalar_lea.vmem %s90_s30, 16  ;;  %s9603_s2 = scalar_lea.vmem %s90_s30, 32 }
  0x45   :  { %p9600_p2 = scmp.ne.s32.totalorder %s90_s30, %s9599_s10  ;;  %p9604_p3 = scmp.lt.s32.totalorder %s90_s30, %s90_s30 }
  0x46   :  { %p9605_p4 = scmp.lt.s32.totalorder %s9603_s2, %s9599_s10 }
  0x48   :  { %p9606_p5 = por %p9605_p4, %p9604_p3 }
  0x4a   :  { %p9607_p6 = pnand %p9606_p5, %p9600_p2 }
  0x4c   :  { %9610 = shalt.err (!%p9607_p6)
}
  0x4d   :  { %92 = dma.hbm_to_vmem [thread:$0]  %s9913_s6, 16, %s90_s30, [#allocation12]  }
  0x4e   :  { %9631 = dma.done.wait [#allocation3], 3072  }
  0x4f   :  { %9632 = vsyncadd [#allocation3], 4294964224 }
  0x50   :  { %9633 = dma.done.wait [#allocation6], 98368  }
  0x51   :  { %9634 = vsyncadd [#allocation6], 4294868928 }
  0x52   :  { %9635 = dma.done.wait [#allocation9], 16448  }
  0x53   :  { %9636 = vsyncadd [#allocation9], 4294950848 }
  0x54   :  { %9637 = dma.done.wait [#allocation12], 4112  }
  0x55   :  { %9638 = vsyncadd [#allocation12], 4294963184  ;;  %v8094_v0 = vld [vmem:[#allocation5 + $0xe4] ss:$16 sps:$4 sm:$0xff]   ;;  %v8098_v2 = vld [vmem:[#allocation5 + $0xe0] ss:$16 sps:$4 sm:$0xff]  }
  0x56   :  { %v8096_v1 = vld [vmem:[#allocation5 + $0x2e4] ss:$16 sps:$4 sm:$0xff]   ;;  %4793 = vmatprep.subr.bf16.mxu0 %v8094_v0  ;;  %v8099_v3 = vld [vmem:[#allocation5 + $0x2e0] ss:$16 sps:$4 sm:$0xff]   ;;  %v116_v46 = vld [vmem:[#allocation2 + $0x8] sm:$0xff]  ;;  %s9652_s4 = smov [#allocation14]  }
  0x57   :  { %4834 = vmatprep.subr.bf16.mxu1 %v8096_v1  ;;  %v8100_v4 = vld [vmem:[#allocation5 + $0xc4] ss:$16 sps:$4 sm:$0xff]   ;;  %4794 = vmatpush1.bf16.msra.mxu0 %v8098_v2  ;;  %v8104_v6 = vld [vmem:[#allocation5 + $0xc0] ss:$16 sps:$4 sm:$0xff]   ;;  %v9714_v49 = vpack.c.bf16 %v116_v46, %v116_v46  ;;  %v118_v50 = vld [vmem:[#allocation2 + $0x18] sm:$0xff]  ;;  %s7097_s6 = sshll.u32 %s9652_s4, 4  ;;  %s7098_s6 = int_to_ptr.vmem [resolvable:$true] %s7097_s6 }
  0x58   :  { %4835 = vmatpush1.bf16.msra.mxu1 %v8099_v3  ;;  %v8102_v5 = vld [vmem:[#allocation5 + $0x2c4] ss:$16 sps:$4 sm:$0xff]   ;;  %4795 = vmatprep.subr.bf16.mxu0 %v8100_v4  ;;  %v8105_v7 = vld [vmem:[#allocation5 + $0x2c0] ss:$16 sps:$4 sm:$0xff]   ;;  %v9716_v52 = vpack.c.bf16 %v118_v50, %v118_v50  ;;  %s9611_s13 = scalar_lea.vmem %s7098_s6, 128  ;;  %p9616_p8 = scmp.lt.s32.totalorder %s7098_s6, %s7098_s6 }
  0x59   :  { %4836 = vmatprep.subr.bf16.mxu1 %v8102_v5  ;;  %v8106_v8 = vld [vmem:[#allocation5 + $0xa4] ss:$16 sps:$4 sm:$0xff]   ;;  %v8110_v10 = vld [vmem:[#allocation5 + $0xa0] ss:$16 sps:$4 sm:$0xff]   ;;  %4825 = vmatprep.mubr.bf16.mxu0 %v9714_v49  ;;  %p9612_p7 = scmp.ne.s32.totalorder %s7098_s6, %s9611_s13  ;;  %p9617_p9 = scmp.lt.s32.totalorder %s9611_s13, %s9611_s13 }
  0x5a   :  { %v8108_v9 = vld [vmem:[#allocation5 + $0x2a4] ss:$16 sps:$4 sm:$0xff]   ;;  %v8111_v11 = vld [vmem:[#allocation5 + $0x2a0] ss:$16 sps:$4 sm:$0xff]   ;;  %4866 = vmatprep.mubr.bf16.mxu1 %v9716_v52 }
  0x5b   :  { %4796 = vmatpush1.bf16.msra.mxu0 %v8104_v6  ;;  %v8112_v12 = vld [vmem:[#allocation5 + $0x84] ss:$16 sps:$4 sm:$0xff]   ;;  %v8116_v14 = vld [vmem:[#allocation5 + $0x80] ss:$16 sps:$4 sm:$0xff]   ;;  %p9618_p10 = por %p9617_p9, %p9616_p8 }
  0x5c   :  { %4837 = vmatpush1.bf16.msra.mxu1 %v8105_v7  ;;  %4797 = vmatprep.subr.bf16.mxu0 %v8106_v8  ;;  %v8114_v13 = vld [vmem:[#allocation5 + $0x284] ss:$16 sps:$4 sm:$0xff]   ;;  %v8117_v15 = vld [vmem:[#allocation5 + $0x280] ss:$16 sps:$4 sm:$0xff]  }
  0x5d   :  { %4838 = vmatprep.subr.bf16.mxu1 %v8108_v9  ;;  %v8118_v16 = vld [vmem:[#allocation5 + $0x64] ss:$16 sps:$4 sm:$0xff]   ;;  %v8122_v18 = vld [vmem:[#allocation5 + $0x60] ss:$16 sps:$4 sm:$0xff]   ;;  %p9619_p11 = pnand %p9618_p10, %p9612_p7 }
  0x5e   :  { %v8120_v17 = vld [vmem:[#allocation5 + $0x264] ss:$16 sps:$4 sm:$0xff]   ;;  %v8123_v19 = vld [vmem:[#allocation5 + $0x260] ss:$16 sps:$4 sm:$0xff]  }
  0x5f   :  { %4798 = vmatpush1.bf16.msra.mxu0 %v8110_v10  ;;  %v8124_v20 = vld [vmem:[#allocation5 + $0x44] ss:$16 sps:$4 sm:$0xff]   ;;  %v8128_v22 = vld [vmem:[#allocation5 + $0x40] ss:$16 sps:$4 sm:$0xff]  }
  0x60   :  { %4839 = vmatpush1.bf16.msra.mxu1 %v8111_v11  ;;  %4799 = vmatprep.subr.bf16.mxu0 %v8112_v12  ;;  %v8126_v21 = vld [vmem:[#allocation5 + $0x244] ss:$16 sps:$4 sm:$0xff]   ;;  %v8129_v23 = vld [vmem:[#allocation5 + $0x240] ss:$16 sps:$4 sm:$0xff]  }
  0x61   :  { %4840 = vmatprep.subr.bf16.mxu1 %v8114_v13  ;;  %v8130_v24 = vld [vmem:[#allocation5 + $0x24] ss:$16 sps:$4 sm:$0xff]   ;;  %v8134_v26 = vld [vmem:[#allocation5 + $0x20] ss:$16 sps:$4 sm:$0xff]  }
  0x62   :  { %v8132_v25 = vld [vmem:[#allocation5 + $0x224] ss:$16 sps:$4 sm:$0xff]   ;;  %v8135_v27 = vld [vmem:[#allocation5 + $0x220] ss:$16 sps:$4 sm:$0xff]  }
  0x63   :  { %4800 = vmatpush1.bf16.msra.mxu0 %v8116_v14  ;;  %v8136_v28 = vld [vmem:[#allocation5 + $0x4] ss:$16 sps:$4 sm:$0xff]   ;;  %v8140_v30 = vld [vmem:[#allocation5] ss:$16 sps:$4 sm:$0xff]  }
  0x64   :  { %4841 = vmatpush1.bf16.msra.mxu1 %v8117_v15  ;;  %4801 = vmatprep.subr.bf16.mxu0 %v8118_v16  ;;  %v8138_v29 = vld [vmem:[#allocation5 + $0x204] ss:$16 sps:$4 sm:$0xff]   ;;  %v8141_v31 = vld [vmem:[#allocation5 + $0x200] ss:$16 sps:$4 sm:$0xff]  }
  0x65   :  { %4842 = vmatprep.subr.bf16.mxu1 %v8120_v17  ;;  %v8142_v32 = vld [vmem:[#allocation5 + $0x1e4] ss:$16 sps:$4 sm:$0xff]   ;;  %v8146_v34 = vld [vmem:[#allocation5 + $0x1e0] ss:$16 sps:$4 sm:$0xff]  }
  0x66   :  { %v8144_v33 = vld [vmem:[#allocation5 + $0x3e4] ss:$16 sps:$4 sm:$0xff]   ;;  %v8147_v35 = vld [vmem:[#allocation5 + $0x3e0] ss:$16 sps:$4 sm:$0xff]  }
  0x67   :  { %4802 = vmatpush1.bf16.msra.mxu0 %v8122_v18  ;;  %v8148_v36 = vld [vmem:[#allocation5 + $0x1c4] ss:$16 sps:$4 sm:$0xff]   ;;  %v8152_v38 = vld [vmem:[#allocation5 + $0x1c0] ss:$16 sps:$4 sm:$0xff]  }
  0x68   :  { %4843 = vmatpush1.bf16.msra.mxu1 %v8123_v19  ;;  %4803 = vmatprep.subr.bf16.mxu0 %v8124_v20  ;;  %v8150_v37 = vld [vmem:[#allocation5 + $0x3c4] ss:$16 sps:$4 sm:$0xff]   ;;  %v8153_v39 = vld [vmem:[#allocation5 + $0x3c0] ss:$16 sps:$4 sm:$0xff]  }
  0x69   :  { %4844 = vmatprep.subr.bf16.mxu1 %v8126_v21  ;;  %v8154_v40 = vld [vmem:[#allocation5 + $0x1a4] ss:$16 sps:$4 sm:$0xff]   ;;  %v8158_v42 = vld [vmem:[#allocation5 + $0x1a0] ss:$16 sps:$4 sm:$0xff]  }
  0x6a   :  { %v8156_v41 = vld [vmem:[#allocation5 + $0x3a4] ss:$16 sps:$4 sm:$0xff]   ;;  %v8159_v43 = vld [vmem:[#allocation5 + $0x3a0] ss:$16 sps:$4 sm:$0xff]  }
  0x6b   :  { %4804 = vmatpush1.bf16.msra.mxu0 %v8128_v22  ;;  %v8160_v44 = vld [vmem:[#allocation5 + $0x184] ss:$16 sps:$4 sm:$0xff]   ;;  %v8164_v47 = vld [vmem:[#allocation5 + $0x180] ss:$16 sps:$4 sm:$0xff]  }
  0x6c   :  { %4845 = vmatpush1.bf16.msra.mxu1 %v8129_v23  ;;  %4805 = vmatprep.subr.bf16.mxu0 %v8130_v24  ;;  %v8162_v45 = vld [vmem:[#allocation5 + $0x384] ss:$16 sps:$4 sm:$0xff]   ;;  %v8165_v48 = vld [vmem:[#allocation5 + $0x380] ss:$16 sps:$4 sm:$0xff]  }
  0x6d   :  { %4846 = vmatprep.subr.bf16.mxu1 %v8132_v25  ;;  %v8166_v51 = vld [vmem:[#allocation5 + $0x164] ss:$16 sps:$4 sm:$0xff]   ;;  %v8170_v54 = vld [vmem:[#allocation5 + $0x160] ss:$16 sps:$4 sm:$0xff]  }
  0x6e   :  { %v8168_v53 = vld [vmem:[#allocation5 + $0x364] ss:$16 sps:$4 sm:$0xff]   ;;  %v8171_v55 = vld [vmem:[#allocation5 + $0x360] ss:$16 sps:$4 sm:$0xff]  }
  0x6f   :  { %4806 = vmatpush1.bf16.msra.mxu0 %v8134_v26  ;;  %v8172_v56 = vld [vmem:[#allocation5 + $0x144] ss:$16 sps:$4 sm:$0xff]   ;;  %v8176_v58 = vld [vmem:[#allocation5 + $0x140] ss:$16 sps:$4 sm:$0xff]  }
  0x70   :  { %4847 = vmatpush1.bf16.msra.mxu1 %v8135_v27  ;;  %4807 = vmatprep.subr.bf16.mxu0 %v8136_v28  ;;  %v8174_v57 = vld [vmem:[#allocation5 + $0x344] ss:$16 sps:$4 sm:$0xff]   ;;  %v8177_v59 = vld [vmem:[#allocation5 + $0x340] ss:$16 sps:$4 sm:$0xff]  }
  0x71   :  { %4848 = vmatprep.subr.bf16.mxu1 %v8138_v29  ;;  %v8178_v60 = vld [vmem:[#allocation5 + $0x124] ss:$16 sps:$4 sm:$0xff]   ;;  %v8182_v62 = vld [vmem:[#allocation5 + $0x120] ss:$16 sps:$4 sm:$0xff]  }
  0x72   :  { %v8180_v61 = vld [vmem:[#allocation5 + $0x324] ss:$16 sps:$4 sm:$0xff]   ;;  %v8183_v63 = vld [vmem:[#allocation5 + $0x320] ss:$16 sps:$4 sm:$0xff]  }
  0x73   :  { %4808 = vmatpush1.bf16.msra.mxu0 %v8140_v30  ;;  %v8184_v0 = vld [vmem:[#allocation5 + $0x104] ss:$16 sps:$4 sm:$0xff]   ;;  %v8188_v2 = vld [vmem:[#allocation5 + $0x100] ss:$16 sps:$4 sm:$0xff]  }
  0x74   :  { %4849 = vmatpush1.bf16.msra.mxu1 %v8141_v31  ;;  %4809 = vmatprep.subr.bf16.mxu0 %v8142_v32  ;;  %v8186_v1 = vld [vmem:[#allocation5 + $0x304] ss:$16 sps:$4 sm:$0xff]   ;;  %v8189_v3 = vld [vmem:[#allocation5 + $0x300] ss:$16 sps:$4 sm:$0xff]  }
  0x75   :  { %4850 = vmatprep.subr.bf16.mxu1 %v8144_v33  ;;  %v115_v4 = vld [vmem:[#allocation2] sm:$0xff]  ;;  %v117_v5 = vld [vmem:[#allocation2 + $0x10] sm:$0xff] }
  0x76   :  { %v8192_v6 = vld [vmem:[#allocation5 + $0x4e4] ss:$16 sps:$4 sm:$0xff]   ;;  %v9720_v8 = vpack.c.bf16 %v115_v4, %v115_v4  ;;  %v9722_v9 = vpack.c.bf16 %v117_v5, %v117_v5  ;;  %v8190_v10 = vld [vmem:[#allocation5 + $0x4e0] ss:$16 sps:$4 sm:$0xff]  }
  0x77   :  { %4810 = vmatpush2.bf16.msra.mxu0 %v8146_v34  ;;  %v8195_v7 = vld [vmem:[#allocation5 + $0x6e4] ss:$16 sps:$4 sm:$0xff]   ;;  %v8193_v11 = vld [vmem:[#allocation5 + $0x6e0] ss:$16 sps:$4 sm:$0xff]   ;;  %v120_v34 = vld [vmem:[#allocation2 + $0x28] sm:$0xff] }
  0x78   :  { %4851 = vmatpush2.bf16.msra.mxu1 %v8147_v35  ;;  %4811 = vmatprep.subr.bf16.mxu0 %v8148_v36  ;;  %v8198_v12 = vld [vmem:[#allocation5 + $0x4c4] ss:$16 sps:$4 sm:$0xff]   ;;  %v8196_v14 = vld [vmem:[#allocation5 + $0x4c0] ss:$16 sps:$4 sm:$0xff]  }
  0x79   :  { %4852 = vmatprep.subr.bf16.mxu1 %v8150_v37  ;;  %v8201_v13 = vld [vmem:[#allocation5 + $0x6c4] ss:$16 sps:$4 sm:$0xff]   ;;  %v8199_v15 = vld [vmem:[#allocation5 + $0x6c0] ss:$16 sps:$4 sm:$0xff]   ;;  %v9726_v37 = vpack.c.bf16 %v120_v34, %v120_v34 }
  0x7a   :  { %v8204_v16 = vld [vmem:[#allocation5 + $0x4a4] ss:$16 sps:$4 sm:$0xff]   ;;  %v8202_v18 = vld [vmem:[#allocation5 + $0x4a0] ss:$16 sps:$4 sm:$0xff]  }
  0x7b   :  { %4812 = vmatpush2.bf16.msra.mxu0 %v8152_v38  ;;  %v8207_v17 = vld [vmem:[#allocation5 + $0x6a4] ss:$16 sps:$4 sm:$0xff]   ;;  %v8205_v19 = vld [vmem:[#allocation5 + $0x6a0] ss:$16 sps:$4 sm:$0xff]   ;;  %v122_v38 = vld [vmem:[#allocation2 + $0x38] sm:$0xff] }
  0x7c   :  { %4853 = vmatpush2.bf16.msra.mxu1 %v8153_v39  ;;  %4813 = vmatprep.subr.bf16.mxu0 %v8154_v40  ;;  %v8210_v20 = vld [vmem:[#allocation5 + $0x484] ss:$16 sps:$4 sm:$0xff]   ;;  %v8208_v22 = vld [vmem:[#allocation5 + $0x480] ss:$16 sps:$4 sm:$0xff]   ;;  %v9728_v40 = vpack.c.bf16 %v122_v38, %v122_v38 }
  0x7d   :  { %4854 = vmatprep.subr.bf16.mxu1 %v8156_v41  ;;  %v8213_v21 = vld [vmem:[#allocation5 + $0x684] ss:$16 sps:$4 sm:$0xff]   ;;  %v8211_v23 = vld [vmem:[#allocation5 + $0x680] ss:$16 sps:$4 sm:$0xff]  }
  0x7e   :  { %v8216_v24 = vld [vmem:[#allocation5 + $0x464] ss:$16 sps:$4 sm:$0xff]   ;;  %v8214_v26 = vld [vmem:[#allocation5 + $0x460] ss:$16 sps:$4 sm:$0xff]  }
  0x7f   :  { %4814 = vmatpush2.bf16.msra.mxu0 %v8158_v42  ;;  %v8219_v25 = vld [vmem:[#allocation5 + $0x664] ss:$16 sps:$4 sm:$0xff]   ;;  %v8217_v27 = vld [vmem:[#allocation5 + $0x660] ss:$16 sps:$4 sm:$0xff]  }
  0x80   :  { %4855 = vmatpush2.bf16.msra.mxu1 %v8159_v43  ;;  %4815 = vmatprep.subr.bf16.mxu0 %v8160_v44  ;;  %v8222_v28 = vld [vmem:[#allocation5 + $0x444] ss:$16 sps:$4 sm:$0xff]   ;;  %v8220_v30 = vld [vmem:[#allocation5 + $0x440] ss:$16 sps:$4 sm:$0xff]  }
  0x81   :  { %4856 = vmatprep.subr.bf16.mxu1 %v8162_v45  ;;  %v8225_v29 = vld [vmem:[#allocation5 + $0x644] ss:$16 sps:$4 sm:$0xff]   ;;  %v8223_v31 = vld [vmem:[#allocation5 + $0x640] ss:$16 sps:$4 sm:$0xff]  }
  0x82   :  { %v8228_v32 = vld [vmem:[#allocation5 + $0x424] ss:$16 sps:$4 sm:$0xff]   ;;  %v8226_v35 = vld [vmem:[#allocation5 + $0x420] ss:$16 sps:$4 sm:$0xff]  }
  0x83   :  { %4816 = vmatpush2.bf16.msra.mxu0 %v8164_v47  ;;  %v8231_v33 = vld [vmem:[#allocation5 + $0x624] ss:$16 sps:$4 sm:$0xff]   ;;  %v8229_v36 = vld [vmem:[#allocation5 + $0x620] ss:$16 sps:$4 sm:$0xff]  }
  0x84   :  { %4857 = vmatpush2.bf16.msra.mxu1 %v8165_v48  ;;  %4817 = vmatprep.subr.bf16.mxu0 %v8166_v51  ;;  %v8234_v39 = vld [vmem:[#allocation5 + $0x404] ss:$16 sps:$4 sm:$0xff]   ;;  %v8232_v42 = vld [vmem:[#allocation5 + $0x400] ss:$16 sps:$4 sm:$0xff]  }
  0x85   :  { %4858 = vmatprep.subr.bf16.mxu1 %v8168_v53  ;;  %v8237_v41 = vld [vmem:[#allocation5 + $0x604] ss:$16 sps:$4 sm:$0xff]   ;;  %v8235_v43 = vld [vmem:[#allocation5 + $0x600] ss:$16 sps:$4 sm:$0xff]  }
  0x86   :  { %v8240_v44 = vld [vmem:[#allocation5 + $0x5e4] ss:$16 sps:$4 sm:$0xff]   ;;  %v8238_v46 = vld [vmem:[#allocation5 + $0x5e0] ss:$16 sps:$4 sm:$0xff]  }
  0x87   :  { %4818 = vmatpush2.bf16.msra.mxu0 %v8170_v54  ;;  %v8243_v45 = vld [vmem:[#allocation5 + $0x7e4] ss:$16 sps:$4 sm:$0xff]   ;;  %v8241_v47 = vld [vmem:[#allocation5 + $0x7e0] ss:$16 sps:$4 sm:$0xff]  }
  0x88   :  { %4859 = vmatpush2.bf16.msra.mxu1 %v8171_v55  ;;  %4819 = vmatprep.subr.bf16.mxu0 %v8172_v56  ;;  %v8246_v48 = vld [vmem:[#allocation5 + $0x5c4] ss:$16 sps:$4 sm:$0xff]   ;;  %v8244_v51 = vld [vmem:[#allocation5 + $0x5c0] ss:$16 sps:$4 sm:$0xff]  }
  0x89   :  { %4860 = vmatprep.subr.bf16.mxu1 %v8174_v57  ;;  %v8249_v50 = vld [vmem:[#allocation5 + $0x7c4] ss:$16 sps:$4 sm:$0xff]   ;;  %v8247_v53 = vld [vmem:[#allocation5 + $0x7c0] ss:$16 sps:$4 sm:$0xff]  }
  0x8a   :  { %v8252_v54 = vld [vmem:[#allocation5 + $0x5a4] ss:$16 sps:$4 sm:$0xff]   ;;  %v8250_v56 = vld [vmem:[#allocation5 + $0x5a0] ss:$16 sps:$4 sm:$0xff]  }
  0x8b   :  { %4820 = vmatpush2.bf16.msra.mxu0 %v8176_v58  ;;  %v8255_v55 = vld [vmem:[#allocation5 + $0x7a4] ss:$16 sps:$4 sm:$0xff]   ;;  %v8253_v57 = vld [vmem:[#allocation5 + $0x7a0] ss:$16 sps:$4 sm:$0xff]  }
  0x8c   :  { %4861 = vmatpush2.bf16.msra.mxu1 %v8177_v59  ;;  %4821 = vmatprep.subr.bf16.mxu0 %v8178_v60  ;;  %v8258_v58 = vld [vmem:[#allocation5 + $0x584] ss:$16 sps:$4 sm:$0xff]   ;;  %v8256_v60 = vld [vmem:[#allocation5 + $0x580] ss:$16 sps:$4 sm:$0xff]  }
  0x8d   :  { %4862 = vmatprep.subr.bf16.mxu1 %v8180_v61  ;;  %v8261_v59 = vld [vmem:[#allocation5 + $0x784] ss:$16 sps:$4 sm:$0xff]   ;;  %v8259_v61 = vld [vmem:[#allocation5 + $0x780] ss:$16 sps:$4 sm:$0xff]  }
  0x8e   :  { %v8268_v4 = vld [vmem:[#allocation5 + $0x540] ss:$16 sps:$4 sm:$0xff]   ;;  %v8309_v38 = vld [vmem:[#allocation5 + $0xa84] ss:$16 sps:$4 sm:$0xff]  }
  0x8f   :  { %4822 = vmatpush2.bf16.msra.mxu0 %v8182_v62  ;;  %v8264_v62 = vld [vmem:[#allocation5 + $0x564] ss:$16 sps:$4 sm:$0xff]   ;;  %v8271_v5 = vld [vmem:[#allocation5 + $0x740] ss:$16 sps:$4 sm:$0xff]  }
  0x90   :  { %4863 = vmatpush2.bf16.msra.mxu1 %v8183_v63  ;;  %4823 = vmatprep.subr.bf16.mxu0 %v8184_v0  ;;  %v8267_v63 = vld [vmem:[#allocation5 + $0x764] ss:$16 sps:$4 sm:$0xff]   ;;  %v8262_v0 = vld [vmem:[#allocation5 + $0x560] ss:$16 sps:$4 sm:$0xff]  }
  0x91   :  { %4864 = vmatprep.subr.bf16.mxu1 %v8186_v1  ;;  %v8265_v1 = vld [vmem:[#allocation5 + $0x760] ss:$16 sps:$4 sm:$0xff]  }
  0x92   :  { %v8298_v34 = vld [vmem:[#allocation5 + $0x8a0] ss:$16 sps:$4 sm:$0xff]  }
  0x93   :  { %4824 = vmatpush2.bf16.msra.mxu0 %v8188_v2  ;;  %v8270_v2 = vld [vmem:[#allocation5 + $0x544] ss:$16 sps:$4 sm:$0xff]  }
  0x94   :  { %4865 = vmatpush2.bf16.msra.mxu1 %v8189_v3  ;;  %4875 = vmatprep.subr.bf16.mxu0 %v8192_v6  ;;  %v8273_v3 = vld [vmem:[#allocation5 + $0x744] ss:$16 sps:$4 sm:$0xff]  }
  0x95   :  { %4916 = vmatprep.subr.bf16.mxu1 %v8195_v7  ;;  %v8276_v6 = vld [vmem:[#allocation5 + $0x524] ss:$16 sps:$4 sm:$0xff]  }
  0x96   :  { %4826 = vmatmul.mubr.bf16.vlgmr.msra.gmra.mxu0 %v9720_v8  ;;  %v8279_v7 = vld [vmem:[#allocation5 + $0x724] ss:$16 sps:$4 sm:$0xff]  }
  0x97   :  { %4867 = vmatmul.mubr.bf16.vlgmr.msra.gmra.mxu1 %v9722_v9  ;;  %4876 = vmatpush1.bf16.msra.mxu0 %v8190_v10  ;;  %v8274_v10 = vld [vmem:[#allocation5 + $0x520] ss:$16 sps:$4 sm:$0xff]  }
  0x98   :  { %4917 = vmatpush1.bf16.msra.mxu1 %v8193_v11  ;;  %4877 = vmatprep.subr.bf16.mxu0 %v8198_v12  ;;  %v8277_v11 = vld [vmem:[#allocation5 + $0x720] ss:$16 sps:$4 sm:$0xff]   ;;  %v8282_v12 = vld [vmem:[#allocation5 + $0x504] ss:$16 sps:$4 sm:$0xff]  }
  0x99   :  { %4918 = vmatprep.subr.bf16.mxu1 %v8201_v13  ;;  %4907 = vmatprep.mubr.bf16.mxu0 %v9726_v37  ;;  %v8285_v13 = vld [vmem:[#allocation5 + $0x704] ss:$16 sps:$4 sm:$0xff]  }
  0x9a   :  { %4948 = vmatprep.mubr.bf16.mxu1 %v9728_v40 }
  0x9b   :  { %4878 = vmatpush1.bf16.msra.mxu0 %v8196_v14  ;;  %v8280_v14 = vld [vmem:[#allocation5 + $0x500] ss:$16 sps:$4 sm:$0xff]  }
  0x9c   :  { %4919 = vmatpush1.bf16.msra.mxu1 %v8199_v15  ;;  %4879 = vmatprep.subr.bf16.mxu0 %v8204_v16  ;;  %v8283_v15 = vld [vmem:[#allocation5 + $0x700] ss:$16 sps:$4 sm:$0xff]  }
  0x9d   :  { %4920 = vmatprep.subr.bf16.mxu1 %v8207_v17  ;;  %v119_v16 = vld [vmem:[#allocation2 + $0x20] sm:$0xff]  ;;  %v121_v17 = vld [vmem:[#allocation2 + $0x30] sm:$0xff] }
  0x9f   :  { %4880 = vmatpush1.bf16.msra.mxu0 %v8202_v18  ;;  %v8288_v18 = vld [vmem:[#allocation5 + $0x8e4] ss:$16 sps:$4 sm:$0xff]  }
  0xa0   :  { %4921 = vmatpush1.bf16.msra.mxu1 %v8205_v19  ;;  %4881 = vmatprep.subr.bf16.mxu0 %v8210_v20  ;;  %v8291_v19 = vld [vmem:[#allocation5 + $0xae4] ss:$16 sps:$4 sm:$0xff]   ;;  %v9732_v20 = vpack.c.bf16 %v119_v16, %v119_v16  ;;  %v8358_v16 = vld [vmem:[#allocation5 + $0x960] ss:$16 sps:$4 sm:$0xff]  }
  0xa1   :  { %4922 = vmatprep.subr.bf16.mxu1 %v8213_v21  ;;  %v9734_v21 = vpack.c.bf16 %v121_v17, %v121_v17  ;;  %v8361_v17 = vld [vmem:[#allocation5 + $0xb60] ss:$16 sps:$4 sm:$0xff]  }
  0xa3   :  { %4882 = vmatpush1.bf16.msra.mxu0 %v8208_v22  ;;  %v8286_v22 = vld [vmem:[#allocation5 + $0x8e0] ss:$16 sps:$4 sm:$0xff]  }
  0xa4   :  { %4923 = vmatpush1.bf16.msra.mxu1 %v8211_v23  ;;  %4883 = vmatprep.subr.bf16.mxu0 %v8216_v24  ;;  %v8289_v23 = vld [vmem:[#allocation5 + $0xae0] ss:$16 sps:$4 sm:$0xff]   ;;  %v8294_v24 = vld [vmem:[#allocation5 + $0x8c4] ss:$16 sps:$4 sm:$0xff]  }
  0xa5   :  { %4924 = vmatprep.subr.bf16.mxu1 %v8219_v25  ;;  %v8297_v25 = vld [vmem:[#allocation5 + $0xac4] ss:$16 sps:$4 sm:$0xff]  }
  0xa7   :  { %4884 = vmatpush1.bf16.msra.mxu0 %v8214_v26  ;;  %v124_v26 = vld [vmem:[#allocation2 + $0x48] sm:$0xff] }
  0xa8   :  { %4925 = vmatpush1.bf16.msra.mxu1 %v8217_v27  ;;  %4885 = vmatprep.subr.bf16.mxu0 %v8222_v28  ;;  %v8292_v27 = vld [vmem:[#allocation5 + $0x8c0] ss:$16 sps:$4 sm:$0xff]  }
  0xa9   :  { %4926 = vmatprep.subr.bf16.mxu1 %v8225_v29  ;;  %v8295_v28 = vld [vmem:[#allocation5 + $0xac0] ss:$16 sps:$4 sm:$0xff]   ;;  %v9738_v29 = vpack.c.bf16 %v124_v26, %v124_v26 }
  0xaa   :  { %v8370_v26 = vld [vmem:[#allocation5 + $0x920] ss:$16 sps:$4 sm:$0xff]  }
  0xab   :  { %4886 = vmatpush1.bf16.msra.mxu0 %v8220_v30  ;;  %v126_v30 = vld [vmem:[#allocation2 + $0x58] sm:$0xff] }
  0xac   :  { %4927 = vmatpush1.bf16.msra.mxu1 %v8223_v31  ;;  %4887 = vmatprep.subr.bf16.mxu0 %v8228_v32  ;;  %v8300_v31 = vld [vmem:[#allocation5 + $0x8a4] ss:$16 sps:$4 sm:$0xff]   ;;  %v9740_v32 = vpack.c.bf16 %v126_v30, %v126_v30 }
  0xad   :  { %4928 = vmatprep.subr.bf16.mxu1 %v8231_v33  ;;  %v8303_v33 = vld [vmem:[#allocation5 + $0xaa4] ss:$16 sps:$4 sm:$0xff]  }
  0xae   :  { %v8381_v30 = vld [vmem:[#allocation5 + $0xb04] ss:$16 sps:$4 sm:$0xff]  }
  0xaf   :  { %4888 = vmatpush1.bf16.msra.mxu0 %v8226_v35  ;;  %v8301_v35 = vld [vmem:[#allocation5 + $0xaa0] ss:$16 sps:$4 sm:$0xff]  }
  0xb0   :  { %4929 = vmatpush1.bf16.msra.mxu1 %v8229_v36  ;;  %4889 = vmatprep.subr.bf16.mxu0 %v8234_v39  ;;  %v8306_v36 = vld [vmem:[#allocation5 + $0x884] ss:$16 sps:$4 sm:$0xff]   ;;  %v8304_v39 = vld [vmem:[#allocation5 + $0x880] ss:$16 sps:$4 sm:$0xff]  }
  0xb1   :  { %4930 = vmatprep.subr.bf16.mxu1 %v8237_v41  ;;  %v8307_v41 = vld [vmem:[#allocation5 + $0xa80] ss:$16 sps:$4 sm:$0xff]  }
  0xb3   :  { %4890 = vmatpush1.bf16.msra.mxu0 %v8232_v42  ;;  %v8312_v42 = vld [vmem:[#allocation5 + $0x864] ss:$16 sps:$4 sm:$0xff]  }
  0xb4   :  { %4931 = vmatpush1.bf16.msra.mxu1 %v8235_v43  ;;  %4891 = vmatprep.subr.bf16.mxu0 %v8240_v44  ;;  %v8315_v43 = vld [vmem:[#allocation5 + $0xa64] ss:$16 sps:$4 sm:$0xff]   ;;  %v8310_v44 = vld [vmem:[#allocation5 + $0x860] ss:$16 sps:$4 sm:$0xff]  }
  0xb5   :  { %4932 = vmatprep.subr.bf16.mxu1 %v8243_v45  ;;  %v8313_v45 = vld [vmem:[#allocation5 + $0xa60] ss:$16 sps:$4 sm:$0xff]  }
  0xb7   :  { %4892 = vmatpush2.bf16.msra.mxu0 %v8238_v46  ;;  %v8318_v46 = vld [vmem:[#allocation5 + $0x844] ss:$16 sps:$4 sm:$0xff]  }
  0xb8   :  { %4933 = vmatpush2.bf16.msra.mxu1 %v8241_v47  ;;  %4893 = vmatprep.subr.bf16.mxu0 %v8246_v48  ;;  %v8321_v47 = vld [vmem:[#allocation5 + $0xa44] ss:$16 sps:$4 sm:$0xff]   ;;  %v8316_v48 = vld [vmem:[#allocation5 + $0x840] ss:$16 sps:$4 sm:$0xff]  }
  0xb9   :  { %4934 = vmatprep.subr.bf16.mxu1 %v8249_v50  ;;  %v8319_v50 = vld [vmem:[#allocation5 + $0xa40] ss:$16 sps:$4 sm:$0xff]  }
  0xbb   :  { %4894 = vmatpush2.bf16.msra.mxu0 %v8244_v51  ;;  %v8324_v51 = vld [vmem:[#allocation5 + $0x824] ss:$16 sps:$4 sm:$0xff]  }
  0xbc   :  { %4935 = vmatpush2.bf16.msra.mxu1 %v8247_v53  ;;  %4895 = vmatprep.subr.bf16.mxu0 %v8252_v54  ;;  %v8327_v53 = vld [vmem:[#allocation5 + $0xa24] ss:$16 sps:$4 sm:$0xff]   ;;  %v8322_v54 = vld [vmem:[#allocation5 + $0x820] ss:$16 sps:$4 sm:$0xff]  }
  0xbd   :  { %4936 = vmatprep.subr.bf16.mxu1 %v8255_v55  ;;  %v8325_v55 = vld [vmem:[#allocation5 + $0xa20] ss:$16 sps:$4 sm:$0xff]  }
  0xbf   :  { %4896 = vmatpush2.bf16.msra.mxu0 %v8250_v56  ;;  %v8330_v56 = vld [vmem:[#allocation5 + $0x804] ss:$16 sps:$4 sm:$0xff]  }
  0xc0   :  { %4937 = vmatpush2.bf16.msra.mxu1 %v8253_v57  ;;  %4897 = vmatprep.subr.bf16.mxu0 %v8258_v58  ;;  %v8333_v57 = vld [vmem:[#allocation5 + $0xa04] ss:$16 sps:$4 sm:$0xff]   ;;  %v8328_v58 = vld [vmem:[#allocation5 + $0x800] ss:$16 sps:$4 sm:$0xff]  }
  0xc1   :  { %4938 = vmatprep.subr.bf16.mxu1 %v8261_v59  ;;  %v8331_v59 = vld [vmem:[#allocation5 + $0xa00] ss:$16 sps:$4 sm:$0xff]  }
  0xc3   :  { %4898 = vmatpush2.bf16.msra.mxu0 %v8256_v60  ;;  %v8336_v60 = vld [vmem:[#allocation5 + $0x9e4] ss:$16 sps:$4 sm:$0xff]  }
  0xc4   :  { %4939 = vmatpush2.bf16.msra.mxu1 %v8259_v61  ;;  %4899 = vmatprep.subr.bf16.mxu0 %v8264_v62  ;;  %v8339_v61 = vld [vmem:[#allocation5 + $0xbe4] ss:$16 sps:$4 sm:$0xff]   ;;  %v8334_v62 = vld [vmem:[#allocation5 + $0x9e0] ss:$16 sps:$4 sm:$0xff]  }
  0xc5   :  { %4940 = vmatprep.subr.bf16.mxu1 %v8267_v63  ;;  %v8337_v63 = vld [vmem:[#allocation5 + $0xbe0] ss:$16 sps:$4 sm:$0xff]  }
  0xc7   :  { %4900 = vmatpush2.bf16.msra.mxu0 %v8262_v0  ;;  %v8342_v0 = vld [vmem:[#allocation5 + $0x9c4] ss:$16 sps:$4 sm:$0xff]  }
  0xc8   :  { %4941 = vmatpush2.bf16.msra.mxu1 %v8265_v1  ;;  %4901 = vmatprep.subr.bf16.mxu0 %v8270_v2  ;;  %v8345_v1 = vld [vmem:[#allocation5 + $0xbc4] ss:$16 sps:$4 sm:$0xff]   ;;  %v8340_v2 = vld [vmem:[#allocation5 + $0x9c0] ss:$16 sps:$4 sm:$0xff]  }
  0xc9   :  { %4942 = vmatprep.subr.bf16.mxu1 %v8273_v3  ;;  %v8343_v3 = vld [vmem:[#allocation5 + $0xbc0] ss:$16 sps:$4 sm:$0xff]  }
  0xcb   :  { %4902 = vmatpush2.bf16.msra.mxu0 %v8268_v4  ;;  %v8348_v4 = vld [vmem:[#allocation5 + $0x9a4] ss:$16 sps:$4 sm:$0xff]  }
  0xcc   :  { %4943 = vmatpush2.bf16.msra.mxu1 %v8271_v5  ;;  %4903 = vmatprep.subr.bf16.mxu0 %v8276_v6  ;;  %v8351_v5 = vld [vmem:[#allocation5 + $0xba4] ss:$16 sps:$4 sm:$0xff]   ;;  %v8346_v6 = vld [vmem:[#allocation5 + $0x9a0] ss:$16 sps:$4 sm:$0xff]  }
  0xcd   :  { %4944 = vmatprep.subr.bf16.mxu1 %v8279_v7  ;;  %v8349_v7 = vld [vmem:[#allocation5 + $0xba0] ss:$16 sps:$4 sm:$0xff]  }
  0xcf   :  { %4904 = vmatpush2.bf16.msra.mxu0 %v8274_v10  ;;  %v8354_v10 = vld [vmem:[#allocation5 + $0x984] ss:$16 sps:$4 sm:$0xff]  }
  0xd0   :  { %4945 = vmatpush2.bf16.msra.mxu1 %v8277_v11  ;;  %4905 = vmatprep.subr.bf16.mxu0 %v8282_v12  ;;  %v8357_v11 = vld [vmem:[#allocation5 + $0xb84] ss:$16 sps:$4 sm:$0xff]   ;;  %v8352_v12 = vld [vmem:[#allocation5 + $0x980] ss:$16 sps:$4 sm:$0xff]  }
  0xd1   :  { %4946 = vmatprep.subr.bf16.mxu1 %v8285_v13  ;;  %v8355_v13 = vld [vmem:[#allocation5 + $0xb80] ss:$16 sps:$4 sm:$0xff]  }
  0xd3   :  { %4906 = vmatpush2.bf16.msra.mxu0 %v8280_v14  ;;  %v8360_v14 = vld [vmem:[#allocation5 + $0x964] ss:$16 sps:$4 sm:$0xff]  }
  0xd4   :  { %4947 = vmatpush2.bf16.msra.mxu1 %v8283_v15  ;;  %4957 = vmatprep.subr.bf16.mxu0 %v8288_v18  ;;  %v8363_v15 = vld [vmem:[#allocation5 + $0xb64] ss:$16 sps:$4 sm:$0xff]  }
  0xd5   :  { %4998 = vmatprep.subr.bf16.mxu1 %v8291_v19  ;;  %v8366_v18 = vld [vmem:[#allocation5 + $0x944] ss:$16 sps:$4 sm:$0xff]  }
  0xd6   :  { %4908 = vmatmul.mubr.bf16.vlgmr.msra.gmra.mxu0 %v9732_v20  ;;  %v8369_v19 = vld [vmem:[#allocation5 + $0xb44] ss:$16 sps:$4 sm:$0xff]  }
  0xd7   :  { %4949 = vmatmul.mubr.bf16.vlgmr.msra.gmra.mxu1 %v9734_v21  ;;  %4958 = vmatpush1.bf16.msra.mxu0 %v8286_v22  ;;  %v8364_v22 = vld [vmem:[#allocation5 + $0x940] ss:$16 sps:$4 sm:$0xff]  }
  0xd8   :  { %4999 = vmatpush1.bf16.msra.mxu1 %v8289_v23  ;;  %4959 = vmatprep.subr.bf16.mxu0 %v8294_v24  ;;  %v8367_v23 = vld [vmem:[#allocation5 + $0xb40] ss:$16 sps:$4 sm:$0xff]   ;;  %v8372_v24 = vld [vmem:[#allocation5 + $0x924] ss:$16 sps:$4 sm:$0xff]  }
  0xd9   :  { %5000 = vmatprep.subr.bf16.mxu1 %v8297_v25  ;;  %4989 = vmatprep.mubr.bf16.mxu0 %v9738_v29  ;;  %v8375_v25 = vld [vmem:[#allocation5 + $0xb24] ss:$16 sps:$4 sm:$0xff]  }
  0xda   :  { %5030 = vmatprep.mubr.bf16.mxu1 %v9740_v32 }
  0xdb   :  { %4960 = vmatpush1.bf16.msra.mxu0 %v8292_v27  ;;  %v8373_v27 = vld [vmem:[#allocation5 + $0xb20] ss:$16 sps:$4 sm:$0xff]  }
  0xdc   :  { %5001 = vmatpush1.bf16.msra.mxu1 %v8295_v28  ;;  %4961 = vmatprep.subr.bf16.mxu0 %v8300_v31  ;;  %v8378_v28 = vld [vmem:[#allocation5 + $0x904] ss:$16 sps:$4 sm:$0xff]   ;;  %v8376_v31 = vld [vmem:[#allocation5 + $0x900] ss:$16 sps:$4 sm:$0xff]  }
  0xdd   :  { %5002 = vmatprep.subr.bf16.mxu1 %v8303_v33  ;;  %v8379_v33 = vld [vmem:[#allocation5 + $0xb00] ss:$16 sps:$4 sm:$0xff]  }
  0xdf   :  { %4962 = vmatpush1.bf16.msra.mxu0 %v8298_v34  ;;  %v123_v34 = vld [vmem:[#allocation2 + $0x40] sm:$0xff] }
  0xe0   :  { %5003 = vmatpush1.bf16.msra.mxu1 %v8301_v35  ;;  %4963 = vmatprep.subr.bf16.mxu0 %v8306_v36  ;;  %v125_v35 = vld [vmem:[#allocation2 + $0x50] sm:$0xff] }
  0xe1   :  { %5004 = vmatprep.subr.bf16.mxu1 %v8309_v38  ;;  %v8384_v36 = vld [vmem:[#allocation5 + $0xce4] ss:$16 sps:$4 sm:$0xff]  }
  0xe2   :  { %v8387_v38 = vld [vmem:[#allocation5 + $0xee4] ss:$16 sps:$4 sm:$0xff]  }
  0xe3   :  { %4964 = vmatpush1.bf16.msra.mxu0 %v8304_v39  ;;  %v8382_v39 = vld [vmem:[#allocation5 + $0xce0] ss:$16 sps:$4 sm:$0xff]  }
  0xe4   :  { %5005 = vmatpush1.bf16.msra.mxu1 %v8307_v41  ;;  %4965 = vmatprep.subr.bf16.mxu0 %v8312_v42  ;;  %v128_v41 = vld [vmem:[#allocation2 + $0x68] sm:$0xff]  ;;  %v9744_v42 = vpack.c.bf16 %v123_v34, %v123_v34  ;;  %v8448_v34 = vld [vmem:[#allocation5 + $0xd80] ss:$16 sps:$4 sm:$0xff]  }
  0xe5   :  { %5006 = vmatprep.subr.bf16.mxu1 %v8315_v43  ;;  %v9746_v43 = vpack.c.bf16 %v125_v35, %v125_v35  ;;  %v8451_v35 = vld [vmem:[#allocation5 + $0xf80] ss:$16 sps:$4 sm:$0xff]  }
  0xe7   :  { %4966 = vmatpush1.bf16.msra.mxu0 %v8310_v44  ;;  %v130_v44 = vld [vmem:[#allocation2 + $0x78] sm:$0xff] }
  0xe8   :  { %5007 = vmatpush1.bf16.msra.mxu1 %v8313_v45  ;;  %4967 = vmatprep.subr.bf16.mxu0 %v8318_v46  ;;  %v8385_v45 = vld [vmem:[#allocation5 + $0xee0] ss:$16 sps:$4 sm:$0xff]   ;;  %v8390_v46 = vld [vmem:[#allocation5 + $0xcc4] ss:$16 sps:$4 sm:$0xff]  }
  0xe9   :  { %5008 = vmatprep.subr.bf16.mxu1 %v8321_v47  ;;  %v8393_v47 = vld [vmem:[#allocation5 + $0xec4] ss:$16 sps:$4 sm:$0xff]  }
  0xeb   :  { %4968 = vmatpush1.bf16.msra.mxu0 %v8316_v48  ;;  %v9748_v48 = vpack.c.bf16 %v128_v41, %v128_v41  ;;  %v8457_v41 = vld [vmem:[#allocation5 + $0xf60] ss:$16 sps:$4 sm:$0xff]  }
  0xec   :  { %5009 = vmatpush1.bf16.msra.mxu1 %v8319_v50  ;;  %4969 = vmatprep.subr.bf16.mxu0 %v8324_v51  ;;  %v9750_v50 = vpack.c.bf16 %v130_v44, %v130_v44  ;;  %v8388_v51 = vld [vmem:[#allocation5 + $0xcc0] ss:$16 sps:$4 sm:$0xff]   ;;  %v8462_v44 = vld [vmem:[#allocation5 + $0xd44] ss:$16 sps:$4 sm:$0xff]  }
  0xed   :  { %5010 = vmatprep.subr.bf16.mxu1 %v8327_v53  ;;  %v8391_v53 = vld [vmem:[#allocation5 + $0xec0] ss:$16 sps:$4 sm:$0xff]  }
  0xef   :  { %4970 = vmatpush1.bf16.msra.mxu0 %v8322_v54  ;;  %v8396_v54 = vld [vmem:[#allocation5 + $0xca4] ss:$16 sps:$4 sm:$0xff]  }
  0xf0   :  { %5011 = vmatpush1.bf16.msra.mxu1 %v8325_v55  ;;  %4971 = vmatprep.subr.bf16.mxu0 %v8330_v56  ;;  %v8399_v55 = vld [vmem:[#allocation5 + $0xea4] ss:$16 sps:$4 sm:$0xff]   ;;  %v8394_v56 = vld [vmem:[#allocation5 + $0xca0] ss:$16 sps:$4 sm:$0xff]  }
  0xf1   :  { %5012 = vmatprep.subr.bf16.mxu1 %v8333_v57  ;;  %v8397_v57 = vld [vmem:[#allocation5 + $0xea0] ss:$16 sps:$4 sm:$0xff]  }
  0xf3   :  { %4972 = vmatpush1.bf16.msra.mxu0 %v8328_v58  ;;  %v8402_v58 = vld [vmem:[#allocation5 + $0xc84] ss:$16 sps:$4 sm:$0xff]  }
  0xf4   :  { %5013 = vmatpush1.bf16.msra.mxu1 %v8331_v59  ;;  %4973 = vmatprep.subr.bf16.mxu0 %v8336_v60  ;;  %v8405_v59 = vld [vmem:[#allocation5 + $0xe84] ss:$16 sps:$4 sm:$0xff]   ;;  %v8400_v60 = vld [vmem:[#allocation5 + $0xc80] ss:$16 sps:$4 sm:$0xff]  }
  0xf5   :  { %5014 = vmatprep.subr.bf16.mxu1 %v8339_v61  ;;  %v8403_v61 = vld [vmem:[#allocation5 + $0xe80] ss:$16 sps:$4 sm:$0xff]  }
  0xf7   :  { %4974 = vmatpush2.bf16.msra.mxu0 %v8334_v62  ;;  %v8408_v62 = vld [vmem:[#allocation5 + $0xc64] ss:$16 sps:$4 sm:$0xff]  }
  0xf8   :  { %5015 = vmatpush2.bf16.msra.mxu1 %v8337_v63  ;;  %4975 = vmatprep.subr.bf16.mxu0 %v8342_v0  ;;  %v8411_v63 = vld [vmem:[#allocation5 + $0xe64] ss:$16 sps:$4 sm:$0xff]   ;;  %v8406_v0 = vld [vmem:[#allocation5 + $0xc60] ss:$16 sps:$4 sm:$0xff]  }
  0xf9   :  { %5016 = vmatprep.subr.bf16.mxu1 %v8345_v1  ;;  %v8409_v1 = vld [vmem:[#allocation5 + $0xe60] ss:$16 sps:$4 sm:$0xff]  }
  0xfb   :  { %4976 = vmatpush2.bf16.msra.mxu0 %v8340_v2  ;;  %v8414_v2 = vld [vmem:[#allocation5 + $0xc44] ss:$16 sps:$4 sm:$0xff]  }
  0xfc   :  { %5017 = vmatpush2.bf16.msra.mxu1 %v8343_v3  ;;  %4977 = vmatprep.subr.bf16.mxu0 %v8348_v4  ;;  %v8417_v3 = vld [vmem:[#allocation5 + $0xe44] ss:$16 sps:$4 sm:$0xff]   ;;  %v8412_v4 = vld [vmem:[#allocation5 + $0xc40] ss:$16 sps:$4 sm:$0xff]  }
  0xfd   :  { %5018 = vmatprep.subr.bf16.mxu1 %v8351_v5  ;;  %v8415_v5 = vld [vmem:[#allocation5 + $0xe40] ss:$16 sps:$4 sm:$0xff]  }
  0xff   :  { %4978 = vmatpush2.bf16.msra.mxu0 %v8346_v6  ;;  %v8420_v6 = vld [vmem:[#allocation5 + $0xc24] ss:$16 sps:$4 sm:$0xff]  }
 0x100   :  { %5019 = vmatpush2.bf16.msra.mxu1 %v8349_v7  ;;  %4979 = vmatprep.subr.bf16.mxu0 %v8354_v10  ;;  %v8423_v7 = vld [vmem:[#allocation5 + $0xe24] ss:$16 sps:$4 sm:$0xff]   ;;  %v8418_v10 = vld [vmem:[#allocation5 + $0xc20] ss:$16 sps:$4 sm:$0xff]  }
 0x101   :  { %5020 = vmatprep.subr.bf16.mxu1 %v8357_v11  ;;  %v8421_v11 = vld [vmem:[#allocation5 + $0xe20] ss:$16 sps:$4 sm:$0xff]  }
 0x103   :  { %4980 = vmatpush2.bf16.msra.mxu0 %v8352_v12  ;;  %v8426_v12 = vld [vmem:[#allocation5 + $0xc04] ss:$16 sps:$4 sm:$0xff]  }
 0x104   :  { %5021 = vmatpush2.bf16.msra.mxu1 %v8355_v13  ;;  %4981 = vmatprep.subr.bf16.mxu0 %v8360_v14  ;;  %v8429_v13 = vld [vmem:[#allocation5 + $0xe04] ss:$16 sps:$4 sm:$0xff]   ;;  %v8424_v14 = vld [vmem:[#allocation5 + $0xc00] ss:$16 sps:$4 sm:$0xff]  }
 0x105   :  { %5022 = vmatprep.subr.bf16.mxu1 %v8363_v15  ;;  %v8427_v15 = vld [vmem:[#allocation5 + $0xe00] ss:$16 sps:$4 sm:$0xff]  }
 0x107   :  { %4982 = vmatpush2.bf16.msra.mxu0 %v8358_v16  ;;  %v8432_v16 = vld [vmem:[#allocation5 + $0xde4] ss:$16 sps:$4 sm:$0xff]  }
 0x108   :  { %5023 = vmatpush2.bf16.msra.mxu1 %v8361_v17  ;;  %4983 = vmatprep.subr.bf16.mxu0 %v8366_v18  ;;  %v8435_v17 = vld [vmem:[#allocation5 + $0xfe4] ss:$16 sps:$4 sm:$0xff]   ;;  %v8430_v18 = vld [vmem:[#allocation5 + $0xde0] ss:$16 sps:$4 sm:$0xff]  }
 0x109   :  { %5024 = vmatprep.subr.bf16.mxu1 %v8369_v19  ;;  %v8433_v19 = vld [vmem:[#allocation5 + $0xfe0] ss:$16 sps:$4 sm:$0xff]  }
 0x10b   :  { %4984 = vmatpush2.bf16.msra.mxu0 %v8364_v22  ;;  %v8438_v22 = vld [vmem:[#allocation5 + $0xdc4] ss:$16 sps:$4 sm:$0xff]  }
 0x10c   :  { %5025 = vmatpush2.bf16.msra.mxu1 %v8367_v23  ;;  %4985 = vmatprep.subr.bf16.mxu0 %v8372_v24  ;;  %v8441_v23 = vld [vmem:[#allocation5 + $0xfc4] ss:$16 sps:$4 sm:$0xff]   ;;  %v8436_v24 = vld [vmem:[#allocation5 + $0xdc0] ss:$16 sps:$4 sm:$0xff]  }
 0x10d   :  { %5026 = vmatprep.subr.bf16.mxu1 %v8375_v25  ;;  %v8439_v25 = vld [vmem:[#allocation5 + $0xfc0] ss:$16 sps:$4 sm:$0xff]  }
 0x10f   :  { %4986 = vmatpush2.bf16.msra.mxu0 %v8370_v26  ;;  %v8444_v26 = vld [vmem:[#allocation5 + $0xda4] ss:$16 sps:$4 sm:$0xff]  }
 0x110   :  { %5027 = vmatpush2.bf16.msra.mxu1 %v8373_v27  ;;  %4987 = vmatprep.subr.bf16.mxu0 %v8378_v28  ;;  %v8447_v27 = vld [vmem:[#allocation5 + $0xfa4] ss:$16 sps:$4 sm:$0xff]   ;;  %v8442_v28 = vld [vmem:[#allocation5 + $0xda0] ss:$16 sps:$4 sm:$0xff]  }
 0x111   :  { %5028 = vmatprep.subr.bf16.mxu1 %v8381_v30  ;;  %v8445_v30 = vld [vmem:[#allocation5 + $0xfa0] ss:$16 sps:$4 sm:$0xff]  }
 0x113   :  { %4988 = vmatpush2.bf16.msra.mxu0 %v8376_v31  ;;  %v8450_v31 = vld [vmem:[#allocation5 + $0xd84] ss:$16 sps:$4 sm:$0xff]  }
 0x114   :  { %5029 = vmatpush2.bf16.msra.mxu1 %v8379_v33  ;;  %5039 = vmatprep.subr.bf16.mxu0 %v8384_v36  ;;  %v8453_v33 = vld [vmem:[#allocation5 + $0xf84] ss:$16 sps:$4 sm:$0xff]  }
 0x115   :  { %5080 = vmatprep.subr.bf16.mxu1 %v8387_v38  ;;  %v8456_v36 = vld [vmem:[#allocation5 + $0xd64] ss:$16 sps:$4 sm:$0xff]  }
 0x116   :  { %4990 = vmatmul.mubr.bf16.vlgmr.msra.gmra.mxu0 %v9744_v42  ;;  %v8459_v38 = vld [vmem:[#allocation5 + $0xf64] ss:$16 sps:$4 sm:$0xff]  }
 0x117   :  { %5031 = vmatmul.mubr.bf16.vlgmr.msra.gmra.mxu1 %v9746_v43  ;;  %5040 = vmatpush1.bf16.msra.mxu0 %v8382_v39  ;;  %v8454_v39 = vld [vmem:[#allocation5 + $0xd60] ss:$16 sps:$4 sm:$0xff]  }
 0x118   :  { %5081 = vmatpush1.bf16.msra.mxu1 %v8385_v45  ;;  %5041 = vmatprep.subr.bf16.mxu0 %v8390_v46  ;;  %v8465_v45 = vld [vmem:[#allocation5 + $0xf44] ss:$16 sps:$4 sm:$0xff]   ;;  %v8460_v46 = vld [vmem:[#allocation5 + $0xd40] ss:$16 sps:$4 sm:$0xff]  }
 0x119   :  { %5082 = vmatprep.subr.bf16.mxu1 %v8393_v47  ;;  %5071 = vmatprep.mubr.bf16.mxu0 %v9748_v48  ;;  %v8463_v47 = vld [vmem:[#allocation5 + $0xf40] ss:$16 sps:$4 sm:$0xff]  }
 0x11a   :  { %5112 = vmatprep.mubr.bf16.mxu1 %v9750_v50 }
 0x11b   :  { %5042 = vmatpush1.bf16.msra.mxu0 %v8388_v51  ;;  %v933_v51 = vlaneseq }
 0x11c   :  { %5083 = vmatpush1.bf16.msra.mxu1 %v8391_v53  ;;  %5043 = vmatprep.subr.bf16.mxu0 %v8396_v54  ;;  %v8468_v53 = vld [vmem:[#allocation5 + $0xd24] ss:$16 sps:$4 sm:$0xff]  }
 0x11d   :  { %5084 = vmatprep.subr.bf16.mxu1 %v8399_v55  ;;  %v8471_v54 = vld [vmem:[#allocation5 + $0xf24] ss:$16 sps:$4 sm:$0xff]   ;;  %v8466_v55 = vld [vmem:[#allocation5 + $0xd20] ss:$16 sps:$4 sm:$0xff]  }
 0x11f   :  { %5044 = vmatpush1.bf16.msra.mxu0 %v8394_v56  ;;  %v8469_v56 = vld [vmem:[#allocation5 + $0xf20] ss:$16 sps:$4 sm:$0xff]  }
 0x120   :  { %5085 = vmatpush1.bf16.msra.mxu1 %v8397_v57  ;;  %5045 = vmatprep.subr.bf16.mxu0 %v8402_v58  ;;  %v9756_v57 = vshrl.u32 %v933_v51, 7  ;;  %v8474_v58 = vld [vmem:[#allocation5 + $0xd04] ss:$16 sps:$4 sm:$0xff]   ;;  %v8499_v51 = vld [vmem:[#allocation5 + $0x1280] ss:$16 sps:$4 sm:$0xff]  }
 0x121   :  { %5086 = vmatprep.subr.bf16.mxu1 %v8405_v59  ;;  %v8477_v59 = vld [vmem:[#allocation5 + $0xf04] ss:$16 sps:$4 sm:$0xff]  }
 0x123   :  { %5046 = vmatpush1.bf16.msra.mxu0 %v8400_v60  ;;  %v8472_v60 = vld [vmem:[#allocation5 + $0xd00] ss:$16 sps:$4 sm:$0xff]  }
 0x124   :  { %5087 = vmatpush1.bf16.msra.mxu1 %v8403_v61  ;;  %5047 = vmatprep.subr.bf16.mxu0 %v8408_v62  ;;  %v8475_v61 = vld [vmem:[#allocation5 + $0xf00] ss:$16 sps:$4 sm:$0xff]  }
 0x125   :  { %5088 = vmatprep.subr.bf16.mxu1 %v8411_v63  ;;  %v931_v62 = vld [vmem:[#allocation7] sm:$0xf] }
 0x126   :  { %v127_v63 = vld [vmem:[#allocation2 + $0x60] sm:$0xff] }
 0x127   :  { %5048 = vmatpush1.bf16.msra.mxu0 %v8406_v0  ;;  %v935_v0 = vsub.s32 0, %v9756_v57 }
 0x128   :  { %5089 = vmatpush1.bf16.msra.mxu1 %v8409_v1  ;;  %5049 = vmatprep.subr.bf16.mxu0 %v8414_v2  ;;  %v129_v1 = vld [vmem:[#allocation2 + $0x70] sm:$0xff] }
 0x129   :  { %5090 = vmatprep.subr.bf16.mxu1 %v8417_v3  ;;  %v8480_v2 = vld [vmem:[#allocation5 + $0x10e4] ss:$16 sps:$4 sm:$0xff]  }
 0x12a   :  { %v8483_v3 = vld [vmem:[#allocation5 + $0x12e4] ss:$16 sps:$4 sm:$0xff]  }
 0x12b   :  { %5050 = vmatpush1.bf16.msra.mxu0 %v8412_v4  ;;  %v8478_v4 = vld [vmem:[#allocation5 + $0x10e0] ss:$16 sps:$4 sm:$0xff]  }
 0x12c   :  { %5091 = vmatpush1.bf16.msra.mxu1 %v8415_v5  ;;  %5051 = vmatprep.subr.bf16.mxu0 %v8420_v6  ;;  %v939_v5 = vsub.s32 1, %v9756_v57  ;;  %v132_v6 = vld [vmem:[#allocation2 + $0x88] sm:$0xff] }
 0x12d   :  { %5092 = vmatprep.subr.bf16.mxu1 %v8423_v7  ;;  %v9760_v7 = vpack.c.bf16 %v127_v63, %v127_v63  ;;  %v8519_v63 = vld [vmem:[#allocation5 + $0x1224] ss:$16 sps:$4 sm:$0xff]  }
 0x12f   :  { %5052 = vmatpush1.bf16.msra.mxu0 %v8418_v10  ;;  %v9762_v10 = vpack.c.bf16 %v129_v1, %v129_v1  ;;  %v8514_v1 = vld [vmem:[#allocation5 + $0x1020] ss:$16 sps:$4 sm:$0xff]  }
 0x130   :  { %5093 = vmatpush1.bf16.msra.mxu1 %v8421_v11  ;;  %5053 = vmatprep.subr.bf16.mxu0 %v8426_v12  ;;  %v134_v11 = vld [vmem:[#allocation2 + $0x98] sm:$0xff]  ;;  %v936_v12 = vrot.slane %v931_v62, %v935_v0 }
 0x131   :  { %5094 = vmatprep.subr.bf16.mxu1 %v8429_v13  ;;  %v8481_v13 = vld [vmem:[#allocation5 + $0x12e0] ss:$16 sps:$4 sm:$0xff]  }
 0x133   :  { %5054 = vmatpush1.bf16.msra.mxu0 %v8424_v14  ;;  %v8486_v14 = vld [vmem:[#allocation5 + $0x10c4] ss:$16 sps:$4 sm:$0xff]  }
 0x134   :  { %5095 = vmatpush1.bf16.msra.mxu1 %v8427_v15  ;;  %5055 = vmatprep.subr.bf16.mxu0 %v8432_v16  ;;  %v8489_v15 = vld [vmem:[#allocation5 + $0x12c4] ss:$16 sps:$4 sm:$0xff]   ;;  %v940_v16 = vrot.slane %v931_v62, %v939_v5 }
 0x135   :  { %5096 = vmatprep.subr.bf16.mxu1 %v8435_v17  ;;  %v9768_v17 = vpack.c.bf16 %v132_v6, %v132_v6  ;;  %v8516_v62 = vld [vmem:[#allocation5 + $0x1024] ss:$16 sps:$4 sm:$0xff]   ;;  %v8520_v6 = vld [vmem:[#allocation5 + $0x1000] ss:$16 sps:$4 sm:$0xff]  }
 0x137   :  { %5056 = vmatpush2.bf16.msra.mxu0 %v8430_v18  ;;  %v9770_v18 = vpack.c.bf16 %v134_v11, %v134_v11  ;;  %v8523_v11 = vld [vmem:[#allocation5 + $0x1200] ss:$16 sps:$4 sm:$0xff]  }
 0x138   :  { %5097 = vmatpush2.bf16.msra.mxu1 %v8433_v19  ;;  %5057 = vmatprep.subr.bf16.mxu0 %v8438_v22 }
 0x139   :  { %5098 = vmatprep.subr.bf16.mxu1 %v8441_v23  ;;  %v8484_v23 = vld [vmem:[#allocation5 + $0x10c0] ss:$16 sps:$4 sm:$0xff]  }
 0x13b   :  { %5058 = vmatpush2.bf16.msra.mxu0 %v8436_v24 }
 0x13c   :  { %5099 = vmatpush2.bf16.msra.mxu1 %v8439_v25  ;;  %5059 = vmatprep.subr.bf16.mxu0 %v8444_v26  ;;  %v8487_v25 = vld [vmem:[#allocation5 + $0x12c0] ss:$16 sps:$4 sm:$0xff]  }
 0x13d   :  { %5100 = vmatprep.subr.bf16.mxu1 %v8447_v27 }
 0x13f   :  { %5060 = vmatpush2.bf16.msra.mxu0 %v8442_v28  ;;  %v8492_v28 = vld [vmem:[#allocation5 + $0x10a4] ss:$16 sps:$4 sm:$0xff]  }
 0x140   :  { %5101 = vmatpush2.bf16.msra.mxu1 %v8445_v30  ;;  %5061 = vmatprep.subr.bf16.mxu0 %v8450_v31  ;;  %v8495_v30 = vld [vmem:[#allocation5 + $0x12a4] ss:$16 sps:$4 sm:$0xff]  }
 0x141   :  { %5102 = vmatprep.subr.bf16.mxu1 %v8453_v33 }
 0x143   :  { %5062 = vmatpush2.bf16.msra.mxu0 %v8448_v34 }
 0x144   :  { %5103 = vmatpush2.bf16.msra.mxu1 %v8451_v35  ;;  %5063 = vmatprep.subr.bf16.mxu0 %v8456_v36  ;;  %v8490_v36 = vld [vmem:[#allocation5 + $0x10a0] ss:$16 sps:$4 sm:$0xff]  }
 0x145   :  { %5104 = vmatprep.subr.bf16.mxu1 %v8459_v38 }
 0x147   :  { %5064 = vmatpush2.bf16.msra.mxu0 %v8454_v39  ;;  %v8493_v39 = vld [vmem:[#allocation5 + $0x12a0] ss:$16 sps:$4 sm:$0xff]  }
 0x148   :  { %5105 = vmatpush2.bf16.msra.mxu1 %v8457_v41  ;;  %5065 = vmatprep.subr.bf16.mxu0 %v8462_v44 }
 0x149   :  { %5106 = vmatprep.subr.bf16.mxu1 %v8465_v45  ;;  %v8498_v45 = vld [vmem:[#allocation5 + $0x1084] ss:$16 sps:$4 sm:$0xff]  }
 0x14b   :  { %5066 = vmatpush2.bf16.msra.mxu0 %v8460_v46  ;;  %v8501_v46 = vld [vmem:[#allocation5 + $0x1284] ss:$16 sps:$4 sm:$0xff]  }
 0x14c   :  { %5107 = vmatpush2.bf16.msra.mxu1 %v8463_v47  ;;  %5067 = vmatprep.subr.bf16.mxu0 %v8468_v53  ;;  %v8496_v47 = vld [vmem:[#allocation5 + $0x1080] ss:$16 sps:$4 sm:$0xff]   ;;  %v8504_v53 = vld [vmem:[#allocation5 + $0x1064] ss:$16 sps:$4 sm:$0xff]  }
 0x14d   :  { %5108 = vmatprep.subr.bf16.mxu1 %v8471_v54  ;;  %v8507_v54 = vld [vmem:[#allocation5 + $0x1264] ss:$16 sps:$4 sm:$0xff]  }
 0x14f   :  { %5068 = vmatpush2.bf16.msra.mxu0 %v8466_v55  ;;  %v8502_v55 = vld [vmem:[#allocation5 + $0x1060] ss:$16 sps:$4 sm:$0xff]  }
 0x150   :  { %5109 = vmatpush2.bf16.msra.mxu1 %v8469_v56  ;;  %5069 = vmatprep.subr.bf16.mxu0 %v8474_v58  ;;  %v8505_v56 = vld [vmem:[#allocation5 + $0x1260] ss:$16 sps:$4 sm:$0xff]   ;;  %v8510_v58 = vld [vmem:[#allocation5 + $0x1044] ss:$16 sps:$4 sm:$0xff]  }
 0x151   :  { %5110 = vmatprep.subr.bf16.mxu1 %v8477_v59  ;;  %v8513_v59 = vld [vmem:[#allocation5 + $0x1244] ss:$16 sps:$4 sm:$0xff]  }
 0x153   :  { %5070 = vmatpush2.bf16.msra.mxu0 %v8472_v60  ;;  %v8508_v60 = vld [vmem:[#allocation5 + $0x1040] ss:$16 sps:$4 sm:$0xff]  }
 0x154   :  { %5111 = vmatpush2.bf16.msra.mxu1 %v8475_v61  ;;  %5121 = vmatprep.subr.bf16.mxu0 %v8480_v2  ;;  %v8511_v61 = vld [vmem:[#allocation5 + $0x1240] ss:$16 sps:$4 sm:$0xff]  }
 0x155   :  { %5162 = vmatprep.subr.bf16.mxu1 %v8483_v3  ;;  %v8517_v2 = vld [vmem:[#allocation5 + $0x1220] ss:$16 sps:$4 sm:$0xff]   ;;  %v8522_v3 = vld [vmem:[#allocation5 + $0x1004] ss:$16 sps:$4 sm:$0xff]  }
 0x156   :  { %v4827_v19 = vpop.f32.mrf.mxu0  ;;  %5072 = vmatmul.mubr.bf16.vlgmr.msra.gmra.mxu0 %v9760_v7 }
 0x157   :  { %v4868_v22 = vpop.f32.mrf.mxu1  ;;  %5113 = vmatmul.mubr.bf16.vlgmr.msra.gmra.mxu1 %v9762_v10  ;;  %v4828_v24 = vadd.f32 %v4827_v19, %v936_v12  ;;  %5122 = vmatpush1.bf16.msra.mxu0 %v8478_v4  ;;  %v8525_v4 = vld [vmem:[#allocation5 + $0x1204] ss:$16 sps:$4 sm:$0xff]  }
 0x158   :  { %5163 = vmatpush1.bf16.msra.mxu1 %v8481_v13  ;;  %v4829_v26 = vpop.f32.mrf.mxu0  ;;  %5123 = vmatprep.subr.bf16.mxu0 %v8486_v14  ;;  %v8528_v12 = vld [vmem:[#allocation5 + $0x11e4] ss:$16 sps:$4 sm:$0xff]   ;;  %v8526_v14 = vld [vmem:[#allocation5 + $0x11e0] ss:$16 sps:$4 sm:$0xff]  }
 0x159   :  { %v4870_v27 = vpop.f32.mrf.mxu1  ;;  %5164 = vmatprep.subr.bf16.mxu1 %v8489_v15  ;;  %v9774_v31 = vadd.f32 %v4868_v22, %v4828_v24  ;;  %v4830_v33 = vadd.f32 %v4829_v26, %v940_v16  ;;  %5153 = vmatprep.mubr.bf16.mxu0 %v9768_v17  ;;  %v8531_v13 = vld [vmem:[#allocation5 + $0x13e4] ss:$16 sps:$4 sm:$0xff]   ;;  %v8529_v15 = vld [vmem:[#allocation5 + $0x13e0] ss:$16 sps:$4 sm:$0xff]  }
 0x15a   :  { %5194 = vmatprep.mubr.bf16.mxu1 %v9770_v18  ;;  %v4831_v34 = vpop.f32.mrf.mxu0  ;;  %v8534_v16 = vld [vmem:[#allocation5 + $0x11c4] ss:$16 sps:$4 sm:$0xff]   ;;  %v8532_v22 = vld [vmem:[#allocation5 + $0x11c0] ss:$16 sps:$4 sm:$0xff]  }
 0x15b   :  { %v4872_v35 = vpop.f32.mrf.mxu1  ;;  %v9778_v38 = vadd.f32 %v4870_v27, %v4830_v33  ;;  %5124 = vmatpush1.bf16.msra.mxu0 %v8484_v23  ;;  %v8537_v19 = vld [vmem:[#allocation5 + $0x13c4] ss:$16 sps:$4 sm:$0xff]   ;;  %v8535_v23 = vld [vmem:[#allocation5 + $0x13c0] ss:$16 sps:$4 sm:$0xff]  }
 0x15c   :  { %5165 = vmatpush1.bf16.msra.mxu1 %v8487_v25  ;;  %v4832_v41 = vpop.f32.mrf.mxu0  ;;  %5125 = vmatprep.subr.bf16.mxu0 %v8492_v28  ;;  %v8540_v24 = vld [vmem:[#allocation5 + $0x11a4] ss:$16 sps:$4 sm:$0xff]   ;;  %v8538_v26 = vld [vmem:[#allocation5 + $0x11a0] ss:$16 sps:$4 sm:$0xff]  }
 0x15d   :  { %v4873_v44 = vpop.f32.mrf.mxu1  ;;  %5166 = vmatprep.subr.bf16.mxu1 %v8495_v30  ;;  %v8543_v25 = vld [vmem:[#allocation5 + $0x13a4] ss:$16 sps:$4 sm:$0xff]   ;;  %v8541_v27 = vld [vmem:[#allocation5 + $0x13a0] ss:$16 sps:$4 sm:$0xff]  }
 0x15e   :  { %v8546_v28 = vld [vmem:[#allocation5 + $0x1184] ss:$16 sps:$4 sm:$0xff]   ;;  %v8544_v33 = vld [vmem:[#allocation5 + $0x1180] ss:$16 sps:$4 sm:$0xff]  }
 0x15f   :  { %5126 = vmatpush1.bf16.msra.mxu0 %v8490_v36  ;;  %v8549_v30 = vld [vmem:[#allocation5 + $0x1384] ss:$16 sps:$4 sm:$0xff]   ;;  %v8547_v34 = vld [vmem:[#allocation5 + $0x1380] ss:$16 sps:$4 sm:$0xff]  }
 0x160   :  { %5167 = vmatpush1.bf16.msra.mxu1 %v8493_v39  ;;  %5127 = vmatprep.subr.bf16.mxu0 %v8498_v45  ;;  %v8552_v35 = vld [vmem:[#allocation5 + $0x1164] ss:$16 sps:$4 sm:$0xff]   ;;  %v8550_v39 = vld [vmem:[#allocation5 + $0x1160] ss:$16 sps:$4 sm:$0xff]  }
 0x161   :  { %5168 = vmatprep.subr.bf16.mxu1 %v8501_v46  ;;  %v8555_v36 = vld [vmem:[#allocation5 + $0x1364] ss:$16 sps:$4 sm:$0xff]   ;;  %v8553_v41 = vld [vmem:[#allocation5 + $0x1360] ss:$16 sps:$4 sm:$0xff]  }
 0x162   :  { %v8558_v44 = vld [vmem:[#allocation5 + $0x1144] ss:$16 sps:$4 sm:$0xff]   ;;  %v8556_v46 = vld [vmem:[#allocation5 + $0x1140] ss:$16 sps:$4 sm:$0xff]  }
 0x163   :  { %5128 = vmatpush1.bf16.msra.mxu0 %v8496_v47  ;;  %v8561_v45 = vld [vmem:[#allocation5 + $0x1344] ss:$16 sps:$4 sm:$0xff]   ;;  %v8559_v47 = vld [vmem:[#allocation5 + $0x1340] ss:$16 sps:$4 sm:$0xff]  }
 0x164   :  { %5169 = vmatpush1.bf16.msra.mxu1 %v8499_v51  ;;  %5129 = vmatprep.subr.bf16.mxu0 %v8504_v53  ;;  %v8564_v51 = vld [vmem:[#allocation5 + $0x1124] ss:$16 sps:$4 sm:$0xff]  }
 0x165   :  { %5170 = vmatprep.subr.bf16.mxu1 %v8507_v54  ;;  %v8567_v53 = vld [vmem:[#allocation5 + $0x1324] ss:$16 sps:$4 sm:$0xff]   ;;  %v8562_v54 = vld [vmem:[#allocation5 + $0x1120] ss:$16 sps:$4 sm:$0xff]  }
 0x167   :  { %5130 = vmatpush1.bf16.msra.mxu0 %v8502_v55  ;;  %v8565_v55 = vld [vmem:[#allocation5 + $0x1320] ss:$16 sps:$4 sm:$0xff]  }
 0x168   :  { %5171 = vmatpush1.bf16.msra.mxu1 %v8505_v56  ;;  %5131 = vmatprep.subr.bf16.mxu0 %v8510_v58  ;;  %v8570_v56 = vld [vmem:[#allocation5 + $0x1104] ss:$16 sps:$4 sm:$0xff]  }
 0x169   :  { %5172 = vmatprep.subr.bf16.mxu1 %v8513_v59  ;;  %v8573_v58 = vld [vmem:[#allocation5 + $0x1304] ss:$16 sps:$4 sm:$0xff]   ;;  %v8568_v59 = vld [vmem:[#allocation5 + $0x1100] ss:$16 sps:$4 sm:$0xff]  }
 0x16b   :  { %5132 = vmatpush1.bf16.msra.mxu0 %v8508_v60  ;;  %v8571_v60 = vld [vmem:[#allocation5 + $0x1300] ss:$16 sps:$4 sm:$0xff]  }
 0x16c   :  { %5173 = vmatpush1.bf16.msra.mxu1 %v8511_v61  ;;  %5133 = vmatprep.subr.bf16.mxu0 %v8516_v62  ;;  %v131_v61 = vld [vmem:[#allocation2 + $0x80] sm:$0xff]  ;;  %v133_v62 = vld [vmem:[#allocation2 + $0x90] sm:$0xff] }
 0x16d   :  { %5174 = vmatprep.subr.bf16.mxu1 %v8519_v63  ;;  %v8576_v63 = vld [vmem:[#allocation5 + $0x14e4] ss:$16 sps:$4 sm:$0xff]  }
 0x16f   :  { %5134 = vmatpush1.bf16.msra.mxu0 %v8514_v1  ;;  %v8579_v1 = vld [vmem:[#allocation5 + $0x16e4] ss:$16 sps:$4 sm:$0xff]  }
 0x170   :  { %5175 = vmatpush1.bf16.msra.mxu1 %v8517_v2  ;;  %5135 = vmatprep.subr.bf16.mxu0 %v8522_v3  ;;  %v136_v2 = vld [vmem:[#allocation2 + $0xa8] sm:$0xff]  ;;  %v138_v3 = vld [vmem:[#allocation2 + $0xb8] sm:$0xff] }
 0x171   :  { %5176 = vmatprep.subr.bf16.mxu1 %v8525_v4  ;;  %v8574_v4 = vld [vmem:[#allocation5 + $0x14e0] ss:$16 sps:$4 sm:$0xff]  }
 0x173   :  { %5136 = vmatpush1.bf16.msra.mxu0 %v8520_v6  ;;  %v8577_v6 = vld [vmem:[#allocation5 + $0x16e0] ss:$16 sps:$4 sm:$0xff]  }
 0x174   :  { %5177 = vmatpush1.bf16.msra.mxu1 %v8523_v11  ;;  %5137 = vmatprep.subr.bf16.mxu0 %v8528_v12  ;;  %v9780_v11 = vpack.c.bf16 %v131_v61, %v131_v61  ;;  %v9782_v12 = vpack.c.bf16 %v133_v62, %v133_v62  ;;  %v8607_v61 = vld [vmem:[#allocation5 + $0x1640] ss:$16 sps:$4 sm:$0xff]   ;;  %v8612_v62 = vld [vmem:[#allocation5 + $0x1424] ss:$16 sps:$4 sm:$0xff]  }
 0x175   :  { %5178 = vmatprep.subr.bf16.mxu1 %v8531_v13  ;;  %v8582_v13 = vld [vmem:[#allocation5 + $0x14c4] ss:$16 sps:$4 sm:$0xff]  }
 0x177   :  { %5138 = vmatpush2.bf16.msra.mxu0 %v8526_v14  ;;  %v8585_v14 = vld [vmem:[#allocation5 + $0x16c4] ss:$16 sps:$4 sm:$0xff]  }
 0x178   :  { %5179 = vmatpush2.bf16.msra.mxu1 %v8529_v15  ;;  %5139 = vmatprep.subr.bf16.mxu0 %v8534_v16  ;;  %v8580_v15 = vld [vmem:[#allocation5 + $0x14c0] ss:$16 sps:$4 sm:$0xff]  }
 0x179   :  { %5180 = vmatprep.subr.bf16.mxu1 %v8537_v19  ;;  %v8583_v16 = vld [vmem:[#allocation5 + $0x16c0] ss:$16 sps:$4 sm:$0xff]   ;;  %v9784_v19 = vpack.c.bf16 %v136_v2, %v136_v2 }
 0x17a   :  { %v8613_v2 = vld [vmem:[#allocation5 + $0x1620] ss:$16 sps:$4 sm:$0xff]  }
 0x17b   :  { %5140 = vmatpush2.bf16.msra.mxu0 %v8532_v22  ;;  %v9786_v22 = vpack.c.bf16 %v138_v3, %v138_v3  ;;  %v8618_v3 = vld [vmem:[#allocation5 + $0x1404] ss:$16 sps:$4 sm:$0xff]  }
 0x17c   :  { %5181 = vmatpush2.bf16.msra.mxu1 %v8535_v23  ;;  %5141 = vmatprep.subr.bf16.mxu0 %v8540_v24 }
 0x17d   :  { %5182 = vmatprep.subr.bf16.mxu1 %v8543_v25 }
 0x17f   :  { %5142 = vmatpush2.bf16.msra.mxu0 %v8538_v26 }
 0x180   :  { %5183 = vmatpush2.bf16.msra.mxu1 %v8541_v27  ;;  %5143 = vmatprep.subr.bf16.mxu0 %v8546_v28  ;;  %v8588_v28 = vld [vmem:[#allocation5 + $0x14a4] ss:$16 sps:$4 sm:$0xff]  }
 0x181   :  { %5184 = vmatprep.subr.bf16.mxu1 %v8549_v30  ;;  %v8591_v30 = vld [vmem:[#allocation5 + $0x16a4] ss:$16 sps:$4 sm:$0xff]  }
 0x183   :  { %5144 = vmatpush2.bf16.msra.mxu0 %v8544_v33 }
 0x184   :  { %5185 = vmatpush2.bf16.msra.mxu1 %v8547_v34  ;;  %5145 = vmatprep.subr.bf16.mxu0 %v8552_v35  ;;  %v8586_v35 = vld [vmem:[#allocation5 + $0x14a0] ss:$16 sps:$4 sm:$0xff]  }
 0x185   :  { %5186 = vmatprep.subr.bf16.mxu1 %v8555_v36  ;;  %v8589_v36 = vld [vmem:[#allocation5 + $0x16a0] ss:$16 sps:$4 sm:$0xff]  }
 0x187   :  { %5146 = vmatpush2.bf16.msra.mxu0 %v8550_v39 }
 0x188   :  { %5187 = vmatpush2.bf16.msra.mxu1 %v8553_v41  ;;  %5147 = vmatprep.subr.bf16.mxu0 %v8558_v44 }
 0x189   :  { %5188 = vmatprep.subr.bf16.mxu1 %v8561_v45 }
 0x18b   :  { %5148 = vmatpush2.bf16.msra.mxu0 %v8556_v46  ;;  %v8594_v46 = vld [vmem:[#allocation5 + $0x1484] ss:$16 sps:$4 sm:$0xff]  }
 0x18c   :  { %5189 = vmatpush2.bf16.msra.mxu1 %v8559_v47  ;;  %5149 = vmatprep.subr.bf16.mxu0 %v8564_v51  ;;  %v8597_v47 = vld [vmem:[#allocation5 + $0x1684] ss:$16 sps:$4 sm:$0xff]   ;;  %v8595_v51 = vld [vmem:[#allocation5 + $0x1680] ss:$16 sps:$4 sm:$0xff]  }
 0x18d   :  { %5190 = vmatprep.subr.bf16.mxu1 %v8567_v53  ;;  %v8600_v53 = vld [vmem:[#allocation5 + $0x1464] ss:$16 sps:$4 sm:$0xff]  }
 0x18f   :  { %5150 = vmatpush2.bf16.msra.mxu0 %v8562_v54  ;;  %v8603_v54 = vld [vmem:[#allocation5 + $0x1664] ss:$16 sps:$4 sm:$0xff]  }
 0x190   :  { %5191 = vmatpush2.bf16.msra.mxu1 %v8565_v55  ;;  %5151 = vmatprep.subr.bf16.mxu0 %v8570_v56  ;;  %v8598_v55 = vld [vmem:[#allocation5 + $0x1460] ss:$16 sps:$4 sm:$0xff]  }
 0x191   :  { %5192 = vmatprep.subr.bf16.mxu1 %v8573_v58  ;;  %v8601_v56 = vld [vmem:[#allocation5 + $0x1660] ss:$16 sps:$4 sm:$0xff]   ;;  %v8606_v58 = vld [vmem:[#allocation5 + $0x1444] ss:$16 sps:$4 sm:$0xff]  }
 0x193   :  { %5152 = vmatpush2.bf16.msra.mxu0 %v8568_v59  ;;  %v8609_v59 = vld [vmem:[#allocation5 + $0x1644] ss:$16 sps:$4 sm:$0xff]  }
 0x194   :  { %5193 = vmatpush2.bf16.msra.mxu1 %v8571_v60  ;;  %5203 = vmatprep.subr.bf16.mxu0 %v8576_v63  ;;  %v8604_v60 = vld [vmem:[#allocation5 + $0x1440] ss:$16 sps:$4 sm:$0xff]   ;;  %v8615_v63 = vld [vmem:[#allocation5 + $0x1624] ss:$16 sps:$4 sm:$0xff]  }
 0x195   :  { %5244 = vmatprep.subr.bf16.mxu1 %v8579_v1  ;;  %v8610_v1 = vld [vmem:[#allocation5 + $0x1420] ss:$16 sps:$4 sm:$0xff]  }
 0x196   :  { %v4909_v23 = vpop.f32.mrf.mxu0  ;;  %5154 = vmatmul.mubr.bf16.vlgmr.msra.gmra.mxu0 %v9780_v11 }
 0x197   :  { %v4950_v24 = vpop.f32.mrf.mxu1  ;;  %5195 = vmatmul.mubr.bf16.vlgmr.msra.gmra.mxu1 %v9782_v12  ;;  %v4910_v25 = vadd.f32 %v4909_v23, %v9774_v31  ;;  %5204 = vmatpush1.bf16.msra.mxu0 %v8574_v4  ;;  %v8621_v4 = vld [vmem:[#allocation5 + $0x1604] ss:$16 sps:$4 sm:$0xff]   ;;  %v8625_v23 = vld [vmem:[#allocation5 + $0x17e0] ss:$16 sps:$4 sm:$0xff]  }
 0x198   :  { %5245 = vmatpush1.bf16.msra.mxu1 %v8577_v6  ;;  %v4911_v26 = vpop.f32.mrf.mxu0  ;;  %5205 = vmatprep.subr.bf16.mxu0 %v8582_v13  ;;  %v8616_v6 = vld [vmem:[#allocation5 + $0x1400] ss:$16 sps:$4 sm:$0xff]  }
 0x199   :  { %v4952_v27 = vpop.f32.mrf.mxu1  ;;  %5246 = vmatprep.subr.bf16.mxu1 %v8585_v14  ;;  %v9791_v33 = vadd.f32 %v4950_v24, %v4910_v25  ;;  %v4912_v34 = vadd.f32 %v4911_v26, %v9778_v38  ;;  %5235 = vmatprep.mubr.bf16.mxu0 %v9784_v19  ;;  %v8592_v38 = vld [vmem:[#allocation5 + $0x1480] ss:$16 sps:$4 sm:$0xff]   ;;  %v8624_v14 = vld [vmem:[#allocation5 + $0x15e4] ss:$16 sps:$4 sm:$0xff]  }
 0x19a   :  { %5276 = vmatprep.mubr.bf16.mxu1 %v9786_v22  ;;  %v4913_v39 = vpop.f32.mrf.mxu0  ;;  %v8619_v13 = vld [vmem:[#allocation5 + $0x1600] ss:$16 sps:$4 sm:$0xff]   ;;  %v8630_v24 = vld [vmem:[#allocation5 + $0x15c4] ss:$16 sps:$4 sm:$0xff]  }
 0x19b   :  { %v4954_v31 = vpop.f32.mrf.mxu1  ;;  %v9796_v41 = vadd.f32 %v4952_v27, %v4912_v34  ;;  %5206 = vmatpush1.bf16.msra.mxu0 %v8580_v15  ;;  %v8627_v15 = vld [vmem:[#allocation5 + $0x17e4] ss:$16 sps:$4 sm:$0xff]   ;;  %v8628_v26 = vld [vmem:[#allocation5 + $0x15c0] ss:$16 sps:$4 sm:$0xff]  }
 0x19c   :  { %5247 = vmatpush1.bf16.msra.mxu1 %v8583_v16  ;;  %v4914_v44 = vpop.f32.mrf.mxu0  ;;  %5207 = vmatprep.subr.bf16.mxu0 %v8588_v28  ;;  %v8622_v16 = vld [vmem:[#allocation5 + $0x15e0] ss:$16 sps:$4 sm:$0xff]   ;;  %v8633_v25 = vld [vmem:[#allocation5 + $0x17c4] ss:$16 sps:$4 sm:$0xff]  }
 0x19d   :  { %v4955_v45 = vpop.f32.mrf.mxu1  ;;  %5248 = vmatprep.subr.bf16.mxu1 %v8591_v30  ;;  %v8631_v27 = vld [vmem:[#allocation5 + $0x17c0] ss:$16 sps:$4 sm:$0xff]   ;;  %v8636_v28 = vld [vmem:[#allocation5 + $0x15a4] ss:$16 sps:$4 sm:$0xff]  }
 0x19e   :  { %v8639_v30 = vld [vmem:[#allocation5 + $0x17a4] ss:$16 sps:$4 sm:$0xff]   ;;  %v8634_v34 = vld [vmem:[#allocation5 + $0x15a0] ss:$16 sps:$4 sm:$0xff]  }
 0x19f   :  { %5208 = vmatpush1.bf16.msra.mxu0 %v8586_v35  ;;  %v8637_v35 = vld [vmem:[#allocation5 + $0x17a0] ss:$16 sps:$4 sm:$0xff]   ;;  %v8645_v39 = vld [vmem:[#allocation5 + $0x1784] ss:$16 sps:$4 sm:$0xff]  }
 0x1a0   :  { %5249 = vmatpush1.bf16.msra.mxu1 %v8589_v36  ;;  %5209 = vmatprep.subr.bf16.mxu0 %v8594_v46  ;;  %v8642_v36 = vld [vmem:[#allocation5 + $0x1584] ss:$16 sps:$4 sm:$0xff]   ;;  %v8640_v31 = vld [vmem:[#allocation5 + $0x1580] ss:$16 sps:$4 sm:$0xff]  }
 0x1a1   :  { %5250 = vmatprep.subr.bf16.mxu1 %v8597_v47  ;;  %v8643_v44 = vld [vmem:[#allocation5 + $0x1780] ss:$16 sps:$4 sm:$0xff]   ;;  %v8648_v45 = vld [vmem:[#allocation5 + $0x1564] ss:$16 sps:$4 sm:$0xff]  }
 0x1a2   :  { %v8651_v46 = vld [vmem:[#allocation5 + $0x1764] ss:$16 sps:$4 sm:$0xff]   ;;  %v8646_v47 = vld [vmem:[#allocation5 + $0x1560] ss:$16 sps:$4 sm:$0xff]  }
 0x1a3   :  { %5210 = vmatpush1.bf16.msra.mxu0 %v8592_v38  ;;  %v8649_v38 = vld [vmem:[#allocation5 + $0x1760] ss:$16 sps:$4 sm:$0xff]  }
 0x1a4   :  { %5251 = vmatpush1.bf16.msra.mxu1 %v8595_v51  ;;  %5211 = vmatprep.subr.bf16.mxu0 %v8600_v53  ;;  %v8654_v51 = vld [vmem:[#allocation5 + $0x1544] ss:$16 sps:$4 sm:$0xff]  }
 0x1a5   :  { %5252 = vmatprep.subr.bf16.mxu1 %v8603_v54  ;;  %v8657_v53 = vld [vmem:[#allocation5 + $0x1744] ss:$16 sps:$4 sm:$0xff]   ;;  %v8652_v54 = vld [vmem:[#allocation5 + $0x1540] ss:$16 sps:$4 sm:$0xff]  }
 0x1a7   :  { %5212 = vmatpush1.bf16.msra.mxu0 %v8598_v55  ;;  %v8655_v55 = vld [vmem:[#allocation5 + $0x1740] ss:$16 sps:$4 sm:$0xff]  }
 0x1a8   :  { %5253 = vmatpush1.bf16.msra.mxu1 %v8601_v56  ;;  %5213 = vmatprep.subr.bf16.mxu0 %v8606_v58  ;;  %v8660_v56 = vld [vmem:[#allocation5 + $0x1524] ss:$16 sps:$4 sm:$0xff]  }
 0x1a9   :  { %5254 = vmatprep.subr.bf16.mxu1 %v8609_v59  ;;  %v8663_v58 = vld [vmem:[#allocation5 + $0x1724] ss:$16 sps:$4 sm:$0xff]   ;;  %v8658_v59 = vld [vmem:[#allocation5 + $0x1520] ss:$16 sps:$4 sm:$0xff]  }
 0x1ab   :  { %5214 = vmatpush1.bf16.msra.mxu0 %v8604_v60  ;;  %v8661_v60 = vld [vmem:[#allocation5 + $0x1720] ss:$16 sps:$4 sm:$0xff]  }
 0x1ac   :  { %5255 = vmatpush1.bf16.msra.mxu1 %v8607_v61  ;;  %5215 = vmatprep.subr.bf16.mxu0 %v8612_v62  ;;  %v8666_v61 = vld [vmem:[#allocation5 + $0x1504] ss:$16 sps:$4 sm:$0xff]  }
 0x1ad   :  { %5256 = vmatprep.subr.bf16.mxu1 %v8615_v63  ;;  %v8669_v62 = vld [vmem:[#allocation5 + $0x1704] ss:$16 sps:$4 sm:$0xff]   ;;  %v8664_v63 = vld [vmem:[#allocation5 + $0x1500] ss:$16 sps:$4 sm:$0xff]  }
 0x1af   :  { %5216 = vmatpush1.bf16.msra.mxu0 %v8610_v1  ;;  %v8667_v1 = vld [vmem:[#allocation5 + $0x1700] ss:$16 sps:$4 sm:$0xff]  }
 0x1b0   :  { %5257 = vmatpush1.bf16.msra.mxu1 %v8613_v2  ;;  %5217 = vmatprep.subr.bf16.mxu0 %v8618_v3  ;;  %v135_v2 = vld [vmem:[#allocation2 + $0xa0] sm:$0xff]  ;;  %v137_v3 = vld [vmem:[#allocation2 + $0xb0] sm:$0xff] }
 0x1b1   :  { %5258 = vmatprep.subr.bf16.mxu1 %v8621_v4  ;;  %v8672_v4 = vld [vmem:[#allocation5 + $0xec] ss:$16 sps:$4 sm:$0xff]  }
 0x1b3   :  { %5218 = vmatpush1.bf16.msra.mxu0 %v8616_v6  ;;  %v8675_v6 = vld [vmem:[#allocation5 + $0x2ec] ss:$16 sps:$4 sm:$0xff]  }
 0x1b4   :  { %5259 = vmatpush1.bf16.msra.mxu1 %v8619_v13  ;;  %5219 = vmatprep.subr.bf16.mxu0 %v8624_v14  ;;  %v8670_v13 = vld [vmem:[#allocation5 + $0xe8] ss:$16 sps:$4 sm:$0xff]  }
 0x1b5   :  { %5260 = vmatprep.subr.bf16.mxu1 %v8627_v15  ;;  %v8673_v14 = vld [vmem:[#allocation5 + $0x2e8] ss:$16 sps:$4 sm:$0xff]   ;;  %v9798_v15 = vpack.c.bf16 %v135_v2, %v135_v2  ;;  %v8711_v2 = vld [vmem:[#allocation5 + $0x22c] ss:$16 sps:$4 sm:$0xff]  }
 0x1b7   :  { %5220 = vmatpush2.bf16.msra.mxu0 %v8622_v16  ;;  %v9800_v16 = vpack.c.bf16 %v137_v3, %v137_v3  ;;  %v8706_v3 = vld [vmem:[#allocation5 + $0x28] ss:$16 sps:$4 sm:$0xff]  }
 0x1b8   :  { %5261 = vmatpush2.bf16.msra.mxu1 %v8625_v23  ;;  %5221 = vmatprep.subr.bf16.mxu0 %v8630_v24  ;;  %v8678_v23 = vld [vmem:[#allocation5 + $0xcc] ss:$16 sps:$4 sm:$0xff]  }
 0x1b9   :  { %5262 = vmatprep.subr.bf16.mxu1 %v8633_v25  ;;  %v8681_v24 = vld [vmem:[#allocation5 + $0x2cc] ss:$16 sps:$4 sm:$0xff]   ;;  %v8676_v25 = vld [vmem:[#allocation5 + $0xc8] ss:$16 sps:$4 sm:$0xff]  }
 0x1bb   :  { %5222 = vmatpush2.bf16.msra.mxu0 %v8628_v26  ;;  %v8679_v26 = vld [vmem:[#allocation5 + $0x2c8] ss:$16 sps:$4 sm:$0xff]  }
 0x1bc   :  { %5263 = vmatpush2.bf16.msra.mxu1 %v8631_v27  ;;  %5223 = vmatprep.subr.bf16.mxu0 %v8636_v28 }
 0x1bd   :  { %5264 = vmatprep.subr.bf16.mxu1 %v8639_v30 }
 0x1bf   :  { %5224 = vmatpush2.bf16.msra.mxu0 %v8634_v34 }
 0x1c0   :  { %5265 = vmatpush2.bf16.msra.mxu1 %v8637_v35  ;;  %5225 = vmatprep.subr.bf16.mxu0 %v8642_v36  ;;  %v8684_v36 = vld [vmem:[#allocation5 + $0xac] ss:$16 sps:$4 sm:$0xff]  }
 0x1c1   :  { %5266 = vmatprep.subr.bf16.mxu1 %v8645_v39  ;;  %v8687_v39 = vld [vmem:[#allocation5 + $0x2ac] ss:$16 sps:$4 sm:$0xff]  }
 0x1c3   :  { %5226 = vmatpush2.bf16.msra.mxu0 %v8640_v31 }
 0x1c4   :  { %5267 = vmatpush2.bf16.msra.mxu1 %v8643_v44  ;;  %5227 = vmatprep.subr.bf16.mxu0 %v8648_v45  ;;  %v8682_v45 = vld [vmem:[#allocation5 + $0xa8] ss:$16 sps:$4 sm:$0xff]  }
 0x1c5   :  { %5268 = vmatprep.subr.bf16.mxu1 %v8651_v46  ;;  %v8685_v46 = vld [vmem:[#allocation5 + $0x2a8] ss:$16 sps:$4 sm:$0xff]  }
 0x1c7   :  { %5228 = vmatpush2.bf16.msra.mxu0 %v8646_v47 }
 0x1c8   :  { %5269 = vmatpush2.bf16.msra.mxu1 %v8649_v38  ;;  %5229 = vmatprep.subr.bf16.mxu0 %v8654_v51 }
 0x1c9   :  { %5270 = vmatprep.subr.bf16.mxu1 %v8657_v53 }
 0x1cb   :  { %5230 = vmatpush2.bf16.msra.mxu0 %v8652_v54  ;;  %v8690_v54 = vld [vmem:[#allocation5 + $0x8c] ss:$16 sps:$4 sm:$0xff]  }
 0x1cc   :  { %5271 = vmatpush2.bf16.msra.mxu1 %v8655_v55  ;;  %5231 = vmatprep.subr.bf16.mxu0 %v8660_v56  ;;  %v8693_v55 = vld [vmem:[#allocation5 + $0x28c] ss:$16 sps:$4 sm:$0xff]   ;;  %v8691_v56 = vld [vmem:[#allocation5 + $0x288] ss:$16 sps:$4 sm:$0xff]  }
 0x1cd   :  { %5272 = vmatprep.subr.bf16.mxu1 %v8663_v58  ;;  %v8694_v58 = vld [vmem:[#allocation5 + $0x68] ss:$16 sps:$4 sm:$0xff]  }
 0x1cf   :  { %5232 = vmatpush2.bf16.msra.mxu0 %v8658_v59  ;;  %v8697_v59 = vld [vmem:[#allocation5 + $0x268] ss:$16 sps:$4 sm:$0xff]  }
 0x1d0   :  { %5273 = vmatpush2.bf16.msra.mxu1 %v8661_v60  ;;  %5233 = vmatprep.subr.bf16.mxu0 %v8666_v61  ;;  %v8702_v60 = vld [vmem:[#allocation5 + $0x4c] ss:$16 sps:$4 sm:$0xff]  }
 0x1d1   :  { %5274 = vmatprep.subr.bf16.mxu1 %v8669_v62  ;;  %v8705_v61 = vld [vmem:[#allocation5 + $0x24c] ss:$16 sps:$4 sm:$0xff]   ;;  %v8700_v62 = vld [vmem:[#allocation5 + $0x48] ss:$16 sps:$4 sm:$0xff]  }
 0x1d3   :  { %5234 = vmatpush2.bf16.msra.mxu0 %v8664_v63  ;;  %v8703_v63 = vld [vmem:[#allocation5 + $0x248] ss:$16 sps:$4 sm:$0xff]  }
 0x1d4   :  { %5275 = vmatpush2.bf16.msra.mxu1 %v8667_v1  ;;  %5285 = vmatprep.subr.bf16.mxu0 %v8672_v4  ;;  %v8708_v1 = vld [vmem:[#allocation5 + $0x2c] ss:$16 sps:$4 sm:$0xff]   ;;  %v8709_v4 = vld [vmem:[#allocation5 + $0x228] ss:$16 sps:$4 sm:$0xff]  }
 0x1d5   :  { %5326 = vmatprep.subr.bf16.mxu1 %v8675_v6  ;;  %v8714_v6 = vld [vmem:[#allocation5 + $0xc] ss:$16 sps:$4 sm:$0xff]  }
 0x1d6   :  { %v4991_v27 = vpop.f32.mrf.mxu0  ;;  %5236 = vmatmul.mubr.bf16.vlgmr.msra.gmra.mxu0 %v9798_v15 }
 0x1d7   :  { %v5032_v28 = vpop.f32.mrf.mxu1  ;;  %5277 = vmatmul.mubr.bf16.vlgmr.msra.gmra.mxu1 %v9800_v16  ;;  %v4992_v30 = vadd.f32 %v4991_v27, %v9791_v33  ;;  %5286 = vmatpush1.bf16.msra.mxu0 %v8670_v13  ;;  %v8717_v13 = vld [vmem:[#allocation5 + $0x20c] ss:$16 sps:$4 sm:$0xff]   ;;  %v8721_v27 = vld [vmem:[#allocation5 + $0x3e8] ss:$16 sps:$4 sm:$0xff]  }
 0x1d8   :  { %5327 = vmatpush1.bf16.msra.mxu1 %v8673_v14  ;;  %v4993_v34 = vpop.f32.mrf.mxu0  ;;  %5287 = vmatprep.subr.bf16.mxu0 %v8678_v23  ;;  %v8712_v14 = vld [vmem:[#allocation5 + $0x8] ss:$16 sps:$4 sm:$0xff]  }
 0x1d9   :  { %v5034_v35 = vpop.f32.mrf.mxu1  ;;  %5328 = vmatprep.subr.bf16.mxu1 %v8681_v24  ;;  %v9805_v31 = vadd.f32 %v5032_v28, %v4992_v30  ;;  %v4994_v44 = vadd.f32 %v4993_v34, %v9796_v41  ;;  %5317 = vmatprep.mubr.bf16.mxu0 %v9714_v49  ;;  %v8688_v41 = vld [vmem:[#allocation5 + $0x88] ss:$16 sps:$4 sm:$0xff]   ;;  %v8696_v49 = vld [vmem:[#allocation5 + $0x6c] ss:$16 sps:$4 sm:$0xff]  }
 0x1da   :  { %5358 = vmatprep.mubr.bf16.mxu1 %v9716_v52  ;;  %v4995_v47 = vpop.f32.mrf.mxu0  ;;  %v8699_v52 = vld [vmem:[#allocation5 + $0x26c] ss:$16 sps:$4 sm:$0xff]   ;;  %v8715_v23 = vld [vmem:[#allocation5 + $0x208] ss:$16 sps:$4 sm:$0xff]  }
 0x1db   :  { %v5036_v33 = vpop.f32.mrf.mxu1  ;;  %v9810_v38 = vadd.f32 %v5034_v35, %v4994_v44  ;;  %5288 = vmatpush1.bf16.msra.mxu0 %v8676_v25  ;;  %v8720_v24 = vld [vmem:[#allocation5 + $0x1ec] ss:$16 sps:$4 sm:$0xff]   ;;  %v8724_v34 = vld [vmem:[#allocation5 + $0x1c8] ss:$16 sps:$4 sm:$0xff]  }
 0x1dc   :  { %5329 = vmatpush1.bf16.msra.mxu1 %v8679_v26  ;;  %v4996_v51 = vpop.f32.mrf.mxu0  ;;  %5289 = vmatprep.subr.bf16.mxu0 %v8684_v36  ;;  %v8723_v25 = vld [vmem:[#allocation5 + $0x3ec] ss:$16 sps:$4 sm:$0xff]   ;;  %v8718_v26 = vld [vmem:[#allocation5 + $0x1e8] ss:$16 sps:$4 sm:$0xff]  }
 0x1dd   :  { %v5037_v53 = vpop.f32.mrf.mxu1  ;;  %5330 = vmatprep.subr.bf16.mxu1 %v8687_v39  ;;  %v8726_v28 = vld [vmem:[#allocation5 + $0x1cc] ss:$16 sps:$4 sm:$0xff]   ;;  %v8727_v35 = vld [vmem:[#allocation5 + $0x3c8] ss:$16 sps:$4 sm:$0xff]  }
 0x1de   :  { %v8729_v30 = vld [vmem:[#allocation5 + $0x3cc] ss:$16 sps:$4 sm:$0xff]   ;;  %v8730_v44 = vld [vmem:[#allocation5 + $0x1a8] ss:$16 sps:$4 sm:$0xff]  }
 0x1df   :  { %5290 = vmatpush1.bf16.msra.mxu0 %v8682_v45  ;;  %v8732_v36 = vld [vmem:[#allocation5 + $0x1ac] ss:$16 sps:$4 sm:$0xff]   ;;  %v8733_v45 = vld [vmem:[#allocation5 + $0x3a8] ss:$16 sps:$4 sm:$0xff]  }
 0x1e0   :  { %5331 = vmatpush1.bf16.msra.mxu1 %v8685_v46  ;;  %5291 = vmatprep.subr.bf16.mxu0 %v8690_v54  ;;  %v8735_v39 = vld [vmem:[#allocation5 + $0x3ac] ss:$16 sps:$4 sm:$0xff]   ;;  %v8736_v33 = vld [vmem:[#allocation5 + $0x188] ss:$16 sps:$4 sm:$0xff]  }
 0x1e1   :  { %5332 = vmatprep.subr.bf16.mxu1 %v8693_v55  ;;  %v8738_v46 = vld [vmem:[#allocation5 + $0x18c] ss:$16 sps:$4 sm:$0xff]   ;;  %v8739_v51 = vld [vmem:[#allocation5 + $0x388] ss:$16 sps:$4 sm:$0xff]  }
 0x1e2   :  { %v8741_v47 = vld [vmem:[#allocation5 + $0x38c] ss:$16 sps:$4 sm:$0xff]   ;;  %v8742_v55 = vld [vmem:[#allocation5 + $0x168] ss:$16 sps:$4 sm:$0xff]  }
 0x1e3   :  { %5292 = vmatpush1.bf16.msra.mxu0 %v8688_v41  ;;  %v8744_v53 = vld [vmem:[#allocation5 + $0x16c] ss:$16 sps:$4 sm:$0xff]   ;;  %v8745_v41 = vld [vmem:[#allocation5 + $0x368] ss:$16 sps:$4 sm:$0xff]  }
 0x1e4   :  { %5333 = vmatpush1.bf16.msra.mxu1 %v8691_v56  ;;  %5293 = vmatprep.subr.bf16.mxu0 %v8696_v49  ;;  %v8747_v54 = vld [vmem:[#allocation5 + $0x36c] ss:$16 sps:$4 sm:$0xff]  }
 0x1e5   :  { %5334 = vmatprep.subr.bf16.mxu1 %v8699_v52  ;;  %v8750_v56 = vld [vmem:[#allocation5 + $0x14c] ss:$16 sps:$4 sm:$0xff]   ;;  %v8748_v52 = vld [vmem:[#allocation5 + $0x148] ss:$16 sps:$4 sm:$0xff]  }
 0x1e6   :  { %v8753_v49 = vld [vmem:[#allocation5 + $0x34c] ss:$16 sps:$4 sm:$0xff]  }
 0x1e7   :  { %5294 = vmatpush1.bf16.msra.mxu0 %v8694_v58  ;;  %v8751_v58 = vld [vmem:[#allocation5 + $0x348] ss:$16 sps:$4 sm:$0xff]  }
 0x1e8   :  { %5335 = vmatpush1.bf16.msra.mxu1 %v8697_v59  ;;  %5295 = vmatprep.subr.bf16.mxu0 %v8702_v60  ;;  %v8756_v59 = vld [vmem:[#allocation5 + $0x12c] ss:$16 sps:$4 sm:$0xff]  }
 0x1e9   :  { %5336 = vmatprep.subr.bf16.mxu1 %v8705_v61  ;;  %v8759_v60 = vld [vmem:[#allocation5 + $0x32c] ss:$16 sps:$4 sm:$0xff]   ;;  %v8754_v61 = vld [vmem:[#allocation5 + $0x128] ss:$16 sps:$4 sm:$0xff]  }
 0x1eb   :  { %5296 = vmatpush1.bf16.msra.mxu0 %v8700_v62  ;;  %v8757_v62 = vld [vmem:[#allocation5 + $0x328] ss:$16 sps:$4 sm:$0xff]  }
 0x1ec   :  { %5337 = vmatpush1.bf16.msra.mxu1 %v8703_v63  ;;  %5297 = vmatprep.subr.bf16.mxu0 %v8708_v1  ;;  %v8762_v63 = vld [vmem:[#allocation5 + $0x10c] ss:$16 sps:$4 sm:$0xff]  }
 0x1ed   :  { %5338 = vmatprep.subr.bf16.mxu1 %v8711_v2  ;;  %v8765_v1 = vld [vmem:[#allocation5 + $0x30c] ss:$16 sps:$4 sm:$0xff]   ;;  %v8760_v2 = vld [vmem:[#allocation5 + $0x108] ss:$16 sps:$4 sm:$0xff]  }
 0x1ef   :  { %5298 = vmatpush1.bf16.msra.mxu0 %v8706_v3  ;;  %v8763_v3 = vld [vmem:[#allocation5 + $0x308] ss:$16 sps:$4 sm:$0xff]  }
 0x1f0   :  { %5339 = vmatpush1.bf16.msra.mxu1 %v8709_v4  ;;  %5299 = vmatprep.subr.bf16.mxu0 %v8714_v6  ;;  %v8768_v4 = vld [vmem:[#allocation5 + $0x4ec] ss:$16 sps:$4 sm:$0xff]  }
 0x1f1   :  { %5340 = vmatprep.subr.bf16.mxu1 %v8717_v13  ;;  %v8771_v6 = vld [vmem:[#allocation5 + $0x6ec] ss:$16 sps:$4 sm:$0xff]   ;;  %v8766_v13 = vld [vmem:[#allocation5 + $0x4e8] ss:$16 sps:$4 sm:$0xff]  }
 0x1f3   :  { %5300 = vmatpush1.bf16.msra.mxu0 %v8712_v14  ;;  %v8769_v14 = vld [vmem:[#allocation5 + $0x6e8] ss:$16 sps:$4 sm:$0xff]  }
 0x1f4   :  { %5341 = vmatpush1.bf16.msra.mxu1 %v8715_v23  ;;  %5301 = vmatprep.subr.bf16.mxu0 %v8720_v24  ;;  %v8774_v23 = vld [vmem:[#allocation5 + $0x4cc] ss:$16 sps:$4 sm:$0xff]  }
 0x1f5   :  { %5342 = vmatprep.subr.bf16.mxu1 %v8723_v25  ;;  %v8777_v24 = vld [vmem:[#allocation5 + $0x6cc] ss:$16 sps:$4 sm:$0xff]   ;;  %v8772_v25 = vld [vmem:[#allocation5 + $0x4c8] ss:$16 sps:$4 sm:$0xff]  }
 0x1f7   :  { %5302 = vmatpush2.bf16.msra.mxu0 %v8718_v26  ;;  %v8775_v26 = vld [vmem:[#allocation5 + $0x6c8] ss:$16 sps:$4 sm:$0xff]  }
 0x1f8   :  { %5343 = vmatpush2.bf16.msra.mxu1 %v8721_v27  ;;  %5303 = vmatprep.subr.bf16.mxu0 %v8726_v28 }
 0x1f9   :  { %5344 = vmatprep.subr.bf16.mxu1 %v8729_v30 }
 0x1fb   :  { %5304 = vmatpush2.bf16.msra.mxu0 %v8724_v34 }
 0x1fc   :  { %5345 = vmatpush2.bf16.msra.mxu1 %v8727_v35  ;;  %5305 = vmatprep.subr.bf16.mxu0 %v8732_v36  ;;  %v8780_v36 = vld [vmem:[#allocation5 + $0x4ac] ss:$16 sps:$4 sm:$0xff]  }
 0x1fd   :  { %5346 = vmatprep.subr.bf16.mxu1 %v8735_v39  ;;  %v8783_v39 = vld [vmem:[#allocation5 + $0x6ac] ss:$16 sps:$4 sm:$0xff]  }
 0x1ff   :  { %5306 = vmatpush2.bf16.msra.mxu0 %v8730_v44 }
 0x200   :  { %5347 = vmatpush2.bf16.msra.mxu1 %v8733_v45  ;;  %5307 = vmatprep.subr.bf16.mxu0 %v8738_v46  ;;  %v8778_v46 = vld [vmem:[#allocation5 + $0x4a8] ss:$16 sps:$4 sm:$0xff]  }
 0x201   :  { %5348 = vmatprep.subr.bf16.mxu1 %v8741_v47  ;;  %v8781_v47 = vld [vmem:[#allocation5 + $0x6a8] ss:$16 sps:$4 sm:$0xff]  }
 0x203   :  { %5308 = vmatpush2.bf16.msra.mxu0 %v8736_v33 }
 0x204   :  { %5349 = vmatpush2.bf16.msra.mxu1 %v8739_v51  ;;  %5309 = vmatprep.subr.bf16.mxu0 %v8744_v53  ;;  %v8786_v53 = vld [vmem:[#allocation5 + $0x48c] ss:$16 sps:$4 sm:$0xff]  }
 0x205   :  { %5350 = vmatprep.subr.bf16.mxu1 %v8747_v54  ;;  %v8789_v54 = vld [vmem:[#allocation5 + $0x68c] ss:$16 sps:$4 sm:$0xff]  }
 0x207   :  { %5310 = vmatpush2.bf16.msra.mxu0 %v8742_v55  ;;  %v8787_v55 = vld [vmem:[#allocation5 + $0x688] ss:$16 sps:$4 sm:$0xff]  }
 0x208   :  { %5351 = vmatpush2.bf16.msra.mxu1 %v8745_v41  ;;  %5311 = vmatprep.subr.bf16.mxu0 %v8750_v56  ;;  %v8790_v41 = vld [vmem:[#allocation5 + $0x468] ss:$16 sps:$4 sm:$0xff]  }
 0x209   :  { %5352 = vmatprep.subr.bf16.mxu1 %v8753_v49  ;;  %v8793_v56 = vld [vmem:[#allocation5 + $0x668] ss:$16 sps:$4 sm:$0xff]   ;;  %v8798_v49 = vld [vmem:[#allocation5 + $0x44c] ss:$16 sps:$4 sm:$0xff]  }
 0x20b   :  { %5312 = vmatpush2.bf16.msra.mxu0 %v8748_v52  ;;  %v8801_v52 = vld [vmem:[#allocation5 + $0x64c] ss:$16 sps:$4 sm:$0xff]  }
 0x20c   :  { %5353 = vmatpush2.bf16.msra.mxu1 %v8751_v58  ;;  %5313 = vmatprep.subr.bf16.mxu0 %v8756_v59  ;;  %v8796_v58 = vld [vmem:[#allocation5 + $0x448] ss:$16 sps:$4 sm:$0xff]  }
 0x20d   :  { %5354 = vmatprep.subr.bf16.mxu1 %v8759_v60  ;;  %v8799_v59 = vld [vmem:[#allocation5 + $0x648] ss:$16 sps:$4 sm:$0xff]   ;;  %v8804_v60 = vld [vmem:[#allocation5 + $0x42c] ss:$16 sps:$4 sm:$0xff]  }
 0x20f   :  { %5314 = vmatpush2.bf16.msra.mxu0 %v8754_v61  ;;  %v8807_v61 = vld [vmem:[#allocation5 + $0x62c] ss:$16 sps:$4 sm:$0xff]  }
 0x210   :  { %5355 = vmatpush2.bf16.msra.mxu1 %v8757_v62  ;;  %5315 = vmatprep.subr.bf16.mxu0 %v8762_v63  ;;  %v8802_v62 = vld [vmem:[#allocation5 + $0x428] ss:$16 sps:$4 sm:$0xff]  }
 0x211   :  { %5356 = vmatprep.subr.bf16.mxu1 %v8765_v1  ;;  %v8805_v63 = vld [vmem:[#allocation5 + $0x628] ss:$16 sps:$4 sm:$0xff]   ;;  %v8810_v1 = vld [vmem:[#allocation5 + $0x40c] ss:$16 sps:$4 sm:$0xff]  }
 0x213   :  { %5316 = vmatpush2.bf16.msra.mxu0 %v8760_v2  ;;  %v8813_v2 = vld [vmem:[#allocation5 + $0x60c] ss:$16 sps:$4 sm:$0xff]  }
 0x214   :  { %5357 = vmatpush2.bf16.msra.mxu1 %v8763_v3  ;;  %5367 = vmatprep.subr.bf16.mxu0 %v8768_v4  ;;  %v8808_v3 = vld [vmem:[#allocation5 + $0x408] ss:$16 sps:$4 sm:$0xff]  }
 0x215   :  { %5408 = vmatprep.subr.bf16.mxu1 %v8771_v6  ;;  %v8811_v4 = vld [vmem:[#allocation5 + $0x608] ss:$16 sps:$4 sm:$0xff]   ;;  %v8816_v6 = vld [vmem:[#allocation5 + $0x5ec] ss:$16 sps:$4 sm:$0xff]  }
 0x216   :  { %v5073_v27 = vpop.f32.mrf.mxu0  ;;  %5318 = vmatmul.mubr.bf16.vlgmr.msra.gmra.mxu0 %v9720_v8 }
 0x217   :  { %v5114_v28 = vpop.f32.mrf.mxu1  ;;  %5359 = vmatmul.mubr.bf16.vlgmr.msra.gmra.mxu1 %v9722_v9  ;;  %v5074_v30 = vadd.f32 %v5073_v27, %v9805_v31  ;;  %5368 = vmatpush1.bf16.msra.mxu0 %v8766_v13  ;;  %v8819_v13 = vld [vmem:[#allocation5 + $0x7ec] ss:$16 sps:$4 sm:$0xff]   ;;  %v8823_v27 = vld [vmem:[#allocation5 + $0x7c8] ss:$16 sps:$4 sm:$0xff]  }
 0x218   :  { %5409 = vmatpush1.bf16.msra.mxu1 %v8769_v14  ;;  %v5075_v34 = vpop.f32.mrf.mxu0  ;;  %5369 = vmatprep.subr.bf16.mxu0 %v8774_v23  ;;  %v8814_v14 = vld [vmem:[#allocation5 + $0x5e8] ss:$16 sps:$4 sm:$0xff]  }
 0x219   :  { %v5116_v35 = vpop.f32.mrf.mxu1  ;;  %5410 = vmatprep.subr.bf16.mxu1 %v8777_v24  ;;  %v9815_v44 = vadd.f32 %v5114_v28, %v5074_v30  ;;  %v5076_v45 = vadd.f32 %v5075_v34, %v9810_v38  ;;  %5399 = vmatprep.mubr.bf16.mxu0 %v9726_v37  ;;  %v8784_v38 = vld [vmem:[#allocation5 + $0x488] ss:$16 sps:$4 sm:$0xff]   ;;  %v8792_v37 = vld [vmem:[#allocation5 + $0x46c] ss:$16 sps:$4 sm:$0xff]  }
 0x21a   :  { %5440 = vmatprep.mubr.bf16.mxu1 %v9728_v40  ;;  %v5077_v8 = vpop.f32.mrf.mxu0  ;;  %v8795_v40 = vld [vmem:[#allocation5 + $0x66c] ss:$16 sps:$4 sm:$0xff]   ;;  %v8817_v23 = vld [vmem:[#allocation5 + $0x7e8] ss:$16 sps:$4 sm:$0xff]  }
 0x21b   :  { %v5118_v9 = vpop.f32.mrf.mxu1  ;;  %v9820_v31 = vadd.f32 %v5116_v35, %v5076_v45  ;;  %5370 = vmatpush1.bf16.msra.mxu0 %v8772_v25  ;;  %v8822_v24 = vld [vmem:[#allocation5 + $0x5cc] ss:$16 sps:$4 sm:$0xff]   ;;  %v8826_v34 = vld [vmem:[#allocation5 + $0x5a8] ss:$16 sps:$4 sm:$0xff]  }
 0x21c   :  { %5411 = vmatpush1.bf16.msra.mxu1 %v8775_v26  ;;  %v5078_v33 = vpop.f32.mrf.mxu0  ;;  %5371 = vmatprep.subr.bf16.mxu0 %v8780_v36  ;;  %v8825_v25 = vld [vmem:[#allocation5 + $0x7cc] ss:$16 sps:$4 sm:$0xff]   ;;  %v8820_v26 = vld [vmem:[#allocation5 + $0x5c8] ss:$16 sps:$4 sm:$0xff]  }
 0x21d   :  { %v5119_v51 = vpop.f32.mrf.mxu1  ;;  %5412 = vmatprep.subr.bf16.mxu1 %v8783_v39  ;;  %v8828_v28 = vld [vmem:[#allocation5 + $0x5ac] ss:$16 sps:$4 sm:$0xff]   ;;  %v8829_v35 = vld [vmem:[#allocation5 + $0x7a8] ss:$16 sps:$4 sm:$0xff]  }
 0x21e   :  { %v8831_v30 = vld [vmem:[#allocation5 + $0x7ac] ss:$16 sps:$4 sm:$0xff]   ;;  %v8832_v45 = vld [vmem:[#allocation5 + $0x588] ss:$16 sps:$4 sm:$0xff]  }
 0x21f   :  { %5372 = vmatpush1.bf16.msra.mxu0 %v8778_v46  ;;  %v8834_v36 = vld [vmem:[#allocation5 + $0x58c] ss:$16 sps:$4 sm:$0xff]   ;;  %v8835_v46 = vld [vmem:[#allocation5 + $0x788] ss:$16 sps:$4 sm:$0xff]  }
 0x220   :  { %5413 = vmatpush1.bf16.msra.mxu1 %v8781_v47  ;;  %5373 = vmatprep.subr.bf16.mxu0 %v8786_v53  ;;  %v8837_v39 = vld [vmem:[#allocation5 + $0x78c] ss:$16 sps:$4 sm:$0xff]   ;;  %v8838_v9 = vld [vmem:[#allocation5 + $0x568] ss:$16 sps:$4 sm:$0xff]  }
 0x221   :  { %5414 = vmatprep.subr.bf16.mxu1 %v8789_v54  ;;  %v8840_v47 = vld [vmem:[#allocation5 + $0x56c] ss:$16 sps:$4 sm:$0xff]   ;;  %v8841_v33 = vld [vmem:[#allocation5 + $0x768] ss:$16 sps:$4 sm:$0xff]  }
 0x222   :  { %v8843_v8 = vld [vmem:[#allocation5 + $0x76c] ss:$16 sps:$4 sm:$0xff]   ;;  %v8844_v54 = vld [vmem:[#allocation5 + $0x548] ss:$16 sps:$4 sm:$0xff]  }
 0x223   :  { %5374 = vmatpush1.bf16.msra.mxu0 %v8784_v38  ;;  %v8846_v51 = vld [vmem:[#allocation5 + $0x54c] ss:$16 sps:$4 sm:$0xff]   ;;  %v8847_v38 = vld [vmem:[#allocation5 + $0x748] ss:$16 sps:$4 sm:$0xff]  }
 0x224   :  { %5415 = vmatpush1.bf16.msra.mxu1 %v8787_v55  ;;  %5375 = vmatprep.subr.bf16.mxu0 %v8792_v37  ;;  %v8849_v53 = vld [vmem:[#allocation5 + $0x74c] ss:$16 sps:$4 sm:$0xff]  }
 0x225   :  { %5416 = vmatprep.subr.bf16.mxu1 %v8795_v40  ;;  %v8852_v55 = vld [vmem:[#allocation5 + $0x52c] ss:$16 sps:$4 sm:$0xff]   ;;  %v8850_v40 = vld [vmem:[#allocation5 + $0x528] ss:$16 sps:$4 sm:$0xff]  }
 0x226   :  { %v8855_v37 = vld [vmem:[#allocation5 + $0x72c] ss:$16 sps:$4 sm:$0xff]  }
 0x227   :  { %5376 = vmatpush1.bf16.msra.mxu0 %v8790_v41  ;;  %v8853_v41 = vld [vmem:[#allocation5 + $0x728] ss:$16 sps:$4 sm:$0xff]  }
 0x228   :  { %5417 = vmatpush1.bf16.msra.mxu1 %v8793_v56  ;;  %5377 = vmatprep.subr.bf16.mxu0 %v8798_v49  ;;  %v8858_v56 = vld [vmem:[#allocation5 + $0x50c] ss:$16 sps:$4 sm:$0xff]  }
 0x229   :  { %5418 = vmatprep.subr.bf16.mxu1 %v8801_v52  ;;  %v8861_v49 = vld [vmem:[#allocation5 + $0x70c] ss:$16 sps:$4 sm:$0xff]   ;;  %v8856_v52 = vld [vmem:[#allocation5 + $0x508] ss:$16 sps:$4 sm:$0xff]  }
 0x22b   :  { %5378 = vmatpush1.bf16.msra.mxu0 %v8796_v58  ;;  %v8859_v58 = vld [vmem:[#allocation5 + $0x708] ss:$16 sps:$4 sm:$0xff]  }
 0x22c   :  { %5419 = vmatpush1.bf16.msra.mxu1 %v8799_v59  ;;  %5379 = vmatprep.subr.bf16.mxu0 %v8804_v60  ;;  %v8864_v59 = vld [vmem:[#allocation5 + $0x8ec] ss:$16 sps:$4 sm:$0xff]  }
 0x22d   :  { %5420 = vmatprep.subr.bf16.mxu1 %v8807_v61  ;;  %v8867_v60 = vld [vmem:[#allocation5 + $0xaec] ss:$16 sps:$4 sm:$0xff]   ;;  %v8862_v61 = vld [vmem:[#allocation5 + $0x8e8] ss:$16 sps:$4 sm:$0xff]  }
 0x22f   :  { %5380 = vmatpush1.bf16.msra.mxu0 %v8802_v62  ;;  %v8865_v62 = vld [vmem:[#allocation5 + $0xae8] ss:$16 sps:$4 sm:$0xff]  }
 0x230   :  { %5421 = vmatpush1.bf16.msra.mxu1 %v8805_v63  ;;  %5381 = vmatprep.subr.bf16.mxu0 %v8810_v1  ;;  %v8870_v63 = vld [vmem:[#allocation5 + $0x8cc] ss:$16 sps:$4 sm:$0xff]  }
 0x231   :  { %5422 = vmatprep.subr.bf16.mxu1 %v8813_v2  ;;  %v8873_v1 = vld [vmem:[#allocation5 + $0xacc] ss:$16 sps:$4 sm:$0xff]   ;;  %v8868_v2 = vld [vmem:[#allocation5 + $0x8c8] ss:$16 sps:$4 sm:$0xff]  }
 0x233   :  { %5382 = vmatpush1.bf16.msra.mxu0 %v8808_v3  ;;  %v8871_v3 = vld [vmem:[#allocation5 + $0xac8] ss:$16 sps:$4 sm:$0xff]  }
 0x234   :  { %5423 = vmatpush1.bf16.msra.mxu1 %v8811_v4  ;;  %5383 = vmatprep.subr.bf16.mxu0 %v8816_v6 }
 0x235   :  { %5424 = vmatprep.subr.bf16.mxu1 %v8819_v13 }
 0x237   :  { %5384 = vmatpush2.bf16.msra.mxu0 %v8814_v14 }
 0x238   :  { %5425 = vmatpush2.bf16.msra.mxu1 %v8817_v23  ;;  %5385 = vmatprep.subr.bf16.mxu0 %v8822_v24  ;;  %v8876_v24 = vld [vmem:[#allocation5 + $0x8ac] ss:$16 sps:$4 sm:$0xff]  }
 0x239   :  { %5426 = vmatprep.subr.bf16.mxu1 %v8825_v25  ;;  %v8879_v25 = vld [vmem:[#allocation5 + $0xaac] ss:$16 sps:$4 sm:$0xff]  }
 0x23b   :  { %5386 = vmatpush2.bf16.msra.mxu0 %v8820_v26 }
 0x23c   :  { %5427 = vmatpush2.bf16.msra.mxu1 %v8823_v27  ;;  %5387 = vmatprep.subr.bf16.mxu0 %v8828_v28  ;;  %v8874_v28 = vld [vmem:[#allocation5 + $0x8a8] ss:$16 sps:$4 sm:$0xff]  }
 0x23d   :  { %5428 = vmatprep.subr.bf16.mxu1 %v8831_v30  ;;  %v8877_v30 = vld [vmem:[#allocation5 + $0xaa8] ss:$16 sps:$4 sm:$0xff]  }
 0x23f   :  { %5388 = vmatpush2.bf16.msra.mxu0 %v8826_v34 }
 0x240   :  { %5429 = vmatpush2.bf16.msra.mxu1 %v8829_v35  ;;  %5389 = vmatprep.subr.bf16.mxu0 %v8834_v36  ;;  %v8882_v36 = vld [vmem:[#allocation5 + $0x88c] ss:$16 sps:$4 sm:$0xff]  }
 0x241   :  { %5430 = vmatprep.subr.bf16.mxu1 %v8837_v39  ;;  %v8885_v39 = vld [vmem:[#allocation5 + $0xa8c] ss:$16 sps:$4 sm:$0xff]  }
 0x243   :  { %5390 = vmatpush2.bf16.msra.mxu0 %v8832_v45  ;;  %v8883_v45 = vld [vmem:[#allocation5 + $0xa88] ss:$16 sps:$4 sm:$0xff]  }
 0x244   :  { %5431 = vmatpush2.bf16.msra.mxu1 %v8835_v46  ;;  %5391 = vmatprep.subr.bf16.mxu0 %v8840_v47  ;;  %v8886_v46 = vld [vmem:[#allocation5 + $0x868] ss:$16 sps:$4 sm:$0xff]  }
 0x245   :  { %5432 = vmatprep.subr.bf16.mxu1 %v8843_v8  ;;  %v8889_v47 = vld [vmem:[#allocation5 + $0xa68] ss:$16 sps:$4 sm:$0xff]   ;;  %v8894_v8 = vld [vmem:[#allocation5 + $0x84c] ss:$16 sps:$4 sm:$0xff]  }
 0x247   :  { %5392 = vmatpush2.bf16.msra.mxu0 %v8838_v9  ;;  %v8897_v9 = vld [vmem:[#allocation5 + $0xa4c] ss:$16 sps:$4 sm:$0xff]  }
 0x248   :  { %5433 = vmatpush2.bf16.msra.mxu1 %v8841_v33  ;;  %5393 = vmatprep.subr.bf16.mxu0 %v8846_v51  ;;  %v8892_v33 = vld [vmem:[#allocation5 + $0x848] ss:$16 sps:$4 sm:$0xff]  }
 0x249   :  { %5434 = vmatprep.subr.bf16.mxu1 %v8849_v53  ;;  %v8895_v51 = vld [vmem:[#allocation5 + $0xa48] ss:$16 sps:$4 sm:$0xff]   ;;  %v8900_v53 = vld [vmem:[#allocation5 + $0x82c] ss:$16 sps:$4 sm:$0xff]  }
 0x24b   :  { %5394 = vmatpush2.bf16.msra.mxu0 %v8844_v54  ;;  %v8903_v54 = vld [vmem:[#allocation5 + $0xa2c] ss:$16 sps:$4 sm:$0xff]  }
 0x24c   :  { %5435 = vmatpush2.bf16.msra.mxu1 %v8847_v38  ;;  %5395 = vmatprep.subr.bf16.mxu0 %v8852_v55  ;;  %v8898_v38 = vld [vmem:[#allocation5 + $0x828] ss:$16 sps:$4 sm:$0xff]  }
 0x24d   :  { %5436 = vmatprep.subr.bf16.mxu1 %v8855_v37  ;;  %v8901_v55 = vld [vmem:[#allocation5 + $0xa28] ss:$16 sps:$4 sm:$0xff]   ;;  %v8906_v37 = vld [vmem:[#allocation5 + $0x80c] ss:$16 sps:$4 sm:$0xff]  }
 0x24f   :  { %5396 = vmatpush2.bf16.msra.mxu0 %v8850_v40  ;;  %v8909_v40 = vld [vmem:[#allocation5 + $0xa0c] ss:$16 sps:$4 sm:$0xff]  }
 0x250   :  { %5437 = vmatpush2.bf16.msra.mxu1 %v8853_v41  ;;  %5397 = vmatprep.subr.bf16.mxu0 %v8858_v56  ;;  %v8904_v41 = vld [vmem:[#allocation5 + $0x808] ss:$16 sps:$4 sm:$0xff]  }
 0x251   :  { %5438 = vmatprep.subr.bf16.mxu1 %v8861_v49  ;;  %v8907_v56 = vld [vmem:[#allocation5 + $0xa08] ss:$16 sps:$4 sm:$0xff]   ;;  %v8912_v49 = vld [vmem:[#allocation5 + $0x9ec] ss:$16 sps:$4 sm:$0xff]  }
 0x253   :  { %5398 = vmatpush2.bf16.msra.mxu0 %v8856_v52  ;;  %v8915_v52 = vld [vmem:[#allocation5 + $0xbec] ss:$16 sps:$4 sm:$0xff]  }
 0x254   :  { %5439 = vmatpush2.bf16.msra.mxu1 %v8859_v58  ;;  %5449 = vmatprep.subr.bf16.mxu0 %v8864_v59  ;;  %v8910_v58 = vld [vmem:[#allocation5 + $0x9e8] ss:$16 sps:$4 sm:$0xff]  }
 0x255   :  { %5490 = vmatprep.subr.bf16.mxu1 %v8867_v60  ;;  %v8913_v59 = vld [vmem:[#allocation5 + $0xbe8] ss:$16 sps:$4 sm:$0xff]   ;;  %v8918_v60 = vld [vmem:[#allocation5 + $0x9cc] ss:$16 sps:$4 sm:$0xff]  }
 0x256   :  { %v5155_v4 = vpop.f32.mrf.mxu0  ;;  %5400 = vmatmul.mubr.bf16.vlgmr.msra.gmra.mxu0 %v9732_v20 }
 0x257   :  { %v5196_v6 = vpop.f32.mrf.mxu1  ;;  %5441 = vmatmul.mubr.bf16.vlgmr.msra.gmra.mxu1 %v9734_v21  ;;  %v5156_v13 = vadd.f32 %v5155_v4, %v9815_v44  ;;  %5450 = vmatpush1.bf16.msra.mxu0 %v8862_v61  ;;  %v8921_v61 = vld [vmem:[#allocation5 + $0xbcc] ss:$16 sps:$4 sm:$0xff]   ;;  %v8925_v4 = vld [vmem:[#allocation5 + $0xba8] ss:$16 sps:$4 sm:$0xff]  }
 0x258   :  { %5491 = vmatpush1.bf16.msra.mxu1 %v8865_v62  ;;  %v5157_v14 = vpop.f32.mrf.mxu0  ;;  %5451 = vmatprep.subr.bf16.mxu0 %v8870_v63  ;;  %v8916_v62 = vld [vmem:[#allocation5 + $0x9c8] ss:$16 sps:$4 sm:$0xff]  }
 0x259   :  { %v5198_v23 = vpop.f32.mrf.mxu1  ;;  %5492 = vmatprep.subr.bf16.mxu1 %v8873_v1  ;;  %v9825_v26 = vadd.f32 %v5196_v6, %v5156_v13  ;;  %v5158_v27 = vadd.f32 %v5157_v14, %v9820_v31  ;;  %5481 = vmatprep.mubr.bf16.mxu0 %v9738_v29  ;;  %v8880_v31 = vld [vmem:[#allocation5 + $0x888] ss:$16 sps:$4 sm:$0xff]   ;;  %v8888_v29 = vld [vmem:[#allocation5 + $0x86c] ss:$16 sps:$4 sm:$0xff]  }
 0x25a   :  { %5522 = vmatprep.mubr.bf16.mxu1 %v9740_v32  ;;  %v5159_v20 = vpop.f32.mrf.mxu0  ;;  %v8891_v32 = vld [vmem:[#allocation5 + $0xa6c] ss:$16 sps:$4 sm:$0xff]   ;;  %v8919_v63 = vld [vmem:[#allocation5 + $0xbc8] ss:$16 sps:$4 sm:$0xff]  }
 0x25b   :  { %v5200_v21 = vpop.f32.mrf.mxu1  ;;  %v9830_v44 = vadd.f32 %v5198_v23, %v5158_v27  ;;  %5452 = vmatpush1.bf16.msra.mxu0 %v8868_v2  ;;  %v8924_v1 = vld [vmem:[#allocation5 + $0x9ac] ss:$16 sps:$4 sm:$0xff]   ;;  %v8928_v14 = vld [vmem:[#allocation5 + $0x988] ss:$16 sps:$4 sm:$0xff]  }
 0x25c   :  { %5493 = vmatpush1.bf16.msra.mxu1 %v8871_v3  ;;  %v5160_v34 = vpop.f32.mrf.mxu0  ;;  %5453 = vmatprep.subr.bf16.mxu0 %v8876_v24  ;;  %v8927_v2 = vld [vmem:[#allocation5 + $0xbac] ss:$16 sps:$4 sm:$0xff]   ;;  %v8922_v3 = vld [vmem:[#allocation5 + $0x9a8] ss:$16 sps:$4 sm:$0xff]  }
 0x25d   :  { %v5201_v35 = vpop.f32.mrf.mxu1  ;;  %5494 = vmatprep.subr.bf16.mxu1 %v8879_v25  ;;  %v8930_v6 = vld [vmem:[#allocation5 + $0x98c] ss:$16 sps:$4 sm:$0xff]   ;;  %v8931_v23 = vld [vmem:[#allocation5 + $0xb88] ss:$16 sps:$4 sm:$0xff]  }
 0x25e   :  { %v8933_v13 = vld [vmem:[#allocation5 + $0xb8c] ss:$16 sps:$4 sm:$0xff]   ;;  %v8934_v27 = vld [vmem:[#allocation5 + $0x968] ss:$16 sps:$4 sm:$0xff]  }
 0x25f   :  { %5454 = vmatpush1.bf16.msra.mxu0 %v8874_v28  ;;  %v8936_v24 = vld [vmem:[#allocation5 + $0x96c] ss:$16 sps:$4 sm:$0xff]   ;;  %v8937_v28 = vld [vmem:[#allocation5 + $0xb68] ss:$16 sps:$4 sm:$0xff]  }
 0x260   :  { %5495 = vmatpush1.bf16.msra.mxu1 %v8877_v30  ;;  %5455 = vmatprep.subr.bf16.mxu0 %v8882_v36  ;;  %v8939_v25 = vld [vmem:[#allocation5 + $0xb6c] ss:$16 sps:$4 sm:$0xff]   ;;  %v8940_v21 = vld [vmem:[#allocation5 + $0x948] ss:$16 sps:$4 sm:$0xff]  }
 0x261   :  { %5496 = vmatprep.subr.bf16.mxu1 %v8885_v39  ;;  %v8942_v30 = vld [vmem:[#allocation5 + $0x94c] ss:$16 sps:$4 sm:$0xff]   ;;  %v8943_v34 = vld [vmem:[#allocation5 + $0xb48] ss:$16 sps:$4 sm:$0xff]  }
 0x262   :  { %v8945_v20 = vld [vmem:[#allocation5 + $0xb4c] ss:$16 sps:$4 sm:$0xff]   ;;  %v8946_v39 = vld [vmem:[#allocation5 + $0x928] ss:$16 sps:$4 sm:$0xff]  }
 0x263   :  { %5456 = vmatpush1.bf16.msra.mxu0 %v8880_v31  ;;  %v8948_v35 = vld [vmem:[#allocation5 + $0x92c] ss:$16 sps:$4 sm:$0xff]   ;;  %v8949_v31 = vld [vmem:[#allocation5 + $0xb28] ss:$16 sps:$4 sm:$0xff]  }
 0x264   :  { %5497 = vmatpush1.bf16.msra.mxu1 %v8883_v45  ;;  %5457 = vmatprep.subr.bf16.mxu0 %v8888_v29  ;;  %v8951_v36 = vld [vmem:[#allocation5 + $0xb2c] ss:$16 sps:$4 sm:$0xff]  }
 0x265   :  { %5498 = vmatprep.subr.bf16.mxu1 %v8891_v32  ;;  %v8954_v45 = vld [vmem:[#allocation5 + $0x90c] ss:$16 sps:$4 sm:$0xff]   ;;  %v8952_v32 = vld [vmem:[#allocation5 + $0x908] ss:$16 sps:$4 sm:$0xff]  }
 0x266   :  { %v8957_v29 = vld [vmem:[#allocation5 + $0xb0c] ss:$16 sps:$4 sm:$0xff]  }
 0x267   :  { %5458 = vmatpush1.bf16.msra.mxu0 %v8886_v46  ;;  %v8955_v46 = vld [vmem:[#allocation5 + $0xb08] ss:$16 sps:$4 sm:$0xff]  }
 0x268   :  { %5499 = vmatpush1.bf16.msra.mxu1 %v8889_v47  ;;  %5459 = vmatprep.subr.bf16.mxu0 %v8894_v8  ;;  %v8960_v47 = vld [vmem:[#allocation5 + $0xcec] ss:$16 sps:$4 sm:$0xff]  }
 0x269   :  { %5500 = vmatprep.subr.bf16.mxu1 %v8897_v9  ;;  %v8963_v8 = vld [vmem:[#allocation5 + $0xeec] ss:$16 sps:$4 sm:$0xff]   ;;  %v8958_v9 = vld [vmem:[#allocation5 + $0xce8] ss:$16 sps:$4 sm:$0xff]  }
 0x26b   :  { %5460 = vmatpush1.bf16.msra.mxu0 %v8892_v33  ;;  %v8961_v33 = vld [vmem:[#allocation5 + $0xee8] ss:$16 sps:$4 sm:$0xff]  }
 0x26c   :  { %5501 = vmatpush1.bf16.msra.mxu1 %v8895_v51  ;;  %5461 = vmatprep.subr.bf16.mxu0 %v8900_v53  ;;  %v8966_v51 = vld [vmem:[#allocation5 + $0xccc] ss:$16 sps:$4 sm:$0xff]  }
 0x26d   :  { %5502 = vmatprep.subr.bf16.mxu1 %v8903_v54  ;;  %v8969_v53 = vld [vmem:[#allocation5 + $0xecc] ss:$16 sps:$4 sm:$0xff]  }
 0x26f   :  { %5462 = vmatpush1.bf16.msra.mxu0 %v8898_v38 }
 0x270   :  { %5503 = vmatpush1.bf16.msra.mxu1 %v8901_v55  ;;  %5463 = vmatprep.subr.bf16.mxu0 %v8906_v37  ;;  %v8964_v37 = vld [vmem:[#allocation5 + $0xcc8] ss:$16 sps:$4 sm:$0xff]  }
 0x271   :  { %5504 = vmatprep.subr.bf16.mxu1 %v8909_v40  ;;  %v8967_v40 = vld [vmem:[#allocation5 + $0xec8] ss:$16 sps:$4 sm:$0xff]  }
 0x273   :  { %5464 = vmatpush1.bf16.msra.mxu0 %v8904_v41 }
 0x274   :  { %5505 = vmatpush1.bf16.msra.mxu1 %v8907_v56  ;;  %5465 = vmatprep.subr.bf16.mxu0 %v8912_v49  ;;  %v8972_v49 = vld [vmem:[#allocation5 + $0xcac] ss:$16 sps:$4 sm:$0xff]  }
 0x275   :  { %5506 = vmatprep.subr.bf16.mxu1 %v8915_v52  ;;  %v8975_v52 = vld [vmem:[#allocation5 + $0xeac] ss:$16 sps:$4 sm:$0xff]  }
 0x277   :  { %5466 = vmatpush2.bf16.msra.mxu0 %v8910_v58 }
 0x278   :  { %5507 = vmatpush2.bf16.msra.mxu1 %v8913_v59  ;;  %5467 = vmatprep.subr.bf16.mxu0 %v8918_v60  ;;  %v8970_v60 = vld [vmem:[#allocation5 + $0xca8] ss:$16 sps:$4 sm:$0xff]  }
 0x279   :  { %5508 = vmatprep.subr.bf16.mxu1 %v8921_v61  ;;  %v8973_v61 = vld [vmem:[#allocation5 + $0xea8] ss:$16 sps:$4 sm:$0xff]  }
 0x27b   :  { %5468 = vmatpush2.bf16.msra.mxu0 %v8916_v62 }
 0x27c   :  { %5509 = vmatpush2.bf16.msra.mxu1 %v8919_v63  ;;  %5469 = vmatprep.subr.bf16.mxu0 %v8924_v1  ;;  %v8978_v1 = vld [vmem:[#allocation5 + $0xc8c] ss:$16 sps:$4 sm:$0xff]  }
 0x27d   :  { %5510 = vmatprep.subr.bf16.mxu1 %v8927_v2  ;;  %v8981_v2 = vld [vmem:[#allocation5 + $0xe8c] ss:$16 sps:$4 sm:$0xff]  }
 0x27f   :  { %5470 = vmatpush2.bf16.msra.mxu0 %v8922_v3  ;;  %v8987_v3 = vld [vmem:[#allocation5 + $0xe6c] ss:$16 sps:$4 sm:$0xff]  }
 0x280   :  { %5511 = vmatpush2.bf16.msra.mxu1 %v8925_v4  ;;  %5471 = vmatprep.subr.bf16.mxu0 %v8930_v6  ;;  %v8982_v4 = vld [vmem:[#allocation5 + $0xc68] ss:$16 sps:$4 sm:$0xff]  }
 0x281   :  { %5512 = vmatprep.subr.bf16.mxu1 %v8933_v13  ;;  %v8985_v6 = vld [vmem:[#allocation5 + $0xe68] ss:$16 sps:$4 sm:$0xff]   ;;  %v8990_v13 = vld [vmem:[#allocation5 + $0xc4c] ss:$16 sps:$4 sm:$0xff]  }
 0x283   :  { %5472 = vmatpush2.bf16.msra.mxu0 %v8928_v14  ;;  %v8993_v14 = vld [vmem:[#allocation5 + $0xe4c] ss:$16 sps:$4 sm:$0xff]  }
 0x284   :  { %5513 = vmatpush2.bf16.msra.mxu1 %v8931_v23  ;;  %5473 = vmatprep.subr.bf16.mxu0 %v8936_v24  ;;  %v8988_v23 = vld [vmem:[#allocation5 + $0xc48] ss:$16 sps:$4 sm:$0xff]  }
 0x285   :  { %5514 = vmatprep.subr.bf16.mxu1 %v8939_v25  ;;  %v8991_v24 = vld [vmem:[#allocation5 + $0xe48] ss:$16 sps:$4 sm:$0xff]   ;;  %v8996_v25 = vld [vmem:[#allocation5 + $0xc2c] ss:$16 sps:$4 sm:$0xff]  }
 0x287   :  { %5474 = vmatpush2.bf16.msra.mxu0 %v8934_v27  ;;  %v8999_v27 = vld [vmem:[#allocation5 + $0xe2c] ss:$16 sps:$4 sm:$0xff]  }
 0x288   :  { %5515 = vmatpush2.bf16.msra.mxu1 %v8937_v28  ;;  %5475 = vmatprep.subr.bf16.mxu0 %v8942_v30  ;;  %v8994_v28 = vld [vmem:[#allocation5 + $0xc28] ss:$16 sps:$4 sm:$0xff]  }
 0x289   :  { %5516 = vmatprep.subr.bf16.mxu1 %v8945_v20  ;;  %v8997_v30 = vld [vmem:[#allocation5 + $0xe28] ss:$16 sps:$4 sm:$0xff]   ;;  %v9002_v20 = vld [vmem:[#allocation5 + $0xc0c] ss:$16 sps:$4 sm:$0xff]  }
 0x28b   :  { %5476 = vmatpush2.bf16.msra.mxu0 %v8940_v21  ;;  %v9005_v21 = vld [vmem:[#allocation5 + $0xe0c] ss:$16 sps:$4 sm:$0xff]  }
 0x28c   :  { %5517 = vmatpush2.bf16.msra.mxu1 %v8943_v34  ;;  %5477 = vmatprep.subr.bf16.mxu0 %v8948_v35  ;;  %v9000_v34 = vld [vmem:[#allocation5 + $0xc08] ss:$16 sps:$4 sm:$0xff]  }
 0x28d   :  { %5518 = vmatprep.subr.bf16.mxu1 %v8951_v36  ;;  %v9003_v35 = vld [vmem:[#allocation5 + $0xe08] ss:$16 sps:$4 sm:$0xff]   ;;  %v9008_v36 = vld [vmem:[#allocation5 + $0xdec] ss:$16 sps:$4 sm:$0xff]  }
 0x28f   :  { %5478 = vmatpush2.bf16.msra.mxu0 %v8946_v39  ;;  %v9011_v39 = vld [vmem:[#allocation5 + $0xfec] ss:$16 sps:$4 sm:$0xff]  }
 0x290   :  { %5519 = vmatpush2.bf16.msra.mxu1 %v8949_v31  ;;  %5479 = vmatprep.subr.bf16.mxu0 %v8954_v45  ;;  %v9006_v31 = vld [vmem:[#allocation5 + $0xde8] ss:$16 sps:$4 sm:$0xff]  }
 0x291   :  { %5520 = vmatprep.subr.bf16.mxu1 %v8957_v29  ;;  %v9009_v45 = vld [vmem:[#allocation5 + $0xfe8] ss:$16 sps:$4 sm:$0xff]   ;;  %v9014_v29 = vld [vmem:[#allocation5 + $0xdcc] ss:$16 sps:$4 sm:$0xff]  }
 0x293   :  { %5480 = vmatpush2.bf16.msra.mxu0 %v8952_v32  ;;  %v9017_v32 = vld [vmem:[#allocation5 + $0xfcc] ss:$16 sps:$4 sm:$0xff]  }
 0x294   :  { %5521 = vmatpush2.bf16.msra.mxu1 %v8955_v46  ;;  %5531 = vmatprep.subr.bf16.mxu0 %v8960_v47  ;;  %v9012_v46 = vld [vmem:[#allocation5 + $0xdc8] ss:$16 sps:$4 sm:$0xff]  }
 0x295   :  { %5572 = vmatprep.subr.bf16.mxu1 %v8963_v8  ;;  %v9015_v47 = vld [vmem:[#allocation5 + $0xfc8] ss:$16 sps:$4 sm:$0xff]   ;;  %v9020_v8 = vld [vmem:[#allocation5 + $0xdac] ss:$16 sps:$4 sm:$0xff]  }
 0x296   :  { %v5237_v54 = vpop.f32.mrf.mxu0  ;;  %5482 = vmatmul.mubr.bf16.vlgmr.msra.gmra.mxu0 %v9744_v42 }
 0x297   :  { %v5278_v38 = vpop.f32.mrf.mxu1  ;;  %5523 = vmatmul.mubr.bf16.vlgmr.msra.gmra.mxu1 %v9746_v43  ;;  %v5238_v55 = vadd.f32 %v5237_v54, %v9825_v26  ;;  %5532 = vmatpush1.bf16.msra.mxu0 %v8958_v9  ;;  %v9023_v9 = vld [vmem:[#allocation5 + $0xfac] ss:$16 sps:$4 sm:$0xff]  }
 0x298   :  { %5573 = vmatpush1.bf16.msra.mxu1 %v8961_v33  ;;  %v5239_v41 = vpop.f32.mrf.mxu0  ;;  %5533 = vmatprep.subr.bf16.mxu0 %v8966_v51  ;;  %v9018_v33 = vld [vmem:[#allocation5 + $0xda8] ss:$16 sps:$4 sm:$0xff]   ;;  %v9029_v54 = vld [vmem:[#allocation5 + $0xf8c] ss:$16 sps:$4 sm:$0xff]  }
 0x299   :  { %v5280_v56 = vpop.f32.mrf.mxu1  ;;  %5574 = vmatprep.subr.bf16.mxu1 %v8969_v53  ;;  %v9835_v58 = vadd.f32 %v5278_v38, %v5238_v55  ;;  %v5240_v59 = vadd.f32 %v5239_v41, %v9830_v44  ;;  %5563 = vmatprep.mubr.bf16.mxu0 %v9748_v48  ;;  %v8976_v44 = vld [vmem:[#allocation5 + $0xc88] ss:$16 sps:$4 sm:$0xff]   ;;  %v9026_v53 = vld [vmem:[#allocation5 + $0xd8c] ss:$16 sps:$4 sm:$0xff]  }
 0x29a   :  { %5604 = vmatprep.mubr.bf16.mxu1 %v9750_v50  ;;  %v5241_v42 = vpop.f32.mrf.mxu0  ;;  %v8979_v48 = vld [vmem:[#allocation5 + $0xe88] ss:$16 sps:$4 sm:$0xff]   ;;  %v8984_v50 = vld [vmem:[#allocation5 + $0xc6c] ss:$16 sps:$4 sm:$0xff]  }
 0x29b   :  { %v5282_v43 = vpop.f32.mrf.mxu1  ;;  %v9840_v26 = vadd.f32 %v5280_v56, %v5240_v59  ;;  %5534 = vmatpush1.bf16.msra.mxu0 %v8964_v37  ;;  %v9021_v51 = vld [vmem:[#allocation5 + $0xfa8] ss:$16 sps:$4 sm:$0xff]   ;;  %v9032_v37 = vld [vmem:[#allocation5 + $0xd6c] ss:$16 sps:$4 sm:$0xff]  }
 0x29c   :  { %5575 = vmatpush1.bf16.msra.mxu1 %v8967_v40  ;;  %v5242_v62 = vpop.f32.mrf.mxu0  ;;  %5535 = vmatprep.subr.bf16.mxu0 %v8972_v49  ;;  %v9024_v38 = vld [vmem:[#allocation5 + $0xd88] ss:$16 sps:$4 sm:$0xff]   ;;  %v9035_v40 = vld [vmem:[#allocation5 + $0xf6c] ss:$16 sps:$4 sm:$0xff]  }
 0x29d   :  { %v5283_v63 = vpop.f32.mrf.mxu1  ;;  %5576 = vmatprep.subr.bf16.mxu1 %v8975_v52  ;;  %v9027_v55 = vld [vmem:[#allocation5 + $0xf88] ss:$16 sps:$4 sm:$0xff]   ;;  %v9038_v49 = vld [vmem:[#allocation5 + $0xd4c] ss:$16 sps:$4 sm:$0xff]  }
 0x29e   :  { %v9030_v41 = vld [vmem:[#allocation5 + $0xd68] ss:$16 sps:$4 sm:$0xff]   ;;  %v9041_v52 = vld [vmem:[#allocation5 + $0xf4c] ss:$16 sps:$4 sm:$0xff]  }
 0x29f   :  { %5536 = vmatpush1.bf16.msra.mxu0 %v8970_v60  ;;  %v9033_v56 = vld [vmem:[#allocation5 + $0xf68] ss:$16 sps:$4 sm:$0xff]   ;;  %v9044_v43 = vld [vmem:[#allocation5 + $0xd2c] ss:$16 sps:$4 sm:$0xff]  }
 0x2a0   :  { %5577 = vmatpush1.bf16.msra.mxu1 %v8973_v61  ;;  %5537 = vmatprep.subr.bf16.mxu0 %v8978_v1  ;;  %v9036_v59 = vld [vmem:[#allocation5 + $0xd48] ss:$16 sps:$4 sm:$0xff]   ;;  %v9047_v60 = vld [vmem:[#allocation5 + $0xf2c] ss:$16 sps:$4 sm:$0xff]  }
 0x2a1   :  { %5578 = vmatprep.subr.bf16.mxu1 %v8981_v2  ;;  %v9039_v42 = vld [vmem:[#allocation5 + $0xf48] ss:$16 sps:$4 sm:$0xff]   ;;  %v9050_v63 = vld [vmem:[#allocation5 + $0xd0c] ss:$16 sps:$4 sm:$0xff]  }
 0x2a2   :  { %v9042_v61 = vld [vmem:[#allocation5 + $0xd28] ss:$16 sps:$4 sm:$0xff]   ;;  %v9053_v1 = vld [vmem:[#allocation5 + $0xf0c] ss:$16 sps:$4 sm:$0xff]  }
 0x2a3   :  { %5538 = vmatpush1.bf16.msra.mxu0 %v8976_v44  ;;  %v9045_v62 = vld [vmem:[#allocation5 + $0xf28] ss:$16 sps:$4 sm:$0xff]  }
 0x2a4   :  { %5579 = vmatpush1.bf16.msra.mxu1 %v8979_v48  ;;  %5539 = vmatprep.subr.bf16.mxu0 %v8984_v50  ;;  %v9048_v2 = vld [vmem:[#allocation5 + $0xd08] ss:$16 sps:$4 sm:$0xff]   ;;  %v943_v48 = vsub.s32 2, %v9756_v57  ;;  %v9056_v50 = vld [vmem:[#allocation5 + $0x10ec] ss:$16 sps:$4 sm:$0xff]  }
 0x2a5   :  { %5580 = vmatprep.subr.bf16.mxu1 %v8987_v3  ;;  %v9051_v44 = vld [vmem:[#allocation5 + $0xf08] ss:$16 sps:$4 sm:$0xff]   ;;  %v9059_v3 = vld [vmem:[#allocation5 + $0x12ec] ss:$16 sps:$4 sm:$0xff]  }
 0x2a7   :  { %5540 = vmatpush1.bf16.msra.mxu0 %v8982_v4  ;;  %v947_v4 = vsub.s32 3, %v9756_v57 }
 0x2a8   :  { %5581 = vmatpush1.bf16.msra.mxu1 %v8985_v6  ;;  %5541 = vmatprep.subr.bf16.mxu0 %v8990_v13  ;;  %v9470_v6 = vld [vmem:[#allocation7] sm:$0xf] }
 0x2a9   :  { %5582 = vmatprep.subr.bf16.mxu1 %v8993_v14  ;;  %v944_v13 = vrot.slane %v9470_v6, %v943_v48  ;;  %v9054_v14 = vld [vmem:[#allocation5 + $0x10e8] ss:$16 sps:$4 sm:$0xff]  }
 0x2ab   :  { %5542 = vmatpush1.bf16.msra.mxu0 %v8988_v23  ;;  %v9057_v23 = vld [vmem:[#allocation5 + $0x12e8] ss:$16 sps:$4 sm:$0xff]  }
 0x2ac   :  { %5583 = vmatpush1.bf16.msra.mxu1 %v8991_v24  ;;  %5543 = vmatprep.subr.bf16.mxu0 %v8996_v25  ;;  %v9062_v24 = vld [vmem:[#allocation5 + $0x10cc] ss:$16 sps:$4 sm:$0xff]  }
 0x2ad   :  { %5584 = vmatprep.subr.bf16.mxu1 %v8999_v27  ;;  %v9065_v25 = vld [vmem:[#allocation5 + $0x12cc] ss:$16 sps:$4 sm:$0xff]   ;;  %v948_v27 = vrot.slane %v9470_v6, %v947_v4  ;;  %v9108_v6 = vld [vmem:[#allocation5 + $0x11c8] ss:$16 sps:$4 sm:$0xff]  }
 0x2af   :  { %5544 = vmatpush1.bf16.msra.mxu0 %v8994_v28 }
 0x2b0   :  { %5585 = vmatpush1.bf16.msra.mxu1 %v8997_v30  ;;  %5545 = vmatprep.subr.bf16.mxu0 %v9002_v20 }
 0x2b1   :  { %5586 = vmatprep.subr.bf16.mxu1 %v9005_v21  ;;  %v9060_v21 = vld [vmem:[#allocation5 + $0x10c8] ss:$16 sps:$4 sm:$0xff]  }
 0x2b3   :  { %5546 = vmatpush1.bf16.msra.mxu0 %v9000_v34  ;;  %v9063_v34 = vld [vmem:[#allocation5 + $0x12c8] ss:$16 sps:$4 sm:$0xff]  }
 0x2b4   :  { %5587 = vmatpush1.bf16.msra.mxu1 %v9003_v35  ;;  %5547 = vmatprep.subr.bf16.mxu0 %v9008_v36 }
 0x2b5   :  { %5588 = vmatprep.subr.bf16.mxu1 %v9011_v39  ;;  %v9068_v39 = vld [vmem:[#allocation5 + $0x10ac] ss:$16 sps:$4 sm:$0xff]  }
 0x2b7   :  { %5548 = vmatpush2.bf16.msra.mxu0 %v9006_v31  ;;  %v9071_v31 = vld [vmem:[#allocation5 + $0x12ac] ss:$16 sps:$4 sm:$0xff]  }
 0x2b8   :  { %5589 = vmatpush2.bf16.msra.mxu1 %v9009_v45  ;;  %5549 = vmatprep.subr.bf16.mxu0 %v9014_v29 }
 0x2b9   :  { %5590 = vmatprep.subr.bf16.mxu1 %v9017_v32 }
 0x2bb   :  { %5550 = vmatpush2.bf16.msra.mxu0 %v9012_v46  ;;  %v9066_v46 = vld [vmem:[#allocation5 + $0x10a8] ss:$16 sps:$4 sm:$0xff]  }
 0x2bc   :  { %5591 = vmatpush2.bf16.msra.mxu1 %v9015_v47  ;;  %5551 = vmatprep.subr.bf16.mxu0 %v9020_v8  ;;  %v9069_v47 = vld [vmem:[#allocation5 + $0x12a8] ss:$16 sps:$4 sm:$0xff]  }
 0x2bd   :  { %5592 = vmatprep.subr.bf16.mxu1 %v9023_v9 }
 0x2bf   :  { %5552 = vmatpush2.bf16.msra.mxu0 %v9018_v33  ;;  %v9074_v33 = vld [vmem:[#allocation5 + $0x108c] ss:$16 sps:$4 sm:$0xff]  }
 0x2c0   :  { %5593 = vmatpush2.bf16.msra.mxu1 %v9021_v51  ;;  %5553 = vmatprep.subr.bf16.mxu0 %v9026_v53  ;;  %v9077_v51 = vld [vmem:[#allocation5 + $0x128c] ss:$16 sps:$4 sm:$0xff]   ;;  %v9072_v53 = vld [vmem:[#allocation5 + $0x1088] ss:$16 sps:$4 sm:$0xff]  }
 0x2c1   :  { %5594 = vmatprep.subr.bf16.mxu1 %v9029_v54  ;;  %v9083_v54 = vld [vmem:[#allocation5 + $0x126c] ss:$16 sps:$4 sm:$0xff]  }
 0x2c3   :  { %5554 = vmatpush2.bf16.msra.mxu0 %v9024_v38  ;;  %v9078_v38 = vld [vmem:[#allocation5 + $0x1068] ss:$16 sps:$4 sm:$0xff]  }
 0x2c4   :  { %5595 = vmatpush2.bf16.msra.mxu1 %v9027_v55  ;;  %5555 = vmatprep.subr.bf16.mxu0 %v9032_v37  ;;  %v9081_v55 = vld [vmem:[#allocation5 + $0x1268] ss:$16 sps:$4 sm:$0xff]   ;;  %v9086_v37 = vld [vmem:[#allocation5 + $0x104c] ss:$16 sps:$4 sm:$0xff]  }
 0x2c5   :  { %5596 = vmatprep.subr.bf16.mxu1 %v9035_v40  ;;  %v9089_v40 = vld [vmem:[#allocation5 + $0x124c] ss:$16 sps:$4 sm:$0xff]  }
 0x2c7   :  { %5556 = vmatpush2.bf16.msra.mxu0 %v9030_v41  ;;  %v9084_v41 = vld [vmem:[#allocation5 + $0x1048] ss:$16 sps:$4 sm:$0xff]  }
 0x2c8   :  { %5597 = vmatpush2.bf16.msra.mxu1 %v9033_v56  ;;  %5557 = vmatprep.subr.bf16.mxu0 %v9038_v49  ;;  %v9087_v56 = vld [vmem:[#allocation5 + $0x1248] ss:$16 sps:$4 sm:$0xff]   ;;  %v9092_v49 = vld [vmem:[#allocation5 + $0x102c] ss:$16 sps:$4 sm:$0xff]  }
 0x2c9   :  { %5598 = vmatprep.subr.bf16.mxu1 %v9041_v52  ;;  %v9095_v52 = vld [vmem:[#allocation5 + $0x122c] ss:$16 sps:$4 sm:$0xff]  }
 0x2cb   :  { %5558 = vmatpush2.bf16.msra.mxu0 %v9036_v59  ;;  %v9090_v59 = vld [vmem:[#allocation5 + $0x1028] ss:$16 sps:$4 sm:$0xff]  }
 0x2cc   :  { %5599 = vmatpush2.bf16.msra.mxu1 %v9039_v42  ;;  %5559 = vmatprep.subr.bf16.mxu0 %v9044_v43  ;;  %v9093_v42 = vld [vmem:[#allocation5 + $0x1228] ss:$16 sps:$4 sm:$0xff]   ;;  %v9098_v43 = vld [vmem:[#allocation5 + $0x100c] ss:$16 sps:$4 sm:$0xff]  }
 0x2cd   :  { %5600 = vmatprep.subr.bf16.mxu1 %v9047_v60  ;;  %v9101_v60 = vld [vmem:[#allocation5 + $0x120c] ss:$16 sps:$4 sm:$0xff]  }
 0x2cf   :  { %5560 = vmatpush2.bf16.msra.mxu0 %v9042_v61  ;;  %v9096_v61 = vld [vmem:[#allocation5 + $0x1008] ss:$16 sps:$4 sm:$0xff]  }
 0x2d0   :  { %5601 = vmatpush2.bf16.msra.mxu1 %v9045_v62  ;;  %5561 = vmatprep.subr.bf16.mxu0 %v9050_v63  ;;  %v9099_v62 = vld [vmem:[#allocation5 + $0x1208] ss:$16 sps:$4 sm:$0xff]   ;;  %v9104_v63 = vld [vmem:[#allocation5 + $0x11ec] ss:$16 sps:$4 sm:$0xff]  }
 0x2d1   :  { %5602 = vmatprep.subr.bf16.mxu1 %v9053_v1  ;;  %v9107_v1 = vld [vmem:[#allocation5 + $0x13ec] ss:$16 sps:$4 sm:$0xff]  }
 0x2d3   :  { %5562 = vmatpush2.bf16.msra.mxu0 %v9048_v2  ;;  %v9102_v2 = vld [vmem:[#allocation5 + $0x11e8] ss:$16 sps:$4 sm:$0xff]  }
 0x2d4   :  { %5603 = vmatpush2.bf16.msra.mxu1 %v9051_v44  ;;  %5613 = vmatprep.subr.bf16.mxu0 %v9056_v50  ;;  %v9105_v44 = vld [vmem:[#allocation5 + $0x13e8] ss:$16 sps:$4 sm:$0xff]   ;;  %v9110_v50 = vld [vmem:[#allocation5 + $0x11cc] ss:$16 sps:$4 sm:$0xff]  }
 0x2d5   :  { %5654 = vmatprep.subr.bf16.mxu1 %v9059_v3  ;;  %v9113_v3 = vld [vmem:[#allocation5 + $0x13cc] ss:$16 sps:$4 sm:$0xff]  }
 0x2d6   :  { %v5319_v28 = vpop.f32.mrf.mxu0  ;;  %5564 = vmatmul.mubr.bf16.vlgmr.msra.gmra.mxu0 %v9760_v7 }
 0x2d7   :  { %v5360_v30 = vpop.f32.mrf.mxu1  ;;  %5605 = vmatmul.mubr.bf16.vlgmr.msra.gmra.mxu1 %v9762_v10  ;;  %v5320_v20 = vadd.f32 %v5319_v28, %v944_v13  ;;  %5614 = vmatpush1.bf16.msra.mxu0 %v9054_v14  ;;  %v9111_v13 = vld [vmem:[#allocation5 + $0x13c8] ss:$16 sps:$4 sm:$0xff]   ;;  %v9116_v14 = vld [vmem:[#allocation5 + $0x11ac] ss:$16 sps:$4 sm:$0xff]  }
 0x2d8   :  { %5655 = vmatpush1.bf16.msra.mxu1 %v9057_v23  ;;  %v5321_v35 = vpop.f32.mrf.mxu0  ;;  %5615 = vmatprep.subr.bf16.mxu0 %v9062_v24  ;;  %v9119_v23 = vld [vmem:[#allocation5 + $0x13ac] ss:$16 sps:$4 sm:$0xff]   ;;  %v9114_v24 = vld [vmem:[#allocation5 + $0x11a8] ss:$16 sps:$4 sm:$0xff]  }
 0x2d9   :  { %v5362_v36 = vpop.f32.mrf.mxu1  ;;  %5656 = vmatprep.subr.bf16.mxu1 %v9065_v25  ;;  %v9850_v45 = vadd.f32 %v5360_v30, %v5320_v20  ;;  %v5322_v29 = vadd.f32 %v5321_v35, %v948_v27  ;;  %5645 = vmatprep.mubr.bf16.mxu0 %v9768_v17  ;;  %v9075_v17 = vld [vmem:[#allocation5 + $0x1288] ss:$16 sps:$4 sm:$0xff]   ;;  %v9122_v27 = vld [vmem:[#allocation5 + $0x118c] ss:$16 sps:$4 sm:$0xff]  }
 0x2da   :  { %5686 = vmatprep.mubr.bf16.mxu1 %v9770_v18  ;;  %v5323_v7 = vpop.f32.mrf.mxu0  ;;  %v9080_v18 = vld [vmem:[#allocation5 + $0x106c] ss:$16 sps:$4 sm:$0xff]   ;;  %v9117_v25 = vld [vmem:[#allocation5 + $0x13a8] ss:$16 sps:$4 sm:$0xff]  }
 0x2db   :  { %v5364_v10 = vpop.f32.mrf.mxu1  ;;  %v9854_v32 = vadd.f32 %v5362_v36, %v5322_v29  ;;  %5616 = vmatpush1.bf16.msra.mxu0 %v9060_v21  ;;  %v9125_v28 = vld [vmem:[#allocation5 + $0x138c] ss:$16 sps:$4 sm:$0xff]   ;;  %v9120_v30 = vld [vmem:[#allocation5 + $0x1188] ss:$16 sps:$4 sm:$0xff]  }
 0x2dc   :  { %5657 = vmatpush1.bf16.msra.mxu1 %v9063_v34  ;;  %v5324_v8 = vpop.f32.mrf.mxu0  ;;  %5617 = vmatprep.subr.bf16.mxu0 %v9068_v39  ;;  %v9123_v20 = vld [vmem:[#allocation5 + $0x1388] ss:$16 sps:$4 sm:$0xff]   ;;  %v9128_v21 = vld [vmem:[#allocation5 + $0x116c] ss:$16 sps:$4 sm:$0xff]  }
 0x2dd   :  { %v5365_v9 = vpop.f32.mrf.mxu1  ;;  %5658 = vmatprep.subr.bf16.mxu1 %v9071_v31  ;;  %v9131_v34 = vld [vmem:[#allocation5 + $0x136c] ss:$16 sps:$4 sm:$0xff]   ;;  %v9126_v35 = vld [vmem:[#allocation5 + $0x1168] ss:$16 sps:$4 sm:$0xff]  }
 0x2de   :  { %v9129_v36 = vld [vmem:[#allocation5 + $0x1368] ss:$16 sps:$4 sm:$0xff]   ;;  %v9134_v39 = vld [vmem:[#allocation5 + $0x114c] ss:$16 sps:$4 sm:$0xff]  }
 0x2df   :  { %5618 = vmatpush1.bf16.msra.mxu0 %v9066_v46  ;;  %v9137_v31 = vld [vmem:[#allocation5 + $0x134c] ss:$16 sps:$4 sm:$0xff]   ;;  %v9132_v29 = vld [vmem:[#allocation5 + $0x1148] ss:$16 sps:$4 sm:$0xff]  }
 0x2e0   :  { %5659 = vmatpush1.bf16.msra.mxu1 %v9069_v47  ;;  %5619 = vmatprep.subr.bf16.mxu0 %v9074_v33  ;;  %v9135_v7 = vld [vmem:[#allocation5 + $0x1348] ss:$16 sps:$4 sm:$0xff]   ;;  %v9140_v10 = vld [vmem:[#allocation5 + $0x112c] ss:$16 sps:$4 sm:$0xff]  }
 0x2e1   :  { %5660 = vmatprep.subr.bf16.mxu1 %v9077_v51  ;;  %v9143_v46 = vld [vmem:[#allocation5 + $0x132c] ss:$16 sps:$4 sm:$0xff]   ;;  %v9138_v47 = vld [vmem:[#allocation5 + $0x1128] ss:$16 sps:$4 sm:$0xff]  }
 0x2e2   :  { %v9141_v8 = vld [vmem:[#allocation5 + $0x1328] ss:$16 sps:$4 sm:$0xff]   ;;  %v9146_v9 = vld [vmem:[#allocation5 + $0x110c] ss:$16 sps:$4 sm:$0xff]  }
 0x2e3   :  { %5620 = vmatpush1.bf16.msra.mxu0 %v9072_v53  ;;  %v9149_v33 = vld [vmem:[#allocation5 + $0x130c] ss:$16 sps:$4 sm:$0xff]   ;;  %v9144_v51 = vld [vmem:[#allocation5 + $0x1108] ss:$16 sps:$4 sm:$0xff]  }
 0x2e4   :  { %5661 = vmatpush1.bf16.msra.mxu1 %v9075_v17  ;;  %5621 = vmatprep.subr.bf16.mxu0 %v9080_v18  ;;  %v9147_v53 = vld [vmem:[#allocation5 + $0x1308] ss:$16 sps:$4 sm:$0xff]   ;;  %v9152_v17 = vld [vmem:[#allocation5 + $0x14ec] ss:$16 sps:$4 sm:$0xff]  }
 0x2e5   :  { %5662 = vmatprep.subr.bf16.mxu1 %v9083_v54  ;;  %v9155_v18 = vld [vmem:[#allocation5 + $0x16ec] ss:$16 sps:$4 sm:$0xff]   ;;  %v9150_v54 = vld [vmem:[#allocation5 + $0x14e8] ss:$16 sps:$4 sm:$0xff]  }
 0x2e7   :  { %5622 = vmatpush1.bf16.msra.mxu0 %v9078_v38  ;;  %v9153_v38 = vld [vmem:[#allocation5 + $0x16e8] ss:$16 sps:$4 sm:$0xff]  }
 0x2e8   :  { %5663 = vmatpush1.bf16.msra.mxu1 %v9081_v55  ;;  %5623 = vmatprep.subr.bf16.mxu0 %v9086_v37  ;;  %v9158_v55 = vld [vmem:[#allocation5 + $0x14cc] ss:$16 sps:$4 sm:$0xff]  }
 0x2e9   :  { %5664 = vmatprep.subr.bf16.mxu1 %v9089_v40  ;;  %v9161_v37 = vld [vmem:[#allocation5 + $0x16cc] ss:$16 sps:$4 sm:$0xff]  }
 0x2eb   :  { %5624 = vmatpush1.bf16.msra.mxu0 %v9084_v41 }
 0x2ec   :  { %5665 = vmatpush1.bf16.msra.mxu1 %v9087_v56  ;;  %5625 = vmatprep.subr.bf16.mxu0 %v9092_v49  ;;  %v9156_v49 = vld [vmem:[#allocation5 + $0x14c8] ss:$16 sps:$4 sm:$0xff]  }
 0x2ed   :  { %5666 = vmatprep.subr.bf16.mxu1 %v9095_v52  ;;  %v9159_v52 = vld [vmem:[#allocation5 + $0x16c8] ss:$16 sps:$4 sm:$0xff]  }
 0x2ef   :  { %5626 = vmatpush1.bf16.msra.mxu0 %v9090_v59 }
 0x2f0   :  { %5667 = vmatpush1.bf16.msra.mxu1 %v9093_v42  ;;  %5627 = vmatprep.subr.bf16.mxu0 %v9098_v43  ;;  %v9164_v43 = vld [vmem:[#allocation5 + $0x14ac] ss:$16 sps:$4 sm:$0xff]  }
 0x2f1   :  { %5668 = vmatprep.subr.bf16.mxu1 %v9101_v60  ;;  %v9167_v60 = vld [vmem:[#allocation5 + $0x16ac] ss:$16 sps:$4 sm:$0xff]  }
 0x2f3   :  { %5628 = vmatpush1.bf16.msra.mxu0 %v9096_v61 }
 0x2f4   :  { %5669 = vmatpush1.bf16.msra.mxu1 %v9099_v62  ;;  %5629 = vmatprep.subr.bf16.mxu0 %v9104_v63  ;;  %v9162_v63 = vld [vmem:[#allocation5 + $0x14a8] ss:$16 sps:$4 sm:$0xff]  }
 0x2f5   :  { %5670 = vmatprep.subr.bf16.mxu1 %v9107_v1  ;;  %v9165_v1 = vld [vmem:[#allocation5 + $0x16a8] ss:$16 sps:$4 sm:$0xff]  }
 0x2f7   :  { %5630 = vmatpush2.bf16.msra.mxu0 %v9102_v2 }
 0x2f8   :  { %5671 = vmatpush2.bf16.msra.mxu1 %v9105_v44  ;;  %5631 = vmatprep.subr.bf16.mxu0 %v9110_v50  ;;  %v9170_v50 = vld [vmem:[#allocation5 + $0x148c] ss:$16 sps:$4 sm:$0xff]  }
 0x2f9   :  { %5672 = vmatprep.subr.bf16.mxu1 %v9113_v3  ;;  %v9173_v3 = vld [vmem:[#allocation5 + $0x168c] ss:$16 sps:$4 sm:$0xff]  }
 0x2fb   :  { %5632 = vmatpush2.bf16.msra.mxu0 %v9108_v6  ;;  %v9179_v6 = vld [vmem:[#allocation5 + $0x166c] ss:$16 sps:$4 sm:$0xff]  }
 0x2fc   :  { %5673 = vmatpush2.bf16.msra.mxu1 %v9111_v13  ;;  %5633 = vmatprep.subr.bf16.mxu0 %v9116_v14  ;;  %v9174_v13 = vld [vmem:[#allocation5 + $0x1468] ss:$16 sps:$4 sm:$0xff]  }
 0x2fd   :  { %5674 = vmatprep.subr.bf16.mxu1 %v9119_v23  ;;  %v9177_v14 = vld [vmem:[#allocation5 + $0x1668] ss:$16 sps:$4 sm:$0xff]   ;;  %v9182_v23 = vld [vmem:[#allocation5 + $0x144c] ss:$16 sps:$4 sm:$0xff]  }
 0x2ff   :  { %5634 = vmatpush2.bf16.msra.mxu0 %v9114_v24  ;;  %v9185_v24 = vld [vmem:[#allocation5 + $0x164c] ss:$16 sps:$4 sm:$0xff]  }
 0x300   :  { %5675 = vmatpush2.bf16.msra.mxu1 %v9117_v25  ;;  %5635 = vmatprep.subr.bf16.mxu0 %v9122_v27  ;;  %v9180_v25 = vld [vmem:[#allocation5 + $0x1448] ss:$16 sps:$4 sm:$0xff]  }
 0x301   :  { %5676 = vmatprep.subr.bf16.mxu1 %v9125_v28  ;;  %v9183_v27 = vld [vmem:[#allocation5 + $0x1648] ss:$16 sps:$4 sm:$0xff]   ;;  %v9188_v28 = vld [vmem:[#allocation5 + $0x142c] ss:$16 sps:$4 sm:$0xff]  }
 0x303   :  { %5636 = vmatpush2.bf16.msra.mxu0 %v9120_v30  ;;  %v9191_v30 = vld [vmem:[#allocation5 + $0x162c] ss:$16 sps:$4 sm:$0xff]  }
 0x304   :  { %5677 = vmatpush2.bf16.msra.mxu1 %v9123_v20  ;;  %5637 = vmatprep.subr.bf16.mxu0 %v9128_v21  ;;  %v9186_v20 = vld [vmem:[#allocation5 + $0x1428] ss:$16 sps:$4 sm:$0xff]  }
 0x305   :  { %5678 = vmatprep.subr.bf16.mxu1 %v9131_v34  ;;  %v9189_v21 = vld [vmem:[#allocation5 + $0x1628] ss:$16 sps:$4 sm:$0xff]   ;;  %v9194_v34 = vld [vmem:[#allocation5 + $0x140c] ss:$16 sps:$4 sm:$0xff]  }
 0x307   :  { %5638 = vmatpush2.bf16.msra.mxu0 %v9126_v35  ;;  %v9197_v35 = vld [vmem:[#allocation5 + $0x160c] ss:$16 sps:$4 sm:$0xff]  }
 0x308   :  { %5679 = vmatpush2.bf16.msra.mxu1 %v9129_v36  ;;  %5639 = vmatprep.subr.bf16.mxu0 %v9134_v39  ;;  %v9192_v36 = vld [vmem:[#allocation5 + $0x1408] ss:$16 sps:$4 sm:$0xff]  }
 0x309   :  { %5680 = vmatprep.subr.bf16.mxu1 %v9137_v31  ;;  %v9195_v39 = vld [vmem:[#allocation5 + $0x1608] ss:$16 sps:$4 sm:$0xff]   ;;  %v9200_v31 = vld [vmem:[#allocation5 + $0x15ec] ss:$16 sps:$4 sm:$0xff]  }
 0x30b   :  { %5640 = vmatpush2.bf16.msra.mxu0 %v9132_v29  ;;  %v9203_v29 = vld [vmem:[#allocation5 + $0x17ec] ss:$16 sps:$4 sm:$0xff]  }
 0x30c   :  { %5681 = vmatpush2.bf16.msra.mxu1 %v9135_v7  ;;  %5641 = vmatprep.subr.bf16.mxu0 %v9140_v10  ;;  %v9198_v7 = vld [vmem:[#allocation5 + $0x15e8] ss:$16 sps:$4 sm:$0xff]  }
 0x30d   :  { %5682 = vmatprep.subr.bf16.mxu1 %v9143_v46  ;;  %v9201_v10 = vld [vmem:[#allocation5 + $0x17e8] ss:$16 sps:$4 sm:$0xff]   ;;  %v9206_v46 = vld [vmem:[#allocation5 + $0x15cc] ss:$16 sps:$4 sm:$0xff]  }
 0x30f   :  { %5642 = vmatpush2.bf16.msra.mxu0 %v9138_v47  ;;  %v9209_v47 = vld [vmem:[#allocation5 + $0x17cc] ss:$16 sps:$4 sm:$0xff]  }
 0x310   :  { %5683 = vmatpush2.bf16.msra.mxu1 %v9141_v8  ;;  %5643 = vmatprep.subr.bf16.mxu0 %v9146_v9  ;;  %v9204_v8 = vld [vmem:[#allocation5 + $0x15c8] ss:$16 sps:$4 sm:$0xff]  }
 0x311   :  { %5684 = vmatprep.subr.bf16.mxu1 %v9149_v33  ;;  %v9207_v9 = vld [vmem:[#allocation5 + $0x17c8] ss:$16 sps:$4 sm:$0xff]   ;;  %v9212_v33 = vld [vmem:[#allocation5 + $0x15ac] ss:$16 sps:$4 sm:$0xff]  }
 0x313   :  { %5644 = vmatpush2.bf16.msra.mxu0 %v9144_v51  ;;  %v9215_v51 = vld [vmem:[#allocation5 + $0x17ac] ss:$16 sps:$4 sm:$0xff]  }
 0x314   :  { %5685 = vmatpush2.bf16.msra.mxu1 %v9147_v53  ;;  %5695 = vmatprep.subr.bf16.mxu0 %v9152_v17  ;;  %v9210_v53 = vld [vmem:[#allocation5 + $0x15a8] ss:$16 sps:$4 sm:$0xff]  }
 0x315   :  { %5736 = vmatprep.subr.bf16.mxu1 %v9155_v18  ;;  %v9213_v17 = vld [vmem:[#allocation5 + $0x17a8] ss:$16 sps:$4 sm:$0xff]   ;;  %v9218_v18 = vld [vmem:[#allocation5 + $0x158c] ss:$16 sps:$4 sm:$0xff]  }
 0x316   :  { %v5401_v40 = vpop.f32.mrf.mxu0  ;;  %5646 = vmatmul.mubr.bf16.vlgmr.msra.gmra.mxu0 %v9780_v11 }
 0x317   :  { %v5442_v41 = vpop.f32.mrf.mxu1  ;;  %5687 = vmatmul.mubr.bf16.vlgmr.msra.gmra.mxu1 %v9782_v12  ;;  %v5402_v56 = vadd.f32 %v5401_v40, %v9850_v45  ;;  %5696 = vmatpush1.bf16.msra.mxu0 %v9150_v54  ;;  %v9221_v54 = vld [vmem:[#allocation5 + $0x178c] ss:$16 sps:$4 sm:$0xff]  }
 0x318   :  { %5737 = vmatpush1.bf16.msra.mxu1 %v9153_v38  ;;  %v5403_v59 = vpop.f32.mrf.mxu0  ;;  %5697 = vmatprep.subr.bf16.mxu0 %v9158_v55  ;;  %v9216_v38 = vld [vmem:[#allocation5 + $0x1588] ss:$16 sps:$4 sm:$0xff]   ;;  %v9227_v40 = vld [vmem:[#allocation5 + $0x176c] ss:$16 sps:$4 sm:$0xff]  }
 0x319   :  { %v5444_v42 = vpop.f32.mrf.mxu1  ;;  %5738 = vmatprep.subr.bf16.mxu1 %v9161_v37  ;;  %v9859_v61 = vadd.f32 %v5442_v41, %v5402_v56  ;;  %v5404_v62 = vadd.f32 %v5403_v59, %v9854_v32  ;;  %5727 = vmatprep.mubr.bf16.mxu0 %v9784_v19  ;;  %v9168_v32 = vld [vmem:[#allocation5 + $0x1488] ss:$16 sps:$4 sm:$0xff]   ;;  %v9224_v37 = vld [vmem:[#allocation5 + $0x156c] ss:$16 sps:$4 sm:$0xff]  }
 0x31a   :  { %5768 = vmatprep.mubr.bf16.mxu1 %v9786_v22  ;;  %v5405_v11 = vpop.f32.mrf.mxu0  ;;  %v9171_v19 = vld [vmem:[#allocation5 + $0x1688] ss:$16 sps:$4 sm:$0xff]   ;;  %v9176_v22 = vld [vmem:[#allocation5 + $0x146c] ss:$16 sps:$4 sm:$0xff]  }
 0x31b   :  { %v5446_v12 = vpop.f32.mrf.mxu1  ;;  %v9864_v45 = vadd.f32 %v5444_v42, %v5404_v62  ;;  %5698 = vmatpush1.bf16.msra.mxu0 %v9156_v49  ;;  %v9219_v55 = vld [vmem:[#allocation5 + $0x1788] ss:$16 sps:$4 sm:$0xff]   ;;  %v9230_v49 = vld [vmem:[#allocation5 + $0x154c] ss:$16 sps:$4 sm:$0xff]  }
 0x31c   :  { %5739 = vmatpush1.bf16.msra.mxu1 %v9159_v52  ;;  %v5406_v2 = vpop.f32.mrf.mxu0  ;;  %5699 = vmatprep.subr.bf16.mxu0 %v9164_v43  ;;  %v9222_v41 = vld [vmem:[#allocation5 + $0x1568] ss:$16 sps:$4 sm:$0xff]   ;;  %v9233_v52 = vld [vmem:[#allocation5 + $0x174c] ss:$16 sps:$4 sm:$0xff]  }
 0x31d   :  { %v5447_v44 = vpop.f32.mrf.mxu1  ;;  %5740 = vmatprep.subr.bf16.mxu1 %v9167_v60  ;;  %v9225_v56 = vld [vmem:[#allocation5 + $0x1768] ss:$16 sps:$4 sm:$0xff]   ;;  %v9236_v43 = vld [vmem:[#allocation5 + $0x152c] ss:$16 sps:$4 sm:$0xff]  }
 0x31e   :  { %v9228_v59 = vld [vmem:[#allocation5 + $0x1548] ss:$16 sps:$4 sm:$0xff]   ;;  %v9239_v60 = vld [vmem:[#allocation5 + $0x172c] ss:$16 sps:$4 sm:$0xff]  }
 0x31f   :  { %5700 = vmatpush1.bf16.msra.mxu0 %v9162_v63  ;;  %v9231_v42 = vld [vmem:[#allocation5 + $0x1748] ss:$16 sps:$4 sm:$0xff]   ;;  %v9242_v12 = vld [vmem:[#allocation5 + $0x150c] ss:$16 sps:$4 sm:$0xff]  }
 0x320   :  { %5741 = vmatpush1.bf16.msra.mxu1 %v9165_v1  ;;  %5701 = vmatprep.subr.bf16.mxu0 %v9170_v50  ;;  %v9234_v62 = vld [vmem:[#allocation5 + $0x1528] ss:$16 sps:$4 sm:$0xff]   ;;  %v9245_v63 = vld [vmem:[#allocation5 + $0x170c] ss:$16 sps:$4 sm:$0xff]   ;;  %v5778_v50 = vmax.f32 %v9840_v26, 0.0 }
 0x321   :  { %5742 = vmatprep.subr.bf16.mxu1 %v9173_v3  ;;  %v9237_v11 = vld [vmem:[#allocation5 + $0x1728] ss:$16 sps:$4 sm:$0xff]   ;;  %v9246_v3 = vld [vmem:[#allocation8 + $0xe0] ss:$16 sps:$4 sm:$0xff]  }
 0x322   :  { %v9240_v1 = vld [vmem:[#allocation5 + $0x1508] ss:$16 sps:$4 sm:$0xff]  }
 0x323   :  { %5702 = vmatpush1.bf16.msra.mxu0 %v9168_v32  ;;  %v9243_v2 = vld [vmem:[#allocation5 + $0x1708] ss:$16 sps:$4 sm:$0xff]  }
 0x324   :  { %5743 = vmatpush1.bf16.msra.mxu1 %v9171_v19  ;;  %5703 = vmatprep.subr.bf16.mxu0 %v9176_v22  ;;  %v9248_v44 = vld [vmem:[#allocation8 + $0xe4] ss:$16 sps:$4 sm:$0xff]   ;;  %v9867_v19 = vpack.c.bf16 %v5778_v50, %v5778_v50 }
 0x325   :  { %5744 = vmatprep.subr.bf16.mxu1 %v9179_v6  ;;  %v9251_v32 = vld [vmem:[#allocation8 + $0xc4] ss:$16 sps:$4 sm:$0xff]  }
 0x326   :  { %v9374_v50 = vld [vmem:[#allocation8 + $0x3a4] ss:$16 sps:$4 sm:$0xff]  }
 0x327   :  { %5704 = vmatpush1.bf16.msra.mxu0 %v9174_v13 }
 0x328   :  { %5745 = vmatpush1.bf16.msra.mxu1 %v9177_v14  ;;  %5705 = vmatprep.subr.bf16.mxu0 %v9182_v23  ;;  %v9249_v14 = vld [vmem:[#allocation8 + $0xc0] ss:$16 sps:$4 sm:$0xff]  }
 0x329   :  { %5746 = vmatprep.subr.bf16.mxu1 %v9185_v24  ;;  %v9254_v24 = vld [vmem:[#allocation8 + $0xa4] ss:$16 sps:$4 sm:$0xff]  }
 0x32b   :  { %5706 = vmatpush1.bf16.msra.mxu0 %v9180_v25 }
 0x32c   :  { %5747 = vmatpush1.bf16.msra.mxu1 %v9183_v27  ;;  %5707 = vmatprep.subr.bf16.mxu0 %v9188_v28 }
 0x32d   :  { %5748 = vmatprep.subr.bf16.mxu1 %v9191_v30 }
 0x32f   :  { %5708 = vmatpush1.bf16.msra.mxu0 %v9186_v20 }
 0x330   :  { %5749 = vmatpush1.bf16.msra.mxu1 %v9189_v21  ;;  %5709 = vmatprep.subr.bf16.mxu0 %v9194_v34  ;;  %v9257_v21 = vld [vmem:[#allocation8 + $0x84] ss:$16 sps:$4 sm:$0xff]   ;;  %v9342_v34 = vld [vmem:[#allocation8 + $0x2e0] ss:$16 sps:$4 sm:$0xff]  }
 0x331   :  { %5750 = vmatprep.subr.bf16.mxu1 %v9197_v35  ;;  %v9344_v35 = vld [vmem:[#allocation8 + $0x2e4] ss:$16 sps:$4 sm:$0xff]  }
 0x333   :  { %5710 = vmatpush1.bf16.msra.mxu0 %v9192_v36  ;;  %v9347_v36 = vld [vmem:[#allocation8 + $0x2c4] ss:$16 sps:$4 sm:$0xff]  }
 0x334   :  { %5751 = vmatpush1.bf16.msra.mxu1 %v9195_v39  ;;  %5711 = vmatprep.subr.bf16.mxu0 %v9200_v31  ;;  %v9255_v39 = vld [vmem:[#allocation8 + $0x80] ss:$16 sps:$4 sm:$0xff]  }
 0x335   :  { %5752 = vmatprep.subr.bf16.mxu1 %v9203_v29  ;;  %v9345_v31 = vld [vmem:[#allocation8 + $0x2c0] ss:$16 sps:$4 sm:$0xff]   ;;  %v9350_v29 = vld [vmem:[#allocation8 + $0x2a4] ss:$16 sps:$4 sm:$0xff]  }
 0x337   :  { %5712 = vmatpush2.bf16.msra.mxu0 %v9198_v7  ;;  %v9258_v7 = vld [vmem:[#allocation8 + $0x60] ss:$16 sps:$4 sm:$0xff]  }
 0x338   :  { %5753 = vmatpush2.bf16.msra.mxu1 %v9201_v10  ;;  %5713 = vmatprep.subr.bf16.mxu0 %v9206_v46  ;;  %v9348_v10 = vld [vmem:[#allocation8 + $0x2a0] ss:$16 sps:$4 sm:$0xff]   ;;  %v9263_v46 = vld [vmem:[#allocation8 + $0x44] ss:$16 sps:$4 sm:$0xff]  }
 0x339   :  { %5754 = vmatprep.subr.bf16.mxu1 %v9209_v47  ;;  %v9353_v47 = vld [vmem:[#allocation8 + $0x284] ss:$16 sps:$4 sm:$0xff]  }
 0x33b   :  { %5714 = vmatpush2.bf16.msra.mxu0 %v9204_v8  ;;  %v9261_v8 = vld [vmem:[#allocation8 + $0x40] ss:$16 sps:$4 sm:$0xff]  }
 0x33c   :  { %5755 = vmatpush2.bf16.msra.mxu1 %v9207_v9  ;;  %5715 = vmatprep.subr.bf16.mxu0 %v9212_v33  ;;  %v9351_v9 = vld [vmem:[#allocation8 + $0x280] ss:$16 sps:$4 sm:$0xff]   ;;  %v9266_v33 = vld [vmem:[#allocation8 + $0x24] ss:$16 sps:$4 sm:$0xff]  }
 0x33d   :  { %5756 = vmatprep.subr.bf16.mxu1 %v9215_v51  ;;  %v9356_v51 = vld [vmem:[#allocation8 + $0x264] ss:$16 sps:$4 sm:$0xff]  }
 0x33f   :  { %5716 = vmatpush2.bf16.msra.mxu0 %v9210_v53  ;;  %v9264_v53 = vld [vmem:[#allocation8 + $0x20] ss:$16 sps:$4 sm:$0xff]  }
 0x340   :  { %5757 = vmatpush2.bf16.msra.mxu1 %v9213_v17  ;;  %5717 = vmatprep.subr.bf16.mxu0 %v9218_v18  ;;  %v9354_v17 = vld [vmem:[#allocation8 + $0x260] ss:$16 sps:$4 sm:$0xff]   ;;  %v9269_v18 = vld [vmem:[#allocation8 + $0x4] ss:$16 sps:$4 sm:$0xff]  }
 0x341   :  { %5758 = vmatprep.subr.bf16.mxu1 %v9221_v54  ;;  %v9359_v54 = vld [vmem:[#allocation8 + $0x244] ss:$16 sps:$4 sm:$0xff]  }
 0x343   :  { %5718 = vmatpush2.bf16.msra.mxu0 %v9216_v38  ;;  %v9267_v38 = vld [vmem:[#allocation8] ss:$16 sps:$4 sm:$0xff]  }
 0x344   :  { %5759 = vmatpush2.bf16.msra.mxu1 %v9219_v55  ;;  %5719 = vmatprep.subr.bf16.mxu0 %v9224_v37  ;;  %v9357_v55 = vld [vmem:[#allocation8 + $0x240] ss:$16 sps:$4 sm:$0xff]   ;;  %v9272_v37 = vld [vmem:[#allocation8 + $0x1e4] ss:$16 sps:$4 sm:$0xff]  }
 0x345   :  { %5760 = vmatprep.subr.bf16.mxu1 %v9227_v40  ;;  %v9362_v40 = vld [vmem:[#allocation8 + $0x224] ss:$16 sps:$4 sm:$0xff]  }
 0x347   :  { %5720 = vmatpush2.bf16.msra.mxu0 %v9222_v41  ;;  %v9270_v41 = vld [vmem:[#allocation8 + $0x1e0] ss:$16 sps:$4 sm:$0xff]  }
 0x348   :  { %5761 = vmatpush2.bf16.msra.mxu1 %v9225_v56  ;;  %5721 = vmatprep.subr.bf16.mxu0 %v9230_v49  ;;  %v9360_v56 = vld [vmem:[#allocation8 + $0x220] ss:$16 sps:$4 sm:$0xff]   ;;  %v9275_v49 = vld [vmem:[#allocation8 + $0x1c4] ss:$16 sps:$4 sm:$0xff]  }
 0x349   :  { %5762 = vmatprep.subr.bf16.mxu1 %v9233_v52  ;;  %v9365_v52 = vld [vmem:[#allocation8 + $0x204] ss:$16 sps:$4 sm:$0xff]  }
 0x34b   :  { %5722 = vmatpush2.bf16.msra.mxu0 %v9228_v59  ;;  %v9273_v59 = vld [vmem:[#allocation8 + $0x1c0] ss:$16 sps:$4 sm:$0xff]  }
 0x34c   :  { %5763 = vmatpush2.bf16.msra.mxu1 %v9231_v42  ;;  %5723 = vmatprep.subr.bf16.mxu0 %v9236_v43  ;;  %v9363_v42 = vld [vmem:[#allocation8 + $0x200] ss:$16 sps:$4 sm:$0xff]   ;;  %v9278_v43 = vld [vmem:[#allocation8 + $0x1a4] ss:$16 sps:$4 sm:$0xff]  }
 0x34d   :  { %5764 = vmatprep.subr.bf16.mxu1 %v9239_v60  ;;  %v9368_v60 = vld [vmem:[#allocation8 + $0x3e4] ss:$16 sps:$4 sm:$0xff]  }
 0x34f   :  { %5724 = vmatpush2.bf16.msra.mxu0 %v9234_v62  ;;  %v9276_v62 = vld [vmem:[#allocation8 + $0x1a0] ss:$16 sps:$4 sm:$0xff]  }
 0x350   :  { %5765 = vmatpush2.bf16.msra.mxu1 %v9237_v11  ;;  %5725 = vmatprep.subr.bf16.mxu0 %v9242_v12  ;;  %v9366_v11 = vld [vmem:[#allocation8 + $0x3e0] ss:$16 sps:$4 sm:$0xff]   ;;  %v9281_v12 = vld [vmem:[#allocation8 + $0x184] ss:$16 sps:$4 sm:$0xff]  }
 0x351   :  { %5766 = vmatprep.subr.bf16.mxu1 %v9245_v63  ;;  %v9371_v63 = vld [vmem:[#allocation8 + $0x3c4] ss:$16 sps:$4 sm:$0xff]  }
 0x353   :  { %5726 = vmatpush2.bf16.msra.mxu0 %v9240_v1  ;;  %v9279_v1 = vld [vmem:[#allocation8 + $0x180] ss:$16 sps:$4 sm:$0xff]  }
 0x354   :  { %5767 = vmatpush2.bf16.msra.mxu1 %v9243_v2  ;;  %6575 = vmatprep.subr.bf16.mxu0 %v9248_v44  ;;  %v9369_v2 = vld [vmem:[#allocation8 + $0x3c0] ss:$16 sps:$4 sm:$0xff]   ;;  %v9284_v44 = vld [vmem:[#allocation8 + $0x164] ss:$16 sps:$4 sm:$0xff]  }
 0x355   :  { %6616 = vmatprep.subr.bf16.mxu1 %v9344_v35 }
 0x356   :  { %v5483_v22 = vpop.f32.mrf.mxu0  ;;  %5728 = vmatmul.mubr.bf16.vlgmr.msra.gmra.mxu0 %v9798_v15  ;;  %v9252_v15 = vld [vmem:[#allocation8 + $0xa0] ss:$16 sps:$4 sm:$0xff]  }
 0x357   :  { %v5524_v6 = vpop.f32.mrf.mxu1  ;;  %5769 = vmatmul.mubr.bf16.vlgmr.msra.gmra.mxu1 %v9800_v16  ;;  %v5484_v13 = vadd.f32 %v5483_v22, %v9859_v61  ;;  %6576 = vmatpush1.bf16.msra.mxu0 %v9246_v3  ;;  %v9282_v3 = vld [vmem:[#allocation8 + $0x160] ss:$16 sps:$4 sm:$0xff]   ;;  %v9287_v22 = vld [vmem:[#allocation8 + $0x144] ss:$16 sps:$4 sm:$0xff]  }
 0x358   :  { %6607 = vmatprep.mubr.bf16.mxu0 %v9867_v19  ;;  %v5485_v26 = vpop.f32.mrf.mxu0  ;;  %6577 = vmatprep.subr.bf16.mxu0 %v9251_v32  ;;  %v9372_v32 = vld [vmem:[#allocation8 + $0x3a0] ss:$16 sps:$4 sm:$0xff]  }
 0x359   :  { %v5526_v23 = vpop.f32.mrf.mxu1  ;;  %v9873_v25 = vadd.f32 %v5524_v6, %v5484_v13  ;;  %v5486_v27 = vadd.f32 %v5485_v26, %v9864_v45  ;;  %6617 = vmatpush1.bf16.msra.mxu1 %v9342_v34  ;;  %v9260_v45 = vld [vmem:[#allocation8 + $0x64] ss:$16 sps:$4 sm:$0xff]   ;;  %v9285_v13 = vld [vmem:[#allocation8 + $0x140] ss:$16 sps:$4 sm:$0xff]   ;;  %v9294_v34 = vld [vmem:[#allocation8 + $0xe8] ss:$16 sps:$4 sm:$0xff]  }
 0x35a   :  { %v5487_v28 = vpop.f32.mrf.mxu0  ;;  %6618 = vmatprep.subr.bf16.mxu1 %v9347_v36  ;;  %v9377_v6 = vld [vmem:[#allocation8 + $0x384] ss:$16 sps:$4 sm:$0xff]   ;;  %v9299_v36 = vld [vmem:[#allocation8 + $0xcc] ss:$16 sps:$4 sm:$0xff]  }
 0x35b   :  { %v5528_v30 = vpop.f32.mrf.mxu1  ;;  %v9876_v20 = vadd.f32 %v5526_v23, %v5486_v27  ;;  %6578 = vmatpush1.bf16.msra.mxu0 %v9249_v14  ;;  %v9375_v14 = vld [vmem:[#allocation8 + $0x380] ss:$16 sps:$4 sm:$0xff]   ;;  %v9290_v26 = vld [vmem:[#allocation8 + $0x124] ss:$16 sps:$4 sm:$0xff]  }
 0x35c   :  { %v5488_v16 = vpop.f32.mrf.mxu0  ;;  %6579 = vmatprep.subr.bf16.mxu0 %v9254_v24  ;;  %v9380_v23 = vld [vmem:[#allocation8 + $0x364] ss:$16 sps:$4 sm:$0xff]   ;;  %v9288_v24 = vld [vmem:[#allocation8 + $0x120] ss:$16 sps:$4 sm:$0xff]  }
 0x35d   :  { %v5529_v61 = vpop.f32.mrf.mxu1  ;;  %6619 = vmatpush1.bf16.msra.mxu1 %v9345_v31  ;;  %v9378_v27 = vld [vmem:[#allocation8 + $0x360] ss:$16 sps:$4 sm:$0xff]   ;;  %v9293_v28 = vld [vmem:[#allocation8 + $0x104] ss:$16 sps:$4 sm:$0xff]  }
 0x35e   :  { %6620 = vmatprep.subr.bf16.mxu1 %v9350_v29  ;;  %v9383_v30 = vld [vmem:[#allocation8 + $0x344] ss:$16 sps:$4 sm:$0xff]   ;;  %v9381_v16 = vld [vmem:[#allocation8 + $0x340] ss:$16 sps:$4 sm:$0xff]   ;;  %v5777_v61 = vmax.f32 %v9835_v58, 0.0 }
 0x35f   :  { %6580 = vmatpush1.bf16.msra.mxu0 %v9252_v15  ;;  %v9291_v15 = vld [vmem:[#allocation8 + $0x100] ss:$16 sps:$4 sm:$0xff]   ;;  %v9297_v58 = vld [vmem:[#allocation8 + $0xc8] ss:$16 sps:$4 sm:$0xff]   ;;  %v9386_v29 = vld [vmem:[#allocation8 + $0x324] ss:$16 sps:$4 sm:$0xff]  }
 0x360   :  { %6581 = vmatprep.subr.bf16.mxu0 %v9257_v21  ;;  %v9296_v21 = vld [vmem:[#allocation8 + $0xec] ss:$16 sps:$4 sm:$0xff]   ;;  %v9879_v35 = vpack.c.bf16 %v5777_v61, %v5777_v61 }
 0x361   :  { %6621 = vmatpush1.bf16.msra.mxu1 %v9348_v10 }
 0x362   :  { %6622 = vmatprep.subr.bf16.mxu1 %v9353_v47  ;;  %v9384_v47 = vld [vmem:[#allocation8 + $0x320] ss:$16 sps:$4 sm:$0xff]  }
 0x363   :  { %6582 = vmatpush1.bf16.msra.mxu0 %v9255_v39 }
 0x364   :  { %6583 = vmatprep.subr.bf16.mxu0 %v9260_v45 }
 0x365   :  { %6623 = vmatpush1.bf16.msra.mxu1 %v9351_v9 }
 0x366   :  { %6624 = vmatprep.subr.bf16.mxu1 %v9356_v51 }
 0x367   :  { %6584 = vmatpush1.bf16.msra.mxu0 %v9258_v7 }
 0x368   :  { %6585 = vmatprep.subr.bf16.mxu0 %v9263_v46  ;;  %v9302_v46 = vld [vmem:[#allocation8 + $0xac] ss:$16 sps:$4 sm:$0xff]  }
 0x369   :  { %6625 = vmatpush1.bf16.msra.mxu1 %v9354_v17 }
 0x36a   :  { %6626 = vmatprep.subr.bf16.mxu1 %v9359_v54  ;;  %v9305_v54 = vld [vmem:[#allocation8 + $0x8c] ss:$16 sps:$4 sm:$0xff]  }
 0x36b   :  { %6586 = vmatpush1.bf16.msra.mxu0 %v9261_v8 }
 0x36c   :  { %6587 = vmatprep.subr.bf16.mxu0 %v9266_v33 }
 0x36d   :  { %6627 = vmatpush1.bf16.msra.mxu1 %v9357_v55  ;;  %v9303_v55 = vld [vmem:[#allocation8 + $0x88] ss:$16 sps:$4 sm:$0xff]  }
 0x36e   :  { %6628 = vmatprep.subr.bf16.mxu1 %v9362_v40  ;;  %v9306_v40 = vld [vmem:[#allocation8 + $0x68] ss:$16 sps:$4 sm:$0xff]  }
 0x36f   :  { %6588 = vmatpush1.bf16.msra.mxu0 %v9264_v53 }
 0x370   :  { %6589 = vmatprep.subr.bf16.mxu0 %v9269_v18 }
 0x371   :  { %6629 = vmatpush1.bf16.msra.mxu1 %v9360_v56  ;;  %v9309_v56 = vld [vmem:[#allocation8 + $0x48] ss:$16 sps:$4 sm:$0xff]  }
 0x372   :  { %6630 = vmatprep.subr.bf16.mxu1 %v9365_v52  ;;  %v9312_v52 = vld [vmem:[#allocation8 + $0x28] ss:$16 sps:$4 sm:$0xff]  }
 0x373   :  { %6590 = vmatpush1.bf16.msra.mxu0 %v9267_v38  ;;  %v9387_v38 = vld [vmem:[#allocation8 + $0x300] ss:$16 sps:$4 sm:$0xff]  }
 0x374   :  { %6591 = vmatprep.subr.bf16.mxu0 %v9272_v37  ;;  %v9392_v37 = vld [vmem:[#allocation8 + $0x2ec] ss:$16 sps:$4 sm:$0xff]  }
 0x375   :  { %6631 = vmatpush1.bf16.msra.mxu1 %v9363_v42  ;;  %v9315_v42 = vld [vmem:[#allocation8 + $0x8] ss:$16 sps:$4 sm:$0xff]  }
 0x376   :  { %6632 = vmatprep.subr.bf16.mxu1 %v9368_v60  ;;  %v9318_v60 = vld [vmem:[#allocation8 + $0x1e8] ss:$16 sps:$4 sm:$0xff]  }
 0x377   :  { %6592 = vmatpush2.bf16.msra.mxu0 %v9270_v41  ;;  %v9311_v41 = vld [vmem:[#allocation8 + $0x4c] ss:$16 sps:$4 sm:$0xff]  }
 0x378   :  { %6593 = vmatprep.subr.bf16.mxu0 %v9275_v49  ;;  %v9314_v49 = vld [vmem:[#allocation8 + $0x2c] ss:$16 sps:$4 sm:$0xff]  }
 0x379   :  { %6633 = vmatpush2.bf16.msra.mxu1 %v9366_v11  ;;  %v9321_v11 = vld [vmem:[#allocation8 + $0x1c8] ss:$16 sps:$4 sm:$0xff]  }
 0x37a   :  { %6634 = vmatprep.subr.bf16.mxu1 %v9371_v63  ;;  %v9324_v63 = vld [vmem:[#allocation8 + $0x1a8] ss:$16 sps:$4 sm:$0xff]  }
 0x37b   :  { %6594 = vmatpush2.bf16.msra.mxu0 %v9273_v59  ;;  %v9317_v59 = vld [vmem:[#allocation8 + $0xc] ss:$16 sps:$4 sm:$0xff]  }
 0x37c   :  { %6595 = vmatprep.subr.bf16.mxu0 %v9278_v43  ;;  %v9320_v43 = vld [vmem:[#allocation8 + $0x1ec] ss:$16 sps:$4 sm:$0xff]  }
 0x37d   :  { %6635 = vmatpush2.bf16.msra.mxu1 %v9369_v2  ;;  %v9327_v2 = vld [vmem:[#allocation8 + $0x188] ss:$16 sps:$4 sm:$0xff]  }
 0x37e   :  { %6636 = vmatprep.subr.bf16.mxu1 %v9374_v50  ;;  %v9330_v50 = vld [vmem:[#allocation8 + $0x168] ss:$16 sps:$4 sm:$0xff]  }
 0x37f   :  { %6596 = vmatpush2.bf16.msra.mxu0 %v9276_v62  ;;  %v9323_v62 = vld [vmem:[#allocation8 + $0x1cc] ss:$16 sps:$4 sm:$0xff]  }
 0x380   :  { %6597 = vmatprep.subr.bf16.mxu0 %v9281_v12  ;;  %v9326_v12 = vld [vmem:[#allocation8 + $0x1ac] ss:$16 sps:$4 sm:$0xff]  }
 0x381   :  { %6637 = vmatpush2.bf16.msra.mxu1 %v9372_v32  ;;  %v9333_v32 = vld [vmem:[#allocation8 + $0x148] ss:$16 sps:$4 sm:$0xff]  }
 0x382   :  { %6638 = vmatprep.subr.bf16.mxu1 %v9377_v6  ;;  %v9336_v6 = vld [vmem:[#allocation8 + $0x128] ss:$16 sps:$4 sm:$0xff]  }
 0x383   :  { %6598 = vmatpush2.bf16.msra.mxu0 %v9279_v1  ;;  %v9329_v1 = vld [vmem:[#allocation8 + $0x18c] ss:$16 sps:$4 sm:$0xff]  }
 0x384   :  { %6599 = vmatprep.subr.bf16.mxu0 %v9284_v44  ;;  %v9332_v44 = vld [vmem:[#allocation8 + $0x16c] ss:$16 sps:$4 sm:$0xff]  }
 0x385   :  { %6639 = vmatpush2.bf16.msra.mxu1 %v9375_v14  ;;  %v9339_v14 = vld [vmem:[#allocation8 + $0x108] ss:$16 sps:$4 sm:$0xff]  }
 0x386   :  { %6640 = vmatprep.subr.bf16.mxu1 %v9380_v23 }
 0x387   :  { %6600 = vmatpush2.bf16.msra.mxu0 %v9282_v3  ;;  %v9335_v3 = vld [vmem:[#allocation8 + $0x14c] ss:$16 sps:$4 sm:$0xff]  }
 0x388   :  { %6601 = vmatprep.subr.bf16.mxu0 %v9287_v22  ;;  %v9338_v22 = vld [vmem:[#allocation8 + $0x12c] ss:$16 sps:$4 sm:$0xff]  }
 0x389   :  { %6641 = vmatpush2.bf16.msra.mxu1 %v9378_v27 }
 0x38a   :  { %6642 = vmatprep.subr.bf16.mxu1 %v9383_v30 }
 0x38b   :  { %6602 = vmatpush2.bf16.msra.mxu0 %v9285_v13  ;;  %v9341_v13 = vld [vmem:[#allocation8 + $0x10c] ss:$16 sps:$4 sm:$0xff]  }
 0x38c   :  { %6603 = vmatprep.subr.bf16.mxu0 %v9290_v26 }
 0x38d   :  { %6643 = vmatpush2.bf16.msra.mxu1 %v9381_v16 }
 0x38e   :  { %6644 = vmatprep.subr.bf16.mxu1 %v9386_v29 }
 0x38f   :  { %6604 = vmatpush2.bf16.msra.mxu0 %v9288_v24 }
 0x390   :  { %6605 = vmatprep.subr.bf16.mxu0 %v9293_v28 }
 0x391   :  { %6645 = vmatpush2.bf16.msra.mxu1 %v9384_v47 }
 0x393   :  { %6606 = vmatpush2.bf16.msra.mxu0 %v9291_v15 }
 0x394   :  { %6657 = vmatprep.subr.bf16.mxu0 %v9296_v21 }
 0x396   :  { %v5565_v39 = vpop.f32.mrf.mxu0  ;;  %6608 = vmatmul.mubr.bf16.vlgmr.msra.gmra.mxu0 %v9879_v35 }
 0x397   :  { %v5606_v31 = vpop.f32.mrf.mxu1  ;;  %v5566_v45 = vadd.f32 %v5565_v39, %v9873_v25  ;;  %6658 = vmatpush1.bf16.msra.mxu0 %v9294_v34  ;;  %6689 = vmatprep.mubr.bf16.mxu0 %v9867_v19  ;;  %v9300_v25 = vld [vmem:[#allocation8 + $0xa8] ss:$16 sps:$4 sm:$0xff]   ;;  %v9389_v19 = vld [vmem:[#allocation8 + $0x304] ss:$16 sps:$4 sm:$0xff]  }
 0x398   :  { %v5567_v7 = vpop.f32.mrf.mxu0  ;;  %6659 = vmatprep.subr.bf16.mxu0 %v9299_v36  ;;  %6646 = vmatprep.subr.bf16.mxu1 %v9389_v19  ;;  %v9440_v19 = vld [vmem:[#allocation11 + $0x70] sm:$0xff]  }
 0x399   :  { %v5608_v10 = vpop.f32.mrf.mxu1  ;;  %v9884_v8 = vadd.f32 %v5606_v31, %v5566_v45  ;;  %v5568_v9 = vadd.f32 %v5567_v7, %v9876_v20  ;;  %6647 = vmatpush2.bf16.msra.mxu1 %v9387_v38  ;;  %v9308_v20 = vld [vmem:[#allocation8 + $0x6c] ss:$16 sps:$4 sm:$0xff]  }
 0x39a   :  { %v5569_v33 = vpop.f32.mrf.mxu0  ;;  %6698 = vmatprep.subr.bf16.mxu1 %v9392_v37  ;;  %v9395_v38 = vld [vmem:[#allocation8 + $0x2cc] ss:$16 sps:$4 sm:$0xff]  }
 0x39b   :  { %v5610_v51 = vpop.f32.mrf.mxu1  ;;  %v9887_v53 = vadd.f32 %v5608_v10, %v5568_v9  ;;  %6660 = vmatpush1.bf16.msra.mxu0 %v9297_v58  ;;  %v9442_v37 = vld [vmem:[#allocation11 + $0x68] sm:$0xff]  }
 0x39c   :  { %v5570_v17 = vpop.f32.mrf.mxu0  ;;  %6661 = vmatprep.subr.bf16.mxu0 %v9302_v46  ;;  %v9438_v51 = vld [vmem:[#allocation11 + $0x78] sm:$0xff]  }
 0x39d   :  { %v5611_v18 = vpop.f32.mrf.mxu1 }
 0x39e   :  { %v9390_v18 = vld [vmem:[#allocation8 + $0x2e8] ss:$16 sps:$4 sm:$0xff]  }
 0x39f   :  { %6662 = vmatpush1.bf16.msra.mxu0 %v9300_v25  ;;  %v9439_v25 = vld [vmem:[#allocation11 + $0x38] sm:$0xff]  }
 0x3a0   :  { %6663 = vmatprep.subr.bf16.mxu0 %v9305_v54 }
 0x3a3   :  { %6664 = vmatpush1.bf16.msra.mxu0 %v9303_v55  ;;  %v9441_v55 = vld [vmem:[#allocation11 + $0x30] sm:$0xff]  }
 0x3a4   :  { %6665 = vmatprep.subr.bf16.mxu0 %v9308_v20  ;;  %v9393_v20 = vld [vmem:[#allocation8 + $0x2c8] ss:$16 sps:$4 sm:$0xff]  }
 0x3a7   :  { %6666 = vmatpush1.bf16.msra.mxu0 %v9306_v40  ;;  %v9398_v40 = vld [vmem:[#allocation8 + $0x2ac] ss:$16 sps:$4 sm:$0xff]  }
 0x3a8   :  { %6667 = vmatprep.subr.bf16.mxu0 %v9311_v41  ;;  %v9443_v41 = vld [vmem:[#allocation11 + $0x28] sm:$0xff]  }
 0x3ab   :  { %6668 = vmatpush1.bf16.msra.mxu0 %v9309_v56  ;;  %v9444_v56 = vld [vmem:[#allocation11 + $0x60] sm:$0xff]  }
 0x3ac   :  { %6669 = vmatprep.subr.bf16.mxu0 %v9314_v49  ;;  %v9396_v49 = vld [vmem:[#allocation8 + $0x2a8] ss:$16 sps:$4 sm:$0xff]  }
 0x3af   :  { %6670 = vmatpush1.bf16.msra.mxu0 %v9312_v52  ;;  %v9401_v52 = vld [vmem:[#allocation8 + $0x28c] ss:$16 sps:$4 sm:$0xff]  }
 0x3b0   :  { %6671 = vmatprep.subr.bf16.mxu0 %v9317_v59  ;;  %v9445_v59 = vld [vmem:[#allocation11 + $0x20] sm:$0xff]  }
 0x3b3   :  { %6672 = vmatpush1.bf16.msra.mxu0 %v9315_v42  ;;  %v9446_v42 = vld [vmem:[#allocation11 + $0x58] sm:$0xff]  }
 0x3b4   :  { %6673 = vmatprep.subr.bf16.mxu0 %v9320_v43  ;;  %v9399_v43 = vld [vmem:[#allocation8 + $0x288] ss:$16 sps:$4 sm:$0xff]  }
 0x3b7   :  { %6674 = vmatpush2.bf16.msra.mxu0 %v9318_v60  ;;  %v9404_v60 = vld [vmem:[#allocation8 + $0x26c] ss:$16 sps:$4 sm:$0xff]  }
 0x3b8   :  { %6675 = vmatprep.subr.bf16.mxu0 %v9323_v62  ;;  %v9447_v62 = vld [vmem:[#allocation11 + $0x18] sm:$0xff]  }
 0x3bb   :  { %6676 = vmatpush2.bf16.msra.mxu0 %v9321_v11  ;;  %v9448_v11 = vld [vmem:[#allocation11 + $0x50] sm:$0xff]  }
 0x3bc   :  { %6677 = vmatprep.subr.bf16.mxu0 %v9326_v12  ;;  %v9402_v12 = vld [vmem:[#allocation8 + $0x268] ss:$16 sps:$4 sm:$0xff]  }
 0x3bf   :  { %6678 = vmatpush2.bf16.msra.mxu0 %v9324_v63  ;;  %v9407_v63 = vld [vmem:[#allocation8 + $0x24c] ss:$16 sps:$4 sm:$0xff]  }
 0x3c0   :  { %6679 = vmatprep.subr.bf16.mxu0 %v9329_v1  ;;  %v9449_v1 = vld [vmem:[#allocation11 + $0x10] sm:$0xff]  }
 0x3c3   :  { %6680 = vmatpush2.bf16.msra.mxu0 %v9327_v2  ;;  %v9405_v2 = vld [vmem:[#allocation8 + $0x248] ss:$16 sps:$4 sm:$0xff]  }
 0x3c4   :  { %6681 = vmatprep.subr.bf16.mxu0 %v9332_v44  ;;  %v9410_v44 = vld [vmem:[#allocation8 + $0x22c] ss:$16 sps:$4 sm:$0xff]  }
 0x3c7   :  { %6682 = vmatpush2.bf16.msra.mxu0 %v9330_v50  ;;  %v9408_v50 = vld [vmem:[#allocation8 + $0x228] ss:$16 sps:$4 sm:$0xff]  }
 0x3c8   :  { %6683 = vmatprep.subr.bf16.mxu0 %v9335_v3  ;;  %v9413_v3 = vld [vmem:[#allocation8 + $0x20c] ss:$16 sps:$4 sm:$0xff]  }
 0x3cb   :  { %6684 = vmatpush2.bf16.msra.mxu0 %v9333_v32  ;;  %v9411_v32 = vld [vmem:[#allocation8 + $0x208] ss:$16 sps:$4 sm:$0xff]  }
 0x3cc   :  { %6685 = vmatprep.subr.bf16.mxu0 %v9338_v22  ;;  %v9416_v22 = vld [vmem:[#allocation8 + $0x3ec] ss:$16 sps:$4 sm:$0xff]  }
 0x3cf   :  { %6686 = vmatpush2.bf16.msra.mxu0 %v9336_v6  ;;  %v9414_v6 = vld [vmem:[#allocation8 + $0x3e8] ss:$16 sps:$4 sm:$0xff]  }
 0x3d0   :  { %6687 = vmatprep.subr.bf16.mxu0 %v9341_v13  ;;  %v9419_v13 = vld [vmem:[#allocation8 + $0x3cc] ss:$16 sps:$4 sm:$0xff]  }
 0x3d3   :  { %6688 = vmatpush2.bf16.msra.mxu0 %v9339_v14  ;;  %v9417_v14 = vld [vmem:[#allocation8 + $0x3c8] ss:$16 sps:$4 sm:$0xff]  }
 0x3d4   :  { %8038 = vmatprep.subr.bf16.mxu0 %v9438_v51  ;;  %v9459_v51 = vld [vmem:[#allocation11 + $0xa8] sm:$0xff]  }
 0x3d6   :  { %v5647_v26 = vpop.f32.mrf.mxu0  ;;  %6690 = vmatmul.mubr.bf16.vlgmr.msra.gmra.mxu0 %v9879_v35 }
 0x3d7   :  { %v5688_v23 = vpop.f32.mrf.mxu1  ;;  %v5648_v24 = vadd.f32 %v5647_v26, %v9884_v8  ;;  %8039 = vmatpush3.bf16.msra.mxu0 %v9439_v25  ;;  %v9422_v26 = vld [vmem:[#allocation8 + $0x3ac] ss:$16 sps:$4 sm:$0xff]   ;;  %v9460_v25 = vld [vmem:[#allocation11 + $0xe0] sm:$0xff]  }
 0x3d8   :  { %v5649_v27 = vpop.f32.mrf.mxu0  ;;  %8040 = vmatprep.subr.bf16.mxu0 %v9440_v19  ;;  %v9461_v19 = vld [vmem:[#allocation11 + $0xa0] sm:$0xff]  }
 0x3d9   :  { %v5690_v28 = vpop.f32.mrf.mxu1  ;;  %v5689_v30 = vadd.f32 %v5688_v23, %v5648_v24  ;;  %v5650_v34 = vadd.f32 %v5649_v27, %v9887_v53  ;;  %v9420_v23 = vld [vmem:[#allocation8 + $0x3a8] ss:$16 sps:$4 sm:$0xff]   ;;  %v9425_v24 = vld [vmem:[#allocation8 + $0x38c] ss:$16 sps:$4 sm:$0xff]  }
 0x3da   :  { %v5651_v15 = vpop.f32.mrf.mxu0  ;;  %v9423_v27 = vld [vmem:[#allocation8 + $0x388] ss:$16 sps:$4 sm:$0xff]  }
 0x3db   :  { %v5692_v16 = vpop.f32.mrf.mxu1  ;;  %v5691_v31 = vadd.f32 %v5690_v28, %v5650_v34  ;;  %8041 = vmatpush3.bf16.msra.mxu0 %v9441_v55  ;;  %v9428_v28 = vld [vmem:[#allocation8 + $0x36c] ss:$16 sps:$4 sm:$0xff]   ;;  %v9432_v34 = vld [vmem:[#allocation8 + $0x328] ss:$16 sps:$4 sm:$0xff]  }
 0x3dc   :  { %v5652_v61 = vpop.f32.mrf.mxu0  ;;  %8042 = vmatprep.subr.bf16.mxu0 %v9442_v37  ;;  %v9431_v15 = vld [vmem:[#allocation8 + $0x34c] ss:$16 sps:$4 sm:$0xff]   ;;  %v9429_v16 = vld [vmem:[#allocation8 + $0x348] ss:$16 sps:$4 sm:$0xff]  }
 0x3dd   :  { %v5693_v21 = vpop.f32.mrf.mxu1  ;;  %v9434_v61 = vld [vmem:[#allocation8 + $0x32c] ss:$16 sps:$4 sm:$0xff]  }
 0x3df   :  { %8043 = vmatpush3.bf16.msra.mxu0 %v9443_v41  ;;  %v9467_v41 = vld [vmem:[#allocation11 + $0x88] sm:$0xff]  }
 0x3e0   :  { %8044 = vmatprep.subr.bf16.mxu0 %v9444_v56  ;;  %v9468_v56 = vld [vmem:[#allocation11 + $0xc0] sm:$0xff]  }
 0x3e3   :  { %8045 = vmatpush3.bf16.msra.mxu0 %v9445_v59 }
 0x3e4   :  { %8046 = vmatprep.subr.bf16.mxu0 %v9446_v42 }
 0x3e7   :  { %8047 = vmatpush3.bf16.msra.mxu0 %v9447_v62 }
 0x3e8   :  { %8048 = vmatprep.subr.bf16.mxu0 %v9448_v11 }
 0x3eb   :  { %8049 = vmatpush3.bf16.msra.mxu0 %v9449_v1 }
 0x416   :  { %v5729_v36 = vpop.f32.mrf.mxu0 }
 0x417   :  { %v5770_v39 = vpop.f32.mrf.mxu1  ;;  %v5730_v45 = vadd.f32 %v5729_v36, %v5689_v30  ;;  %v9426_v30 = vld [vmem:[#allocation8 + $0x368] ss:$16 sps:$4 sm:$0xff]  }
 0x418   :  { %v5731_v58 = vpop.f32.mrf.mxu0 }
 0x419   :  { %v5772_v29 = vpop.f32.mrf.mxu1  ;;  %v5771_v7 = vadd.f32 %v5770_v39, %v5730_v45  ;;  %v5732_v10 = vadd.f32 %v5731_v58, %v5691_v31  ;;  %v9437_v39 = vld [vmem:[#allocation8 + $0x30c] ss:$16 sps:$4 sm:$0xff]   ;;  %v9435_v45 = vld [vmem:[#allocation8 + $0x308] ss:$16 sps:$4 sm:$0xff]  }
 0x41a   :  { %v5733_v35 = vpop.f32.mrf.mxu0 }
 0x41b   :  { %v5774_v46 = vpop.f32.mrf.mxu1  ;;  %v5773_v47 = vadd.f32 %v5772_v29, %v5732_v10  ;;  %v5779_v8 = vmax.f32 %v5771_v7, 0.0  ;;  %v9450_v29 = vld [vmem:[#allocation11 + $0x48] sm:$0xff]   ;;  %v9452_v10 = vld [vmem:[#allocation11 + $0x40] sm:$0xff]  }
 0x41c   :  { %v5734_v9 = vpop.f32.mrf.mxu0  ;;  %v9451_v7 = vld [vmem:[#allocation11 + $0x8] sm:$0xff]   ;;  %8050 = vmatprep.subr.bf16.mxu0 %v9450_v29  ;;  %v9453_v35 = vld [vmem:[#allocation11] sm:$0xff]   ;;  %v9454_v46 = vld [vmem:[#allocation11 + $0xf8] sm:$0xff]  }
 0x41d   :  { %v5775_v33 = vpop.f32.mrf.mxu1  ;;  %v5780_v17 = vmax.f32 %v5773_v47, 0.0  ;;  %v9892_v54 = vpack.c.bf16 %v5779_v8, %v5779_v8  ;;  %8051 = vmatpush3.bf16.msra.mxu0 %v9451_v7  ;;  %v9455_v47 = vld [vmem:[#allocation11 + $0xb8] sm:$0xff]   ;;  %v9456_v8 = vld [vmem:[#allocation11 + $0xf0] sm:$0xff]  }
 0x41e   :  { %8052 = vmatprep.subr.bf16.mxu0 %v9452_v10  ;;  %v9457_v9 = vld [vmem:[#allocation11 + $0xb0] sm:$0xff]   ;;  %v9458_v33 = vld [vmem:[#allocation11 + $0xe8] sm:$0xff]  }
 0x41f   :  { %v5784_v53 = vpack.c.bf16 %v5780_v17, %v5780_v17  ;;  %v9462_v17 = vld [vmem:[#allocation11 + $0xd8] sm:$0xff]  }
 0x421   :  { %6648 = vmatprep.mubr.bf16.mxu1 %v5784_v53  ;;  %8053 = vmatpush3.bf16.msra.mxu0 %v9453_v35 }
 0x422   :  { %6649 = vmatmul.mubr.bf16.vlgmr.msra.gmra.mxu1 %v9892_v54 }
 0x423   :  { %6699 = vmatpush1.bf16.msra.mxu1 %v9390_v18  ;;  %6730 = vmatprep.mubr.bf16.mxu1 %v5784_v53  ;;  %v9463_v53 = vld [vmem:[#allocation11 + $0x98] sm:$0xff]   ;;  %v9464_v18 = vld [vmem:[#allocation11 + $0xd0] sm:$0xff]  }
 0x424   :  { %6700 = vmatprep.subr.bf16.mxu1 %v9395_v38 }
 0x427   :  { %6701 = vmatpush1.bf16.msra.mxu1 %v9393_v20 }
 0x428   :  { %6702 = vmatprep.subr.bf16.mxu1 %v9398_v40  ;;  %v9466_v40 = vld [vmem:[#allocation11 + $0xc8] sm:$0xff]  }
 0x42b   :  { %6703 = vmatpush1.bf16.msra.mxu1 %v9396_v49  ;;  %v9469_v49 = vld [vmem:[#allocation11 + $0x80] sm:$0xff]  }
 0x42c   :  { %6704 = vmatprep.subr.bf16.mxu1 %v9401_v52  ;;  %v5913_v52 = vld [vmem:[#allocation10] sm:$0xf] }
 0x42d   :  { %v5918_v59 = vrot.slane %v5913_v52, %v935_v0  ;;  %v5922_v42 = vrot.slane %v5913_v52, %v939_v5  ;;  %v5926_v0 = vrot.slane %v5913_v52, %v943_v48  ;;  %v5930_v5 = vrot.slane %v5913_v52, %v947_v4  ;;  %v8005_v4 = vld [vmem:[#allocation13] ss:$0 sm:$0xff] }
 0x42f   :  { %6705 = vmatpush1.bf16.msra.mxu1 %v9399_v43 }
 0x430   :  { %6706 = vmatprep.subr.bf16.mxu1 %v9404_v60 }
 0x433   :  { %6707 = vmatpush1.bf16.msra.mxu1 %v9402_v12 }
 0x434   :  { %6708 = vmatprep.subr.bf16.mxu1 %v9407_v63 }
 0x437   :  { %6709 = vmatpush1.bf16.msra.mxu1 %v9405_v2 }
 0x438   :  { %6710 = vmatprep.subr.bf16.mxu1 %v9410_v44 }
 0x43b   :  { %6711 = vmatpush1.bf16.msra.mxu1 %v9408_v50 }
 0x43c   :  { %6712 = vmatprep.subr.bf16.mxu1 %v9413_v3 }
 0x43f   :  { %6713 = vmatpush1.bf16.msra.mxu1 %v9411_v32 }
 0x440   :  { %6714 = vmatprep.subr.bf16.mxu1 %v9416_v22 }
 0x443   :  { %6715 = vmatpush2.bf16.msra.mxu1 %v9414_v6 }
 0x444   :  { %6716 = vmatprep.subr.bf16.mxu1 %v9419_v13 }
 0x447   :  { %6717 = vmatpush2.bf16.msra.mxu1 %v9417_v14 }
 0x448   :  { %6718 = vmatprep.subr.bf16.mxu1 %v9422_v26 }
 0x44b   :  { %6719 = vmatpush2.bf16.msra.mxu1 %v9420_v23 }
 0x44c   :  { %6720 = vmatprep.subr.bf16.mxu1 %v9425_v24 }
 0x44f   :  { %6721 = vmatpush2.bf16.msra.mxu1 %v9423_v27 }
 0x450   :  { %6722 = vmatprep.subr.bf16.mxu1 %v9428_v28 }
 0x453   :  { %6723 = vmatpush2.bf16.msra.mxu1 %v9426_v30 }
 0x454   :  { %6724 = vmatprep.subr.bf16.mxu1 %v9431_v15 }
 0x456   :  { %v6609_v21 = vpop.f32.mrf.mxu0 }
 0x457   :  { %6725 = vmatpush2.bf16.msra.mxu1 %v9429_v16  ;;  %v6610_v43 = vadd.f32 %v6609_v21, %v5918_v59 }
 0x458   :  { %v6611_v36 = vpop.f32.mrf.mxu0  ;;  %6726 = vmatprep.subr.bf16.mxu1 %v9434_v61 }
 0x459   :  { %v6612_v62 = vadd.f32 %v6611_v36, %v5922_v42 }
 0x45a   :  { %v6613_v31 = vpop.f32.mrf.mxu0 }
 0x45b   :  { %6727 = vmatpush2.bf16.msra.mxu1 %v9432_v34 }
 0x45c   :  { %v6614_v58 = vpop.f32.mrf.mxu0  ;;  %6728 = vmatprep.subr.bf16.mxu1 %v9437_v39 }
 0x45f   :  { %6729 = vmatpush2.bf16.msra.mxu1 %v9435_v45 }
 0x460   :  { %8060 = vmatprep.subr.bf16.mxu1 %v9454_v46 }
 0x462   :  { %6731 = vmatmul.mubr.bf16.vlgmr.msra.gmra.mxu1 %v9892_v54  ;;  %v9465_v54 = vld [vmem:[#allocation11 + $0x90] sm:$0xff]  }
 0x463   :  { %8061 = vmatpush3.bf16.msra.mxu1 %v9455_v47 }
 0x464   :  { %8062 = vmatprep.subr.bf16.mxu1 %v9456_v8 }
 0x467   :  { %8063 = vmatpush3.bf16.msra.mxu1 %v9457_v9 }
 0x468   :  { %8064 = vmatprep.subr.bf16.mxu1 %v9458_v33 }
 0x46b   :  { %8065 = vmatpush3.bf16.msra.mxu1 %v9459_v51 }
 0x46c   :  { %8066 = vmatprep.subr.bf16.mxu1 %v9460_v25 }
 0x46f   :  { %8067 = vmatpush3.bf16.msra.mxu1 %v9461_v19 }
 0x470   :  { %8068 = vmatprep.subr.bf16.mxu1 %v9462_v17 }
 0x473   :  { %8069 = vmatpush3.bf16.msra.mxu1 %v9463_v53 }
 0x474   :  { %8070 = vmatprep.subr.bf16.mxu1 %v9464_v18 }
 0x477   :  { %8071 = vmatpush3.bf16.msra.mxu1 %v9465_v54 }
 0x478   :  { %8072 = vmatprep.subr.bf16.mxu1 %v9466_v40 }
 0x47b   :  { %8073 = vmatpush3.bf16.msra.mxu1 %v9467_v41 }
 0x47c   :  { %8074 = vmatprep.subr.bf16.mxu1 %v9468_v56 }
 0x47f   :  { %8075 = vmatpush3.bf16.msra.mxu1 %v9469_v49 }
 0x496   :  { %v6691_v38 = vpop.f32.mrf.mxu0 }
 0x497   :  { %v6692_v22 = vadd.f32 %v6691_v38, %v5926_v0 }
 0x498   :  { %v6693_v55 = vpop.f32.mrf.mxu0 }
 0x499   :  { %v6694_v13 = vadd.f32 %v6693_v55, %v5930_v5 }
 0x49a   :  { %v6695_v37 = vpop.f32.mrf.mxu0 }
 0x49c   :  { %v6696_v20 = vpop.f32.mrf.mxu0 }
 0x4e2   :  { %v6650_v60 = vpop.f32.mrf.mxu1 }
 0x4e3   :  { %v6651_v11 = vadd.f32 %v6650_v60, %v6610_v43 }
 0x4e4   :  { %v6652_v12 = vpop.f32.mrf.mxu1 }
 0x4e5   :  { %v6653_v63 = vadd.f32 %v6652_v12, %v6612_v62  ;;  %v6739_v1 = vmax.f32 %v6651_v11, 0.0 }
 0x4e6   :  { %v6654_v2 = vpop.f32.mrf.mxu1 }
 0x4e7   :  { %v6740_v44 = vmax.f32 %v6653_v63, 0.0  ;;  %v6743_v32 = vpack.c.bf16 %v6739_v1, %v6739_v1 }
 0x4e8   :  { %v6655_v50 = vpop.f32.mrf.mxu1 }
 0x4e9   :  { %v6744_v3 = vpack.c.bf16 %v6740_v44, %v6740_v44 }
 0x4eb   :  { %7042 = vmatprep.mubr.bf16.mxu0 %v6744_v3 }
 0x4ec   :  { %7043 = vmatmul.mubr.bf16.vlgmr.msra.gmra.mxu0 %v6743_v32 }
 0x522   :  { %v6732_v6 = vpop.f32.mrf.mxu1 }
 0x523   :  { %v6733_v14 = vadd.f32 %v6732_v6, %v6692_v22 }
 0x524   :  { %v6734_v26 = vpop.f32.mrf.mxu1 }
 0x525   :  { %v6735_v23 = vadd.f32 %v6734_v26, %v6694_v13  ;;  %v6741_v24 = vmax.f32 %v6733_v14, 0.0 }
 0x526   :  { %v6736_v27 = vpop.f32.mrf.mxu1 }
 0x527   :  { %v6742_v28 = vmax.f32 %v6735_v23, 0.0  ;;  %v6745_v16 = vpack.c.bf16 %v6741_v24, %v6741_v24 }
 0x528   :  { %v6737_v30 = vpop.f32.mrf.mxu1 }
 0x529   :  { %v6746_v15 = vpack.c.bf16 %v6742_v28, %v6742_v28 }
 0x52b   :  { %7082 = vmatprep.mubr.bf16.mxu1 %v6746_v15 }
 0x52c   :  { %7083 = vmatmul.mubr.bf16.vlgmr.msra.gmra.mxu1 %v6745_v16 }
 0x5ac   :  { %v8054_v61 = vpop.f32.mrf.mxu0 }
 0x5ae   :  { %v8055_v21 = vpop.f32.mrf.mxu0 }
 0x5af   :  { %v8056_v57 = vadd.f32 %v8055_v21, %v8054_v61 }
 0x5b0   :  { %v8057_v48 = vpop.f32.mrf.mxu0 }
 0x5b1   :  { %v7045_v31 = vadd.f32 %v8056_v57, %v8005_v4 }
 0x5b2   :  { %v8058_v34 = vpop.f32.mrf.mxu0 }
 0x5ec   :  { %v8076_v36 = vpop.f32.mrf.mxu1 }
 0x5ee   :  { %v8077_v39 = vpop.f32.mrf.mxu1 }
 0x5ef   :  { %v8078_v45 = vadd.f32 %v8077_v39, %v8076_v36 }
 0x5f0   :  { %v8079_v58 = vpop.f32.mrf.mxu1 }
 0x5f1   :  { %v7085_v29 = vadd.f32 %v8078_v45, %v7045_v31 }
 0x5f2   :  { %v8080_v7 = vpop.f32.mrf.mxu1 }
 0x5f3   :  { %7090 = vst [vmem:[#allocation14] sm:$0xff] %v7085_v29 }
 0x5f4   :  { %9622 = shalt.err (!%p9619_p11)
}
 0x5f5   :  { %7100 = dma.vmem_to_hbm [thread:$0]  %s7098_s6, 128, %s9914_s7, [#allocation4]  }
 0x5f6   :  { %9639 = dma.done.wait [#allocation4], 128  }
 0x5f7   :  { %9640 = vsyncadd [#allocation4], 4294967168 }
 0x5f8   :  { %7104 = vsyncpa [#allocation3], 1 }
 0x5f9   :  { %7105 = vsyncpa [#allocation6], 1 }
 0x5fa   :  { %7106 = vsyncpa [#allocation9], 1 }
 0x5fb   :  { %7107 = vsyncpa [#allocation12], 1 }
 0x5fc   :  { %7108 = vsyncpa [#allocation4], 1 }

</bundles_post_ra>
